<compile_context>
chip_gen: v6e
topology: v6e:2x2x1
jax: 0.10.0
libtpu: 0.0.40
codegen_flags: <defaults>
</compile_context>

<pallas_src>
import functools
import math

import numpy as np
import jax
import jax.numpy as jnp
from jax.experimental import pallas as pl
from jax.experimental.pallas import tpu as pltpu


# ---------------------------------------------------------------------------
# Elementwise helpers (built only from exp / div / where for safe lowering)
# ---------------------------------------------------------------------------
def _erf(x):
    """Abramowitz-Stegun 7.1.26 erf approximation, |err| < 1.5e-7 (far below
    the bf16 noise of the surrounding matmuls); exp runs on the EUP slot."""
    a1, a2, a3, a4, a5 = (0.254829592, -0.284496736, 1.421413741,
                          -1.453152027, 1.061405429)
    p = 0.3275911
    ax = jnp.abs(x)
    t = 1.0 / (1.0 + p * ax)
    poly = ((((a5 * t + a4) * t + a3) * t + a2) * t + a1) * t
    y = 1.0 - poly * jnp.exp(-ax * ax)
    return jnp.where(x >= 0.0, y, -y)


def _gelu(x):
    # exact (erf-based) GELU, matching torch.nn.GELU() default
    return 0.5 * x * (1.0 + _erf(x * (1.0 / math.sqrt(2.0))))


def _sigmoid(x):
    return 1.0 / (1.0 + jnp.exp(-x))


# ---------------------------------------------------------------------------
# Constant matrices (numpy at trace time from static shapes)
# ---------------------------------------------------------------------------
def _lin_interp_matrix(n_in, n_out):
    """1-D align_corners=True linear interpolation matrix, shape (n_out, n_in)."""
    if n_in == 1:
        return np.ones((n_out, 1), np.float64)
    src = np.arange(n_out, dtype=np.float64) * (n_in - 1) / (n_out - 1)
    i0 = np.clip(np.floor(src).astype(np.int64), 0, n_in - 1)
    i1 = np.clip(i0 + 1, 0, n_in - 1)
    t = src - i0
    m = np.zeros((n_out, n_in), np.float64)
    m[np.arange(n_out), i0] += 1.0 - t
    m[np.arange(n_out), i1] += t
    return m


def _upsample2x_matrix(h, w):
    """(H*W, h*w) matrix so flat_out = U @ flat_in (NHWC row-major flatten)."""
    return np.kron(_lin_interp_matrix(h, 2 * h), _lin_interp_matrix(w, 2 * w))


def _column_wrap_masks(H, W):
    """(Lpad, 2) bf16 masks over the flat zero-padded activation buffer
    (front/back pad of W+1 rows).  Column 0 zeroes source pixels in image
    column W-1 (used by dx==0 taps); column 1 zeroes image column 0 (dx==2)."""
    Lpad = H * W + 2 * (W + 1)
    q = np.arange(Lpad)
    m = np.stack([(q % W != 0), (q % W != 1)], axis=1).astype(np.float32)
    return m


# ---------------------------------------------------------------------------
# Fused Decoder_Head kernel (one grid step per batch element)
# ---------------------------------------------------------------------------
def _decoder_head_kernel(
        xlo_ref, en_ref, u_ref, mcol_ref,
        w_pre_ref, w_post_ref, post_b_ref,
        w_scpa_ref, sc_b_ref,
        w_ca1_ref, w_ca2_ref,
        w_proj_ref, pj_b_ref,
        o_ref, *, H, W):
    f32 = jnp.float32
    bf16 = jnp.bfloat16
    C = o_ref.shape[-1]
    HW = H * W
    P = W + 1                       # zero rows before / after the flat image

    def im2col_slab(x_bf):
        """x_bf: (HW, C) bf16 image, row-major (p = i*W + j).
        Returns the (HW, 9C) bf16 im2col slab of a 3x3 / pad=1 conv,
        tap order dy-major, dx-minor, channel-minor.  Row padding comes from
        the zero rows; column wrap is removed by the two pre-masked copies."""
        zeros = jnp.zeros((P, C), bf16)
        pad = jnp.concatenate([zeros, x_bf, zeros], axis=0)      # (HW+2P, C)
        pad_l = pad * mcol_ref[:, 0:1]     # for dx == 0 taps
        pad_r = pad * mcol_ref[:, 1:2]     # for dx == 2 taps
        srcs = (pad_l, pad, pad_r)
        taps = [srcs[dx][dy * W + dx: dy * W + dx + HW, :]
                for dy in range(3) for dx in range(3)]
        return jnp.concatenate(taps, axis=-1)                    # (HW, 9C)

    # --- bilinear x2 upsample (align_corners=True) as one constant matmul ---
    up = jnp.dot(u_ref[...], xlo_ref[0], preferred_element_type=f32)      # (HW, C)

    # --- pre_conv (1x1, no bias) on encoder feature + residual add ----------
    z = jnp.dot(en_ref[0], w_pre_ref[...], preferred_element_type=f32) + up

    # --- post_conv: 3x3 conv (BN scale folded into weights) + bias + ReLU ---
    slab = im2col_slab(z.astype(bf16))                                    # (HW, 9C)
    y = jnp.dot(slab, w_post_ref[...], preferred_element_type=f32)
    y = jnp.maximum(y + post_b_ref[...], 0.0)                             # (HW, C)
    y_bf = y.astype(bf16)

    # --- shortcut (1x1 ConvBN) + spatial attention (1x1 C->1): one matmul ---
    sp = jnp.dot(y_bf, w_scpa_ref[...], preferred_element_type=f32)       # (HW, C+1)
    sc = sp[:, :C] + sc_b_ref[...]
    pa = _sigmoid(_gelu(sp[:, C:C + 1]))                                  # (HW, 1)

    # --- channel attention: GAP (MXU matmul) -> 1x1 -> GELU -> 1x1 -> sigmoid
    ones_row = jnp.full((1, HW), 1.0 / HW, bf16)        # 1/HW exact in bf16
    pooled = jnp.dot(ones_row, y_bf, preferred_element_type=f32)          # (1, C)
    hid = _gelu(jnp.dot(pooled.astype(bf16), w_ca1_ref[...],
                        preferred_element_type=f32))                      # (1, Cr)
    ca = _sigmoid(jnp.dot(hid.astype(bf16), w_ca2_ref[...],
                          preferred_element_type=f32))                    # (1, C)

    att = ((pa + ca) * y).astype(bf16)                                    # pa*y + ca*y

    # --- proj: depthwise 3x3 + BN + pointwise 1x1, all folded into ONE matmul
    slab_a = im2col_slab(att)                                             # (HW, 9C)
    out = jnp.dot(slab_a, w_proj_ref[...], preferred_element_type=f32)
    out = out + pj_b_ref[...] + sc
    o_ref[0] = _gelu(out).astype(o_ref.dtype)


# ---------------------------------------------------------------------------
# Full forward pass (public wrapper: PyTorch-style NCHW in / NCHW out)
# ---------------------------------------------------------------------------
def decoder_head_forward(x_nchw, en_nchw, params):
    B, C, h, w_sp = x_nchw.shape
    Cin = en_nchw.shape[1]
    H, W = 2 * h, 2 * w_sp
    HW, hw = H * W, h * w_sp
    Lpad = HW + 2 * (W + 1)
    Cr = params["w_ca1"].shape[1]
    bf16 = jnp.bfloat16

    # Boundary NCHW -> row-major (pixel, channel) flattening, bf16 inputs.
    x_rows = jnp.transpose(x_nchw, (0, 2, 3, 1)).reshape(B, hw, C).astype(bf16)
    en_rows = jnp.transpose(en_nchw, (0, 2, 3, 1)).reshape(B, HW, Cin).astype(bf16)

    # Static constants: upsample map + column-wrap masks for tap extraction.
    U = jnp.asarray(_upsample2x_matrix(h, w_sp), dtype=bf16)              # (HW, hw)
    mcol = jnp.asarray(_column_wrap_masks(H, W), dtype=bf16)              # (Lpad, 2)

    # --- fold eval-mode BatchNorm scales/biases into the conv weights -------
    w_pre = params["w_pre"].astype(bf16)                                  # (Cin, C)
    w_post = (params["w_post"] * params["post_scale"]).astype(bf16)       # (9C, C)
    post_b = params["post_bias"]                                          # (1, C) f32
    w_sc = params["w_sc"] * params["sc_scale"]                            # (C, C)
    w_scpa = jnp.concatenate([w_sc, params["w_pa"]], axis=1).astype(bf16)  # (C, C+1)
    sc_b = params["sc_bias"]                                              # (1, C) f32
    w_ca1 = params["w_ca1"].astype(bf16)
    w_ca2 = params["w_ca2"].astype(bf16)
    # depthwise taps * BN scale, composed with the pointwise 1x1:
    # w_proj[k*C + cin, cout] = w_dw[k, cin] * pj_scale[cin] * w_pw[cin, cout]
    dw = params["w_dw"] * params["pj_scale"]                              # (9, C)
    w_proj = (dw[:, :, None] * params["w_pw"][None, :, :]
              ).reshape(9 * C, C).astype(bf16)                            # (9C, C)
    pj_b = params["pj_bias"] @ params["w_pw"]                             # (1, C) f32

    kernel = functools.partial(_decoder_head_kernel, H=H, W=W)

    out_rows = pl.pallas_call(
        kernel,
        out_shape=jax.ShapeDtypeStruct((B, HW, C), jnp.float32),
        grid=(B,),
        in_specs=[
            pl.BlockSpec((1, hw, C), lambda b: (b, 0, 0)),      # low-res x rows
            pl.BlockSpec((1, HW, Cin), lambda b: (b, 0, 0)),    # encoder rows
            pl.BlockSpec((HW, hw), lambda b: (0, 0)),           # upsample matrix
            pl.BlockSpec((Lpad, 2), lambda b: (0, 0)),          # column masks
            pl.BlockSpec((Cin, C), lambda b: (0, 0)),           # w_pre
            pl.BlockSpec((9 * C, C), lambda b: (0, 0)),         # w_post (folded)
            pl.BlockSpec((1, C), lambda b: (0, 0)),             # post BN bias
            pl.BlockSpec((C, C + 1), lambda b: (0, 0)),         # [w_sc | w_pa]
            pl.BlockSpec((1, C), lambda b: (0, 0)),             # sc BN bias
            pl.BlockSpec((C, Cr), lambda b: (0, 0)),            # w_ca1
            pl.BlockSpec((Cr, C), lambda b: (0, 0)),            # w_ca2
            pl.BlockSpec((9 * C, C), lambda b: (0, 0)),         # w_proj (folded)
            pl.BlockSpec((1, C), lambda b: (0, 0)),             # proj bias row
        ],
        out_specs=pl.BlockSpec((1, HW, C), lambda b: (b, 0, 0)),
        compiler_params=pltpu.CompilerParams(
            dimension_semantics=("parallel",),
            vmem_limit_bytes=32 * 1024 * 1024),
    )(x_rows, en_rows, U, mcol,
      w_pre, w_post, post_b,
      w_scpa, sc_b,
      w_ca1, w_ca2,
      w_proj, pj_b)

    return jnp.transpose(out_rows.reshape(B, H, W, C), (0, 3, 1, 2))      # NHWC -> NCHW


# ---------------------------------------------------------------------------
# Deterministic synthetic parameters (shapes follow Decoder_Head.__init__).
# NOTE: real PyTorch checkpoints store Conv2d weights as (Cout, Cin, kh, kw)
# (depthwise: (C, 1, kh, kw)); they must be permuted to these layouts
# (tap-major / channel-minor im2col rows, (Cin, Cout) for 1x1 convs).
# ---------------------------------------------------------------------------
def make_params(key, in_channels, decode_channels, chan_ratio):
    C = decode_channels
    Cr = max(1, C // chan_ratio)
    keys = jax.random.split(key, 11)

    def w(k, shape, fan_in):
        return jax.random.normal(k, shape, jnp.float32) / jnp.sqrt(float(fan_in))

    def bn(k, c):
        k1, k2, k3, k4 = jax.random.split(k, 4)
        gamma = 1.0 + 0.1 * jax.random.normal(k1, (c,), jnp.float32)
        beta = 0.1 * jax.random.normal(k2, (c,), jnp.float32)
        mean = 0.1 * jax.random.normal(k3, (c,), jnp.float32)
        var = jnp.abs(jax.random.normal(k4, (c,), jnp.float32)) + 0.5
        scale = gamma / jnp.sqrt(var + 1e-5)        # eval-mode BN folded
        bias = beta - mean * scale
        return scale.reshape(1, c), bias.reshape(1, c)

    p = {}
    p["w_pre"] = w(keys[0], (in_channels, C), in_channels)                 # 1x1 conv
    p["w_post"] = w(keys[1], (3, 3, C, C), 9 * C).reshape(9 * C, C)        # 3x3 conv
    p["post_scale"], p["post_bias"] = bn(keys[2], C)
    p["w_pa"] = w(keys[3], (C, 1), C)                                      # C -> 1
    p["w_ca1"] = w(keys[4], (C, Cr), C)                                    # C -> C/r
    p["w_ca2"] = w(keys[5], (Cr, C), Cr)                                   # C/r -> C
    p["w_sc"] = w(keys[6], (C, C), C)                                      # shortcut 1x1
    p["sc_scale"], p["sc_bias"] = bn(keys[7], C)
    p["w_dw"] = w(keys[8], (3, 3, C), 9).reshape(9, C)                     # depthwise 3x3
    p["pj_scale"], p["pj_bias"] = bn(keys[9], C)
    p["w_pw"] = w(keys[10], (C, C), C)                                     # pointwise 1x1
    return p


if __name__ == "__main__":
    B = 2
    in_channels = 32
    decode_channels = 32
    chan_ratio = 16
    h = w = 8            # low-res decoder feature spatial size
    H = W = 16           # encoder feature / output spatial size

    key = jax.random.PRNGKey(0)
    kx, ke, kp = jax.random.split(key, 3)
    x = jax.random.normal(kx, (B, decode_channels, h, w), jnp.float32)     # NCHW
    en = jax.random.normal(ke, (B, in_channels, H, W), jnp.float32)        # NCHW
    params = make_params(kp, in_channels, decode_channels, chan_ratio)

    fwd = jax.jit(functools.partial(decoder_head_forward, params=params))
    out = jax.block_until_ready(fwd(x, en))

    assert out.shape == (B, decode_channels, H, W), out.shape
    assert bool(jnp.all(jnp.isfinite(out)))
    print("KERNEL_OK")
</pallas_src>

<mosaic_0001>
module attributes {stable_mosaic.version = 11 : i64} {
  func.func @_decoder_head_kernel(%arg0: i32, %arg1: memref<1x64x32xbf16, #tpu.memory_space<vmem>>, %arg2: memref<1x256x32xbf16, #tpu.memory_space<vmem>>, %arg3: memref<256x64xbf16, #tpu.memory_space<vmem>>, %arg4: memref<290x2xbf16, #tpu.memory_space<vmem>>, %arg5: memref<32x32xbf16, #tpu.memory_space<vmem>>, %arg6: memref<288x32xbf16, #tpu.memory_space<vmem>>, %arg7: memref<1x32xf32, #tpu.memory_space<vmem>>, %arg8: memref<32x33xbf16, #tpu.memory_space<vmem>>, %arg9: memref<1x32xf32, #tpu.memory_space<vmem>>, %arg10: memref<32x2xbf16, #tpu.memory_space<vmem>>, %arg11: memref<2x32xbf16, #tpu.memory_space<vmem>>, %arg12: memref<288x32xbf16, #tpu.memory_space<vmem>>, %arg13: memref<1x32xf32, #tpu.memory_space<vmem>>, %arg14: memref<1x256x32xf32, #tpu.memory_space<vmem>>) attributes {dimension_semantics = [#tpu.dimension_semantics<parallel>], iteration_bounds = array<i64: 2>, scalar_prefetch = 0 : i64, scratch_operands = 0 : i64, tpu.core_type = #tpu.core_type<tc>, window_params = [{transform_indices = @transform_0, window_bounds = array<i64: 1, 64, 32>}, {transform_indices = @transform_1, window_bounds = array<i64: 1, 256, 32>}, {pipeline_mode = #tpu.pipeline_mode<synchronous>, transform_indices = @transform_2, window_bounds = array<i64: 256, 64>}, {pipeline_mode = #tpu.pipeline_mode<synchronous>, transform_indices = @transform_3, window_bounds = array<i64: 290, 2>}, {pipeline_mode = #tpu.pipeline_mode<synchronous>, transform_indices = @transform_4, window_bounds = array<i64: 32, 32>}, {pipeline_mode = #tpu.pipeline_mode<synchronous>, transform_indices = @transform_5, window_bounds = array<i64: 288, 32>}, {pipeline_mode = #tpu.pipeline_mode<synchronous>, transform_indices = @transform_6, window_bounds = array<i64: 1, 32>}, {pipeline_mode = #tpu.pipeline_mode<synchronous>, transform_indices = @transform_7, window_bounds = array<i64: 32, 33>}, {pipeline_mode = #tpu.pipeline_mode<synchronous>, transform_indices = @transform_8, window_bounds = array<i64: 1, 32>}, {pipeline_mode = #tpu.pipeline_mode<synchronous>, transform_indices = @transform_9, window_bounds = array<i64: 32, 2>}, {pipeline_mode = #tpu.pipeline_mode<synchronous>, transform_indices = @transform_10, window_bounds = array<i64: 2, 32>}, {pipeline_mode = #tpu.pipeline_mode<synchronous>, transform_indices = @transform_11, window_bounds = array<i64: 288, 32>}, {pipeline_mode = #tpu.pipeline_mode<synchronous>, transform_indices = @transform_12, window_bounds = array<i64: 1, 32>}, {transform_indices = @transform_13, window_bounds = array<i64: 1, 256, 32>}]} {
    %c0 = arith.constant 0 : index
    %c0_0 = arith.constant 0 : index
    %0 = vector.load %arg3[%c0, %c0_0] : memref<256x64xbf16, #tpu.memory_space<vmem>>, vector<256x64xbf16>
    %c0_1 = arith.constant 0 : index
    %c0_2 = arith.constant 0 : index
    %c0_3 = arith.constant 0 : index
    %1 = vector.load %arg1[%c0_1, %c0_2, %c0_3] : memref<1x64x32xbf16, #tpu.memory_space<vmem>>, vector<1x64x32xbf16>
    %2 = vector.shape_cast %1 : vector<1x64x32xbf16> to vector<64x32xbf16>
    %cst = arith.constant dense<0.000000e+00> : vector<256x32xf32>
    %3 = tpu.matmul %0, %2, %cst {dimension_numbers = #tpu.dot_dimension_numbers<[1], [0], [0], [1], [0, 0, 1, 1], [], []>} : vector<256x64xbf16>, vector<64x32xbf16>, vector<256x32xf32> -> vector<256x32xf32>
    %c0_4 = arith.constant 0 : index
    %c0_5 = arith.constant 0 : index
    %c0_6 = arith.constant 0 : index
    %4 = vector.load %arg2[%c0_4, %c0_5, %c0_6] : memref<1x256x32xbf16, #tpu.memory_space<vmem>>, vector<1x256x32xbf16>
    %5 = vector.shape_cast %4 : vector<1x256x32xbf16> to vector<256x32xbf16>
    %c0_7 = arith.constant 0 : index
    %c0_8 = arith.constant 0 : index
    %6 = vector.load %arg5[%c0_7, %c0_8] : memref<32x32xbf16, #tpu.memory_space<vmem>>, vector<32x32xbf16>
    %cst_9 = arith.constant dense<0.000000e+00> : vector<256x32xf32>
    %7 = tpu.matmul %5, %6, %cst_9 {dimension_numbers = #tpu.dot_dimension_numbers<[1], [0], [0], [1], [0, 0, 1, 1], [], []>} : vector<256x32xbf16>, vector<32x32xbf16>, vector<256x32xf32> -> vector<256x32xf32>
    %8 = arith.addf %7, %3 : vector<256x32xf32>
    %9 = arith.truncf %8 : vector<256x32xf32> to vector<256x32xbf16>
    %cst_10 = arith.constant 0.000000e+00 : bf16
    %10 = vector.broadcast %cst_10 : bf16 to vector<17x32xbf16>
    %11 = tpu.concatenate %10, %9, %10 in 0 : vector<17x32xbf16>, vector<256x32xbf16>, vector<17x32xbf16> -> vector<290x32xbf16>
    %c0_11 = arith.constant 0 : index
    %c0_12 = arith.constant 0 : index
    %12 = vector.load %arg4[%c0_11, %c0_12] : memref<290x2xbf16, #tpu.memory_space<vmem>>, vector<290x1xbf16>
    %13 = vector.broadcast %12 : vector<290x1xbf16> to vector<290x32xbf16>
    %14 = arith.mulf %11, %13 : vector<290x32xbf16>
    %c0_13 = arith.constant 0 : index
    %c1 = arith.constant 1 : index
    %15 = vector.load %arg4[%c0_13, %c1] : memref<290x2xbf16, #tpu.memory_space<vmem>>, vector<290x1xbf16>
    %16 = vector.broadcast %15 : vector<290x1xbf16> to vector<290x32xbf16>
    %17 = arith.mulf %11, %16 : vector<290x32xbf16>
    %18 = vector.extract_strided_slice %14 {offsets = [0, 0], sizes = [256, 32], strides = [1, 1]} : vector<290x32xbf16> to vector<256x32xbf16>
    %19 = vector.extract_strided_slice %11 {offsets = [1, 0], sizes = [256, 32], strides = [1, 1]} : vector<290x32xbf16> to vector<256x32xbf16>
    %20 = vector.extract_strided_slice %17 {offsets = [2, 0], sizes = [256, 32], strides = [1, 1]} : vector<290x32xbf16> to vector<256x32xbf16>
    %21 = vector.extract_strided_slice %14 {offsets = [16, 0], sizes = [256, 32], strides = [1, 1]} : vector<290x32xbf16> to vector<256x32xbf16>
    %22 = vector.extract_strided_slice %11 {offsets = [17, 0], sizes = [256, 32], strides = [1, 1]} : vector<290x32xbf16> to vector<256x32xbf16>
    %23 = vector.extract_strided_slice %17 {offsets = [18, 0], sizes = [256, 32], strides = [1, 1]} : vector<290x32xbf16> to vector<256x32xbf16>
    %24 = vector.extract_strided_slice %14 {offsets = [32, 0], sizes = [256, 32], strides = [1, 1]} : vector<290x32xbf16> to vector<256x32xbf16>
    %25 = vector.extract_strided_slice %11 {offsets = [33, 0], sizes = [256, 32], strides = [1, 1]} : vector<290x32xbf16> to vector<256x32xbf16>
    %26 = vector.extract_strided_slice %17 {offsets = [34, 0], sizes = [256, 32], strides = [1, 1]} : vector<290x32xbf16> to vector<256x32xbf16>
    %27 = tpu.concatenate %18, %19, %20, %21, %22, %23, %24, %25, %26 in 1 : vector<256x32xbf16>, vector<256x32xbf16>, vector<256x32xbf16>, vector<256x32xbf16>, vector<256x32xbf16>, vector<256x32xbf16>, vector<256x32xbf16>, vector<256x32xbf16>, vector<256x32xbf16> -> vector<256x288xbf16>
    %c0_14 = arith.constant 0 : index
    %c0_15 = arith.constant 0 : index
    %28 = vector.load %arg6[%c0_14, %c0_15] : memref<288x32xbf16, #tpu.memory_space<vmem>>, vector<288x32xbf16>
    %cst_16 = arith.constant dense<0.000000e+00> : vector<256x32xf32>
    %29 = tpu.matmul %27, %28, %cst_16 {dimension_numbers = #tpu.dot_dimension_numbers<[1], [0], [0], [1], [0, 0, 1, 1], [], []>} : vector<256x288xbf16>, vector<288x32xbf16>, vector<256x32xf32> -> vector<256x32xf32>
    %c0_17 = arith.constant 0 : index
    %c0_18 = arith.constant 0 : index
    %30 = vector.load %arg7[%c0_17, %c0_18] : memref<1x32xf32, #tpu.memory_space<vmem>>, vector<1x32xf32>
    %31 = vector.broadcast %30 : vector<1x32xf32> to vector<256x32xf32>
    %32 = arith.addf %29, %31 : vector<256x32xf32>
    %cst_19 = arith.constant 0.000000e+00 : f32
    %33 = vector.broadcast %cst_19 : f32 to vector<256x32xf32>
    %34 = arith.maximumf %32, %33 : vector<256x32xf32>
    %35 = arith.truncf %34 : vector<256x32xf32> to vector<256x32xbf16>
    %c0_20 = arith.constant 0 : index
    %c0_21 = arith.constant 0 : index
    %36 = vector.load %arg8[%c0_20, %c0_21] : memref<32x33xbf16, #tpu.memory_space<vmem>>, vector<32x33xbf16>
    %cst_22 = arith.constant dense<0.000000e+00> : vector<256x33xf32>
    %37 = tpu.matmul %35, %36, %cst_22 {dimension_numbers = #tpu.dot_dimension_numbers<[1], [0], [0], [1], [0, 0, 1, 1], [], []>} : vector<256x32xbf16>, vector<32x33xbf16>, vector<256x33xf32> -> vector<256x33xf32>
    %38 = vector.extract_strided_slice %37 {offsets = [0, 0], sizes = [256, 32], strides = [1, 1]} : vector<256x33xf32> to vector<256x32xf32>
    %c0_23 = arith.constant 0 : index
    %c0_24 = arith.constant 0 : index
    %39 = vector.load %arg9[%c0_23, %c0_24] : memref<1x32xf32, #tpu.memory_space<vmem>>, vector<1x32xf32>
    %40 = vector.broadcast %39 : vector<1x32xf32> to vector<256x32xf32>
    %41 = arith.addf %38, %40 : vector<256x32xf32>
    %42 = vector.extract_strided_slice %37 {offsets = [0, 32], sizes = [256, 1], strides = [1, 1]} : vector<256x33xf32> to vector<256x1xf32>
    %cst_25 = arith.constant 5.000000e-01 : f32
    %43 = vector.broadcast %cst_25 : f32 to vector<256x1xf32>
    %44 = arith.mulf %43, %42 : vector<256x1xf32>
    %cst_26 = arith.constant 0.707106769 : f32
    %45 = vector.broadcast %cst_26 : f32 to vector<256x1xf32>
    %46 = arith.mulf %42, %45 : vector<256x1xf32>
    %47 = math.absf %46 : vector<256x1xf32>
    %cst_27 = arith.constant 0.327591091 : f32
    %48 = vector.broadcast %cst_27 : f32 to vector<256x1xf32>
    %49 = arith.mulf %48, %47 : vector<256x1xf32>
    %cst_28 = arith.constant 1.000000e+00 : f32
    %50 = vector.broadcast %cst_28 : f32 to vector<256x1xf32>
    %51 = arith.addf %50, %49 : vector<256x1xf32>
    %cst_29 = arith.constant 1.000000e+00 : f32
    %52 = vector.broadcast %cst_29 : f32 to vector<256x1xf32>
    %53 = arith.divf %52, %51 : vector<256x1xf32>
    %cst_30 = arith.constant 1.06140542 : f32
    %54 = vector.broadcast %cst_30 : f32 to vector<256x1xf32>
    %55 = arith.mulf %54, %53 : vector<256x1xf32>
    %cst_31 = arith.constant -1.45315206 : f32
    %56 = vector.broadcast %cst_31 : f32 to vector<256x1xf32>
    %57 = arith.addf %55, %56 : vector<256x1xf32>
    %58 = arith.mulf %57, %53 : vector<256x1xf32>
    %cst_32 = arith.constant 1.42141378 : f32
    %59 = vector.broadcast %cst_32 : f32 to vector<256x1xf32>
    %60 = arith.addf %58, %59 : vector<256x1xf32>
    %61 = arith.mulf %60, %53 : vector<256x1xf32>
    %cst_33 = arith.constant -0.284496725 : f32
    %62 = vector.broadcast %cst_33 : f32 to vector<256x1xf32>
    %63 = arith.addf %61, %62 : vector<256x1xf32>
    %64 = arith.mulf %63, %53 : vector<256x1xf32>
    %cst_34 = arith.constant 0.254829586 : f32
    %65 = vector.broadcast %cst_34 : f32 to vector<256x1xf32>
    %66 = arith.addf %64, %65 : vector<256x1xf32>
    %67 = arith.mulf %66, %53 : vector<256x1xf32>
    %cst_35 = arith.constant 0.000000e+00 : f32
    %68 = vector.broadcast %cst_35 : f32 to vector<256x1xf32>
    %69 = arith.subf %68, %47 : vector<256x1xf32>
    %70 = arith.mulf %69, %47 : vector<256x1xf32>
    %71 = math.exp %70 : vector<256x1xf32>
    %72 = arith.mulf %67, %71 : vector<256x1xf32>
    %cst_36 = arith.constant 1.000000e+00 : f32
    %73 = vector.broadcast %cst_36 : f32 to vector<256x1xf32>
    %74 = arith.subf %73, %72 : vector<256x1xf32>
    %cst_37 = arith.constant 0.000000e+00 : f32
    %75 = vector.broadcast %cst_37 : f32 to vector<256x1xf32>
    %76 = arith.cmpf oge, %46, %75 : vector<256x1xf32>
    %cst_38 = arith.constant 0.000000e+00 : f32
    %77 = vector.broadcast %cst_38 : f32 to vector<256x1xf32>
    %78 = arith.subf %77, %74 : vector<256x1xf32>
    %79 = arith.select %76, %74, %78 : vector<256x1xi1>, vector<256x1xf32>
    %cst_39 = arith.constant 1.000000e+00 : f32
    %80 = vector.broadcast %cst_39 : f32 to vector<256x1xf32>
    %81 = arith.addf %80, %79 : vector<256x1xf32>
    %82 = arith.mulf %44, %81 : vector<256x1xf32>
    %cst_40 = arith.constant 0.000000e+00 : f32
    %83 = vector.broadcast %cst_40 : f32 to vector<256x1xf32>
    %84 = arith.subf %83, %82 : vector<256x1xf32>
    %85 = math.exp %84 : vector<256x1xf32>
    %cst_41 = arith.constant 1.000000e+00 : f32
    %86 = vector.broadcast %cst_41 : f32 to vector<256x1xf32>
    %87 = arith.addf %86, %85 : vector<256x1xf32>
    %cst_42 = arith.constant 1.000000e+00 : f32
    %88 = vector.broadcast %cst_42 : f32 to vector<256x1xf32>
    %89 = arith.divf %88, %87 : vector<256x1xf32>
    %cst_43 = arith.constant 3.906250e-03 : bf16
    %90 = vector.broadcast %cst_43 : bf16 to vector<1x256xbf16>
    %cst_44 = arith.constant dense<0.000000e+00> : vector<1x32xf32>
    %91 = tpu.matmul %90, %35, %cst_44 {dimension_numbers = #tpu.dot_dimension_numbers<[1], [0], [0], [1], [0, 0, 1, 1], [], []>} : vector<1x256xbf16>, vector<256x32xbf16>, vector<1x32xf32> -> vector<1x32xf32>
    %92 = arith.truncf %91 : vector<1x32xf32> to vector<1x32xbf16>
    %c0_45 = arith.constant 0 : index
    %c0_46 = arith.constant 0 : index
    %93 = vector.load %arg10[%c0_45, %c0_46] : memref<32x2xbf16, #tpu.memory_space<vmem>>, vector<32x2xbf16>
    %cst_47 = arith.constant dense<0.000000e+00> : vector<1x2xf32>
    %94 = tpu.matmul %92, %93, %cst_47 {dimension_numbers = #tpu.dot_dimension_numbers<[1], [0], [0], [1], [0, 0, 1, 1], [], []>} : vector<1x32xbf16>, vector<32x2xbf16>, vector<1x2xf32> -> vector<1x2xf32>
    %cst_48 = arith.constant 5.000000e-01 : f32
    %95 = vector.broadcast %cst_48 : f32 to vector<1x2xf32>
    %96 = arith.mulf %95, %94 : vector<1x2xf32>
    %cst_49 = arith.constant 0.707106769 : f32
    %97 = vector.broadcast %cst_49 : f32 to vector<1x2xf32>
    %98 = arith.mulf %94, %97 : vector<1x2xf32>
    %99 = math.absf %98 : vector<1x2xf32>
    %cst_50 = arith.constant 0.327591091 : f32
    %100 = vector.broadcast %cst_50 : f32 to vector<1x2xf32>
    %101 = arith.mulf %100, %99 : vector<1x2xf32>
    %cst_51 = arith.constant 1.000000e+00 : f32
    %102 = vector.broadcast %cst_51 : f32 to vector<1x2xf32>
    %103 = arith.addf %102, %101 : vector<1x2xf32>
    %cst_52 = arith.constant 1.000000e+00 : f32
    %104 = vector.broadcast %cst_52 : f32 to vector<1x2xf32>
    %105 = arith.divf %104, %103 : vector<1x2xf32>
    %cst_53 = arith.constant 1.06140542 : f32
    %106 = vector.broadcast %cst_53 : f32 to vector<1x2xf32>
    %107 = arith.mulf %106, %105 : vector<1x2xf32>
    %cst_54 = arith.constant -1.45315206 : f32
    %108 = vector.broadcast %cst_54 : f32 to vector<1x2xf32>
    %109 = arith.addf %107, %108 : vector<1x2xf32>
    %110 = arith.mulf %109, %105 : vector<1x2xf32>
    %cst_55 = arith.constant 1.42141378 : f32
    %111 = vector.broadcast %cst_55 : f32 to vector<1x2xf32>
    %112 = arith.addf %110, %111 : vector<1x2xf32>
    %113 = arith.mulf %112, %105 : vector<1x2xf32>
    %cst_56 = arith.constant -0.284496725 : f32
    %114 = vector.broadcast %cst_56 : f32 to vector<1x2xf32>
    %115 = arith.addf %113, %114 : vector<1x2xf32>
    %116 = arith.mulf %115, %105 : vector<1x2xf32>
    %cst_57 = arith.constant 0.254829586 : f32
    %117 = vector.broadcast %cst_57 : f32 to vector<1x2xf32>
    %118 = arith.addf %116, %117 : vector<1x2xf32>
    %119 = arith.mulf %118, %105 : vector<1x2xf32>
    %cst_58 = arith.constant 0.000000e+00 : f32
    %120 = vector.broadcast %cst_58 : f32 to vector<1x2xf32>
    %121 = arith.subf %120, %99 : vector<1x2xf32>
    %122 = arith.mulf %121, %99 : vector<1x2xf32>
    %123 = math.exp %122 : vector<1x2xf32>
    %124 = arith.mulf %119, %123 : vector<1x2xf32>
    %cst_59 = arith.constant 1.000000e+00 : f32
    %125 = vector.broadcast %cst_59 : f32 to vector<1x2xf32>
    %126 = arith.subf %125, %124 : vector<1x2xf32>
    %cst_60 = arith.constant 0.000000e+00 : f32
    %127 = vector.broadcast %cst_60 : f32 to vector<1x2xf32>
    %128 = arith.cmpf oge, %98, %127 : vector<1x2xf32>
    %cst_61 = arith.constant 0.000000e+00 : f32
    %129 = vector.broadcast %cst_61 : f32 to vector<1x2xf32>
    %130 = arith.subf %129, %126 : vector<1x2xf32>
    %131 = arith.select %128, %126, %130 : vector<1x2xi1>, vector<1x2xf32>
    %cst_62 = arith.constant 1.000000e+00 : f32
    %132 = vector.broadcast %cst_62 : f32 to vector<1x2xf32>
    %133 = arith.addf %132, %131 : vector<1x2xf32>
    %134 = arith.mulf %96, %133 : vector<1x2xf32>
    %135 = arith.truncf %134 : vector<1x2xf32> to vector<1x2xbf16>
    %c0_63 = arith.constant 0 : index
    %c0_64 = arith.constant 0 : index
    %136 = vector.load %arg11[%c0_63, %c0_64] : memref<2x32xbf16, #tpu.memory_space<vmem>>, vector<2x32xbf16>
    %cst_65 = arith.constant dense<0.000000e+00> : vector<1x32xf32>
    %137 = tpu.matmul %135, %136, %cst_65 {dimension_numbers = #tpu.dot_dimension_numbers<[1], [0], [0], [1], [0, 0, 1, 1], [], []>} : vector<1x2xbf16>, vector<2x32xbf16>, vector<1x32xf32> -> vector<1x32xf32>
    %cst_66 = arith.constant 0.000000e+00 : f32
    %138 = vector.broadcast %cst_66 : f32 to vector<1x32xf32>
    %139 = arith.subf %138, %137 : vector<1x32xf32>
    %140 = math.exp %139 : vector<1x32xf32>
    %cst_67 = arith.constant 1.000000e+00 : f32
    %141 = vector.broadcast %cst_67 : f32 to vector<1x32xf32>
    %142 = arith.addf %141, %140 : vector<1x32xf32>
    %cst_68 = arith.constant 1.000000e+00 : f32
    %143 = vector.broadcast %cst_68 : f32 to vector<1x32xf32>
    %144 = arith.divf %143, %142 : vector<1x32xf32>
    %145 = vector.broadcast %89 : vector<256x1xf32> to vector<256x32xf32>
    %146 = vector.broadcast %144 : vector<1x32xf32> to vector<256x32xf32>
    %147 = arith.addf %145, %146 : vector<256x32xf32>
    %148 = arith.mulf %147, %34 : vector<256x32xf32>
    %149 = arith.truncf %148 : vector<256x32xf32> to vector<256x32xbf16>
    %cst_69 = arith.constant 0.000000e+00 : bf16
    %150 = vector.broadcast %cst_69 : bf16 to vector<17x32xbf16>
    %151 = tpu.concatenate %150, %149, %150 in 0 : vector<17x32xbf16>, vector<256x32xbf16>, vector<17x32xbf16> -> vector<290x32xbf16>
    %c0_70 = arith.constant 0 : index
    %c0_71 = arith.constant 0 : index
    %152 = vector.load %arg4[%c0_70, %c0_71] : memref<290x2xbf16, #tpu.memory_space<vmem>>, vector<290x1xbf16>
    %153 = vector.broadcast %152 : vector<290x1xbf16> to vector<290x32xbf16>
    %154 = arith.mulf %151, %153 : vector<290x32xbf16>
    %c0_72 = arith.constant 0 : index
    %c1_73 = arith.constant 1 : index
    %155 = vector.load %arg4[%c0_72, %c1_73] : memref<290x2xbf16, #tpu.memory_space<vmem>>, vector<290x1xbf16>
    %156 = vector.broadcast %155 : vector<290x1xbf16> to vector<290x32xbf16>
    %157 = arith.mulf %151, %156 : vector<290x32xbf16>
    %158 = vector.extract_strided_slice %154 {offsets = [0, 0], sizes = [256, 32], strides = [1, 1]} : vector<290x32xbf16> to vector<256x32xbf16>
    %159 = vector.extract_strided_slice %151 {offsets = [1, 0], sizes = [256, 32], strides = [1, 1]} : vector<290x32xbf16> to vector<256x32xbf16>
    %160 = vector.extract_strided_slice %157 {offsets = [2, 0], sizes = [256, 32], strides = [1, 1]} : vector<290x32xbf16> to vector<256x32xbf16>
    %161 = vector.extract_strided_slice %154 {offsets = [16, 0], sizes = [256, 32], strides = [1, 1]} : vector<290x32xbf16> to vector<256x32xbf16>
    %162 = vector.extract_strided_slice %151 {offsets = [17, 0], sizes = [256, 32], strides = [1, 1]} : vector<290x32xbf16> to vector<256x32xbf16>
    %163 = vector.extract_strided_slice %157 {offsets = [18, 0], sizes = [256, 32], strides = [1, 1]} : vector<290x32xbf16> to vector<256x32xbf16>
    %164 = vector.extract_strided_slice %154 {offsets = [32, 0], sizes = [256, 32], strides = [1, 1]} : vector<290x32xbf16> to vector<256x32xbf16>
    %165 = vector.extract_strided_slice %151 {offsets = [33, 0], sizes = [256, 32], strides = [1, 1]} : vector<290x32xbf16> to vector<256x32xbf16>
    %166 = vector.extract_strided_slice %157 {offsets = [34, 0], sizes = [256, 32], strides = [1, 1]} : vector<290x32xbf16> to vector<256x32xbf16>
    %167 = tpu.concatenate %158, %159, %160, %161, %162, %163, %164, %165, %166 in 1 : vector<256x32xbf16>, vector<256x32xbf16>, vector<256x32xbf16>, vector<256x32xbf16>, vector<256x32xbf16>, vector<256x32xbf16>, vector<256x32xbf16>, vector<256x32xbf16>, vector<256x32xbf16> -> vector<256x288xbf16>
    %c0_74 = arith.constant 0 : index
    %c0_75 = arith.constant 0 : index
    %168 = vector.load %arg12[%c0_74, %c0_75] : memref<288x32xbf16, #tpu.memory_space<vmem>>, vector<288x32xbf16>
    %cst_76 = arith.constant dense<0.000000e+00> : vector<256x32xf32>
    %169 = tpu.matmul %167, %168, %cst_76 {dimension_numbers = #tpu.dot_dimension_numbers<[1], [0], [0], [1], [0, 0, 1, 1], [], []>} : vector<256x288xbf16>, vector<288x32xbf16>, vector<256x32xf32> -> vector<256x32xf32>
    %c0_77 = arith.constant 0 : index
    %c0_78 = arith.constant 0 : index
    %170 = vector.load %arg13[%c0_77, %c0_78] : memref<1x32xf32, #tpu.memory_space<vmem>>, vector<1x32xf32>
    %171 = vector.broadcast %170 : vector<1x32xf32> to vector<256x32xf32>
    %172 = arith.addf %169, %171 : vector<256x32xf32>
    %173 = arith.addf %172, %41 : vector<256x32xf32>
    %cst_79 = arith.constant 5.000000e-01 : f32
    %174 = vector.broadcast %cst_79 : f32 to vector<256x32xf32>
    %175 = arith.mulf %174, %173 : vector<256x32xf32>
    %cst_80 = arith.constant 0.707106769 : f32
    %176 = vector.broadcast %cst_80 : f32 to vector<256x32xf32>
    %177 = arith.mulf %173, %176 : vector<256x32xf32>
    %178 = math.absf %177 : vector<256x32xf32>
    %cst_81 = arith.constant 0.327591091 : f32
    %179 = vector.broadcast %cst_81 : f32 to vector<256x32xf32>
    %180 = arith.mulf %179, %178 : vector<256x32xf32>
    %cst_82 = arith.constant 1.000000e+00 : f32
    %181 = vector.broadcast %cst_82 : f32 to vector<256x32xf32>
    %182 = arith.addf %181, %180 : vector<256x32xf32>
    %cst_83 = arith.constant 1.000000e+00 : f32
    %183 = vector.broadcast %cst_83 : f32 to vector<256x32xf32>
    %184 = arith.divf %183, %182 : vector<256x32xf32>
    %cst_84 = arith.constant 1.06140542 : f32
    %185 = vector.broadcast %cst_84 : f32 to vector<256x32xf32>
    %186 = arith.mulf %185, %184 : vector<256x32xf32>
    %cst_85 = arith.constant -1.45315206 : f32
    %187 = vector.broadcast %cst_85 : f32 to vector<256x32xf32>
    %188 = arith.addf %186, %187 : vector<256x32xf32>
    %189 = arith.mulf %188, %184 : vector<256x32xf32>
    %cst_86 = arith.constant 1.42141378 : f32
    %190 = vector.broadcast %cst_86 : f32 to vector<256x32xf32>
    %191 = arith.addf %189, %190 : vector<256x32xf32>
    %192 = arith.mulf %191, %184 : vector<256x32xf32>
    %cst_87 = arith.constant -0.284496725 : f32
    %193 = vector.broadcast %cst_87 : f32 to vector<256x32xf32>
    %194 = arith.addf %192, %193 : vector<256x32xf32>
    %195 = arith.mulf %194, %184 : vector<256x32xf32>
    %cst_88 = arith.constant 0.254829586 : f32
    %196 = vector.broadcast %cst_88 : f32 to vector<256x32xf32>
    %197 = arith.addf %195, %196 : vector<256x32xf32>
    %198 = arith.mulf %197, %184 : vector<256x32xf32>
    %cst_89 = arith.constant 0.000000e+00 : f32
    %199 = vector.broadcast %cst_89 : f32 to vector<256x32xf32>
    %200 = arith.subf %199, %178 : vector<256x32xf32>
    %201 = arith.mulf %200, %178 : vector<256x32xf32>
    %202 = math.exp %201 : vector<256x32xf32>
    %203 = arith.mulf %198, %202 : vector<256x32xf32>
    %cst_90 = arith.constant 1.000000e+00 : f32
    %204 = vector.broadcast %cst_90 : f32 to vector<256x32xf32>
    %205 = arith.subf %204, %203 : vector<256x32xf32>
    %cst_91 = arith.constant 0.000000e+00 : f32
    %206 = vector.broadcast %cst_91 : f32 to vector<256x32xf32>
    %207 = arith.cmpf oge, %177, %206 : vector<256x32xf32>
    %cst_92 = arith.constant 0.000000e+00 : f32
    %208 = vector.broadcast %cst_92 : f32 to vector<256x32xf32>
    %209 = arith.subf %208, %205 : vector<256x32xf32>
    %210 = arith.select %207, %205, %209 : vector<256x32xi1>, vector<256x32xf32>
    %cst_93 = arith.constant 1.000000e+00 : f32
    %211 = vector.broadcast %cst_93 : f32 to vector<256x32xf32>
    %212 = arith.addf %211, %210 : vector<256x32xf32>
    %213 = arith.mulf %175, %212 : vector<256x32xf32>
    %c0_94 = arith.constant 0 : index
    %c0_95 = arith.constant 0 : index
    %c0_96 = arith.constant 0 : index
    %214 = vector.load %arg14[%c0_94, %c0_95, %c0_96] : memref<1x256x32xf32, #tpu.memory_space<vmem>>, vector<1x256x32xf32>
    %215 = vector.shape_cast %214 : vector<1x256x32xf32> to vector<256x32xf32>
    %216 = vector.shape_cast %213 : vector<256x32xf32> to vector<1x256x32xf32>
    tpu.vector_store %arg14[%c0_94, %c0_95, %c0_96], %216 {strides = array<i32>} : memref<1x256x32xf32, #tpu.memory_space<vmem>>, vector<1x256x32xf32>,
    return
  }
  func.func @transform_0(%arg0: i32) -> (i32, i32, i32) {
    %c0_i32 = arith.constant 0 : i32
    %c0_i32_0 = arith.constant 0 : i32
    %c0_i32_1 = arith.constant 0 : i32
    return %arg0, %c0_i32, %c0_i32_0 : i32, i32, i32
  }
  func.func @transform_1(%arg0: i32) -> (i32, i32, i32) {
    %c0_i32 = arith.constant 0 : i32
    %c0_i32_0 = arith.constant 0 : i32
    %c0_i32_1 = arith.constant 0 : i32
    return %arg0, %c0_i32, %c0_i32_0 : i32, i32, i32
  }
  func.func @transform_2(%arg0: i32) -> (i32, i32) {
    %c0_i32 = arith.constant 0 : i32
    %c0_i32_0 = arith.constant 0 : i32
    %c0_i32_1 = arith.constant 0 : i32
    return %c0_i32, %c0_i32_0 : i32, i32
  }
  func.func @transform_3(%arg0: i32) -> (i32, i32) {
    %c0_i32 = arith.constant 0 : i32
    %c0_i32_0 = arith.constant 0 : i32
    %c0_i32_1 = arith.constant 0 : i32
    return %c0_i32, %c0_i32_0 : i32, i32
  }
  func.func @transform_4(%arg0: i32) -> (i32, i32) {
    %c0_i32 = arith.constant 0 : i32
    %c0_i32_0 = arith.constant 0 : i32
    %c0_i32_1 = arith.constant 0 : i32
    return %c0_i32, %c0_i32_0 : i32, i32
  }
  func.func @transform_5(%arg0: i32) -> (i32, i32) {
    %c0_i32 = arith.constant 0 : i32
    %c0_i32_0 = arith.constant 0 : i32
    %c0_i32_1 = arith.constant 0 : i32
    return %c0_i32, %c0_i32_0 : i32, i32
  }
  func.func @transform_6(%arg0: i32) -> (i32, i32) {
    %c0_i32 = arith.constant 0 : i32
    %c0_i32_0 = arith.constant 0 : i32
    %c0_i32_1 = arith.constant 0 : i32
    return %c0_i32, %c0_i32_0 : i32, i32
  }
  func.func @transform_7(%arg0: i32) -> (i32, i32) {
    %c0_i32 = arith.constant 0 : i32
    %c0_i32_0 = arith.constant 0 : i32
    %c0_i32_1 = arith.constant 0 : i32
    return %c0_i32, %c0_i32_0 : i32, i32
  }
  func.func @transform_8(%arg0: i32) -> (i32, i32) {
    %c0_i32 = arith.constant 0 : i32
    %c0_i32_0 = arith.constant 0 : i32
    %c0_i32_1 = arith.constant 0 : i32
    return %c0_i32, %c0_i32_0 : i32, i32
  }
  func.func @transform_9(%arg0: i32) -> (i32, i32) {
    %c0_i32 = arith.constant 0 : i32
    %c0_i32_0 = arith.constant 0 : i32
    %c0_i32_1 = arith.constant 0 : i32
    return %c0_i32, %c0_i32_0 : i32, i32
  }
  func.func @transform_10(%arg0: i32) -> (i32, i32) {
    %c0_i32 = arith.constant 0 : i32
    %c0_i32_0 = arith.constant 0 : i32
    %c0_i32_1 = arith.constant 0 : i32
    return %c0_i32, %c0_i32_0 : i32, i32
  }
  func.func @transform_11(%arg0: i32) -> (i32, i32) {
    %c0_i32 = arith.constant 0 : i32
    %c0_i32_0 = arith.constant 0 : i32
    %c0_i32_1 = arith.constant 0 : i32
    return %c0_i32, %c0_i32_0 : i32, i32
  }
  func.func @transform_12(%arg0: i32) -> (i32, i32) {
    %c0_i32 = arith.constant 0 : i32
    %c0_i32_0 = arith.constant 0 : i32
    %c0_i32_1 = arith.constant 0 : i32
    return %c0_i32, %c0_i32_0 : i32, i32
  }
  func.func @transform_13(%arg0: i32) -> (i32, i32, i32) {
    %c0_i32 = arith.constant 0 : i32
    %c0_i32_0 = arith.constant 0 : i32
    %c0_i32_1 = arith.constant 0 : i32
    return %arg0, %c0_i32, %c0_i32_0 : i32, i32, i32
  }
}

</mosaic_0001>

<bundles_post_ra>
// kernel: decoder_head_forward.1
= control target key start
LH: loop header
LB: loop body
LE: loop exit
PB: predicated region body
PF: predicated region fallthrough
CT: control target
= control target key end

     0   :  { %18 = vsyncpa [#allocation3], 0  ;;  %s13637_s0 = inlined_call_operand.vmem [shape: bf16[2,64,32], index: 0, kind: input, shape index: {}]   ;;  %s13638_s1 = inlined_call_operand.vmem [shape: bf16[2,256,32], index: 1, kind: input, shape index: {}]   ;;  %s13639_s2 = inlined_call_operand.vmem [shape: bf16[256,64], index: 2, kind: input, shape index: {}]   ;;  %s13640_s3 = inlined_call_operand.vmem [shape: bf16[290,2], index: 3, kind: input, shape index: {}]   ;;  %s13641_s4 = inlined_call_operand.vmem [shape: bf16[32,32], index: 4, kind: input, shape index: {}]   ;;  %s13642_s5 = inlined_call_operand.vmem [shape: bf16[288,32], index: 5, kind: input, shape index: {}]   ;;  %s13643_s6 = inlined_call_operand.vmem [shape: f32[1,32], index: 6, kind: input, shape index: {}]   ;;  %s13644_s7 = inlined_call_operand.vmem [shape: bf16[32,33], index: 7, kind: input, shape index: {}]   ;;  %s13645_s8 = inlined_call_operand.vmem [shape: f32[1,32], index: 8, kind: input, shape index: {}]   ;;  %s13646_s9 = inlined_call_operand.vmem [shape: bf16[32,2], index: 9, kind: input, shape index: {}]   ;;  %s13647_s10 = inlined_call_operand.vmem [shape: bf16[2,32], index: 10, kind: input, shape index: {}]   ;;  %s13648_s11 = inlined_call_operand.vmem [shape: bf16[288,32], index: 11, kind: input, shape index: {}]   ;;  %s13649_s12 = inlined_call_operand.vmem [shape: f32[1,32], index: 12, kind: input, shape index: {}]   ;;  %s13650_s13 = inlined_call_operand.hbm [shape: f32[2,256,32], index: 13, kind: output, shape index: {}]  }
   0x1   :  { %20 = vsyncpa [#allocation3 + $0x1], 0  ;;  %s9277_s25 = smov 0   ;;  %s9279_s26 = smov 0  }
   0x2   :  { %s9281_s27 = smov 0   ;;  %s9283_s28 = smov 0  }
   0x3 LB: > { %13802 = sst [smem:[#allocation5_spill]] %s9180_s25  ;;  %s9298_s29 = sadd.s32 4294967295, %s9192_s28   ;;  %s9192_s28 = sphi %s9283_s28, %s14132_s28   ;;  %s9188_s27 = sphi %s9281_s27, %s14134_s27   ;;  %s9184_s26 = sphi %s9279_s26, %s14136_s26   ;;  %s9180_s25 = sphi %s9277_s25, %s14135_s25  }
   0x4   : > { %13803 = sst [smem:[#allocation6_spill]] %s9188_s27  ;;  %s7806_s30 = sadd.s32 4294967294, %s9192_s28  }
   0x5   : > { %s9302_s14 = sadd.s32 1, %s9192_s28   ;;  %s316_s15 = sadd.s32 1, %s9188_s27 }
   0x6   : > { %13804 = sst [smem:[#allocation7_spill]] %s9302_s14  ;;  %s313_s16 = ssub.s32 %s9192_s28, %s9302_s14 }
   0x7   : > { %p326_p0 = scmp.ne.s32.totalorder %s9188_s27, %s9184_s26  ;;  %p314_p1 = scmp.eq.s32.totalorder %s313_s16, 0 }
   0x8   : > { %p327_p2 = scmp.eq.s32.totalorder %s9298_s29, 1  ;;  %p332_p3 = scmp.ne.s32.totalorder %s9184_s26, %s9180_s25 }
   0x9   : > { %p333_p4 = scmp.eq.s32.totalorder %s7806_s30, 1  ;;  %p7809_p7 = scmp.ge.s32.totalorder %s9192_s28, 1 }
   0xa   : > { %s9313_s17 = scalar_select %p314_p1, %s9188_s27, %s316_s15  }
   0xb   : > { %p9315_p5 = por %p327_p2, %p326_p0  ;;  %p9319_p6 = por %p333_p4, %p332_p3 }
   0xc   : > { %13805 = sst [smem:[#allocation8_spill]] %s9313_s17  ;;  %p400_p8 = scmp.lt.s32.totalorder %s9192_s28, 3 }
   0xd   : > { %s13807_s19 = scalar_select %p9319_p6, 1, 0 }
   0xe   : > { %p401_p9 = pnand %p7809_p7, %p400_p8 }
   0xf   : > { %13808 = sst [smem:[#allocation9_spill]] %s13807_s19 }
  0x10   : > { %404 = sbr.rel (%p401_p9) target bundleno = 2295 (0x8f7), region = 72 }
  0x15   : > { %v9328_v0 = vld [vmem:[%s13640_s3 + $0x10] sm:$0xf]  ;;  %v1320_v1 = vld [vmem:[%s13640_s3 + $0x8] sm:$0xf]  ;;  %p449_p10 = scmp.lt.s32.totalorder %s9298_s29, 1  ;;  %v9194_v2 = vmov 1  }
  0x16   : > { %8624 = vset.pattern.permute.xlu1 %v9194_v2  ;;  %8623 = vset.pattern.permute.xlu0 %v9194_v2  ;;  %v1323_v3 = vld [vmem:[%s13640_s3 + $0x14] sm:$0xf]  ;;  %v9346_v4 = vld [vmem:[%s13640_s3 + $0xc] sm:$0xf]  ;;  %v9355_v5 = vld [vmem:[%s13640_s3 + $0x4] sm:$0xf] }
  0x17   : > { %1958 = vperm.xlu1 %8624, %v9328_v0   ;;  %1936 = vperm.xlu0 %8623, %v1320_v1   ;;  %s9338_s24 = scalar_select %p449_p10, %s9298_s29, 1  ;;  %v9360_v6 = vld [vmem:[%s13640_s3] sm:$0xf]  ;;  %v8664_v7 = vld [vmem:[%s13639_s2 + $0x30] sm:$0xff]   ;;  %vm605_vm0 = vcmask 523264   ;;  %v13656_v12 = vmov 0  }
  0x18   : > { %8386 = vmatprep.mubr.msk.bf16.mxu1 %vm605_vm0, %v8664_v7  ;;  %v1325_v10 = vld [vmem:[%s13640_s3 + $0x1c] sm:$0xf]  ;;  %v9376_v14 = vld [vmem:[%s13640_s3 + $0x20] sm:$0xf]  ;;  %v1324_v15 = vld [vmem:[%s13640_s3 + $0x18] sm:$0xf] }
  0x19   : > { %s8020_s21 = sshll.u32 %s9338_s24, 5  ;;  %v9385_v16 = vld [vmem:[%s13640_s3 + $0x2c] sm:$0xf]  ;;  %v8665_v17 = vld [vmem:[%s13639_s2 + $0x38] sm:$0xff]   ;;  %v9393_v18 = vld [vmem:[%s13640_s3 + $0x30] sm:$0xf] }
  0x1a   : > { %s453_s17 = scalar_lea.vmem %s13637_s0, %s8020_s21  ;;  %v8666_v19 = vld [vmem:[%s13639_s2 + $0x40] sm:$0xff]   ;;  %s8021_s14 = sshll.u32 %s9338_s24, 7  ;;  %v8674_v20 = vld [vmem:[%s13641_s4 + $0x8] sm:$0xff]   ;;  %v9425_v24 = vld [vmem:[%s13640_s3 + $0x3c] sm:$0xf]  ;;  %vm943_vm1 = vcmask 261120  }
  0x1b   : > { %1969 = vperm.xlu1 %8624, %v1323_v3   ;;  %1947 = vperm.xlu0 %8623, %v9346_v4   ;;  %v8660_v8 = vld [vmem:[%s453_s17 + $0x18] sm:$0xff]   ;;  %v8661_v9 = vld [vmem:[%s453_s17 + $0x10] sm:$0xff]   ;;  %v8662_v11 = vld [vmem:[%s453_s17 + $0x8] sm:$0xff]   ;;  %s9414_s30 = scalar_lea.vmem %s13638_s1, %s8021_s14  ;;  %vm1169_vm2 = vsmask.f32 256  ;;  %vm1314_vm3 = vcmask 1040384  }
  0x1c   : > { %8564 = vmatprep.subr.bf16.mxu1 %v8660_v8  ;;  %8366 = vmatprep.subr.bf16.mxu0 %v8660_v8  ;;  %v8663_v13 = vld [vmem:[%s453_s17] sm:$0xff]   ;;  %v8676_v22 = vld [vmem:[%s13639_s2 + $0x8] sm:$0xff]   ;;  %v8668_v26 = vld [vmem:[%s13639_s2 + $0x50] sm:$0xff]   ;;  %vm2634_vm4 = vcmask 1046528   ;;  %vm2452_vm5 = vsmask.f32 7424 }
  0x1d   : > { %8568 = vmatpush3.bf16.msra.mxu1 %v8660_v8  ;;  %8367 = vmatpush3.bf16.msra.mxu0 %v8660_v8  ;;  %v8675_v21 = vld [vmem:[%s13639_s2] sm:$0xff]   ;;  %v8667_v25 = vld [vmem:[%s13639_s2 + $0x48] sm:$0xff]   ;;  %v8680_v27 = vld [vmem:[%s13639_s2 + $0x10] sm:$0xff]   ;;  %s9197_s16 = smov 96   ;;  %s9198_s20 = smov 64   ;;  %vm2943_vm7 = vcmask 785408  }
  0x1e   : > { %8565 = vmatprep.subr.bf16.mxu1 %v8661_v9  ;;  %8368 = vmatprep.subr.bf16.mxu0 %v8661_v9  ;;  %v8677_v23 = vld [vmem:[%s13641_s4] sm:$0xff]   ;;  %v8682_v29 = vld [vmem:[%s13639_s2 + $0x18] sm:$0xff]   ;;  %v9460_v32 = vld [vmem:[%s13640_s3 + $0x4c] sm:$0xf]  ;;  %s9199_s25 = smov 32   ;;  %s446_s27 = sand.u32 1, %s9184_s26  }
  0x1f   : > { %1925 = vperm.xlu1 %8624, %v9355_v5   ;;  %1914 = vperm.xlu0 %8623, %v9360_v6   ;;  %v9442_v28 = vld [vmem:[%s13640_s3 + $0x40] sm:$0xf]  ;;  %v1327_v30 = vld [vmem:[%s13640_s3 + $0x24] sm:$0xf]  ;;  %v8669_v33 = vld [vmem:[%s13639_s2 + $0x58] sm:$0xff]   ;;  %s12885_s19 = sshll.u32 %s446_s27, 8 }
  0x20   : > { %8374 = vmatprep.mubr.msk.bf16.mxu0 %vm605_vm0, %v8675_v21  ;;  %v8684_v31 = vld [vmem:[%s13639_s2 + $0x20] sm:$0xff]   ;;  %v9475_v35 = vld [vmem:[%s13640_s3 + $0x54] sm:$0xf]  ;;  %v8686_v36 = vld [vmem:[%s13639_s2 + $0x28] sm:$0xff]   ;;  %s12908_s14 = scalar_lea.vmem [#allocation2], %s12885_s19  ;;  %s8022_s23 = sshll.u32 %s9298_s29, 12 }
  0x21   : > { %8569 = vmatpush3.bf16.msra.mxu1 %v8661_v9  ;;  %8369 = vmatpush3.bf16.msra.mxu0 %v8661_v9  ;;  %v8670_v34 = vld [vmem:[%s13639_s2 + $0x60] sm:$0xff]   ;;  %v1328_v37 = vld [vmem:[%s13640_s3 + $0x28] sm:$0xf]  ;;  %v9490_v38 = vld [vmem:[%s13640_s3 + $0x58] sm:$0xf]  ;;  %s7732_s15 = sshll.u32 %s12908_s14, 4  ;;  %s13591_s15 = int_to_ptr.vmem [resolvable:$true] %s7732_s15 }
  0x22   : > { %8566 = vmatprep.subr.bf16.mxu1 %v8662_v11  ;;  %8370 = vmatprep.subr.bf16.mxu0 %v8662_v11  ;;  %v8671_v39 = vld [vmem:[%s13639_s2 + $0x68] sm:$0xff]   ;;  %v8672_v40 = vld [vmem:[%s13639_s2 + $0x70] sm:$0xff]   ;;  %v9504_v41 = vld [vmem:[%s13640_s3 + $0x64] sm:$0xf]  ;;  %s13597_s29 = scalar_lea.sflag [#allocation3], %s446_s27  ;;  %s9204_s19 = smov [#allocation2]  }
  0x23   : > { %8625 = vset.pattern.permute.xlu1 %v13656_v12  ;;  %1991 = vperm.xlu0 %8623, %v1325_v10   ;;  %v9512_v42 = vld [vmem:[%s13640_s3 + $0x6c] sm:$0xf]  ;;  %v8673_v43 = vld [vmem:[%s13639_s2 + $0x78] sm:$0xff]   ;;  %v8678_v44 = vld [vmem:[%s9414_s30] sm:$0xff]   ;;  %s9136_s17 = sshll.u32 %s9204_s19, 4  ;;  %s9137_s17 = int_to_ptr.vmem [resolvable:$false] %s9136_s17 }
  0x24   : > { %1416 = vperm.xlu1 %8625, %v1323_v3   ;;  %v9522_v45 = vld [vmem:[%s13640_s3 + $0x74] sm:$0xf]  ;;  %v9533_v47 = vld [vmem:[%s13640_s3 + $0x7c] sm:$0xf]  ;;  %v8679_v48 = vld [vmem:[%s9414_s30 + $0x8] sm:$0xff]   ;;  %s9138_s21 = scalar_lea.vmem %s9137_s17, 8192  ;;  %p9139_p0 = scmp.lt.s32.totalorder %s13591_s15, %s9137_s17 }
  0x25   : > { %8570 = vmatpush3.bf16.msra.mxu1 %v8662_v11  ;;  %8371 = vmatpush3.bf16.msra.mxu0 %v8662_v11  ;;  %v1331_v46 = vld [vmem:[%s13640_s3 + $0x34] sm:$0xf]  ;;  %v9543_v50 = vld [vmem:[%s13640_s3 + $0x84] sm:$0xf]  ;;  %v9550_v51 = vld [vmem:[%s13640_s3 + $0x8c] sm:$0xf] }
  0x26   : > { %8567 = vmatprep.subr.bf16.mxu1 %v8663_v13  ;;  %8372 = vmatprep.subr.bf16.mxu0 %v8663_v13  ;;  %v8681_v49 = vld [vmem:[%s9414_s30 + $0x10] sm:$0xff]   ;;  %v8683_v52 = vld [vmem:[%s9414_s30 + $0x18] sm:$0xff]   ;;  %v8685_v54 = vld [vmem:[%s9414_s30 + $0x20] sm:$0xff]  }
  0x27   : > { %2002 = vperm.xlu0 %8623, %v9376_v14   ;;  %v1332_v53 = vld [vmem:[%s13640_s3 + $0x38] sm:$0xf]  ;;  %v8687_v55 = vld [vmem:[%s9414_s30 + $0x28] sm:$0xff]   ;;  %v8688_v56 = vld [vmem:[%s9414_s30 + $0x30] sm:$0xff]  }
  0x28   : > { %1380 = vperm.xlu1 %8625, %v1320_v1   ;;  %v1335_v57 = vld [vmem:[%s13640_s3 + $0x44] sm:$0xf]  ;;  %v8689_v58 = vld [vmem:[%s9414_s30 + $0x38] sm:$0xff]   ;;  %v8691_v60 = vld [vmem:[%s9414_s30 + $0x48] sm:$0xff]  }
  0x29   : > { %8571 = vmatpush3.bf16.msra.mxu1 %v8663_v13  ;;  %8373 = vmatpush3.bf16.msra.mxu0 %v8663_v13  ;;  %v8690_v59 = vld [vmem:[%s9414_s30 + $0x40] sm:$0xff]   ;;  %v1336_v61 = vld [vmem:[%s13640_s3 + $0x48] sm:$0xf]  ;;  %v8692_v62 = vld [vmem:[%s9414_s30 + $0x50] sm:$0xff]  }
  0x2a   : > { %8406 = vmatprep.subr.bf16.mxu1 %v8674_v20  ;;  %v8693_v63 = vld [vmem:[%s9414_s30 + $0x58] sm:$0xff]   ;;  %v8694_v1 = vld [vmem:[%s9414_s30 + $0x60] sm:$0xff]   ;;  %v1344_v3 = vld [vmem:[%s13640_s3 + $0x68] sm:$0xf] }
  0x2b   : > { %2035 = vperm.xlu0 %8623, %v9385_v16   ;;  %v8696_v7 = vld [vmem:[%s9414_s30 + $0x70] sm:$0xff]   ;;  %v1348_v9 = vld [vmem:[%s13640_s3 + $0x78] sm:$0xf]  ;;  %v1352_v11 = vld [vmem:[%s13640_s3 + $0x88] sm:$0xf] }
  0x2c   : > { %8626 = vset.pattern.permute.xlu1 %v9194_v2  ;;  %8387 = vmatmul.mubr.msk.bf16.vlgmr.msra.gmra.mxu1 %vm605_vm0, %v8665_v17  ;;  %v1338_v8 = vld [vmem:[%s13640_s3 + $0x50] sm:$0xf]  ;;  %v1341_v13 = vld [vmem:[%s13640_s3 + $0x5c] sm:$0xf]  ;;  %vm10002_vm6 = vmand %vm1314_vm3, %vm1169_vm2 }
  0x2d   : > { %1980 = vperm.xlu1 %8626, %v1324_v15   ;;  %8390 = vmatprep.mubr.msk.bf16.mxu1 %vm605_vm0, %v8666_v19 }
  0x2e   : > { %8407 = vmatpush3.bf16.msra.mxu1 %v8674_v20  ;;  %8375 = vmatmul.mubr.msk.bf16.vlgmr.msra.gmra.mxu0 %vm605_vm0, %v8676_v22 }
  0x2f   : > { %2046 = vperm.xlu0 %8623, %v9393_v18   ;;  %8408 = vmatprep.subr.bf16.mxu1 %v8677_v23 }
  0x30   : > { %8378 = vmatprep.mubr.msk.bf16.mxu0 %vm605_vm0, %v8680_v27 }
  0x31   : > { %8627 = vset.pattern.permute.xlu1 %v13656_v12 }
  0x32   : > { %1428 = vperm.xlu1 %8627, %v1324_v15   ;;  %8409 = vmatpush3.bf16.msra.mxu1 %v8677_v23  ;;  %v8698_v23 = vld [vmem:[%s13642_s5 + $0x88] sm:$0xff]  }
  0x33   : > { %2079 = vperm.xlu0 %8623, %v9425_v24   ;;  %8442 = vmatprep.subr.bf16.mxu0 %v8698_v23 }
  0x34   : > { %8391 = vmatmul.mubr.msk.bf16.gmra.mxu1 %vm605_vm0, %v8667_v25  ;;  %8443 = vmatpush3.bf16.msra.mxu0 %v8698_v23  ;;  %v8699_v25 = vld [vmem:[%s13642_s5 + $0x80] sm:$0xff]  }
  0x35   : > { %8394 = vmatprep.mubr.msk.bf16.mxu1 %vm605_vm0, %v8668_v26  ;;  %8444 = vmatprep.subr.bf16.mxu0 %v8699_v25 }
  0x36   : > { %1440 = vperm.xlu1 %8627, %v1325_v10   ;;  %8379 = vmatmul.mubr.msk.bf16.gmra.mxu0 %vm605_vm0, %v8682_v29  ;;  %v8697_v10 = vld [vmem:[%s9414_s30 + $0x78] sm:$0xff]  }
  0x37   : > { %2090 = vperm.xlu0 %8623, %v9442_v28   ;;  %8382 = vmatprep.mubr.msk.bf16.mxu0 %vm605_vm0, %v8684_v31 }
  0x38   : > { %8445 = vmatpush3.bf16.msra.mxu0 %v8699_v25 }
  0x3a   : > { %8628 = vset.pattern.permute.xlu1 %v9194_v2 }
  0x3b   : > { %2013 = vperm.xlu1 %8628, %v1327_v30   ;;  %2123 = vperm.xlu0 %8623, %v9460_v32  }
  0x3c   : > { %8395 = vmatmul.mubr.msk.bf16.gmra.mxu1 %vm605_vm0, %v8669_v33 }
  0x3d   : > { %8398 = vmatprep.mubr.msk.bf16.mxu1 %vm605_vm0, %v8670_v34 }
  0x3e   : > { %8383 = vmatmul.mubr.msk.bf16.gmra.mxu0 %vm605_vm0, %v8686_v36 }
  0x3f   : > { %8629 = vset.pattern.permute.xlu1 %v13656_v12  ;;  %2145 = vperm.xlu0 %8623, %v9475_v35  }
  0x40   : > { %1464 = vperm.xlu1 %8629, %v1327_v30  }
  0x43   : > { %2156 = vperm.xlu0 %8623, %v9490_v38  }
  0x44   : > { %8630 = vset.pattern.permute.xlu1 %v9194_v2  ;;  %8399 = vmatmul.mubr.msk.bf16.gmra.mxu1 %vm605_vm0, %v8671_v39 }
  0x45   : > { %2024 = vperm.xlu1 %8630, %v1328_v37   ;;  %8402 = vmatprep.mubr.msk.bf16.mxu1 %vm605_vm0, %v8672_v40 }
  0x47   : > { %2189 = vperm.xlu0 %8623, %v9504_v41  }
  0x49   : > { %8631 = vset.pattern.permute.xlu1 %v13656_v12 }
  0x4a   : > { %1476 = vperm.xlu1 %8631, %v1328_v37  }
  0x4b   : > { %2211 = vperm.xlu0 %8623, %v9512_v42  }
  0x4c   : > { %8403 = vmatmul.mubr.msk.bf16.gmra.mxu1 %vm605_vm0, %v8673_v43 }
  0x4d   : > { %8410 = vmatprep.mubr.msk.bf16.mxu1 %vm943_vm1, %v8678_v44 }
  0x4e   : > { %1488 = vperm.xlu1 %8631, %v9385_v16  }
  0x4f   : > { %2233 = vperm.xlu0 %8623, %v9522_v45  }
  0x52   : > { %8632 = vset.pattern.permute.xlu1 %v9194_v2 }
  0x53   : > { %2057 = vperm.xlu1 %8632, %v1331_v46   ;;  %2255 = vperm.xlu0 %8623, %v9533_v47  }
  0x54   : > { %8411 = vmatmul.mubr.msk.bf16.vlgmr.msra.gmra.mxu1 %vm943_vm1, %v8679_v48 }
  0x55   : > { %8414 = vmatprep.mubr.msk.bf16.mxu1 %vm943_vm1, %v8681_v49 }
  0x57   : > { %8633 = vset.pattern.permute.xlu1 %v13656_v12  ;;  %2277 = vperm.xlu0 %8623, %v9543_v50  }
  0x58   : > { %1512 = vperm.xlu1 %8633, %v1331_v46  }
  0x5b   : > { %2299 = vperm.xlu0 %8623, %v9550_v51  }
  0x5c   : > { %8634 = vset.pattern.permute.xlu1 %v9194_v2  ;;  %8415 = vmatmul.mubr.msk.bf16.gmra.mxu1 %vm943_vm1, %v8683_v52 }
  0x5d   : > { %2068 = vperm.xlu1 %8634, %v1332_v53   ;;  %8418 = vmatprep.mubr.msk.bf16.mxu1 %vm943_vm1, %v8685_v54 }
  0x5f   : > { %8655 = vset.pattern.permute.xlu0 %v13656_v12 }
  0x60   : > { %1404 = vperm.xlu0 %8655, %v9328_v0   ;;  %v1342_v0 = vld [vmem:[%s13640_s3 + $0x60] sm:$0xf] }
  0x61   : > { %8635 = vset.pattern.permute.xlu1 %v13656_v12 }
  0x62   : > { %1524 = vperm.xlu1 %8635, %v1332_v53  }
  0x64   : > { %1392 = vperm.xlu0 %8655, %v9346_v4   ;;  %8419 = vmatmul.mubr.msk.bf16.gmra.mxu1 %vm943_vm1, %v8687_v55  ;;  %v8695_v4 = vld [vmem:[%s9414_s30 + $0x68] sm:$0xff]   ;;  %s9132_s30 = scalar_lea.vmem %s13591_s15, 4096 }
  0x65   : > { %8422 = vmatprep.mubr.msk.bf16.mxu1 %vm943_vm1, %v8688_v56  ;;  %p9133_p11 = scmp.ne.s32.totalorder %s13591_s15, %s9132_s30  ;;  %p9140_p1 = scmp.lt.s32.totalorder %s9138_s21, %s9132_s30 }
  0x66   : > { %1536 = vperm.xlu1 %8635, %v9425_v24  }
  0x67   : > { %p9134_p12 = pnand %p9133_p11, %p9315_p5  ;;  %p9141_p2 = por %p9140_p1, %p9139_p0 }
  0x68   : > { %1452 = vperm.xlu0 %8655, %v9376_v14  }
  0x69   : > { %p9135_p13 = pneg %p9134_p12 }
  0x6a   : > { %8636 = vset.pattern.permute.xlu1 %v9194_v2 }
  0x6b   : > { %2101 = vperm.xlu1 %8636, %v1335_v57   ;;  %p9142_p3 = pnand %p9141_p2, %p9135_p13 }
  0x6c   : > { %1500 = vperm.xlu0 %8655, %v9393_v18   ;;  %8423 = vmatmul.mubr.msk.bf16.gmra.mxu1 %vm943_vm1, %v8689_v58 }
  0x6d   : > { %8426 = vmatprep.mubr.msk.bf16.mxu1 %vm943_vm1, %v8690_v59 }
  0x6f   : > { %8637 = vset.pattern.permute.xlu1 %v13656_v12 }
  0x70   : > { %1560 = vperm.xlu1 %8637, %v1335_v57   ;;  %1548 = vperm.xlu0 %8655, %v9442_v28  }
  0x74   : > { %8638 = vset.pattern.permute.xlu1 %v9194_v2  ;;  %1356 = vperm.xlu0 %8655, %v9360_v6   ;;  %v1346_v6 = vld [vmem:[%s13640_s3 + $0x70] sm:$0xf] }
  0x75   : > { %2112 = vperm.xlu1 %8638, %v1336_v61   ;;  %8427 = vmatmul.mubr.msk.bf16.gmra.mxu1 %vm943_vm1, %v8691_v60 }
  0x76   : > { %8430 = vmatprep.mubr.msk.bf16.mxu1 %vm943_vm1, %v8692_v62 }
  0x78   : > { %1620 = vperm.xlu0 %8655, %v9490_v38  }
  0x79   : > { %8639 = vset.pattern.permute.xlu1 %v13656_v12 }
  0x7a   : > { %1572 = vperm.xlu1 %8639, %v1336_v61  }
  0x7c   : > { %1644 = vperm.xlu0 %8655, %v1342_v0  }
  0x7d   : > { %8431 = vmatmul.mubr.msk.bf16.gmra.mxu1 %vm943_vm1, %v8693_v63  ;;  %v9196_v63 = vmov 839922192  }
  0x7e   : > { %1584 = vperm.xlu1 %8639, %v9460_v32   ;;  %8434 = vmatprep.mubr.msk.bf16.mxu1 %vm943_vm1, %v8694_v1  ;;  %v1362_v1 = vlaneseq }
  0x80   : > { %1668 = vperm.xlu0 %8655, %v1344_v3  }
  0x82   : > { %1368 = vperm.xlu1 %8639, %v9355_v5   ;;  %v1350_v5 = vld [vmem:[%s13640_s3 + $0x80] sm:$0xf] }
  0x84   : > { %1692 = vperm.xlu0 %8655, %v1346_v6  }
  0x85   : > { %8435 = vmatmul.mubr.msk.bf16.gmra.mxu1 %vm943_vm1, %v8695_v4 }
  0x86   : > { %8640 = vset.pattern.permute.xlu1 %v9194_v2  ;;  %8438 = vmatprep.mubr.msk.bf16.mxu1 %vm943_vm1, %v8696_v7 }
  0x87   : > { %2134 = vperm.xlu1 %8640, %v1338_v8  }
  0x88   : > { %1716 = vperm.xlu0 %8655, %v1348_v9  }
  0x8b   : > { %8641 = vset.pattern.permute.xlu1 %v13656_v12 }
  0x8c   : > { %1596 = vperm.xlu1 %8641, %v1338_v8   ;;  %1740 = vperm.xlu0 %8655, %v1350_v5  }
  0x8d   : > { %8439 = vmatmul.mubr.msk.bf16.gmra.mxu1 %vm943_vm1, %v8697_v10 }
  0x90   : > { %1608 = vperm.xlu1 %8641, %v9475_v35   ;;  %1764 = vperm.xlu0 %8655, %v1352_v11  }
  0x92   : > { %v9635_v14 = vpop.permute.xlu1 %1958  ;;  %v9650_v19 = vpop.permute.xlu0 %1936 }
  0x94   : > { %8642 = vset.pattern.permute.xlu1 %v9194_v2 }
  0x95   : > { %2167 = vperm.xlu1 %8642, %v1341_v13  }
  0x96   : > { %v9638_v15 = vpop.permute.xlu1 %1969  ;;  %v9655_v21 = vpop.permute.xlu0 %1947 }
  0x99   : > { %8643 = vset.pattern.permute.xlu1 %v13656_v12 }
  0x9a   : > { %1632 = vperm.xlu1 %8643, %v1341_v13   ;;  %v9641_v16 = vpop.permute.xlu1 %1925  ;;  %v9669_v26 = vpop.permute.xlu0 %1914 }
  0x9e   : > { %8644 = vset.pattern.permute.xlu1 %v9194_v2  ;;  %v9675_v28 = vpop.permute.xlu0 %1991 }
  0x9f   : > { %2178 = vperm.xlu1 %8644, %v1342_v0   ;;  %v9644_v17 = vpop.permute.xlu1 %1416  ;;  %v1360_v0 = vunpack.c.l.s4 %v9196_v63 }
  0xa1   : > { %v1361_v8 = vunpack.c.0.s8 %v1360_v0 }
  0xa2   : > { %v9681_v30 = vpop.permute.xlu0 %2002 }
  0xa3   : > { %8645 = vset.pattern.permute.xlu1 %v13656_v12  ;;  %v9647_v18 = vpop.permute.xlu1 %1380 }
  0xa4   : > { %1656 = vperm.xlu1 %8645, %v9504_v41  }
  0xa6   : > { %v9687_v32 = vpop.permute.xlu0 %2035 }
  0xa8   : > { %8646 = vset.pattern.permute.xlu1 %v9194_v2  ;;  %v9653_v20 = vpop.permute.xlu1 %1980 }
  0xa9   : > { %2200 = vperm.xlu1 %8646, %v1344_v3  }
  0xaa   : > { %v9694_v35 = vpop.permute.xlu0 %2046 }
  0xad   : > { %8647 = vset.pattern.permute.xlu1 %v13656_v12  ;;  %v9658_v22 = vpop.permute.xlu1 %1428 }
  0xae   : > { %1680 = vperm.xlu1 %8647, %v9512_v42   ;;  %v9700_v37 = vpop.permute.xlu0 %2079 }
  0xb1   : > { %v9664_v24 = vpop.permute.xlu1 %1440 }
  0xb2   : > { %8648 = vset.pattern.permute.xlu1 %v9194_v2  ;;  %v9706_v39 = vpop.permute.xlu0 %2090 }
  0xb3   : > { %2222 = vperm.xlu1 %8648, %v1346_v6  }
  0xb6   : > { %v9672_v27 = vpop.permute.xlu1 %2013  ;;  %v9712_v41 = vpop.permute.xlu0 %2123 }
  0xb7   : > { %8649 = vset.pattern.permute.xlu1 %v13656_v12 }
  0xb8   : > { %1704 = vperm.xlu1 %8649, %v9522_v45  }
  0xba   : > { %v9718_v44 = vpop.permute.xlu0 %2145 }
  0xbb   : > { %v9678_v29 = vpop.permute.xlu1 %1464  ;;  %13809 = vst [vmem:[#allocation10_spill] sm:$0xff] %v9718_v44 }
  0xbc   : > { %8650 = vset.pattern.permute.xlu1 %v9194_v2 }
  0xbd   : > { %2244 = vperm.xlu1 %8650, %v1348_v9   ;;  %v9766_v9 = vshrl.u32 %v1362_v1, 7 }
  0xbe   : > { %v9722_v46 = vpop.permute.xlu0 %2156 }
  0xbf   : > { %13820 = vst [vmem:[#allocation21_spill] sm:$0xff] %v9766_v9  ;;  %v9777_v23 = vsub.s32 %v1361_v8, %v9766_v9 }
  0xc0   : > { %v9683_v31 = vpop.permute.xlu1 %2024 }
  0xc1   : > { %8651 = vset.pattern.permute.xlu1 %v13656_v12 }
  0xc2   : > { %1728 = vperm.xlu1 %8651, %v9533_v47   ;;  %v9728_v49 = vpop.permute.xlu0 %2189 }
  0xc5   : > { %v9689_v33 = vpop.permute.xlu1 %1476 }
  0xc6   : > { %8652 = vset.pattern.permute.xlu1 %v9194_v2  ;;  %v9738_v53 = vpop.permute.xlu0 %2211 }
  0xc7   : > { %2266 = vperm.xlu1 %8652, %v1350_v5   ;;  %13810 = vst [vmem:[#allocation11_spill] sm:$0xff] %v9738_v53 }
  0xc9   : > { %v9692_v34 = vpop.permute.xlu1 %1488 }
  0xca   : > { %v9750_v59 = vpop.permute.xlu0 %2233 }
  0xcb   : > { %8653 = vset.pattern.permute.xlu1 %v13656_v12 }
  0xcc   : > { %1752 = vperm.xlu1 %8653, %v9543_v50  }
  0xce   : > { %v9698_v36 = vpop.permute.xlu1 %2057  ;;  %v9762_v6 = vpop.permute.xlu0 %2255 }
  0xd0   : > { %8654 = vset.pattern.permute.xlu1 %v9194_v2 }
  0xd1   : > { %2288 = vperm.xlu1 %8654, %v1352_v11  }
  0xd2   : > { %v9779_v25 = vpop.permute.xlu0 %2277 }
  0xd3   : > { %v9703_v38 = vpop.permute.xlu1 %1512 }
  0xd5   : > { %8656 = vset.pattern.permute.xlu1 %v13656_v12 }
  0xd6   : > { %1776 = vperm.xlu1 %8656, %v9550_v51  }
  0xd8   : > { %v9709_v40 = vpop.permute.xlu1 %2068 }
  0xda   : > { %8657 = vset.pattern.permute.xlu1 %v9194_v2 }
  0xdd   : > { %v9714_v42 = vpop.permute.xlu1 %1524 }
  0xe1   : > { %v9716_v43 = vpop.permute.xlu1 %1536 }
  0xe6   : > { %v9720_v45 = vpop.permute.xlu1 %2101 }
  0xeb   : > { %v9724_v47 = vpop.permute.xlu1 %1560 }
  0xec   : > { %v9726_v48 = vpop.f32.mrf.mxu1 }
  0xee   : > { %v9730_v50 = vpop.f32.mrf.mxu1  ;;  %v9758_v3 = vpop.f32.mrf.mxu0 }
  0xf0   : > { %v9732_v2 = vpop.permute.xlu1 %2112  ;;  %v9734_v51 = vpop.f32.mrf.mxu1 }
  0xf1   : > { %v9768_v10 = vpop.f32.mrf.mxu0 }
  0xf2   : > { %v9736_v52 = vpop.f32.mrf.mxu1 }
  0xf3   : > { %v9781_v63 = vpop.f32.mrf.mxu0 }
  0xf4   : > { %v9742_v55 = vpop.f32.mrf.mxu1 }
  0xf5   : > { %v9740_v54 = vpop.permute.xlu1 %1572 }
  0xf6   : > { %13811 = vst [vmem:[#allocation12_spill] sm:$0xff] %v9740_v54  ;;  %v9744_v56 = vpop.f32.mrf.mxu1  ;;  %v9793_v54 = vpop.f32.mrf.mxu0 }
  0xf7   : > { %13812 = vst [vmem:[#allocation13_spill] sm:$0xff] %v9744_v56 }
  0xf8   : > { %v9748_v58 = vpop.f32.mrf.mxu1 }
  0xf9   : > { %v9746_v57 = vpop.permute.xlu1 %1584  ;;  %13814 = vst [vmem:[#allocation15_spill] sm:$0xff] %v9748_v58 }
  0xfa   : > { %13813 = vst [vmem:[#allocation14_spill] sm:$0xff] %v9746_v57  ;;  %v9752_v60 = vpop.f32.mrf.mxu1  ;;  %v1934_v57 = vrot.slane %v9641_v16, %v9777_v23  ;;  %v8701_v16 = vld [vmem:[%s13642_s5 + $0x38] sm:$0xff]  }
  0xfb   : > { %13815 = vst [vmem:[#allocation16_spill] sm:$0xff] %v9752_v60 }
  0xfc   : > { %v9756_v62 = vpop.f32.mrf.mxu1 }
  0xfd   : > { %v9754_v61 = vpop.permute.xlu1 %1368  ;;  %13817 = vst [vmem:[#allocation18_spill] sm:$0xff] %v9756_v62 }
  0xfe   : > { %13816 = vst [vmem:[#allocation17_spill] sm:$0xff] %v9754_v61  ;;  %v9760_v4 = vpop.f32.mrf.mxu1  ;;  %v1923_v61 = vrot.slane %v9669_v26, %v9777_v23  ;;  %v8700_v26 = vld [vmem:[%s13642_s5 + $0x78] sm:$0xff]  }
  0xff   : > { %13818 = vst [vmem:[#allocation19_spill] sm:$0xff] %v9760_v4  ;;  %8061 = vmatprep.subr.bf16.mxu1 %v8700_v26  ;;  %v1945_v4 = vrot.slane %v9650_v19, %v9777_v23  ;;  %v8702_v26 = vld [vmem:[%s13642_s5 + $0x70] sm:$0xff]  }
 0x100   : > { %v9764_v7 = vpop.f32.mrf.mxu1  ;;  %8062 = vmatpush3.bf16.msra.mxu1 %v8701_v16  ;;  %v8703_v19 = vld [vmem:[%s13642_s5 + $0x30] sm:$0xff]   ;;  %v1437_v16 = vrot.slane %v9658_v22, %v9777_v23 }
 0x101   : > { %13819 = vst [vmem:[#allocation20_spill] sm:$0xff] %v9764_v7  ;;  %8063 = vmatprep.subr.bf16.mxu1 %v8702_v26 }
 0x102   : > { %v9770_v5 = vpop.permute.xlu1 %2134  ;;  %v9772_v11 = vpop.f32.mrf.mxu1 }
 0x103   : > { %13821 = vst [vmem:[#allocation22_spill] sm:$0xff] %v9772_v11  ;;  %v9801_v11 = vpop.f32.mrf.mxu0 }
 0x104   : > { %v9774_v13 = vpop.f32.mrf.mxu1  ;;  %8064 = vmatpush3.bf16.msra.mxu1 %v8703_v19  ;;  %v13838_v19 = vmov 0  }
 0x105   : > { %13822 = vst [vmem:[#allocation23_spill] sm:$0xff] %v9774_v13  ;;  %v9799_v13 = vpop.permute.xlu0 %2299 }
 0x106   : > { %v9785_v0 = vpop.f32.mrf.mxu1 }
 0x107   : > { %v9783_v12 = vpop.permute.xlu1 %1596  ;;  %13824 = vst [vmem:[#allocation25_spill] sm:$0xff] %v9785_v0  ;;  %v7903_v0 = vcombine.low %v1923_v61, %v1934_v57  ;;  %v1956_v57 = vrot.slane %v9655_v21, %v9777_v23  ;;  %v1967_v61 = vrot.slane %v9635_v14, %v9777_v23  ;;  %v2000_v14 = vrot.slane %v9675_v28, %v9777_v23 }
 0x108   : > { %13823 = vst [vmem:[#allocation24_spill] sm:$0xff] %v9783_v12  ;;  %v9787_v1 = vpop.f32.mrf.mxu1  ;;  %v2011_v28 = vrot.slane %v9681_v30, %v9777_v23  ;;  %v8705_v30 = vld [vmem:[%s13642_s5 + $0x28] sm:$0xff]  }
 0x109   : > { %13825 = vst [vmem:[#allocation26_spill] sm:$0xff] %v9787_v1  ;;  %v2433_v62 = vmul.bf16 0, %v7903_v0  ;;  %v1449_v0 = vrot.slane %v9664_v24, %v9777_v23  ;;  %v2066_v24 = vrot.slane %v9698_v36, %v9777_v23  ;;  %v8707_v36 = vld [vmem:[%s13642_s5 + $0x20] sm:$0xff]  }
 0x10a   : > { %v9797_v9 = vpop.f32.mrf.mxu1 }
 0x10b   : > { %v9795_v8 = vpop.permute.xlu1 %1608  ;;  %13827 = vst [vmem:[#allocation28_spill] sm:$0xff] %v9797_v9  ;;  %v9815_v9 = vpop.f32.mrf.mxu0  ;;  %v9857_v22 = vrot.slane %v2433_v62, 1  ;;  %v2055_v62 = vrot.slane %v9694_v35, %v9777_v23  ;;  %v9886_v58 = vcombine.low %v1437_v16, %v1449_v0 }
 0x10c   : > { %13826 = vst [vmem:[#allocation27_spill] sm:$0xff] %v9795_v8  ;;  %v9803_v12 = vpop.f32.mrf.mxu1  ;;  %v9813_v8 = vpop.permute.xlu0 %1404 }
 0x10d   : > { %13828 = vst [vmem:[#allocation29_spill] sm:$0xff] %v9803_v12  ;;  %v1978_v12 = vrot.slane %v9638_v15, %v9777_v23  ;;  %v1989_v15 = vrot.slane %v9653_v20, %v9777_v23  ;;  %v2022_v20 = vrot.slane %v9672_v27, %v9777_v23  ;;  %13836 = vst [vmem:[#allocation37_spill] sm:$0xff] %v9857_v22  ;;  %v8704_v27 = vld [vmem:[%s13642_s5 + $0x68] sm:$0xff]  }
 0x10e   : > { %v9811_v1 = vpop.f32.mrf.mxu1  ;;  %13840 = vst [vmem:[#allocation40_spill] sm:$0xff] %v9886_v58  ;;  %8065 = vmatprep.subr.bf16.mxu1 %v8704_v27 }
 0x10f   : > { %13829 = vst [vmem:[#allocation30_spill] sm:$0xff] %v9811_v1  ;;  %v9849_v60 = vcombine.low %v1967_v61, %v1978_v12  ;;  %v9875_v61 = vcombine.low %v1989_v15, %v2000_v14  ;;  %v9880_v12 = vrot.slane %v13838_v19, 1  ;;  %v9892_v15 = vcombine.low %v2011_v28, %v2022_v20  ;;  %8066 = vmatpush3.bf16.msra.mxu1 %v8705_v30 }
 0x110   : > { %v9825_v7 = vpop.permute.xlu1 %2167  ;;  %v9827_v1 = vpop.f32.mrf.mxu1  ;;  %v1497_v19 = vrot.slane %v9692_v34, %v9777_v23  ;;  %v8706_v34 = vld [vmem:[%s13642_s5 + $0x60] sm:$0xff]  }
 0x111   : > { %13830 = vst [vmem:[#allocation31_spill] sm:$0xff] %v9825_v7  ;;  %13831 = vst [vmem:[#allocation32_spill] sm:$0xff] %v9827_v1  ;;  %v9845_v1 = vpop.f32.mrf.mxu0  ;;  %v9847_v7 = vcombine.low %v1945_v4, %v1956_v57  ;;  %v2044_v4 = vrot.slane %v9687_v32, %v9777_v23  ;;  %v9865_v57 = vpop.permute.xlu0 %1392  ;;  %v2033_v32 = vrot.slane %v9683_v31, %v9777_v23  ;;  %8067 = vmatprep.subr.bf16.mxu1 %v8706_v34 }
 0x112   : > { %v9839_v21 = vpop.f32.mrf.mxu1  ;;  %13834 = vst [vmem:[#allocation35_spill] sm:$0xff] %v9849_v60  ;;  %13837 = vst [vmem:[#allocation38_spill] sm:$0xff] %v9875_v61  ;;  %v1485_v31 = vrot.slane %v9689_v33, %v9777_v23 }
 0x113   : > { %13832 = vst [vmem:[#allocation33_spill] sm:$0xff] %v9839_v21  ;;  %13833 = vst [vmem:[#allocation34_spill] sm:$0xff] %v9847_v7  ;;  %v9890_v14 = vpop.f32.mrf.mxu0  ;;  %v9916_v30 = vcombine.low %v2033_v32, %v2044_v4  ;;  %v9932_v32 = vcombine.low %v2055_v62, %v2066_v24  ;;  %8068 = vmatpush3.bf16.msra.mxu1 %v8707_v36  ;;  %v8708_v24 = vld [vmem:[%s13642_s5 + $0x58] sm:$0xff]  }
 0x114   : > { %v8412_v56 = vpop.f32.mrf.mxu1  ;;  %13839 = vst [vmem:[#allocation39_spill] sm:$0xff] %v9880_v12  ;;  %13841 = vst [vmem:[#allocation41_spill] sm:$0xff] %v9892_v15  ;;  %v9930_v4 = vcombine.low %v1485_v31, %v1497_v19  ;;  %v8709_v62 = vld [vmem:[%s13642_s5 + $0x18] sm:$0xff]   ;;  %v1533_v31 = vrot.slane %v9714_v42, %v9777_v23  ;;  %v1545_v19 = vrot.slane %v9716_v43, %v9777_v23  ;;  %8069 = vmatprep.subr.bf16.mxu1 %v8708_v24 }
 0x115   : > { %v9855_v21 = vpop.permute.xlu1 %1632  ;;  %v9904_v28 = vpop.permute.xlu0 %1452  ;;  %v1035_v33 = vadd.f32 %v8412_v56, %v9758_v3  ;;  %13842 = vst [vmem:[#allocation42_spill] sm:$0xff] %v9916_v30  ;;  %13844 = vst [vmem:[#allocation44_spill] sm:$0xff] %v9932_v32  ;;  %v2110_v43 = vrot.slane %v9720_v45, %v9777_v23  ;;  %v8710_v45 = vld [vmem:[%s13642_s5 + $0x50] sm:$0xff]  }
 0x116   : > { %13835 = vst [vmem:[#allocation36_spill] sm:$0xff] %v9855_v21  ;;  %v1026_v26 = vpop.f32.mrf.mxu1  ;;  %v9928_v27 = vpop.f32.mrf.mxu0  ;;  %13843 = vst [vmem:[#allocation43_spill] sm:$0xff] %v9930_v4 }
 0x117   : > { %v1027_v35 = vadd.f32 %v1026_v26, %v9768_v10  ;;  %v1521_v10 = vrot.slane %v9703_v38, %v9777_v23  ;;  %v1413_v38 = vrot.slane %v9813_v8, %v9777_v23  ;;  %v1461_v8 = vrot.slane %v9904_v28, %v9777_v23  ;;  %8070 = vmatpush3.bf16.msra.mxu1 %v8709_v62 }
 0x118   : > { %v8413_v21 = vpop.f32.mrf.mxu1  ;;  %v9961_v42 = vpop.f32.mrf.mxu0  ;;  %v13846_v28 = vrot.slane %v9700_v37, %v9777_v23  ;;  %8071 = vmatprep.subr.bf16.mxu1 %v8710_v45 }
 0x119   : > { %v1038_v20 = vadd.f32 %v8413_v21, %v9781_v63 }
 0x11a   : > { %v9922_v3 = vpop.permute.xlu1 %2178  ;;  %v1029_v63 = vpop.f32.mrf.mxu1 }
 0x11b   : > { %v1154_v0 = vpack.c.bf16 %v1038_v20, %v1035_v33  ;;  %v1030_v44 = vadd.f32 %v1029_v63, %v9793_v54  ;;  %v2077_v54 = vrot.slane %v9709_v40, %v9777_v23  ;;  %v1401_v40 = vrot.slane %v9865_v57, %v9777_v23  ;;  %v1501_v20 = vpop.permute.xlu0 %1500 }
 0x11c   : > { %v8416_v53 = vpop.f32.mrf.mxu1  ;;  %v1509_v57 = vrot.slane %v1501_v20, %v9777_v23 }
 0x11d   : > { %v1178_v26 = vshrl.u32 %v1154_v0, 16  ;;  %v1153_v33 = vpack.c.bf16 %v1030_v44, %v1027_v35  ;;  %v1181_v36 = vshll.u32 %v1154_v0, 16  ;;  %v1051_v16 = vadd.f32 %v8416_v53, %v9801_v11  ;;  %v8711_v11 = vld [vmem:[%s13642_s5 + $0x10] sm:$0xff]  }
 0x11e   : > { %v1042_v35 = vpop.f32.mrf.mxu1  ;;  %8072 = vmatpush3.bf16.msra.mxu1 %v8711_v11 }
 0x11f   : > { %v9956_v44 = vpop.permute.xlu1 %1656  ;;  %v9958_v34 = vrot.slane %v1178_v26, 7  ;;  %v1171_v63 = vshrl.u32 %v1153_v33, 16  ;;  %v1174_v56 = vshll.u32 %v1153_v33, 16  ;;  %v9980_v33 = vcombine.low %v2077_v54, %v13846_v28  ;;  %v8385_v28 = vpop.f32.mrf.mxu0 }
 0x120   : > { %13845 = vst [vmem:[#allocation45_spill] sm:$0xff] %v9956_v44  ;;  %v8417_v21 = vpop.f32.mrf.mxu1  ;;  %v1043_v44 = vadd.f32 %v1042_v35, %v9815_v9  ;;  %v13848_v9 = vrot.slane %v9644_v17, %v9777_v23  ;;  %v13852_v17 = vmov 0 }
 0x121   : > { %v1183_v26 = vor.u32 %v1181_v36, %v9958_v34  ;;  %v1173_v0 = vrot.slane %v1171_v63, 7  ;;  %v1054_v53 = vadd.f32 %v8417_v21, %v9845_v1  ;;  %13847 = vst [vmem:[#allocation46_spill] sm:$0xff] %v9980_v33  ;;  %v13850_v21 = vrot.slane %v9647_v18, %v9777_v23 }
 0x122   : > { %v9987_v1 = vcombine.low %v1413_v38, %v13848_v9  ;;  %v1045_v35 = vpop.f32.mrf.mxu1  ;;  %v13853_v17 = vsel %vm10002_vm6, 4294967295, %v13852_v17  ;;  %v10006_v18 = vcombine.low %v1533_v31, %v1545_v19  ;;  %v1549_v31 = vpop.permute.xlu0 %1548 }
 0x123   : > { %v9992_v62 = vcombine.low %v13850_v21, %v1401_v40  ;;  %v1176_v20 = vor.u32 %v1174_v56, %v1173_v0  ;;  %v1156_v36 = vpack.c.bf16 %v1054_v53, %v1051_v16  ;;  %v1046_v54 = vadd.f32 %v1045_v35, %v9890_v14  ;;  %13854 = vst [vmem:[#allocation49_spill] sm:$0xff] %v13853_v17  ;;  %v723_v35 = vpop.f32.mrf.mxu0 }
 0x124   : > { %13849 = vst [vmem:[#allocation47_spill] sm:$0xff] %v9987_v1  ;;  %v9994_v37 = vpop.permute.xlu1 %2200  ;;  %v9998_v63 = vsel %vm1169_vm2, %v1173_v0, %v1183_v26  ;;  %13855 = vst [vmem:[#allocation50_spill] sm:$0xff] %v10006_v18  ;;  %v13856_v16 = vrot.slane %v9706_v39, %v9777_v23  ;;  %v13858_v14 = vrot.slane %v9678_v29, %v9777_v23  ;;  %v8420_v40 = vpop.f32.mrf.mxu1  ;;  %v8712_v39 = vld [vmem:[%s13642_s5 + $0x48] sm:$0xff]  }
 0x125   : > { %13851 = vst [vmem:[#allocation48_spill] sm:$0xff] %v9992_v62  ;;  %v10020_v26 = vmul.bf16 %v9987_v1, %v9998_v63  ;;  %v10022_v0 = vcombine.low %v1509_v57, %v1521_v10  ;;  %v1194_v19 = vshrl.u32 %v1156_v36, 16  ;;  %v1197_v53 = vshll.u32 %v1156_v36, 16  ;;  %8073 = vmatprep.subr.bf16.mxu1 %v8712_v39  ;;  %v8715_v39 = vld [vmem:[%s13642_s5] sm:$0xff]  }
 0x126   : > { %v10011_v56 = vcombine.low %v13856_v16, %v2110_v43  ;;  %v10016_v38 = vcombine.low %v1461_v8, %v13858_v14  ;;  %v1155_v45 = vpack.c.bf16 %v1046_v54, %v1043_v44  ;;  %v1569_v29 = vrot.slane %v9724_v47, %v9777_v23  ;;  %v1058_v8 = vpop.f32.mrf.mxu1  ;;  %v8713_v47 = vld [vmem:[%s13642_s5 + $0x8] sm:$0xff]  }
 0x127   : > { %13860 = vst [vmem:[#allocation53_spill] sm:$0xff] %v10022_v0  ;;  %v1557_v43 = vrot.slane %v1549_v31, %v9777_v23  ;;  %2718 = vrot.lane.b32.xlu1 %v10020_v26, %s9197_s16  ;;  %2792 = vrot.lane.b32.xlu0 %v10020_v26, %s9198_s20  ;;  %v10036_v10 = vsel %vm10002_vm6, 0, %v1176_v20  ;;  %v2435_v44 = vmul.bf16 %v9849_v60, %v9998_v63  ;;  %v10043_v57 = vrot.slane %v1194_v19, 7 }
 0x128   : > { %13857 = vst [vmem:[#allocation51_spill] sm:$0xff] %v10011_v56  ;;  %13859 = vst [vmem:[#allocation52_spill] sm:$0xff] %v10016_v38  ;;  %v1186_v11 = vshrl.u32 %v1155_v45, 16  ;;  %v1189_v9 = vshll.u32 %v1155_v45, 16  ;;  %v1067_v21 = vadd.f32 %v8420_v40, %v9928_v27  ;;  %v2121_v36 = vrot.slane %v9732_v2, %v9777_v23  ;;  %v8421_v54 = vpop.f32.mrf.mxu1  ;;  %8074 = vmatpush3.bf16.msra.mxu1 %v8713_v47  ;;  %v8714_v2 = vld [vmem:[%s13642_s5 + $0x40] sm:$0xff]  }
 0x129   : > { %v10048_v20 = vpop.permute.xlu1 %1680  ;;  %v10052_v16 = vmul.bf16 %v9992_v62, %v10036_v10  ;;  %v2434_v14 = vmul.bf16 %v9847_v7, %v10036_v10  ;;  %v2461_v31 = vshll.u32 %v10036_v10, 16  ;;  %v1199_v27 = vor.u32 %v1197_v53, %v10043_v57  ;;  %8075 = vmatprep.subr.bf16.mxu1 %v8714_v2 }
 0x12a   : > { %v1188_v40 = vrot.slane %v1186_v11, 7  ;;  %v1059_v19 = vadd.f32 %v1058_v8, %v9961_v42  ;;  %v1070_v45 = vadd.f32 %v8421_v54, %v8385_v28  ;;  %v10065_v24 = vcombine.low %v1557_v43, %v1569_v29  ;;  %v1061_v7 = vpop.f32.mrf.mxu1 }
 0x12b   : > { %2716 = vrot.lane.b32.xlu1 %v10052_v16, %s9197_s16  ;;  %v2636_v47 = vrot.slane %v2434_v14, 1  ;;  %v2638_v53 = vrot.slane %v2435_v44, 1  ;;  %v2463_v11 = vrot.slane %v2461_v31, 1  ;;  %v1062_v28 = vadd.f32 %v1061_v7, %v723_v35 }
 0x12c   : > { %13861 = vst [vmem:[#allocation54_spill] sm:$0xff] %v10065_v24  ;;  %v1191_v60 = vor.u32 %v1189_v9, %v1188_v40  ;;  %v1158_v42 = vpack.c.bf16 %v1070_v45, %v1067_v21  ;;  %v2469_v8 = vshll.u32 %v9998_v63, 16  ;;  %v13862_v54 = vrot.slane %v9712_v41, %v9777_v23  ;;  %v8424_v62 = vpop.f32.mrf.mxu1  ;;  %8076 = vmatpush3.bf16.msra.mxu1 %v8715_v39 }
 0x12d   : > { %v2639_v43 = vsel %vm2634_vm4, %v2636_v47, %v2638_v53  ;;  %v10079_v44 = vsel %vm1169_vm2, %v1188_v40, %v1199_v27  ;;  %v1157_v21 = vpack.c.bf16 %v1062_v28, %v1059_v19  ;;  %v2464_v35 = vsel %vm2452_vm5, %v9880_v12, %v2463_v11 }
 0x12e   : > { %v10073_v1 = vcombine.low %v2121_v36, %v13862_v54  ;;  %v1192_v7 = vsel %vm1169_vm2, %v9958_v34, %v1191_v60  ;;  %v1210_v9 = vshrl.u32 %v1158_v42, 16  ;;  %2759 = vrot.lane.b32.xlu0 %v2639_v43, %s9199_s25  ;;  %v10084_v41 = vpop.permute.xlu1 %2222  ;;  %v1213_v14 = vshll.u32 %v1158_v42, 16  ;;  %v1074_v31 = vpop.f32.mrf.mxu1 }
 0x12f   : > { %2585 = vrot.lane.b32.xlu1 %v2464_v35, %s9199_s25  ;;  %v10093_v60 = vmul.bf16 %v10016_v38, %v10079_v44  ;;  %v2437_v34 = vmul.bf16 %v9892_v15, %v10079_v44  ;;  %v1202_v40 = vshrl.u32 %v1157_v21, 16  ;;  %v1205_v19 = vshll.u32 %v1157_v21, 16 }
 0x130   : > { %13863 = vst [vmem:[#allocation55_spill] sm:$0xff] %v10073_v1  ;;  %v10097_v27 = vrot.slane %v1210_v9, 7  ;;  %v2471_v45 = vrot.slane %v2469_v8, 1  ;;  %v8425_v2 = vpop.f32.mrf.mxu1  ;;  %v2637_v39 = vsel %vm2634_vm4, %v9857_v22, %v2636_v47  ;;  %v2436_v42 = vmul.bf16 %v9875_v61, %v1192_v7  ;;  %v13879_v61 = vld [vmem:[#allocation22_spill] sm:$0xff] }
 0x131   : > { %13864 = vst [vmem:[#allocation56_spill] sm:$0xff] %v10093_v60  ;;  %v2473_v28 = vshrl.u32 %v9998_v63, 16  ;;  %v2465_v54 = vshrl.u32 %v10036_v10, 16  ;;  %v1204_v35 = vrot.slane %v1202_v40, 7  ;;  %v1083_v36 = vadd.f32 %v8424_v62, %v9726_v48 }
 0x132   : > { %2796 = vrot.lane.b32.xlu0 %v10093_v60, %s9198_s20  ;;  %v1086_v9 = vadd.f32 %v8425_v2, %v9734_v51  ;;  %v2477_v21 = vshll.u32 %v1192_v7, 16  ;;  %v1215_v8 = vor.u32 %v1213_v14, %v10097_v27  ;;  %v1075_v29 = vadd.f32 %v1074_v31, %v9730_v50  ;;  %v1077_v22 = vpop.f32.mrf.mxu1 }
 0x133   : > { %v2642_v47 = vrot.slane %v2437_v34, 1  ;;  %2668 = vrot.lane.b32.xlu1 %v2637_v39, %s9198_s20  ;;  %v2640_v63 = vrot.slane %v2436_v42, 1  ;;  %v1207_v38 = vor.u32 %v1205_v19, %v1204_v35  ;;  %v10111_v40 = vpop.permute.xlu1 %1704  ;;  %v10114_v48 = vmul.bf16 %v9886_v58, %v1192_v7 }
 0x134   : > { %v1160_v10 = vpack.c.bf16 %v1086_v9, %v1083_v36  ;;  %v2485_v62 = vshll.u32 %v10079_v44, 16  ;;  %v1078_v51 = vadd.f32 %v1077_v22, %v9736_v52  ;;  %v2479_v34 = vrot.slane %v2477_v21, 1 }
 0x135   : > { %v10119_v14 = vsel %vm2634_vm4, %v2638_v53, %v2640_v63  ;;  %v8428_v50 = vpop.f32.mrf.mxu1  ;;  %v10122_v31 = vsel %vm2634_vm4, %v2640_v63, %v2642_v47  ;;  %v10126_v36 = vsel %vm1169_vm2, %v10043_v57, %v1207_v38  ;;  %v2467_v52 = vor.u32 %v2465_v54, %v2463_v11 }
 0x136   : > { %v1226_v19 = vshrl.u32 %v1160_v10, 16  ;;  %8446 = vmatprep.mubr.msk.bf16.mxu0 %vm943_vm1, %v10119_v14  ;;  %2794 = vrot.lane.b32.xlu0 %v10114_v48, %s9198_s20  ;;  %v2481_v22 = vshrl.u32 %v1192_v7, 16  ;;  %v10133_v53 = vsel %vm1169_vm2, %v1204_v35, %v1215_v8  ;;  %v1159_v2 = vpack.c.bf16 %v1078_v51, %v1075_v29 }
 0x137   : > { %8447 = vmatmul.mubr.msk.bf16.vlgmr.msra.gmra.mxu0 %vm943_vm1, %v10122_v31  ;;  %v1090_v39 = vpop.f32.mrf.mxu1  ;;  %2670 = vrot.lane.b32.xlu1 %v2639_v43, %s9198_s20  ;;  %v2475_v38 = vor.u32 %v2473_v28, %v2471_v45  ;;  %v1229_v42 = vshll.u32 %v1160_v10, 16  ;;  %v2487_v21 = vrot.slane %v2485_v62, 1  ;;  %v1099_v11 = vadd.f32 %v8428_v50, %v9742_v55  ;;  %v13865_v43 = vld [vmem:[#allocation15_spill] sm:$0xff]  ;;  %v13866_v62 = vld [vmem:[#allocation10_spill] sm:$0xff] }
 0x138   : > { %v10138_v57 = vrot.slane %v1226_v19, 7  ;;  %v2483_v9 = vor.u32 %v2481_v22, %v2479_v34  ;;  %v1218_v63 = vshrl.u32 %v1159_v2, 16  ;;  %v2438_v29 = vmul.bf16 %v9916_v30, %v10126_v36  ;;  %v10147_v8 = vpop.permute.xlu1 %2244 }
 0x139   : > { %v10142_v7 = vsel %vm2452_vm5, %v2475_v38, %v2479_v34  ;;  %v8429_v54 = vpop.f32.mrf.mxu1  ;;  %v10153_v10 = vsel %vm2452_vm5, %v2467_v52, %v2471_v45  ;;  %v2439_v55 = vmul.bf16 %v9932_v32, %v10133_v53  ;;  %v13867_v51 = vrot.slane %v13866_v62, %v9777_v23  ;;  %v13870_v45 = vld [vmem:[#allocation13_spill] sm:$0xff] }
 0x13a   : > { %v1231_v35 = vor.u32 %v1229_v42, %v10138_v57  ;;  %2828 = vrot.lane.b32.xlu0 %v10142_v7, %s9197_s16  ;;  %v1102_v28 = vadd.f32 %v8429_v54, %v13865_v43  ;;  %v13868_v50 = vrot.slane %v9770_v5, %v9777_v23  ;;  %v1220_v19 = vrot.slane %v1218_v63, 7  ;;  %v13871_v43 = vld [vmem:[#allocation16_spill] sm:$0xff] }
 0x13b   : > { %v1221_v22 = vshll.u32 %v1159_v2, 16  ;;  %v1093_v38 = vpop.f32.mrf.mxu1  ;;  %2587 = vrot.lane.b32.xlu1 %v10153_v10, %s9199_s25  ;;  %v2644_v42 = vrot.slane %v2438_v29, 1  ;;  %v1091_v52 = vadd.f32 %v1090_v39, %v13870_v45  ;;  %v10170_v58 = vsel %vm2452_vm5, %v2483_v9, %v2487_v21 }
 0x13c   : > { %v10163_v34 = vcombine.low %v13868_v50, %v13867_v51  ;;  %v1162_v54 = vpack.c.bf16 %v1102_v28, %v1099_v11  ;;  %v1094_v32 = vadd.f32 %v1093_v38, %v13871_v43  ;;  %v10173_v5 = vsel %vm1169_vm2, %v1220_v19, %v1231_v35  ;;  %v13872_v50 = vld [vmem:[#allocation31_spill] sm:$0xff] }
 0x13d   : > { %v1223_v62 = vor.u32 %v1221_v22, %v1220_v19  ;;  %v10176_v63 = vsel %vm2634_vm4, %v2642_v47, %v2644_v42  ;;  %v8432_v2 = vpop.f32.mrf.mxu1  ;;  %v2646_v51 = vrot.slane %v2439_v55, 1  ;;  %v13873_v39 = vrot.slane %v9728_v49, %v9777_v23  ;;  %v10206_v45 = vpop.permute.xlu1 %1728 }
 0x13e   : > { %13869 = vst [vmem:[#allocation15_spill] sm:$0xff] %v10163_v34  ;;  %v13874_v11 = vrot.slane %v9922_v3, %v9777_v23  ;;  %v1242_v28 = vshrl.u32 %v1162_v54, 16  ;;  %v1161_v22 = vpack.c.bf16 %v1094_v32, %v1091_v52  ;;  %2830 = vrot.lane.b32.xlu0 %v10170_v58, %s9197_s16  ;;  %8450 = vmatprep.mubr.msk.bf16.mxu0 %vm943_vm1, %v10176_v63  ;;  %v2489_v32 = vshrl.u32 %v10079_v44, 16  ;;  %v13876_v52 = vld [vmem:[#allocation18_spill] sm:$0xff] }
 0x13f   : > { %v10194_v47 = vsel %vm1169_vm2, %v10097_v27, %v1223_v62  ;;  %v10197_v35 = vsel %vm2634_vm4, %v2644_v42, %v2646_v51  ;;  %v1106_v49 = vpop.f32.mrf.mxu1  ;;  %2722 = vrot.lane.b32.xlu1 %v10093_v60, %s9197_s16  ;;  %v2441_v3 = vmul.bf16 %v10011_v56, %v10173_v5  ;;  %v1245_v19 = vshll.u32 %v1162_v54, 16 }
 0x140   : > { %v10186_v9 = vcombine.low %v13874_v11, %v13873_v39  ;;  %v10204_v55 = vrot.slane %v1242_v28, 7  ;;  %v1234_v38 = vshrl.u32 %v1161_v22, 16  ;;  %8451 = vmatmul.mubr.msk.bf16.gmra.mxu0 %vm943_vm1, %v10197_v35  ;;  %v10212_v27 = vmul.bf16 %v10022_v0, %v10133_v53  ;;  %v13877_v28 = vld [vmem:[#allocation20_spill] sm:$0xff]  ;;  %v13878_v0 = vld [vmem:[#allocation19_spill] sm:$0xff] }
 0x141   : > { %v1237_v42 = vshll.u32 %v1161_v22, 16  ;;  %v1115_v43 = vadd.f32 %v8432_v2, %v13876_v52  ;;  %v8433_v62 = vpop.f32.mrf.mxu1  ;;  %v2440_v44 = vmul.bf16 %v9980_v33, %v10194_v47  ;;  %v10219_v54 = vmul.bf16 %v9930_v4, %v10126_v36 }
 0x142   : > { %13875 = vst [vmem:[#allocation10_spill] sm:$0xff] %v10186_v9  ;;  %v1247_v39 = vor.u32 %v1245_v19, %v10204_v55  ;;  %v1236_v11 = vrot.slane %v1234_v38, 7  ;;  %2800 = vrot.lane.b32.xlu0 %v10212_v27, %s9198_s20  ;;  %v1118_v29 = vadd.f32 %v8433_v62, %v13877_v28  ;;  %v2493_v22 = vshll.u32 %v10126_v36, 16 }
 0x143   : > { %v1107_v2 = vadd.f32 %v1106_v49, %v13878_v0  ;;  %v1109_v52 = vpop.f32.mrf.mxu1  ;;  %2720 = vrot.lane.b32.xlu1 %v10114_v48, %s9197_s16  ;;  %v2648_v56 = vrot.slane %v2440_v44, 1  ;;  %v2650_v33 = vrot.slane %v2441_v3, 1  ;;  %v2491_v4 = vor.u32 %v2489_v32, %v2487_v21 }
 0x144   : > { %v1239_v30 = vor.u32 %v1237_v42, %v1236_v11  ;;  %v10230_v19 = vsel %vm1169_vm2, %v1236_v11, %v1247_v39  ;;  %v1164_v38 = vpack.c.bf16 %v1118_v29, %v1115_v43  ;;  %v1110_v15 = vadd.f32 %v1109_v52, %v13879_v61  ;;  %v10246_v29 = vpop.permute.xlu1 %2266  ;;  %v13880_v43 = vld [vmem:[#allocation23_spill] sm:$0xff] }
 0x145   : > { %v10234_v62 = vsel %vm2634_vm4, %v2646_v51, %v2648_v56  ;;  %v8436_v28 = vpop.f32.mrf.mxu1  ;;  %v10237_v0 = vsel %vm2634_vm4, %v2648_v56, %v2650_v33  ;;  %v2495_v49 = vrot.slane %v2493_v22, 1  ;;  %v2501_v60 = vshll.u32 %v10133_v53, 16 }
 0x146   : > { %v2209_v21 = vrot.slane %v9994_v37, %v9777_v23  ;;  %v10244_v3 = vsel %vm1169_vm2, %v10138_v57, %v1239_v30  ;;  %v1258_v61 = vshrl.u32 %v1164_v38, 16  ;;  %v1163_v32 = vpack.c.bf16 %v1110_v15, %v1107_v2  ;;  %8454 = vmatprep.mubr.msk.bf16.mxu0 %vm943_vm1, %v10234_v62  ;;  %2798 = vrot.lane.b32.xlu0 %v10219_v54, %s9198_s20 }
 0x147   : > { %v2231_v56 = vrot.slane %v10084_v41, %v9777_v23  ;;  %v1261_v51 = vshll.u32 %v1164_v38, 16  ;;  %v1122_v42 = vpop.f32.mrf.mxu1  ;;  %2761 = vrot.lane.b32.xlu1 %v10119_v14, %s9199_s25  ;;  %v2442_v30 = vmul.bf16 %v10073_v1, %v10244_v3  ;;  %v2497_v37 = vshrl.u32 %v10126_v36, 16  ;;  %v13882_v1 = vld [vmem:[#allocation25_spill] sm:$0xff] }
 0x148   : > { %v10259_v15 = vrot.slane %v1258_v61, 7  ;;  %v1250_v57 = vshrl.u32 %v1163_v32, 16  ;;  %v1131_v44 = vadd.f32 %v8436_v28, %v13880_v43  ;;  %8455 = vmatmul.mubr.msk.bf16.gmra.mxu0 %vm943_vm1, %v10237_v0  ;;  %v10265_v41 = vsel %vm2452_vm5, %v2491_v4, %v2495_v49  ;;  %v13881_v28 = vld [vmem:[#allocation26_spill] sm:$0xff] }
 0x149   : > { %v8437_v39 = vpop.f32.mrf.mxu1  ;;  %v2652_v11 = vrot.slane %v2442_v30, 1  ;;  %v2499_v22 = vor.u32 %v2497_v37, %v2495_v49  ;;  %v10267_v2 = vrot.slane %v2501_v60, 1  ;;  %v2443_v52 = vmul.bf16 %v10163_v34, %v10230_v19 }
 0x14a   : > { %v1263_v36 = vor.u32 %v1261_v51, %v10259_v15  ;;  %v1252_v38 = vrot.slane %v1250_v57, 7  ;;  %v1253_v61 = vshll.u32 %v1163_v32, 16  ;;  %2832 = vrot.lane.b32.xlu0 %v10265_v41, %s9197_s16  ;;  %v1134_v43 = vadd.f32 %v8437_v39, %v13881_v28  ;;  %v10286_v57 = vpop.permute.xlu1 %1752  ;;  %v13884_v28 = vld [vmem:[#allocation28_spill] sm:$0xff] }
 0x14b   : > { %v2253_v4 = vrot.slane %v10147_v8, %v9777_v23  ;;  %v1123_v30 = vadd.f32 %v1122_v42, %v13882_v1  ;;  %v1125_v49 = vpop.f32.mrf.mxu1  ;;  %2763 = vrot.lane.b32.xlu1 %v10122_v31, %s9199_s25  ;;  %v10281_v60 = vsel %vm2634_vm4, %v2650_v33, %v2652_v11  ;;  %v2654_v51 = vrot.slane %v2443_v52, 1  ;;  %13883 = vst [vmem:[#allocation13_spill] sm:$0xff] %v10286_v57 }
 0x14c   : > { %v1255_v37 = vor.u32 %v1253_v61, %v1252_v38  ;;  %v10284_v32 = vsel %vm1169_vm2, %v1252_v38, %v1263_v36  ;;  %v1166_v39 = vpack.c.bf16 %v1134_v43, %v1131_v44  ;;  %v1126_v34 = vadd.f32 %v1125_v49, %v13884_v28  ;;  %8458 = vmatprep.mubr.msk.bf16.mxu0 %vm943_vm1, %v10281_v60  ;;  %v13888_v38 = vld [vmem:[#allocation11_spill] sm:$0xff] }
 0x14d   : > { %v13885_v1 = vrot.slane %v13872_v50, %v9777_v23  ;;  %v13886_v33 = vrot.slane %v9722_v46, %v9777_v23  ;;  %v10301_v42 = vsel %vm2452_vm5, %v2499_v22, %v10267_v2  ;;  %v8440_v52 = vpop.f32.mrf.mxu1  ;;  %v10304_v44 = vsel %vm2634_vm4, %v2652_v11, %v2654_v51 }
 0x14e   : > { %v2445_v36 = vmul.bf16 %v10186_v9, %v10284_v32  ;;  %v13889_v61 = vrot.slane %v13888_v38, %v9777_v23  ;;  %v10315_v46 = vsel %vm1169_vm2, %v10204_v55, %v1255_v37  ;;  %v1274_v43 = vshrl.u32 %v1166_v39, 16  ;;  %2834 = vrot.lane.b32.xlu0 %v10301_v42, %s9197_s16  ;;  %v13896_v9 = vld [vmem:[#allocation32_spill] sm:$0xff] }
 0x14f   : > { %v10297_v8 = vcombine.low %v13886_v33, %v13885_v1  ;;  %v1165_v49 = vpack.c.bf16 %v1126_v34, %v1123_v30  ;;  %v13891_v11 = vrot.slane %v9750_v59, %v9777_v23  ;;  %v13893_v28 = vrot.slane %v9762_v6, %v9777_v23  ;;  %v1138_v55 = vpop.f32.mrf.mxu1  ;;  %2589 = vrot.lane.b32.xlu1 %v10142_v7, %s9199_s25 }
 0x150   : > { %v10311_v50 = vcombine.low %v2209_v21, %v13889_v61  ;;  %v2275_v21 = vrot.slane %v10246_v29, %v9777_v23  ;;  %v10335_v30 = vrot.slane %v1274_v43, 7  ;;  %v1277_v59 = vshll.u32 %v1166_v39, 16  ;;  %8459 = vmatmul.mubr.msk.bf16.gmra.mxu0 %vm943_vm1, %v10304_v44  ;;  %v2289_v43 = vpop.permute.xlu1 %2288 }
 0x151   : > { %13887 = vst [vmem:[#allocation16_spill] sm:$0xff] %v10297_v8  ;;  %v10322_v22 = vcombine.low %v2231_v56, %v13891_v11  ;;  %v10327_v1 = vcombine.low %v2253_v4, %v13893_v28  ;;  %v2444_v34 = vmul.bf16 %v10297_v8, %v10315_v46  ;;  %v1266_v56 = vshrl.u32 %v1165_v49, 16  ;;  %v13895_v4 = vld [vmem:[#allocation29_spill] sm:$0xff]  ;;  %v8441_v37 = vpop.f32.mrf.mxu1 }
 0x152   : > { %13890 = vst [vmem:[#allocation31_spill] sm:$0xff] %v10311_v50  ;;  %v10341_v6 = vmul.bf16 %v10065_v24, %v10173_v5  ;;  %v1147_v29 = vadd.f32 %v8440_v52, %v13895_v4  ;;  %v2658_v38 = vrot.slane %v2445_v36, 1  ;;  %v2509_v61 = vshll.u32 %v10194_v47, 16  ;;  %v13898_v24 = vld [vmem:[#allocation33_spill] sm:$0xff] }
 0x153   : > { %13892 = vst [vmem:[#allocation18_spill] sm:$0xff] %v10322_v22  ;;  %13894 = vst [vmem:[#allocation20_spill] sm:$0xff] %v10327_v1  ;;  %v2656_v33 = vrot.slane %v2444_v34, 1  ;;  %v1279_v11 = vor.u32 %v1277_v59, %v10335_v30  ;;  %v1268_v28 = vrot.slane %v1266_v56, 7  ;;  %v1269_v39 = vshll.u32 %v1165_v49, 16  ;;  %v1141_v57 = vpop.f32.mrf.mxu1  ;;  %2672 = vrot.lane.b32.xlu1 %v10119_v14, %s9198_s20 }
 0x154   : > { %2804 = vrot.lane.b32.xlu0 %v10341_v6, %s9198_s20  ;;  %v1150_v8 = vadd.f32 %v8441_v37, %v13896_v9  ;;  %v2505_v34 = vshrl.u32 %v10133_v53, 16  ;;  %v2511_v59 = vrot.slane %v2509_v61, 1  ;;  %v2513_v9 = vshrl.u32 %v10194_v47, 16 }
 0x155   : > { %v10352_v52 = vsel %vm2634_vm4, %v2654_v51, %v2656_v33  ;;  %v10355_v36 = vsel %vm2634_vm4, %v2656_v33, %v2658_v38  ;;  %v1271_v56 = vor.u32 %v1269_v39, %v1268_v28  ;;  %v10359_v49 = vsel %vm1169_vm2, %v1268_v28, %v1279_v11  ;;  %v13897_v51 = vld [vmem:[#allocation30_spill] sm:$0xff] }
 0x156   : > { %v1168_v4 = vpack.c.bf16 %v1150_v8, %v1147_v29  ;;  %8462 = vmatprep.mubr.msk.bf16.mxu0 %vm943_vm1, %v10352_v52  ;;  %v2297_v14 = vrot.slane %v2289_v43, %v9777_v23  ;;  %v1139_v37 = vadd.f32 %v1138_v55, %v13897_v51  ;;  %v1142_v33 = vadd.f32 %v1141_v57, %v13898_v24 }
 0x157   : > { %v2447_v53 = vmul.bf16 %v10322_v22, %v10359_v49  ;;  %v10371_v61 = vsel %vm1169_vm2, %v10259_v15, %v1271_v56  ;;  %v2515_v8 = vor.u32 %v2513_v9, %v2511_v59  ;;  %v2517_v29 = vshll.u32 %v10173_v5, 16  ;;  %2674 = vrot.lane.b32.xlu1 %v10122_v31, %s9198_s20 }
 0x158   : > { %v1290_v11 = vshrl.u32 %v1168_v4, 16  ;;  %2730 = vrot.lane.b32.xlu0 %v10341_v6, %s9197_s16  ;;  %v13899_v43 = vrot.slane %v9779_v25, %v9777_v23  ;;  %v1167_v24 = vpack.c.bf16 %v1142_v33, %v1139_v37  ;;  %v10385_v15 = vmul.bf16 %v10006_v18, %v10194_v47  ;;  %8463 = vmatmul.mubr.msk.bf16.gmra.mxu0 %vm943_vm1, %v10355_v36 }
 0x159   : > { %v2446_v57 = vmul.bf16 %v10311_v50, %v10371_v61  ;;  %v1293_v39 = vshll.u32 %v1168_v4, 16  ;;  %v2507_v25 = vor.u32 %v2505_v34, %v10267_v2  ;;  %v2662_v51 = vrot.slane %v2447_v53, 1  ;;  %v13905_v50 = vld [vmem:[#allocation12_spill] sm:$0xff] }
 0x15a   : > { %v10379_v55 = vcombine.low %v2275_v21, %v13899_v43  ;;  %v1292_v28 = vrot.slane %v1290_v11, 7  ;;  %v2519_v21 = vrot.slane %v2517_v29, 1  ;;  %v1282_v56 = vshrl.u32 %v1167_v24, 16 }
 0x15b   : > { %v2660_v9 = vrot.slane %v2446_v57, 1  ;;  %v2525_v31 = vshll.u32 %v10244_v3, 16  ;;  %v13901_v47 = vrot.slane %v9799_v13, %v9777_v23  ;;  %v2521_v2 = vshrl.u32 %v10173_v5, 16  ;;  %2591 = vrot.lane.b32.xlu1 %v10170_v58, %s9199_s25 }
 0x15c   : > { %13900 = vst [vmem:[#allocation19_spill] sm:$0xff] %v10379_v55  ;;  %v1295_v33 = vor.u32 %v1293_v39, %v1292_v28  ;;  %2802 = vrot.lane.b32.xlu0 %v10385_v15, %s9198_s20  ;;  %v10401_v4 = vsel %vm2452_vm5, %v2515_v8, %v2519_v21  ;;  %v1284_v34 = vrot.slane %v1282_v56, 7  ;;  %v1285_v11 = vshll.u32 %v1167_v24, 16 }
 0x15d   : > { %v10396_v37 = vcombine.low %v2297_v14, %v13901_v47  ;;  %v10407_v53 = vsel %vm2634_vm4, %v2658_v38, %v2660_v9  ;;  %v10410_v13 = vsel %vm2634_vm4, %v2660_v9, %v2662_v51  ;;  %v2523_v14 = vor.u32 %v2521_v2, %v2519_v21 }
 0x15e   : > { %8466 = vmatprep.mubr.msk.bf16.mxu0 %vm943_vm1, %v10407_v53  ;;  %v2527_v29 = vrot.slane %v2525_v31, 1  ;;  %v2529_v8 = vshrl.u32 %v10244_v3, 16  ;;  %v2533_v5 = vshll.u32 %v10230_v19, 16  ;;  %v10418_v43 = vsel %vm10002_vm6, %v1292_v28, 0 }
 0x15f   : > { %13902 = vst [vmem:[#allocation22_spill] sm:$0xff] %v10396_v37  ;;  %v1287_v24 = vor.u32 %v1285_v11, %v1284_v34  ;;  %v10421_v38 = vsel %vm1169_vm2, %v1284_v34, %v1295_v33  ;;  %v10424_v57 = vsel %vm2452_vm5, %v2507_v25, %v2511_v59  ;;  %2726 = vrot.lane.b32.xlu1 %v10212_v27, %s9197_s16  ;;  %v2537_v59 = vshrl.u32 %v10230_v19, 16 }
 0x160   : > { %2836 = vrot.lane.b32.xlu0 %v10424_v57, %s9197_s16  ;;  %v2449_v39 = vmul.bf16 %v10379_v55, %v10421_v38  ;;  %v10431_v21 = vsel %vm2452_vm5, %v2523_v14, %v2527_v29  ;;  %v2531_v56 = vor.u32 %v2529_v8, %v2527_v29  ;;  %v2535_v9 = vrot.slane %v2533_v5, 1  ;;  %8467 = vmatmul.mubr.msk.bf16.gmra.mxu0 %vm943_vm1, %v10410_v13  ;;  %v13903_v8 = vld [vmem:[#allocation24_spill] sm:$0xff] }
 0x161   : > { %v10435_v28 = vsel %vm1169_vm2, %v10335_v30, %v1287_v24  ;;  %v2541_v25 = vshll.u32 %v10315_v46, 16  ;;  %v2549_v31 = vshll.u32 %v10284_v32, 16  ;;  %v2450_v33 = vmul.bf16 %v10396_v37, %v10418_v43 }
 0x162   : > { %v2448_v47 = vmul.bf16 %v10327_v1, %v10435_v28  ;;  %v10449_v30 = vsel %vm2452_vm5, %v2531_v56, %v2535_v9  ;;  %v2545_v2 = vshrl.u32 %v10315_v46, 16  ;;  %v2539_v34 = vor.u32 %v2537_v59, %v2535_v9  ;;  %v13904_v56 = vld [vmem:[#allocation27_spill] sm:$0xff] }
 0x163   : > { %v2543_v11 = vrot.slane %v2541_v25, 1  ;;  %v2551_v14 = vrot.slane %v2549_v31, 1  ;;  %v2553_v29 = vshrl.u32 %v10284_v32, 16  ;;  %v1605_v5 = vrot.slane %v13903_v8, %v9777_v23  ;;  %2724 = vrot.lane.b32.xlu1 %v10219_v54, %s9197_s16 }
 0x164   : > { %2682 = vrot.lane.b32.xlu0 %v10237_v0, %s9198_s20  ;;  %v2664_v24 = vrot.slane %v2448_v47, 1  ;;  %v2666_v55 = vrot.slane %v2449_v39, 1  ;;  %v2557_v37 = vshll.u32 %v10371_v61, 16  ;;  %v1617_v1 = vrot.slane %v13904_v56, %v9777_v23 }
 0x165   : > { %v10463_v9 = vsel %vm2452_vm5, %v2539_v34, %v2543_v11  ;;  %v2547_v59 = vor.u32 %v2545_v2, %v2543_v11  ;;  %v2555_v25 = vor.u32 %v2553_v29, %v2551_v14  ;;  %v2561_v47 = vshrl.u32 %v10371_v61, 16  ;;  %v13907_v34 = vld [vmem:[#allocation14_spill] sm:$0xff] }
 0x166   : > { %v10466_v31 = vsel %vm2634_vm4, %v2662_v51, %v2664_v24  ;;  %v10469_v8 = vsel %vm2634_vm4, %v2664_v24, %v2666_v55  ;;  %v2559_v39 = vrot.slane %v2557_v37, 1  ;;  %v1581_v56 = vrot.slane %v13905_v50, %v9777_v23 }
 0x167   : > { %8470 = vmatprep.mubr.msk.bf16.mxu0 %vm943_vm1, %v10466_v31  ;;  %v10476_v22 = vrot.slane %v2450_v33, 1  ;;  %v10479_v2 = vsel %vm2452_vm5, %v2547_v59, %v2551_v14  ;;  %v2565_v51 = vshll.u32 %v10359_v49, 16  ;;  %v1593_v11 = vrot.slane %v13907_v34, %v9777_v23  ;;  %2765 = vrot.lane.b32.xlu1 %v10176_v63, %s9199_s25 }
 0x168   : > { %2838 = vrot.lane.b32.xlu0 %v10401_v4, %s9197_s16  ;;  %v10487_v37 = vsel %vm2452_vm5, %v2555_v25, %v2559_v39  ;;  %v2563_v50 = vor.u32 %v2561_v47, %v2559_v39  ;;  %v2573_v29 = vshll.u32 %v10435_v28, 16  ;;  %v10490_v24 = vcombine.low %v1605_v5, %v1617_v1  ;;  %8471 = vmatmul.mubr.msk.bf16.gmra.mxu0 %vm943_vm1, %v10469_v8 }
 0x169   : > { %13906 = vst [vmem:[#allocation23_spill] sm:$0xff] %v10476_v22  ;;  %v10494_v33 = vsel %vm2634_vm4, %v2666_v55, %v10476_v22  ;;  %v2567_v14 = vrot.slane %v2565_v51, 1  ;;  %v2569_v59 = vshrl.u32 %v10359_v49, 16  ;;  %v2752_v39 = vshll.u32 %v10418_v43, 16  ;;  %v1357_v22 = vpop.permute.xlu0 %1356 }
 0x16a   : > { %13908 = vst [vmem:[#allocation26_spill] sm:$0xff] %v10490_v24  ;;  %v2575_v25 = vrot.slane %v2573_v29, 1  ;;  %v2577_v47 = vshrl.u32 %v10435_v28, 16  ;;  %v2581_v1 = vshll.u32 %v10421_v38, 16  ;;  %8474 = vmatprep.mubr.msk.bf16.mxu0 %vm943_vm1, %v10494_v33  ;;  %v2748_v29 = vshrl.u32 %v10421_v38, 16 }
 0x16b   : > { %v10507_v55 = vsel %vm2452_vm5, %v2563_v50, %v2567_v14  ;;  %v2571_v5 = vor.u32 %v2569_v59, %v2567_v14  ;;  %v10512_v18 = vcombine.low %v1581_v56, %v1593_v11  ;;  %2767 = vrot.lane.b32.xlu1 %v10197_v35, %s9199_s25  ;;  %v10521_v50 = vmul.bf16 %v10490_v24, %v10230_v19 }
 0x16c   : > { %2599 = vrot.lane.b32.xlu0 %v10401_v4, %s9199_s25  ;;  %v2579_v51 = vor.u32 %v2577_v47, %v2575_v25  ;;  %v2583_v34 = vrot.slane %v2581_v1, 1  ;;  %v10523_v14 = vrot.slane %v2752_v39, 1  ;;  %v13912_v39 = vld [vmem:[#allocation36_spill] sm:$0xff] }
 0x16d   : > { %13909 = vst [vmem:[#allocation25_spill] sm:$0xff] %v10512_v18  ;;  %v10517_v17 = vsel %vm2452_vm5, %v2571_v5, %v2575_v25  ;;  %13910 = vst [vmem:[#allocation28_spill] sm:$0xff] %v10521_v50  ;;  %v10538_v19 = vmul.bf16 %v10512_v18, %v10244_v3  ;;  %v1621_v11 = vpop.permute.xlu0 %1620  ;;  %v1641_v1 = vrot.slane %v13912_v39, %v9777_v23 }
 0x16e   : > { %v10526_v59 = vsel %vm2452_vm5, %v2579_v51, %v2583_v34  ;;  %v2750_v47 = vor.u32 %v2748_v29, %v2583_v34 }
 0x16f   : > { %2593 = vrot.lane.b32.xlu1 %v10265_v41, %s9199_s25  ;;  %13911 = vst [vmem:[#allocation11_spill] sm:$0xff] %v10538_v19 }
 0x170   : > { %2734 = vrot.lane.b32.xlu0 %v10521_v50, %s9197_s16  ;;  %v10532_v56 = vsel %vm2452_vm5, %v2750_v47, %v10523_v14  ;;  %v13914_v47 = vld [vmem:[#allocation45_spill] sm:$0xff] }
 0x171   : > { %v1645_v25 = vpop.permute.xlu0 %1644 }
 0x173   : > { %2676 = vrot.lane.b32.xlu1 %v10176_v63, %s9198_s20  ;;  %v1629_v63 = vrot.slane %v1621_v11, %v9777_v23  ;;  %v1665_v11 = vrot.slane %v13914_v47, %v9777_v23 }
 0x174   : > { %2732 = vrot.lane.b32.xlu0 %v10538_v19, %s9197_s16 }
 0x175   : > { %v1669_v3 = vpop.permute.xlu0 %1668  ;;  %v10565_v5 = vcombine.low %v1629_v63, %v1641_v1 }
 0x177   : > { %2678 = vrot.lane.b32.xlu1 %v10197_v35, %s9198_s20  ;;  %13913 = vst [vmem:[#allocation29_spill] sm:$0xff] %v10565_v5  ;;  %v10573_v51 = vmul.bf16 %v10565_v5, %v10315_v46  ;;  %v1653_v46 = vrot.slane %v1645_v25, %v9777_v23  ;;  %v1365_v5 = vrot.slane %v1357_v22, %v9777_v23 }
 0x178   : > { %2840 = vrot.lane.b32.xlu0 %v10431_v21, %s9197_s16 }
 0x179   : > { %v10563_v35 = vpop.permute.xlu0 %1692  ;;  %v10604_v39 = vcombine.low %v1653_v46, %v1665_v11  ;;  %v13916_v46 = vld [vmem:[#allocation17_spill] sm:$0xff] }
 0x17a   : > { %v1377_v11 = vrot.slane %v13916_v46, %v9777_v23 }
 0x17b   : > { %2595 = vrot.lane.b32.xlu1 %v10301_v42, %s9199_s25  ;;  %13915 = vst [vmem:[#allocation32_spill] sm:$0xff] %v10604_v39  ;;  %v10612_v25 = vmul.bf16 %v10604_v39, %v10284_v32 }
 0x17c   : > { %2601 = vrot.lane.b32.xlu0 %v10431_v21, %s9199_s25  ;;  %v10627_v32 = vcombine.low %v1365_v5, %v1377_v11 }
 0x17d   : > { %v10575_v34 = vpop.permute.xlu0 %1716 }
 0x17e   : > { %13917 = vst [vmem:[#allocation30_spill] sm:$0xff] %v10627_v32 }
 0x17f   : > { %2728 = vrot.lane.b32.xlu1 %v10385_v15, %s9197_s16 }
 0x180   : > { %2684 = vrot.lane.b32.xlu0 %v10281_v60, %s9198_s20 }
 0x181   : > { %v10585_v29 = vpop.permute.xlu0 %1740 }
 0x183   : > { %2769 = vrot.lane.b32.xlu1 %v10234_v62, %s9199_s25 }
 0x184   : > { %2686 = vrot.lane.b32.xlu0 %v10304_v44, %s9198_s20 }
 0x185   : > { %v10596_v63 = vpop.permute.xlu0 %1764 }
 0x187   : > { %2771 = vrot.lane.b32.xlu1 %v10237_v0, %s9199_s25  ;;  %v10591_v0 = vpop.permute.xlu1 %1776 }
 0x188   : > { %2603 = vrot.lane.b32.xlu0 %v10449_v30, %s9199_s25 }
 0x18b   : > { %2597 = vrot.lane.b32.xlu1 %v10424_v57, %s9199_s25 }
 0x18c   : > { %2736 = vrot.lane.b32.xlu0 %v10573_v51, %s9197_s16 }
 0x18f   : > { %2680 = vrot.lane.b32.xlu1 %v10234_v62, %s9198_s20 }
 0x190   : > { %2605 = vrot.lane.b32.xlu0 %v10463_v9, %s9199_s25 }
 0x193   : > { %2808 = vrot.lane.b32.xlu1 %v10521_v50, %s9198_s20 }
 0x194   : > { %2688 = vrot.lane.b32.xlu0 %v10352_v52, %s9198_s20 }
 0x197   : > { %2806 = vrot.lane.b32.xlu1 %v10538_v19, %s9198_s20 }
 0x198   : > { %2607 = vrot.lane.b32.xlu0 %v10479_v2, %s9199_s25 }
 0x199   : > { %v10602_v62 = vpop.permute.xlu1 %2718  ;;  %v2793_v1 = vpop.permute.xlu0 %2792 }
 0x19b   : > { %2773 = vrot.lane.b32.xlu1 %v10281_v60, %s9199_s25  ;;  %v1689_v60 = vrot.slane %v10048_v20, %v9777_v23  ;;  %v13699_v20 = vmul.bf16 0, %v10627_v32 }
 0x19c   : > { %2690 = vrot.lane.b32.xlu0 %v10355_v36, %s9198_s20 }
 0x19d   : > { %v2717_v47 = vpop.permute.xlu1 %2716 }
 0x19f   : > { %2775 = vrot.lane.b32.xlu1 %v10304_v44, %s9199_s25  ;;  %v1677_v44 = vrot.slane %v1669_v3, %v9777_v23 }
 0x1a0   : > { %2738 = vrot.lane.b32.xlu0 %v10612_v25, %s9197_s16  ;;  %v2760_v24 = vpop.permute.xlu0 %2759 }
 0x1a1   : > { %v2586_v18 = vpop.permute.xlu1 %2585  ;;  %v10630_v46 = vcombine.low %v1677_v44, %v1689_v60  ;;  %v2994_v3 = vsel %vm943_vm1, %v10153_v10, %v2760_v24  ;;  %v1713_v24 = vrot.slane %v10111_v40, %v9777_v23 }
 0x1a2   : > { %v2865_v11 = vsel %vm943_vm1, %v13699_v20, %v2586_v18 }
 0x1a3   : > { %2842 = vrot.lane.b32.xlu1 %v10449_v30, %s9197_s16  ;;  %13918 = vst [vmem:[#allocation33_spill] sm:$0xff] %v10630_v46  ;;  %v10639_v19 = vmul.bf16 %v10630_v46, %v10371_v61  ;;  %v3041_v61 = vsel %vm605_vm0, %v2994_v3, %v2793_v1 }
 0x1a4   : > { %2609 = vrot.lane.b32.xlu0 %v10487_v37, %s9199_s25  ;;  %v2797_v39 = vpop.permute.xlu0 %2796 }
 0x1a5   : > { %v2669_v50 = vpop.permute.xlu1 %2668 }
 0x1a6   : > { %v2912_v60 = vsel %vm605_vm0, %v2865_v11, %v2669_v50  ;;  %v1701_v50 = vrot.slane %v10563_v35, %v9777_v23 }
 0x1a7   : > { %2812 = vrot.lane.b32.xlu1 %v10612_v25, %s9198_s20  ;;  %v2945_v18 = vsel %vm2943_vm7, %v2912_v60, %v2717_v47 }
 0x1a8   : > { %2692 = vrot.lane.b32.xlu0 %v10407_v53, %s9198_s20  ;;  %v2795_v22 = vpop.permute.xlu0 %2794  ;;  %v10664_v11 = vcombine.low %v1701_v50, %v1713_v24 }
 0x1a9   : > { %v2671_v5 = vpop.permute.xlu1 %2670 }
 0x1aa   : > { %13919 = vst [vmem:[#allocation24_spill] sm:$0xff] %v10664_v11  ;;  %v10674_v47 = vmul.bf16 %v10664_v11, %v10359_v49 }
 0x1ab   : > { %2810 = vrot.lane.b32.xlu1 %v10573_v51, %s9198_s20 }
 0x1ac   : > { %2740 = vrot.lane.b32.xlu0 %v10639_v19, %s9197_s16  ;;  %v2829_v44 = vpop.permute.xlu0 %2828 }
 0x1ad   : > { %v3073_v46 = vsel %vm2943_vm7, %v3041_v61, %v2829_v44  ;;  %v2588_v10 = vpop.permute.xlu1 %2587 }
 0x1ae   : > { %3351 = vmatprep.mubr.bf16.mxu1 %v3073_v46  ;;  %v2868_v35 = vsel %vm943_vm1, %v10052_v16, %v2588_v10 }
 0x1af   : > { %3352 = vmatmul.mubr.bf16.vlgmr.msra.gmra.mxu1 %v2945_v18  ;;  %2844 = vrot.lane.b32.xlu1 %v10463_v9, %s9197_s16  ;;  %v2914_v61 = vsel %vm605_vm0, %v2868_v35, %v2671_v5  ;;  %v1785_v35 = vrot.slane %v10591_v0, %v9777_v23 }
 0x1b0   : > { %2611 = vrot.lane.b32.xlu0 %v10507_v55, %s9199_s25  ;;  %v2831_v1 = vpop.permute.xlu0 %2830  ;;  %v2948_v18 = vsel %vm2943_vm7, %v2914_v61, %v10602_v62 }
 0x1b1   : > { %v10662_v3 = vpop.permute.xlu1 %2722 }
 0x1b3   : > { %2777 = vrot.lane.b32.xlu1 %v10352_v52, %s9199_s25  ;;  %v1737_v52 = vrot.slane %v10206_v45, %v9777_v23 }
 0x1b4   : > { %2694 = vrot.lane.b32.xlu0 %v10410_v13, %s9198_s20  ;;  %v10670_v40 = vpop.permute.xlu0 %2800 }
 0x1b5   : > { %v2721_v46 = vpop.permute.xlu1 %2720 }
 0x1b7   : > { %2779 = vrot.lane.b32.xlu1 %v10355_v36, %s9199_s25  ;;  %v1725_v36 = vrot.slane %v10575_v34, %v9777_v23 }
 0x1b8   : > { %2742 = vrot.lane.b32.xlu0 %v10674_v47, %s9197_s16  ;;  %v10682_v60 = vpop.permute.xlu0 %2798 }
 0x1b9   : > { %v2762_v44 = vpop.permute.xlu1 %2761  ;;  %v10699_v50 = vcombine.low %v1725_v36, %v1737_v52 }
 0x1ba   : > { %v2997_v49 = vsel %vm943_vm1, %v10142_v7, %v2762_v44 }
 0x1bb   : > { %2846 = vrot.lane.b32.xlu1 %v10479_v2, %s9197_s16  ;;  %v3043_v16 = vsel %vm605_vm0, %v2997_v49, %v2795_v22  ;;  %13920 = vst [vmem:[#allocation27_spill] sm:$0xff] %v10699_v50  ;;  %v10710_v5 = vmul.bf16 %v10699_v50, %v10435_v28  ;;  %v9201_v50 = vmov 32  }
 0x1bc   : > { %2613 = vrot.lane.b32.xlu0 %v10517_v17, %s9199_s25  ;;  %v2833_v10 = vpop.permute.xlu0 %2832  ;;  %v3076_v24 = vsel %vm2943_vm7, %v3043_v16, %v2831_v1 }
 0x1bd   : > { %v2764_v45 = vpop.permute.xlu1 %2763  ;;  %3359 = vmatprep.mubr.bf16.mxu1 %v3076_v24  ;;  %8659 = vset.pattern.permute.xlu0 %v9201_v50 }
 0x1be   : > { %v3000_v7 = vsel %vm943_vm1, %v10170_v58, %v2764_v45  ;;  %3360 = vmatmul.mubr.bf16.gmra.mxu1 %v2948_v18  ;;  %v1773_v58 = vrot.slane %v10596_v63, %v9777_v23  ;;  %v2824_v63 = vshrl.u32 %v10418_v43, 16 }
 0x1bf   : > { %2814 = vrot.lane.b32.xlu1 %v10639_v19, %s9198_s20  ;;  %v3045_v34 = vsel %vm605_vm0, %v3000_v7, %v2797_v39 }
 0x1c0   : > { %2696 = vrot.lane.b32.xlu0 %v10466_v31, %s9198_s20  ;;  %v2835_v22 = vpop.permute.xlu0 %2834  ;;  %v3079_v62 = vsel %vm2943_vm7, %v3045_v34, %v2833_v10  ;;  %v10725_v52 = vcombine.low %v1773_v58, %v1785_v35  ;;  %v2826_v36 = vor.u32 %v2824_v63, %v10523_v14 }
 0x1c1   : > { %v2590_v1 = vpop.permute.xlu1 %2589  ;;  %3367 = vmatprep.mubr.bf16.mxu1 %v3079_v62 }
 0x1c2   : > { %v2871_v28 = vsel %vm943_vm1, %v10020_v26, %v2590_v1  ;;  %13921 = vst [vmem:[#allocation12_spill] sm:$0xff] %v10725_v52  ;;  %v1911_v26 = vmul.bf16 %v10725_v52, %v10418_v43 }
 0x1c3   : > { %2848 = vrot.lane.b32.xlu1 %v10487_v37, %s9197_s16 }
 0x1c4   : > { %2744 = vrot.lane.b32.xlu0 %v10710_v5, %s9197_s16 }
 0x1c5   : > { %v2673_v44 = vpop.permute.xlu1 %2672 }
 0x1c6   : > { %v10721_v39 = vpop.permute.xlu0 %2804  ;;  %v2916_v0 = vsel %vm605_vm0, %v2871_v28, %v2673_v44  ;;  %v13922_v44 = vld [vmem:[#allocation13_spill] sm:$0xff] }
 0x1c7   : > { %2781 = vrot.lane.b32.xlu1 %v10407_v53, %s9199_s25  ;;  %v2951_v49 = vsel %vm2943_vm7, %v2916_v0, %v2721_v46  ;;  %v2827_v53 = vsel %vm2452_vm5, %v2826_v36, %v9880_v12  ;;  %v1761_v0 = vrot.slane %v13922_v44, %v9777_v23 }
 0x1c8   : > { %2789 = vrot.lane.b32.xlu0 %v10494_v33, %s9199_s25  ;;  %3368 = vmatmul.mubr.bf16.gmra.mxu1 %v2951_v49  ;;  %v13923_v49 = vld [vmem:[#allocation56_spill] sm:$0xff] }
 0x1c9   : > { %v2675_v16 = vpop.permute.xlu1 %2674 }
 0x1ca   : > { %v10734_v61 = vpop.permute.xlu0 %2730 }
 0x1cb   : > { %2850 = vrot.lane.b32.xlu1 %v10507_v55, %s9197_s16 }
 0x1cc   : > { %2822 = vrot.lane.b32.xlu0 %v1911_v26, %s9198_s20 }
 0x1cd   : > { %v2592_v46 = vpop.permute.xlu1 %2591 }
 0x1ce   : > { %v2803_v33 = vpop.permute.xlu0 %2802  ;;  %v2874_v45 = vsel %vm943_vm1, %v10114_v48, %v2592_v46 }
 0x1cf   : > { %2783 = vrot.lane.b32.xlu1 %v10410_v13, %s9199_s25  ;;  %v2918_v13 = vsel %vm605_vm0, %v2874_v45, %v2675_v16 }
 0x1d0   : > { %2858 = vrot.lane.b32.xlu0 %v2827_v53, %s9197_s16  ;;  %v2954_v58 = vsel %vm2943_vm7, %v2918_v13, %v10662_v3  ;;  %v1749_v3 = vrot.slane %v10585_v29, %v9777_v23 }
 0x1d1   : > { %v2727_v10 = vpop.permute.xlu1 %2726 }
 0x1d2   : > { %v2837_v43 = vpop.permute.xlu0 %2836  ;;  %v10787_v16 = vcombine.low %v1749_v3, %v1761_v0 }
 0x1d3   : > { %2816 = vrot.lane.b32.xlu1 %v10674_v47, %s9198_s20 }
 0x1d4   : > { %13924 = vst [vmem:[#allocation14_spill] sm:$0xff] %v10787_v16 }
 0x1d5   : > { %v2725_v24 = vpop.permute.xlu1 %2724 }
 0x1d6   : > { %v10749_v14 = vpop.permute.xlu0 %2682 }
 0x1d7   : > { %2852 = vrot.lane.b32.xlu1 %v10517_v17, %s9197_s16 }
 0x1d9   : > { %v2766_v7 = vpop.permute.xlu1 %2765 }
 0x1da   : > { %v2839_v18 = vpop.permute.xlu0 %2838  ;;  %v3003_v34 = vsel %vm943_vm1, %v10265_v41, %v2766_v7 }
 0x1db   : > { %2785 = vrot.lane.b32.xlu1 %v10466_v31, %s9199_s25  ;;  %v3047_v62 = vsel %vm605_vm0, %v3003_v34, %v10682_v60  ;;  %v1912_v34 = vld [vmem:[%s13640_s3 + $0x90] sm:$0x1] }
 0x1dc   : > { %v3082_v48 = vsel %vm2943_vm7, %v3047_v62, %v2835_v22 }
 0x1dd   : > { %v2768_v35 = vpop.permute.xlu1 %2767  ;;  %3375 = vmatprep.mubr.bf16.mxu1 %v3082_v48 }
 0x1de   : > { %v10762_v1 = vpop.permute.xlu0 %2599  ;;  %v3006_v41 = vsel %vm943_vm1, %v10301_v42, %v2768_v35  ;;  %3376 = vmatmul.mubr.bf16.gmra.mxu1 %v2954_v58 }
 0x1df   : > { %2818 = vrot.lane.b32.xlu1 %v10710_v5, %s9198_s20  ;;  %v3049_v31 = vsel %vm605_vm0, %v3006_v41, %v10670_v40 }
 0x1e0   : > { %v3085_v28 = vsel %vm2943_vm7, %v3049_v31, %v2837_v43  ;;  %v1910_v43 = vmul.bf16 %v10787_v16, %v10421_v38 }
 0x1e1   : > { %v2594_v22 = vpop.permute.xlu1 %2593  ;;  %3383 = vmatprep.mubr.bf16.mxu1 %v3085_v28 }
 0x1e2   : > { %v10773_v60 = vpop.permute.xlu0 %2734  ;;  %v2877_v40 = vsel %vm943_vm1, %v13923_v49, %v2594_v22 }
 0x1e3   : > { %2854 = vrot.lane.b32.xlu1 %v10526_v59, %s9197_s16 }
 0x1e5   : > { %v2677_v63 = vpop.permute.xlu1 %2676 }
 0x1e6   : > { %v10780_v42 = vpop.permute.xlu0 %2732  ;;  %v2920_v26 = vsel %vm605_vm0, %v2877_v40, %v2677_v63 }
 0x1e7   : > { %2787 = vrot.lane.b32.xlu1 %v10469_v8, %s9199_s25  ;;  %v2957_v36 = vsel %vm2943_vm7, %v2920_v26, %v2725_v24 }
 0x1e8   : > { %3384 = vmatmul.mubr.bf16.gmra.mxu1 %v2957_v36  ;;  %v8716_v36 = vld [vmem:[%s13644_s7 + $0x8] sm:$0xff]  }
 0x1e9   : > { %v2679_v46 = vpop.permute.xlu1 %2678  ;;  %8478 = vmatprep.subr.bf16.mxu0 %v8716_v36 }
 0x1ea   : > { %v2841_v53 = vpop.permute.xlu0 %2840  ;;  %8479 = vmatpush3.bf16.msra.mxu0 %v8716_v36 }
 0x1eb   : > { %2820 = vrot.lane.b32.xlu1 %v1910_v43, %s9198_s20 }
 0x1ed   : > { %v2596_v45 = vpop.permute.xlu1 %2595 }
 0x1ee   : > { %v2602_v29 = vpop.permute.xlu0 %2601  ;;  %v2880_v24 = vsel %vm943_vm1, %v10219_v54, %v2596_v45 }
 0x1ef   : > { %2856 = vrot.lane.b32.xlu1 %v10532_v56, %s9197_s16  ;;  %v2922_v35 = vsel %vm605_vm0, %v2880_v24, %v2679_v46  ;;  %v8717_v46 = vld [vmem:[%s13644_s7] sm:$0xff]  }
 0x1f0   : > { %v2960_v54 = vsel %vm2943_vm7, %v2922_v35, %v2727_v10  ;;  %8480 = vmatprep.subr.bf16.mxu0 %v8717_v46 }
 0x1f1   : > { %v2729_v13 = vpop.permute.xlu1 %2728  ;;  %8481 = vmatpush3.bf16.msra.mxu0 %v8717_v46 }
 0x1f2   : > { %v2685_v7 = vpop.permute.xlu0 %2684 }
 0x1f3   : > { %2311 = vperm.xlu1 %8657, %v1912_v34  }
 0x1f5   : > { %v2770_v38 = vpop.permute.xlu1 %2769 }
 0x1f6   : > { %v10802_v62 = vpop.permute.xlu0 %2686  ;;  %v3009_v48 = vsel %vm943_vm1, %v10424_v57, %v2770_v38 }
 0x1f7   : > { %2615 = vrot.lane.b32.xlu1 %v10526_v59, %s9199_s25  ;;  %v3051_v58 = vsel %vm605_vm0, %v3009_v48, %v2803_v33 }
 0x1f8   : > { %v3088_v31 = vsel %vm2943_vm7, %v3051_v58, %v2839_v18  ;;  %8658 = vset.pattern.permute.xlu1 %v9201_v50 }
 0x1f9   : > { %v2772_v28 = vpop.permute.xlu1 %2771  ;;  %3391 = vmatprep.mubr.bf16.mxu1 %v3088_v31 }
 0x1fa   : > { %v2604_v41 = vpop.permute.xlu0 %2603  ;;  %v3012_v22 = vsel %vm943_vm1, %v10401_v4, %v2772_v28  ;;  %3392 = vmatmul.mubr.bf16.gmra.mxu1 %v2960_v54 }
 0x1fb   : > { %2698 = vrot.lane.b32.xlu1 %v10469_v8, %s9198_s20  ;;  %v3053_v57 = vsel %vm605_vm0, %v3012_v22, %v10721_v39 }
 0x1fc   : > { %v3091_v33 = vsel %vm2943_vm7, %v3053_v57, %v2841_v53 }
 0x1fd   : > { %v2598_v0 = vpop.permute.xlu1 %2597  ;;  %3399 = vmatprep.mubr.bf16.mxu1 %v3091_v33 }
 0x1fe   : > { %v10818_v44 = vpop.permute.xlu0 %2736  ;;  %v2883_v10 = vsel %vm943_vm1, %v10212_v27, %v2598_v0  ;;  %v2886_v27 = vsel %vm943_vm1, %v10385_v15, %v10762_v1  ;;  %v13925_v0 = vld [vmem:[#allocation11_spill] sm:$0xff] }
 0x1ff   : > { %2746 = vrot.lane.b32.xlu1 %v1910_v43, %s9197_s16  ;;  %v2926_v34 = vsel %vm605_vm0, %v2886_v27, %v10749_v14  ;;  %v2889_v14 = vsel %vm943_vm1, %v10341_v6, %v2602_v29 }
 0x200   : > { %v2966_v15 = vsel %vm2943_vm7, %v2926_v34, %v10734_v61  ;;  %v2928_v31 = vsel %vm605_vm0, %v2889_v14, %v2685_v7 }
 0x201   : > { %v2681_v4 = vpop.permute.xlu1 %2680  ;;  %v2969_v61 = vsel %vm2943_vm7, %v2928_v31, %v10780_v42 }
 0x202   : > { %v2606_v18 = vpop.permute.xlu0 %2605  ;;  %v2924_v3 = vsel %vm605_vm0, %v2883_v10, %v2681_v4 }
 0x203   : > { %v2963_v8 = vsel %vm2943_vm7, %v2924_v3, %v2729_v13 }
 0x204   : > { %3400 = vmatmul.mubr.bf16.gmra.mxu1 %v2963_v8 }
 0x205   : > { %v2809_v49 = vpop.permute.xlu1 %2808 }
 0x206   : > { %v2689_v39 = vpop.permute.xlu0 %2688 }
 0x209   : > { %v2807_v40 = vpop.permute.xlu1 %2806 }
 0x20a   : > { %v2608_v63 = vpop.permute.xlu0 %2607 }
 0x20d   : > { %v2774_v26 = vpop.permute.xlu1 %2773 }
 0x20e   : > { %v3015_v43 = vsel %vm943_vm1, %v10431_v21, %v2774_v26  ;;  %v2691_v45 = vpop.permute.xlu0 %2690 }
 0x20f   : > { %v3055_v24 = vsel %vm605_vm0, %v3015_v43, %v2807_v40 }
 0x211   : > { %v2776_v53 = vpop.permute.xlu1 %2775 }
 0x212   : > { %v2739_v1 = vpop.permute.xlu0 %2738  ;;  %v3018_v21 = vsel %vm943_vm1, %v10449_v30, %v2776_v53  ;;  %v2892_v30 = vsel %vm943_vm1, %v13925_v0, %v2604_v41 }
 0x213   : > { %v3057_v54 = vsel %vm605_vm0, %v3018_v21, %v2809_v49  ;;  %v2930_v7 = vsel %vm605_vm0, %v2892_v30, %v10802_v62 }
 0x214   : > { %v2972_v42 = vsel %vm2943_vm7, %v2930_v7, %v10773_v60 }
 0x215   : > { %v2843_v13 = vpop.permute.xlu1 %2842 }
 0x216   : > { %v3094_v38 = vsel %vm2943_vm7, %v3055_v24, %v2843_v13  ;;  %v2610_v58 = vpop.permute.xlu0 %2609 }
 0x217   : > { %3407 = vmatprep.mubr.bf16.mxu1 %v3094_v38 }
 0x218   : > { %3408 = vmatmul.mubr.bf16.gmra.mxu1 %v2966_v15 }
 0x219   : > { %v2813_v48 = vpop.permute.xlu1 %2812 }
 0x21a   : > { %v2693_v57 = vpop.permute.xlu0 %2692 }
 0x21d   : > { %v2811_v35 = vpop.permute.xlu1 %2810 }
 0x21e   : > { %v2741_v29 = vpop.permute.xlu0 %2740 }
 0x221   : > { %v2845_v28 = vpop.permute.xlu1 %2844 }
 0x222   : > { %v3097_v22 = vsel %vm2943_vm7, %v3057_v54, %v2845_v28  ;;  %v2612_v49 = vpop.permute.xlu0 %2611 }
 0x223   : > { %3415 = vmatprep.mubr.bf16.mxu1 %v3097_v22 }
 0x224   : > { %3416 = vmatmul.mubr.bf16.gmra.mxu1 %v2969_v61 }
 0x225   : > { %v2778_v33 = vpop.permute.xlu1 %2777 }
 0x226   : > { %v3021_v6 = vsel %vm943_vm1, %v10463_v9, %v2778_v33  ;;  %v13926_v9 = vld [vmem:[#allocation28_spill] sm:$0xff]  ;;  %v2695_v46 = vpop.permute.xlu0 %2694 }
 0x227   : > { %v3059_v3 = vsel %vm605_vm0, %v3021_v6, %v2811_v35  ;;  %v2895_v26 = vsel %vm943_vm1, %v13926_v9, %v2606_v18  ;;  %v2898_v18 = vsel %vm943_vm1, %v10573_v51, %v2608_v63  ;;  %v2901_v51 = vsel %vm943_vm1, %v10612_v25, %v2610_v58 }
 0x228   : > { %v2932_v62 = vsel %vm605_vm0, %v2895_v26, %v2689_v39  ;;  %v2934_v24 = vsel %vm605_vm0, %v2898_v18, %v2691_v45  ;;  %v2936_v45 = vsel %vm605_vm0, %v2901_v51, %v2693_v57  ;;  %v2904_v25 = vsel %vm943_vm1, %v10639_v19, %v2612_v49 }
 0x229   : > { %v2780_v10 = vpop.permute.xlu1 %2779  ;;  %v2975_v60 = vsel %vm2943_vm7, %v2932_v62, %v10818_v44  ;;  %v2978_v15 = vsel %vm2943_vm7, %v2934_v24, %v2739_v1  ;;  %v2981_v1 = vsel %vm2943_vm7, %v2936_v45, %v2741_v29  ;;  %v2938_v57 = vsel %vm605_vm0, %v2904_v25, %v2695_v46 }
 0x22a   : > { %v3024_v40 = vsel %vm943_vm1, %v10479_v2, %v2780_v10  ;;  %v2743_v34 = vpop.permute.xlu0 %2742 }
 0x22b   : > { %v3061_v27 = vsel %vm605_vm0, %v3024_v40, %v2813_v48  ;;  %v2984_v30 = vsel %vm2943_vm7, %v2938_v57, %v2743_v34 }
 0x22d   : > { %v2847_v4 = vpop.permute.xlu1 %2846 }
 0x22e   : > { %v3100_v8 = vsel %vm2943_vm7, %v3059_v3, %v2847_v4  ;;  %v2614_v48 = vpop.permute.xlu0 %2613 }
 0x22f   : > { %3423 = vmatprep.mubr.bf16.mxu1 %v3100_v8  ;;  %v2907_v19 = vsel %vm943_vm1, %v10674_v47, %v2614_v48  ;;  %v8448_v47 = vpop.f32.mrf.mxu0 }
 0x230   : > { %3424 = vmatmul.mubr.bf16.gmra.mxu1 %v2972_v42 }
 0x231   : > { %v2815_v41 = vpop.permute.xlu1 %2814 }
 0x232   : > { %v2697_v63 = vpop.permute.xlu0 %2696 }
 0x233   : > { %v2940_v8 = vsel %vm605_vm0, %v2907_v19, %v2697_v63 }
 0x235   : > { %v2849_v36 = vpop.permute.xlu1 %2848 }
 0x236   : > { %v3103_v53 = vsel %vm2943_vm7, %v3061_v27, %v2849_v36  ;;  %v2745_v54 = vpop.permute.xlu0 %2744  ;;  %v3514_v36 = vpop.f32.mrf.mxu0 }
 0x237   : > { %3431 = vmatprep.mubr.bf16.mxu1 %v3103_v53  ;;  %v2987_v40 = vsel %vm2943_vm7, %v2940_v8, %v2745_v54 }
 0x238   : > { %3432 = vmatmul.mubr.bf16.gmra.mxu1 %v2975_v60  ;;  %v8449_v34 = vpop.f32.mrf.mxu0 }
 0x239   : > { %v2782_v43 = vpop.permute.xlu1 %2781 }
 0x23a   : > { %v3027_v2 = vsel %vm943_vm1, %v10487_v37, %v2782_v43  ;;  %v2790_v58 = vpop.permute.xlu0 %2789 }
 0x23b   : > { %v3063_v13 = vsel %vm605_vm0, %v3027_v2, %v2815_v41  ;;  %v3039_v42 = vsel %vm943_vm1, %v10532_v56, %v2790_v58  ;;  %v10911_v56 = vld [vmem:[%s13643_s6] ss:$0 sm:$0xff] }
 0x23d   : > { %v2851_v39 = vpop.permute.xlu1 %2850 }
 0x23e   : > { %v3106_v38 = vsel %vm2943_vm7, %v3063_v13, %v2851_v39  ;;  %v2823_v6 = vpop.permute.xlu0 %2822 }
 0x23f   : > { %3439 = vmatprep.mubr.bf16.mxu1 %v3106_v38  ;;  %v3071_v41 = vsel %vm605_vm0, %v3039_v42, %v2823_v6  ;;  %v13928_v38 = vld [vmem:[#allocation23_spill] sm:$0xff] }
 0x240   : > { %3440 = vmatmul.mubr.bf16.gmra.mxu1 %v2978_v15 }
 0x241   : > { %v2784_v44 = vpop.permute.xlu1 %2783 }
 0x242   : > { %v3030_v37 = vsel %vm943_vm1, %v10507_v55, %v2784_v44  ;;  %v2859_v7 = vpop.permute.xlu0 %2858 }
 0x245   : > { %v2817_v35 = vpop.permute.xlu1 %2816 }
 0x246   : > { %v3065_v21 = vsel %vm605_vm0, %v3030_v37, %v2817_v35  ;;  %v3517_v35 = vpop.f32.mrf.mxu0 }
 0x249   : > { %v2853_v14 = vpop.permute.xlu1 %2852 }
 0x24a   : > { %v3109_v31 = vsel %vm2943_vm7, %v3065_v21, %v2853_v14 }
 0x24b   : > { %3447 = vmatprep.mubr.bf16.mxu1 %v3109_v31 }
 0x24c   : > { %3448 = vmatmul.mubr.bf16.gmra.mxu1 %v2981_v1 }
 0x24d   : > { %v2786_v28 = vpop.permute.xlu1 %2785 }
 0x24e   : > { %v3033_v55 = vsel %vm943_vm1, %v10517_v17, %v2786_v28 }
 0x251   : > { %v2819_v22 = vpop.permute.xlu1 %2818 }
 0x252   : > { %v3067_v61 = vsel %vm605_vm0, %v3033_v55, %v2819_v22 }
 0x255   : > { %v2855_v33 = vpop.permute.xlu1 %2854 }
 0x256   : > { %v3112_v0 = vsel %vm2943_vm7, %v3067_v61, %v2855_v33  ;;  %v8452_v61 = vpop.f32.mrf.mxu0 }
 0x257   : > { %3455 = vmatprep.mubr.bf16.mxu1 %v3112_v0 }
 0x258   : > { %3456 = vmatmul.mubr.bf16.gmra.mxu1 %v2984_v30 }
 0x259   : > { %v2788_v10 = vpop.permute.xlu1 %2787 }
 0x25a   : > { %v3036_v17 = vsel %vm943_vm1, %v10526_v59, %v2788_v10  ;;  %v3118_v59 = vsel %vm2943_vm7, %v3071_v41, %v2859_v7  ;;  %v3530_v10 = vpop.f32.mrf.mxu0 }
 0x25c   : > { %v8453_v8 = vpop.f32.mrf.mxu0 }
 0x25d   : > { %v2821_v29 = vpop.permute.xlu1 %2820 }
 0x25e   : > { %v3069_v4 = vsel %vm605_vm0, %v3036_v17, %v2821_v29 }
 0x261   : > { %v2857_v3 = vpop.permute.xlu1 %2856 }
 0x262   : > { %v3115_v49 = vsel %vm2943_vm7, %v3069_v4, %v2857_v3 }
 0x263   : > { %3463 = vmatprep.mubr.bf16.mxu1 %v3115_v49 }
 0x264   : > { %3464 = vmatmul.mubr.bf16.gmra.mxu1 %v2987_v40 }
 0x265   : > { %3471 = vmatprep.mubr.bf16.mxu1 %v3118_v59  ;;  %v3533_v59 = vpop.f32.mrf.mxu0 }
 0x26e   : > { %v2312_v9 = vpop.permute.xlu1 %2311 }
 0x26f   : > { %v8077_v26 = vpop.f32.mrf.mxu1  ;;  %v2320_v62 = vrot.slane %v2312_v9, %v9777_v23 }
 0x271   : > { %v7921_v27 = vcombine.low %v2320_v62, %v2320_v62  ;;  %v8078_v53 = vpop.f32.mrf.mxu1 }
 0x272   : > { %v8079_v46 = vadd.f32 %v8078_v53, %v8077_v26  ;;  %v2616_v60 = vpop.permute.xlu1 %2615 }
 0x273   : > { %v10913_v43 = vmul.bf16 0, %v7921_v27  ;;  %v8080_v2 = vpop.f32.mrf.mxu1  ;;  %v2910_v37 = vsel %vm943_vm1, %v10710_v5, %v2616_v60 }
 0x274   : > { %v3354_v18 = vadd.f32 %v8079_v46, %v10911_v56 }
 0x275   : > { %13927 = vst [vmem:[#allocation36_spill] sm:$0xff] %v10913_v43  ;;  %v13700_v39 = vrot.slane %v10913_v43, 1  ;;  %v8081_v13 = vpop.f32.mrf.mxu1 }
 0x276   : > { %v8082_v23 = vadd.f32 %v8081_v13, %v8080_v2  ;;  %v2699_v24 = vpop.permute.xlu1 %2698  ;;  %v10921_v44 = vadd.f32 %v3514_v36, %v3354_v18 }
 0x277   : > { %v2862_v15 = vsel %vm2634_vm4, %v13928_v38, %v13700_v39  ;;  %v2942_v63 = vsel %vm605_vm0, %v2910_v37, %v2699_v24 }
 0x278   : > { %v3357_v48 = vadd.f32 %v8082_v23, %v10911_v56  ;;  %8475 = vmatmul.mubr.msk.bf16.gmra.mxu0 %vm943_vm1, %v2862_v15  ;;  %v13726_v45 = vmax.f32 %v10921_v44, 0.0 }
 0x27a   : > { %v10927_v51 = vadd.f32 %v3517_v35, %v3357_v48  ;;  %v2747_v21 = vpop.permute.xlu1 %2746 }
 0x27b   : > { %v2990_v14 = vsel %vm2943_vm7, %v2942_v63, %v2747_v21 }
 0x27c   : > { %v13723_v31 = vmax.f32 %v10927_v51, 0.0  ;;  %3472 = vmatmul.mubr.bf16.gmra.mxu1 %v2990_v14 }
 0x27e   : > { %v10937_v1 = vpack.c.bf16 %v13723_v31, %v13726_v45  ;;  %v8083_v28 = vpop.f32.mrf.mxu1 }
 0x280   : > { %8482 = vmatprep.mubr.msk.bf16.mxu0 %vm943_vm1, %v10937_v1  ;;  %v8084_v5 = vpop.f32.mrf.mxu1 }
 0x281   : > { %v8085_v54 = vadd.f32 %v8084_v5, %v8083_v28 }
 0x282   : > { %v8086_v22 = vpop.f32.mrf.mxu1 }
 0x283   : > { %v3362_v55 = vadd.f32 %v8085_v54, %v10911_v56 }
 0x284   : > { %v8087_v25 = vpop.f32.mrf.mxu1 }
 0x285   : > { %v8088_v58 = vadd.f32 %v8087_v25, %v8086_v22  ;;  %v10942_v33 = vadd.f32 %v8448_v47, %v3362_v55 }
 0x287   : > { %v3365_v57 = vadd.f32 %v8088_v58, %v10911_v56  ;;  %v13720_v29 = vmax.f32 %v10942_v33, 0.0 }
 0x288   : > { %v8089_v0 = vpop.f32.mrf.mxu1 }
 0x289   : > { %v10945_v30 = vadd.f32 %v8449_v34, %v3365_v57  ;;  %v8456_v34 = vpop.f32.mrf.mxu0 }
 0x28a   : > { %v8090_v6 = vpop.f32.mrf.mxu1 }
 0x28b   : > { %v13719_v17 = vmax.f32 %v10945_v30, 0.0  ;;  %v8091_v19 = vadd.f32 %v8090_v6, %v8089_v0  ;;  %v3546_v15 = vpop.f32.mrf.mxu0 }
 0x28c   : > { %v8092_v7 = vpop.f32.mrf.mxu1 }
 0x28d   : > { %v10953_v4 = vpack.c.bf16 %v13719_v17, %v13720_v29  ;;  %v3370_v3 = vadd.f32 %v8091_v19, %v10911_v56  ;;  %v8457_v5 = vpop.f32.mrf.mxu0 }
 0x28e   : > { %v8093_v42 = vpop.f32.mrf.mxu1 }
 0x28f   : > { %v8094_v49 = vadd.f32 %v8093_v42, %v8092_v7  ;;  %8483 = vmatmul.mubr.msk.bf16.vlgmr.msra.gmra.mxu0 %vm943_vm1, %v10953_v4  ;;  %v10958_v41 = vadd.f32 %v3530_v10, %v3370_v3  ;;  %v3549_v58 = vpop.f32.mrf.mxu0 }
 0x291   : > { %v3373_v40 = vadd.f32 %v8094_v49, %v10911_v56  ;;  %v13718_v9 = vmax.f32 %v10958_v41, 0.0 }
 0x293   : > { %v10961_v47 = vadd.f32 %v3533_v59, %v3373_v40  ;;  %v8460_v40 = vpop.f32.mrf.mxu0 }
 0x295   : > { %v13717_v26 = vmax.f32 %v10961_v47, 0.0 }
 0x297   : > { %v10969_v62 = vpack.c.bf16 %v13717_v26, %v13718_v9 }
 0x299   : > { %8486 = vmatprep.mubr.msk.bf16.mxu0 %vm943_vm1, %v10969_v62 }
 0x29e   : > { %v8095_v36 = vpop.f32.mrf.mxu1 }
 0x2a0   : > { %v8096_v27 = vpop.f32.mrf.mxu1 }
 0x2a1   : > { %v8097_v53 = vadd.f32 %v8096_v27, %v8095_v36 }
 0x2a2   : > { %v8098_v46 = vpop.f32.mrf.mxu1 }
 0x2a3   : > { %v3378_v60 = vadd.f32 %v8097_v53, %v10911_v56 }
 0x2a4   : > { %v8099_v2 = vpop.f32.mrf.mxu1 }
 0x2a5   : > { %v8100_v18 = vadd.f32 %v8099_v2, %v8098_v46  ;;  %v10974_v13 = vadd.f32 %v8452_v61, %v3378_v60  ;;  %v3562_v46 = vpop.f32.mrf.mxu0 }
 0x2a7   : > { %v3381_v23 = vadd.f32 %v8100_v18, %v10911_v56  ;;  %v13716_v35 = vmax.f32 %v10974_v13, 0.0 }
 0x2a8   : > { %v8101_v24 = vpop.f32.mrf.mxu1 }
 0x2a9   : > { %v10977_v38 = vadd.f32 %v8453_v8, %v3381_v23 }
 0x2aa   : > { %v8102_v48 = vpop.f32.mrf.mxu1 }
 0x2ab   : > { %v13715_v37 = vmax.f32 %v10977_v38, 0.0  ;;  %v8103_v63 = vadd.f32 %v8102_v48, %v8101_v24  ;;  %v8461_v48 = vpop.f32.mrf.mxu0 }
 0x2ac   : > { %v8104_v21 = vpop.f32.mrf.mxu1 }
 0x2ad   : > { %v10985_v14 = vpack.c.bf16 %v13715_v37, %v13716_v35  ;;  %v3386_v28 = vadd.f32 %v8103_v63, %v10911_v56 }
 0x2ae   : > { %v8105_v54 = vpop.f32.mrf.mxu1 }
 0x2af   : > { %v8106_v22 = vadd.f32 %v8105_v54, %v8104_v21  ;;  %8487 = vmatmul.mubr.msk.bf16.gmra.mxu0 %vm943_vm1, %v10985_v14  ;;  %v10990_v55 = vadd.f32 %v3546_v15, %v3386_v28  ;;  %v3565_v54 = vpop.f32.mrf.mxu0 }
 0x2b1   : > { %v3389_v25 = vadd.f32 %v8106_v22, %v10911_v56  ;;  %v13710_v57 = vmax.f32 %v10990_v55, 0.0 }
 0x2b3   : > { %v10993_v61 = vadd.f32 %v3549_v58, %v3389_v25 }
 0x2b5   : > { %v13709_v0 = vmax.f32 %v10993_v61, 0.0 }
 0x2b7   : > { %v11001_v10 = vpack.c.bf16 %v13709_v0, %v13710_v57 }
 0x2b9   : > { %8490 = vmatprep.mubr.msk.bf16.mxu0 %vm943_vm1, %v11001_v10 }
 0x2ba   : > { %v8107_v6 = vpop.f32.mrf.mxu1 }
 0x2bc   : > { %v8108_v19 = vpop.f32.mrf.mxu1 }
 0x2bd   : > { %v8109_v7 = vadd.f32 %v8108_v19, %v8107_v6 }
 0x2be   : > { %v8110_v3 = vpop.f32.mrf.mxu1 }
 0x2bf   : > { %v3394_v8 = vadd.f32 %v8109_v7, %v10911_v56 }
 0x2c0   : > { %v8111_v42 = vpop.f32.mrf.mxu1 }
 0x2c1   : > { %v8112_v49 = vadd.f32 %v8111_v42, %v8110_v3  ;;  %v11006_v59 = vadd.f32 %v8456_v34, %v3394_v8 }
 0x2c3   : > { %v3397_v36 = vadd.f32 %v8112_v49, %v10911_v56  ;;  %v13708_v2 = vmax.f32 %v11006_v59, 0.0 }
 0x2c4   : > { %v8113_v27 = vpop.f32.mrf.mxu1 }
 0x2c5   : > { %v11009_v53 = vadd.f32 %v8457_v5, %v3397_v36 }
 0x2c6   : > { %v8114_v60 = vpop.f32.mrf.mxu1 }
 0x2c7   : > { %v13705_v18 = vmax.f32 %v11009_v53, 0.0  ;;  %v8115_v23 = vadd.f32 %v8114_v60, %v8113_v27  ;;  %v8464_v60 = vpop.f32.mrf.mxu0 }
 0x2c8   : > { %v8116_v24 = vpop.f32.mrf.mxu1 }
 0x2c9   : > { %v11017_v15 = vpack.c.bf16 %v13705_v18, %v13708_v2  ;;  %v3402_v34 = vadd.f32 %v8115_v23, %v10911_v56 }
 0x2ca   : > { %v8117_v63 = vpop.f32.mrf.mxu1 }
 0x2cb   : > { %v8118_v21 = vadd.f32 %v8117_v63, %v8116_v24  ;;  %8491 = vmatmul.mubr.msk.bf16.gmra.mxu0 %vm943_vm1, %v11017_v15  ;;  %v11022_v28 = vadd.f32 %v3562_v46, %v3402_v34 }
 0x2cd   : > { %v3405_v5 = vadd.f32 %v8118_v21, %v10911_v56  ;;  %v13704_v25 = vmax.f32 %v11022_v28, 0.0  ;;  %v3578_v21 = vpop.f32.mrf.mxu0 }
 0x2cf   : > { %v11025_v22 = vadd.f32 %v3565_v54, %v3405_v5 }
 0x2d1   : > { %13929 = vst [vmem:[#allocation45_spill] sm:$0xff] %v11025_v22  ;;  %v13703_v58 = vmax.f32 %v11025_v22, 0.0 }
 0x2d3   : > { %v11033_v6 = vpack.c.bf16 %v13703_v58, %v13704_v25 }
 0x2d5   : > { %8494 = vmatprep.mubr.msk.bf16.mxu0 %vm943_vm1, %v11033_v6 }
 0x2d8   : > { %v8119_v19 = vpop.f32.mrf.mxu1 }
 0x2da   : > { %v8120_v7 = vpop.f32.mrf.mxu1 }
 0x2db   : > { %v8121_v3 = vadd.f32 %v8120_v7, %v8119_v19 }
 0x2dc   : > { %v8122_v8 = vpop.f32.mrf.mxu1 }
 0x2dd   : > { %v3410_v42 = vadd.f32 %v8121_v3, %v10911_v56 }
 0x2de   : > { %v8123_v49 = vpop.f32.mrf.mxu1 }
 0x2df   : > { %v8124_v36 = vadd.f32 %v8123_v49, %v8122_v8  ;;  %v11038_v27 = vadd.f32 %v8460_v40, %v3410_v42 }
 0x2e1   : > { %13930 = vst [vmem:[#allocation17_spill] sm:$0xff] %v11038_v27  ;;  %v3413_v46 = vadd.f32 %v8124_v36, %v10911_v56  ;;  %v13702_v34 = vmax.f32 %v11038_v27, 0.0 }
 0x2e3   : > { %v11041_v23 = vadd.f32 %v8461_v48, %v3413_v46  ;;  %v8465_v48 = vpop.f32.mrf.mxu0 }
 0x2e4   : > { %v8125_v24 = vpop.f32.mrf.mxu1 }
 0x2e5   : > { %13931 = vst [vmem:[#allocation13_spill] sm:$0xff] %v11041_v23  ;;  %v13701_v63 = vmax.f32 %v11041_v23, 0.0  ;;  %v3581_v36 = vpop.f32.mrf.mxu0 }
 0x2e6   : > { %v8126_v5 = vpop.f32.mrf.mxu1 }
 0x2e7   : > { %v11049_v54 = vpack.c.bf16 %v13701_v63, %v13702_v34  ;;  %v8127_v40 = vadd.f32 %v8126_v5, %v8125_v24 }
 0x2e8   : > { %v8128_v19 = vpop.f32.mrf.mxu1 }
 0x2e9   : > { %v3418_v7 = vadd.f32 %v8127_v40, %v10911_v56  ;;  %8495 = vmatmul.mubr.msk.bf16.gmra.mxu0 %vm943_vm1, %v11049_v54 }
 0x2ea   : > { %v8129_v3 = vpop.f32.mrf.mxu1 }
 0x2eb   : > { %v8130_v8 = vadd.f32 %v8129_v3, %v8128_v19  ;;  %v11054_v42 = vadd.f32 %v3578_v21, %v3418_v7  ;;  %v8468_v3 = vpop.f32.mrf.mxu0 }
 0x2ed   : > { %13932 = vst [vmem:[#allocation56_spill] sm:$0xff] %v11054_v42  ;;  %v3421_v49 = vadd.f32 %v8130_v8, %v10911_v56  ;;  %v13707_v39 = vmax.f32 %v11054_v42, 0.0  ;;  %v3594_v58 = vpop.f32.mrf.mxu0 }
 0x2ef   : > { %v11057_v46 = vadd.f32 %v3581_v36, %v3421_v49  ;;  %v8469_v2 = vpop.f32.mrf.mxu0 }
 0x2f0   : > { %v8131_v20 = vpop.f32.mrf.mxu1 }
 0x2f1   : > { %13933 = vst [vmem:[#allocation11_spill] sm:$0xff] %v11057_v46  ;;  %v13706_v24 = vmax.f32 %v11057_v46, 0.0 }
 0x2f2   : > { %v8132_v5 = vpop.f32.mrf.mxu1 }
 0x2f3   : > { %v11065_v40 = vpack.c.bf16 %v13706_v24, %v13707_v39  ;;  %v8133_v19 = vadd.f32 %v8132_v5, %v8131_v20 }
 0x2f4   : > { %v8134_v21 = vpop.f32.mrf.mxu1 }
 0x2f5   : > { %v3426_v7 = vadd.f32 %v8133_v19, %v10911_v56  ;;  %8498 = vmatprep.mubr.msk.bf16.mxu0 %vm943_vm1, %v11065_v40 }
 0x2f6   : > { %v8135_v8 = vpop.f32.mrf.mxu1 }
 0x2f7   : > { %v8136_v49 = vadd.f32 %v8135_v8, %v8134_v21  ;;  %v11070_v63 = vadd.f32 %v8464_v60, %v3426_v7 }
 0x2f8   : > { %v8137_v36 = vpop.f32.mrf.mxu1 }
 0x2f9   : > { %13934 = vst [vmem:[#allocation28_spill] sm:$0xff] %v11070_v63  ;;  %v3429_v34 = vadd.f32 %v8136_v49, %v10911_v56  ;;  %v13712_v5 = vmax.f32 %v11070_v63, 0.0 }
 0x2fa   : > { %v8138_v25 = vpop.f32.mrf.mxu1 }
 0x2fb   : > { %v11073_v18 = vadd.f32 %v8465_v48, %v3429_v34  ;;  %v8139_v24 = vadd.f32 %v8138_v25, %v8137_v36  ;;  %v3597_v48 = vpop.f32.mrf.mxu0 }
 0x2fc   : > { %v8140_v20 = vpop.f32.mrf.mxu1 }
 0x2fd   : > { %13935 = vst [vmem:[#allocation23_spill] sm:$0xff] %v11073_v18  ;;  %v13711_v19 = vmax.f32 %v11073_v18, 0.0  ;;  %v3434_v39 = vadd.f32 %v8139_v24, %v10911_v56 }
 0x2fe   : > { %v8141_v0 = vpop.f32.mrf.mxu1 }
 0x2ff   : > { %v11082_v60 = vpack.c.bf16 %v13711_v19, %v13712_v5  ;;  %v8142_v21 = vadd.f32 %v8141_v0, %v8140_v20  ;;  %v11084_v34 = vadd.f32 %v3594_v58, %v3434_v39 }
 0x300   : > { %v8143_v7 = vpop.f32.mrf.mxu1 }
 0x301   : > { %13936 = vst [vmem:[#allocation57_spill] sm:$0xff] %v11084_v34  ;;  %v3437_v25 = vadd.f32 %v8142_v21, %v10911_v56  ;;  %8499 = vmatmul.mubr.msk.bf16.gmra.mxu0 %vm943_vm1, %v11082_v60  ;;  %v13714_v57 = vmax.f32 %v11084_v34, 0.0  ;;  %v13727_v21 = vmov 998259584  }
 0x302   : > { %v8144_v8 = vpop.f32.mrf.mxu1  ;;  %5041 = vmatprep.mubr.bf16.mxu1 %v13727_v21 }
 0x303   : > { %v11089_v24 = vadd.f32 %v3597_v48, %v3437_v25  ;;  %v8145_v49 = vadd.f32 %v8144_v8, %v8143_v7  ;;  %v8472_v48 = vpop.f32.mrf.mxu0 }
 0x304   : > { %v8146_v36 = vpop.f32.mrf.mxu1 }
 0x305   : > { %13937 = vst [vmem:[#allocation58_spill] sm:$0xff] %v11089_v24  ;;  %v13713_v19 = vmax.f32 %v11089_v24, 0.0  ;;  %v3442_v0 = vadd.f32 %v8145_v49, %v10911_v56 }
 0x306   : > { %v8147_v20 = vpop.f32.mrf.mxu1 }
 0x307   : > { %v11098_v39 = vpack.c.bf16 %v13713_v19, %v13714_v57  ;;  %v8148_v58 = vadd.f32 %v8147_v20, %v8146_v36  ;;  %v11101_v25 = vadd.f32 %v8468_v3, %v3442_v0  ;;  %v3610_v57 = vpop.f32.mrf.mxu0 }
 0x309   : > { %13938 = vst [vmem:[#allocation59_spill] sm:$0xff] %v11101_v25  ;;  %v3445_v7 = vadd.f32 %v8148_v58, %v10911_v56  ;;  %8502 = vmatprep.mubr.msk.bf16.mxu0 %vm943_vm1, %v11098_v39  ;;  %v13722_v5 = vmax.f32 %v11101_v25, 0.0 }
 0x30b   : > { %v11106_v8 = vadd.f32 %v8469_v2, %v3445_v7  ;;  %v8473_v2 = vpop.f32.mrf.mxu0 }
 0x30c   : > { %v8149_v49 = vpop.f32.mrf.mxu1 }
 0x30d   : > { %13939 = vst [vmem:[#allocation60_spill] sm:$0xff] %v11106_v8  ;;  %v13721_v19 = vmax.f32 %v11106_v8, 0.0  ;;  %v3613_v9 = vpop.f32.mrf.mxu0 }
 0x30e   : > { %v8150_v36 = vpop.f32.mrf.mxu1 }
 0x30f   : > { %v11114_v3 = vpack.c.bf16 %v13721_v19, %v13722_v5  ;;  %v8151_v0 = vadd.f32 %v8150_v36, %v8149_v49 }
 0x310   : > { %v8152_v20 = vpop.f32.mrf.mxu1 }
 0x311   : > { %v3450_v58 = vadd.f32 %v8151_v0, %v10911_v56  ;;  %8503 = vmatmul.mubr.msk.bf16.gmra.mxu0 %vm943_vm1, %v11114_v3 }
 0x312   : > { %v8153_v7 = vpop.f32.mrf.mxu1 }
 0x313   : > { %v8154_v37 = vadd.f32 %v8153_v7, %v8152_v20  ;;  %v11119_v35 = vadd.f32 %v3610_v57, %v3450_v58 }
 0x315   : > { %13940 = vst [vmem:[#allocation61_spill] sm:$0xff] %v11119_v35  ;;  %v3453_v26 = vadd.f32 %v8154_v37, %v10911_v56  ;;  %v13725_v19 = vmax.f32 %v11119_v35, 0.0 }
 0x317   : > { %v11122_v17 = vadd.f32 %v3613_v9, %v3453_v26 }
 0x318   : > { %v8155_v29 = vpop.f32.mrf.mxu1 }
 0x319   : > { %13941 = vst [vmem:[#allocation62_spill] sm:$0xff] %v11122_v17  ;;  %v13724_v49 = vmax.f32 %v11122_v17, 0.0 }
 0x31a   : > { %v8156_v36 = vpop.f32.mrf.mxu1 }
 0x31b   : > { %v11130_v0 = vpack.c.bf16 %v13724_v49, %v13725_v19  ;;  %v8157_v20 = vadd.f32 %v8156_v36, %v8155_v29 }
 0x31c   : > { %v8158_v57 = vpop.f32.mrf.mxu1 }
 0x31d   : > { %v3458_v58 = vadd.f32 %v8157_v20, %v10911_v56  ;;  %8506 = vmatprep.mubr.msk.bf16.mxu0 %vm943_vm1, %v11130_v0 }
 0x31e   : > { %v8159_v9 = vpop.f32.mrf.mxu1 }
 0x31f   : > { %v8160_v26 = vadd.f32 %v8159_v9, %v8158_v57  ;;  %v11135_v37 = vadd.f32 %v8472_v48, %v3458_v58 }
 0x321   : > { %13942 = vst [vmem:[#allocation63_spill] sm:$0xff] %v11135_v37  ;;  %v3461_v7 = vadd.f32 %v8160_v26, %v10911_v56  ;;  %v13731_v31 = vmax.f32 %v11135_v37, 0.0 }
 0x323   : > { %v11138_v5 = vadd.f32 %v8473_v2, %v3461_v7 }
 0x324   : > { %v8161_v36 = vpop.f32.mrf.mxu1 }
 0x325   : > { %13943 = vst [vmem:[#allocation64_spill] sm:$0xff] %v11138_v5  ;;  %v13730_v49 = vmax.f32 %v11138_v5, 0.0 }
 0x326   : > { %v8162_v20 = vpop.f32.mrf.mxu1 }
 0x327   : > { %v3686_v29 = vpack.c.bf16 %v13730_v49, %v13731_v31  ;;  %v8163_v58 = vadd.f32 %v8162_v20, %v8161_v36 }
 0x328   : > { %v8164_v57 = vpop.f32.mrf.mxu1 }
 0x329   : > { %8507 = vmatmul.mubr.msk.bf16.gmra.mxu0 %vm943_vm1, %v3686_v29  ;;  %v3466_v7 = vadd.f32 %v8163_v58, %v10911_v56 }
 0x32a   : > { %v8165_v48 = vpop.f32.mrf.mxu1 }
 0x32b   : > { %v8166_v26 = vadd.f32 %v8165_v48, %v8164_v57 }
 0x32d   : > { %v3469_v52 = vadd.f32 %v8166_v26, %v10911_v56 }
 0x338   : > { %v8476_v9 = vpop.f32.mrf.mxu0 }
 0x33a   : > { %v3626_v2 = vpop.f32.mrf.mxu0 }
 0x33b   : > { %v11148_v21 = vadd.f32 %v3626_v2, %v3466_v7 }
 0x33c   : > { %v8167_v19 = vpop.f32.mrf.mxu1  ;;  %v8477_v45 = vpop.f32.mrf.mxu0 }
 0x33d   : > { %13944 = vst [vmem:[#allocation65_spill] sm:$0xff] %v11148_v21  ;;  %v13737_v20 = vmax.f32 %v11148_v21, 0.0 }
 0x33e   : > { %v8168_v32 = vpop.f32.mrf.mxu1  ;;  %v3629_v49 = vpop.f32.mrf.mxu0 }
 0x33f   : > { %v8169_v31 = vadd.f32 %v8168_v32, %v8167_v19  ;;  %v11151_v16 = vadd.f32 %v3629_v49, %v3469_v52 }
 0x340   : > { %v8170_v36 = vpop.f32.mrf.mxu1 }
 0x341   : > { %13945 = vst [vmem:[#allocation66_spill] sm:$0xff] %v11151_v16  ;;  %v3474_v57 = vadd.f32 %v8169_v31, %v10911_v56  ;;  %v13736_v48 = vmax.f32 %v11151_v16, 0.0 }
 0x342   : > { %v8171_v58 = vpop.f32.mrf.mxu1 }
 0x343   : > { %v3687_v26 = vpack.c.bf16 %v13736_v48, %v13737_v20  ;;  %v8172_v2 = vadd.f32 %v8171_v58, %v8170_v36  ;;  %v11160_v32 = vadd.f32 %v8476_v9, %v3474_v57 }
 0x345   : > { %13946 = vst [vmem:[#allocation67_spill] sm:$0xff] %v11160_v32  ;;  %v3477_v52 = vadd.f32 %v8172_v2, %v10911_v56  ;;  %8510 = vmatprep.mubr.msk.bf16.mxu0 %vm943_vm1, %v3687_v26  ;;  %v13735_v19 = vmax.f32 %v11160_v32, 0.0 }
 0x347   : > { %v11164_v50 = vadd.f32 %v8477_v45, %v3477_v52 }
 0x349   : > { %13947 = vst [vmem:[#allocation68_spill] sm:$0xff] %v11164_v50  ;;  %v13734_v31 = vmax.f32 %v11164_v50, 0.0 }
 0x34b   : > { %v3688_v49 = vpack.c.bf16 %v13734_v31, %v13735_v19 }
 0x34d   : > { %8511 = vmatmul.mubr.msk.bf16.gmra.mxu0 %vm943_vm1, %v3688_v49  ;;  %8209 = vmatprep.subr.bf16.mxu1 %v3688_v49 }
 0x34e   : > { %8210 = vmatpush3.bf16.msra.mxu1 %v11049_v54 }
 0x34f   : > { %v11174_v9 = vpop.f32.mrf.mxu0  ;;  %8211 = vmatprep.subr.bf16.mxu1 %v3687_v26 }
 0x350   : > { %13948 = vst [vmem:[#allocation69_spill] sm:$0xff] %v11174_v9  ;;  %v11177_v56 = vmul.f32 0.70710677, %v11174_v9  ;;  %v3955_v5 = vmul.f32 0.5, %v11174_v9 }
 0x351   : > { %v11179_v45 = vpop.f32.mrf.mxu0 }
 0x352   : > { %13949 = vst [vmem:[#allocation70_spill] sm:$0xff] %v11179_v45  ;;  %v4019_v7 = vand.u32 2147483647, %v11177_v56  ;;  %8212 = vmatpush3.bf16.msra.mxu1 %v11033_v6  ;;  %v11184_v36 = vmul.f32 0.70710677, %v11179_v45  ;;  %vm4659_vm8 = vcmp.ge.f32.partialorder %v11177_v56, 0.0 }
 0x353   : > { %v11186_v57 = vpop.f32.mrf.mxu0  ;;  %8213 = vmatprep.subr.bf16.mxu1 %v3686_v29 }
 0x354   : > { %13950 = vst [vmem:[#allocation71_spill] sm:$0xff] %v11186_v57  ;;  %v4051_v58 = vmul.f32 0.3275911, %v4019_v7  ;;  %v4017_v54 = vand.u32 2147483647, %v11184_v36  ;;  %vm4657_vm9 = vcmp.ge.f32.partialorder %v11184_v36, 0.0 }
 0x355   : > { %v11190_v26 = vmul.f32 0.70710677, %v11186_v57  ;;  %v11192_v2 = vpop.f32.mrf.mxu0 }
 0x356   : > { %13951 = vst [vmem:[#allocation72_spill] sm:$0xff] %v11192_v2  ;;  %v4083_v52 = vadd.f32 1.0, %v4051_v58  ;;  %8214 = vmatpush3.bf16.msra.mxu1 %v11017_v15  ;;  %v4049_v49 = vmul.f32 0.3275911, %v4017_v54  ;;  %v11198_v31 = vmul.f32 0.70710677, %v11192_v2 }
 0x357   : > { %v4020_v6 = vand.u32 2147483647, %v11190_v26  ;;  %8215 = vmatprep.subr.bf16.mxu1 %v11130_v0  ;;  %v4467_v58 = vsub.f32 0.0, %v4019_v7  ;;  %v4465_v0 = vsub.f32 0.0, %v4017_v54  ;;  %vm4660_vm10 = vcmp.ge.f32.partialorder %v11190_v26, 0.0 }
 0x358   : > { %8738 = vrcp.f32 %v4083_v52  ;;  %v4081_v29 = vadd.f32 1.0, %v4049_v49  ;;  %v4018_v48 = vand.u32 2147483647, %v11198_v31  ;;  %vm4658_vm11 = vcmp.ge.f32.partialorder %v11198_v31, 0.0 }
 0x359   : > { %v4052_v19 = vmul.f32 0.3275911, %v4020_v6  ;;  %v4499_v52 = vmul.f32 %v4467_v58, %v4019_v7 }
 0x35a   : > { %8216 = vmatpush3.bf16.msra.mxu1 %v11001_v10  ;;  %8740 = vrcp.f32 %v4081_v29  ;;  %v4050_v15 = vmul.f32 0.3275911, %v4018_v48  ;;  %v4468_v10 = vsub.f32 0.0, %v4020_v6  ;;  %v4466_v43 = vsub.f32 0.0, %v4018_v48 }
 0x35b   : > { %v4084_v20 = vadd.f32 1.0, %v4052_v19  ;;  %8217 = vmatprep.subr.bf16.mxu1 %v11114_v3  ;;  %v4497_v19 = vmul.f32 %v4465_v0, %v4017_v54  ;;  %v4533_v3 = vmul.f32 1.442695, %v4499_v52 }
 0x35c   : > { %v4082_v11 = vadd.f32 1.0, %v4050_v15 }
 0x35d   : > { %8742 = vrcp.f32 %v4084_v20  ;;  %v4529_v15 = vmul.f32 1.442695, %v4497_v19 }
 0x35e   : > { %8218 = vmatpush3.bf16.msra.mxu1 %v10985_v14  ;;  %8744 = vrcp.f32 %v4082_v11 }
 0x35f   : > { %8219 = vmatprep.subr.bf16.mxu1 %v11098_v39  ;;  %v4500_v39 = vmul.f32 %v4468_v10, %v4020_v6  ;;  %8746 = vpow2.f32 %v4533_v3 }
 0x360   : > { %8748 = vpow2.f32 %v4529_v15 }
 0x361   : > { %v4535_v52 = vmul.f32 1.442695, %v4500_v39 }
 0x362   : > { %8220 = vmatpush3.bf16.msra.mxu1 %v10969_v62  ;;  %v4498_v62 = vmul.f32 %v4466_v43, %v4018_v48 }
 0x363   : > { %8221 = vmatprep.subr.bf16.mxu1 %v11082_v60  ;;  %8750 = vpow2.f32 %v4535_v52 }
 0x364   : > { %v4531_v19 = vmul.f32 1.442695, %v4498_v62 }
 0x365   : > { %v8739_v49 = vpop.eup %8738 }
 0x366   : > { %v4179_v29 = vmul.f32 1.0614054, %v8739_v49  ;;  %8222 = vmatpush3.bf16.msra.mxu1 %v10953_v4  ;;  %8752 = vpow2.f32 %v4531_v19 }
 0x367   : > { %8223 = vmatprep.subr.bf16.mxu1 %v11065_v40  ;;  %v8741_v14 = vpop.eup %8740  ;;  %v13952_v40 = vmov 998259584  }
 0x368   : > { %v4211_v20 = vadd.f32 -1.4531521, %v4179_v29  ;;  %v4177_v11 = vmul.f32 1.0614054, %v8741_v14 }
 0x36a   : > { %v4243_v7 = vmul.f32 %v8739_v49, %v4211_v20  ;;  %8224 = vmatpush3.bf16.msra.mxu1 %v10937_v1  ;;  %v8743_v60 = vpop.eup %8742  ;;  %v4209_v58 = vadd.f32 -1.4531521, %v4177_v11 }
 0x36b   : > { %v4180_v0 = vmul.f32 1.0614054, %v8743_v60  ;;  %v11210_v12 = vpop.eup %8744 }
 0x36c   : > { %v4275_v54 = vadd.f32 1.4214138, %v4243_v7  ;;  %v4241_v4 = vmul.f32 %v8741_v14, %v4209_v58  ;;  %v4178_v10 = vmul.f32 1.0614054, %v11210_v12 }
 0x36d   : > { %5042 = vmatmul.mubr.bf16.vlgmr.msra.gmra.mxu1 %v13952_v40  ;;  %v4212_v6 = vadd.f32 -1.4531521, %v4180_v0 }
 0x36e   : > { %v4307_v29 = vmul.f32 %v8739_v49, %v4275_v54  ;;  %v4273_v3 = vadd.f32 1.4214138, %v4241_v4  ;;  %v4210_v20 = vadd.f32 -1.4531521, %v4178_v10 }
 0x36f   : > { %v11214_v43 = vpop.f32.mrf.mxu0  ;;  %v4244_v48 = vmul.f32 %v8743_v60, %v4212_v6 }
 0x370   : > { %13953 = vst [vmem:[#allocation73_spill] sm:$0xff] %v11214_v43  ;;  %v4339_v1 = vadd.f32 -0.28449672, %v4307_v29  ;;  %v4305_v11 = vmul.f32 %v8741_v14, %v4273_v3  ;;  %v11217_v39 = vmul.f32 0.70710677, %v11214_v43  ;;  %v4242_v54 = vmul.f32 %v11210_v12, %v4210_v20 }
 0x371   : > { %v11219_v7 = vpop.f32.mrf.mxu0  ;;  %v4276_v58 = vadd.f32 1.4214138, %v4244_v48  ;;  %v8747_v48 = vpop.eup %8746 }
 0x372   : > { %13954 = vst [vmem:[#allocation74_spill] sm:$0xff] %v11219_v7  ;;  %v4371_v15 = vmul.f32 %v8739_v49, %v4339_v1  ;;  %v4337_v0 = vadd.f32 -0.28449672, %v4305_v11  ;;  %v4023_v62 = vand.u32 2147483647, %v11217_v39  ;;  %vm4663_vm12 = vcmp.ge.f32.partialorder %v11217_v39, 0.0 }
 0x373   : > { %v4308_v40 = vmul.f32 %v8743_v60, %v4276_v58  ;;  %v4274_v29 = vadd.f32 1.4214138, %v4242_v54  ;;  %v11224_v52 = vmul.f32 0.70710677, %v11219_v7  ;;  %v11231_v21 = vpop.f32.mrf.mxu0 }
 0x374   : > { %v4403_v4 = vadd.f32 0.2548296, %v4371_v15  ;;  %v4369_v6 = vmul.f32 %v8741_v14, %v4337_v0  ;;  %v4055_v10 = vmul.f32 0.3275911, %v4023_v62  ;;  %13955 = vst [vmem:[#allocation75_spill] sm:$0xff] %v11231_v21  ;;  %v8749_v0 = vpop.eup %8748 }
 0x375   : > { %v4340_v50 = vadd.f32 -0.28449672, %v4308_v40  ;;  %v4306_v32 = vmul.f32 %v11210_v12, %v4274_v29  ;;  %v11228_v1 = vand.u32 2147483647, %v11224_v52  ;;  %vm4661_vm13 = vcmp.ge.f32.partialorder %v11224_v52, 0.0 }
 0x376   : > { %v4435_v3 = vmul.f32 %v8739_v49, %v4403_v4  ;;  %v4401_v19 = vadd.f32 0.2548296, %v4369_v6  ;;  %v4087_v20 = vadd.f32 1.0, %v4055_v10  ;;  %v4471_v10 = vsub.f32 0.0, %v4023_v62 }
 0x377   : > { %v4372_v16 = vmul.f32 %v8743_v60, %v4340_v50  ;;  %v4338_v15 = vadd.f32 -0.28449672, %v4306_v32  ;;  %v4053_v58 = vmul.f32 0.3275911, %v11228_v1  ;;  %v4469_v36 = vsub.f32 0.0, %v11228_v1 }
 0x378   : > { %v4595_v11 = vmul.f32 %v8747_v48, %v4435_v3  ;;  %v4433_v54 = vmul.f32 %v8741_v14, %v4401_v19  ;;  %8754 = vrcp.f32 %v4087_v20  ;;  %v8751_v14 = vpop.eup %8750  ;;  %v3953_v48 = vmul.f32 0.5, %v11179_v45 }
 0x379   : > { %v4404_v4 = vadd.f32 0.2548296, %v4372_v16  ;;  %v4370_v40 = vmul.f32 %v11210_v12, %v4338_v15  ;;  %v4085_v29 = vadd.f32 1.0, %v4053_v58  ;;  %v3956_v20 = vmul.f32 0.5, %v11186_v57 }
 0x37a   : > { %v4627_v49 = vsub.f32 1.0, %v4595_v11  ;;  %v4593_v6 = vmul.f32 %v8749_v0, %v4433_v54  ;;  %v11239_v16 = vmul.f32 0.70710677, %v11231_v21  ;;  %v11241_v11 = vpop.f32.mrf.mxu0 }
 0x37b   : > { %v4436_v32 = vmul.f32 %v8743_v60, %v4404_v4  ;;  %v4402_v3 = vadd.f32 0.2548296, %v4370_v40  ;;  %8756 = vrcp.f32 %v4085_v29  ;;  %13956 = vst [vmem:[#allocation76_spill] sm:$0xff] %v11241_v11  ;;  %v8753_v60 = vpop.eup %8752  ;;  %v4503_v4 = vmul.f32 %v4471_v10, %v4023_v62 }
 0x37c   : > { %v4691_v50 = vsub.f32 0.0, %v4627_v49  ;;  %v4625_v19 = vsub.f32 1.0, %v4593_v6  ;;  %v4024_v40 = vand.u32 2147483647, %v11239_v16  ;;  %v3954_v6 = vmul.f32 0.5, %v11192_v2 }
 0x37d   : > { %v4596_v56 = vmul.f32 %v8751_v14, %v4436_v32  ;;  %v4434_v58 = vmul.f32 %v11210_v12, %v4402_v3  ;;  %v11248_v9 = vmul.f32 0.70710677, %v11241_v11  ;;  %v4541_v10 = vmul.f32 1.442695, %v4503_v4 }
 0x37e   : > { %v4723_v15 = vsel %vm4659_vm8, %v4627_v49, %v4691_v50  ;;  %v4689_v0 = vsub.f32 0.0, %v4625_v19  ;;  %v4056_v50 = vmul.f32 0.3275911, %v4024_v40  ;;  %vm4664_vm14 = vcmp.ge.f32.partialorder %v11239_v16, 0.0 }
 0x37f   : > { %v4755_v54 = vadd.f32 1.0, %v4723_v15  ;;  %v4628_v29 = vsub.f32 1.0, %v4596_v56  ;;  %v4594_v57 = vmul.f32 %v8753_v60, %v4434_v58  ;;  %v4022_v14 = vand.u32 2147483647, %v11248_v9 }
 0x380   : > { %v4721_v49 = vsel %vm4657_vm9, %v4625_v19, %v4689_v0  ;;  %v4088_v15 = vadd.f32 1.0, %v4056_v50  ;;  %v4501_v0 = vmul.f32 %v4469_v36, %v11228_v1  ;;  %v3958_v16 = vmul.f32 0.5, %v11241_v11 }
 0x381   : > { %v4787_v45 = vmul.f32 %v4755_v54, %v3955_v5  ;;  %v4753_v32 = vadd.f32 1.0, %v4721_v49  ;;  %v4692_v12 = vsub.f32 0.0, %v4628_v29  ;;  %v4626_v3 = vsub.f32 1.0, %v4594_v57 }
 0x382   : > { %v4054_v2 = vmul.f32 0.3275911, %v4022_v14  ;;  %8758 = vrcp.f32 %v4088_v15  ;;  %v4472_v49 = vsub.f32 0.0, %v4024_v40  ;;  %vm4662_vm15 = vcmp.ge.f32.partialorder %v11248_v9, 0.0 }
 0x383   : > { %v4819_v62 = vsub.f32 0.0, %v4787_v45  ;;  %v4785_v56 = vmul.f32 %v4753_v32, %v3953_v48  ;;  %v4724_v58 = vsel %vm4660_vm10, %v4628_v29, %v4692_v12  ;;  %v4690_v60 = vsub.f32 0.0, %v4626_v3 }
 0x384   : > { %v4756_v5 = vadd.f32 1.0, %v4724_v58  ;;  %v4086_v45 = vadd.f32 1.0, %v4054_v2 }
 0x385   : > { %v4853_v37 = vmul.f32 1.442695, %v4819_v62  ;;  %v11254_v19 = vpop.eup %8754  ;;  %v4817_v54 = vsub.f32 0.0, %v4785_v56  ;;  %v4722_v57 = vsel %vm4658_vm11, %v4626_v3, %v4690_v60  ;;  %v4537_v62 = vmul.f32 1.442695, %v4501_v0 }
 0x386   : > { %v4788_v26 = vmul.f32 %v4756_v5, %v3956_v20  ;;  %v4754_v4 = vadd.f32 1.0, %v4722_v57  ;;  %v4183_v48 = vmul.f32 1.0614054, %v11254_v19  ;;  %v4470_v20 = vsub.f32 0.0, %v4022_v14 }
 0x387   : > { %8760 = vpow2.f32 %v4853_v37  ;;  %v4849_v29 = vmul.f32 1.442695, %v4817_v54 }
 0x388   : > { %8762 = vpow2.f32 %v4541_v10  ;;  %v11258_v50 = vpop.eup %8756  ;;  %v4820_v32 = vsub.f32 0.0, %v4788_v26  ;;  %v4786_v31 = vmul.f32 %v4754_v4, %v3954_v6  ;;  %v4215_v12 = vadd.f32 -1.4531521, %v4183_v48 }
 0x389   : > { %8764 = vrcp.f32 %v4086_v45  ;;  %v4181_v3 = vmul.f32 1.0614054, %v11258_v50  ;;  %v4504_v10 = vmul.f32 %v4472_v49, %v4024_v40  ;;  %v4502_v0 = vmul.f32 %v4470_v20, %v4022_v14 }
 0x38a   : > { %8766 = vpow2.f32 %v4849_v29  ;;  %v4855_v1 = vmul.f32 1.442695, %v4820_v32  ;;  %v4818_v2 = vsub.f32 0.0, %v4786_v31  ;;  %v4247_v37 = vmul.f32 %v11254_v19, %v4215_v12 }
 0x38b   : > { %v11262_v36 = vpop.f32.mrf.mxu0  ;;  %v4213_v15 = vadd.f32 -1.4531521, %v4181_v3  ;;  %v4543_v4 = vmul.f32 1.442695, %v4504_v10  ;;  %v11281_v31 = vmul.f32 0.5, %v11214_v43 }
 0x38c   : > { %13957 = vst [vmem:[#allocation77_spill] sm:$0xff] %v11262_v36  ;;  %8768 = vpow2.f32 %v4855_v1  ;;  %v4851_v56 = vmul.f32 1.442695, %v4818_v2  ;;  %v4279_v58 = vadd.f32 1.4214138, %v4247_v37 }
 0x38d   : > { %v11265_v6 = vmul.f32 0.70710677, %v11262_v36  ;;  %v11267_v60 = vpop.f32.mrf.mxu0  ;;  %v4245_v5 = vmul.f32 %v11258_v50, %v4213_v15  ;;  %8770 = vpow2.f32 %v4537_v62  ;;  %v4539_v2 = vmul.f32 1.442695, %v4502_v0 }
 0x38e   : > { %13958 = vst [vmem:[#allocation78_spill] sm:$0xff] %v11267_v60  ;;  %v11271_v54 = vmul.f32 0.70710677, %v11267_v60  ;;  %8772 = vpow2.f32 %v4851_v56  ;;  %v4311_v57 = vmul.f32 %v11254_v19, %v4279_v58 }
 0x38f   : > { %v4027_v40 = vand.u32 2147483647, %v11265_v6  ;;  %v11275_v45 = vpop.f32.mrf.mxu0  ;;  %v4277_v26 = vadd.f32 1.4214138, %v4245_v5  ;;  %v11278_v32 = vpop.eup %8758  ;;  %8774 = vpow2.f32 %v4543_v4  ;;  %vm4667_vm8 = vcmp.ge.f32.partialorder %v11265_v6, 0.0 }
 0x390   : > { %13959 = vst [vmem:[#allocation79_spill] sm:$0xff] %v11275_v45  ;;  %v4025_v48 = vand.u32 2147483647, %v11271_v54  ;;  %v4343_v29 = vadd.f32 -0.28449672, %v4311_v57  ;;  %vm4665_vm9 = vcmp.ge.f32.partialorder %v11271_v54, 0.0 }
 0x391   : > { %v4059_v49 = vmul.f32 0.3275911, %v4027_v40  ;;  %v4309_v12 = vmul.f32 %v11258_v50, %v4277_v26  ;;  %v11285_v14 = vmul.f32 0.70710677, %v11275_v45  ;;  %v4184_v1 = vmul.f32 1.0614054, %v11278_v32 }
 0x392   : > { %v4057_v3 = vmul.f32 0.3275911, %v4025_v48  ;;  %v4375_v62 = vmul.f32 %v11254_v19, %v4343_v29  ;;  %v11294_v29 = vmul.f32 0.5, %v11219_v7  ;;  %v4473_v8 = vsub.f32 0.0, %v4025_v48 }
 0x393   : > { %v4091_v37 = vadd.f32 1.0, %v4059_v49  ;;  %v4341_v15 = vadd.f32 -0.28449672, %v4309_v12  ;;  %v4028_v56 = vand.u32 2147483647, %v11285_v14  ;;  %v4475_v49 = vsub.f32 0.0, %v4027_v40 }
 0x394   : > { %v8761_v20 = vpop.eup %8760  ;;  %v4089_v10 = vadd.f32 1.0, %v4057_v3  ;;  %v4407_v57 = vadd.f32 0.2548296, %v4375_v62  ;;  %v4216_v26 = vadd.f32 -1.4531521, %v4184_v1  ;;  %vm4668_vm10 = vcmp.ge.f32.partialorder %v11285_v14, 0.0 }
 0x395   : > { %v8763_v58 = vpop.eup %8762  ;;  %v4915_v5 = vadd.f32 1.0, %v8761_v20  ;;  %8776 = vrcp.f32 %v4091_v37  ;;  %v4373_v0 = vmul.f32 %v11258_v50, %v4341_v15  ;;  %v4060_v20 = vmul.f32 0.3275911, %v4028_v56 }
 0x396   : > { %v11290_v43 = vpop.eup %8764  ;;  %8778 = vrcp.f32 %v4089_v10  ;;  %v4439_v12 = vmul.f32 %v11254_v19, %v4407_v57  ;;  %v4248_v3 = vmul.f32 %v11278_v32, %v4216_v26  ;;  %v4507_v10 = vmul.f32 %v4475_v49, %v4027_v40 }
 0x397   : > { %v8767_v4 = vpop.eup %8766  ;;  %8780 = vrcp.f32 %v4915_v5  ;;  %v4182_v62 = vmul.f32 1.0614054, %v11290_v43  ;;  %v4405_v37 = vadd.f32 0.2548296, %v4373_v0  ;;  %v4092_v5 = vadd.f32 1.0, %v4060_v20 }
 0x398   : > { %v4913_v1 = vadd.f32 1.0, %v8767_v4  ;;  %8782 = vpow2.f32 %v4539_v2  ;;  %v4599_v17 = vmul.f32 %v8763_v58, %v4439_v12  ;;  %v4280_v35 = vadd.f32 1.4214138, %v4248_v3 }
 0x399   : > { %v4214_v7 = vadd.f32 -1.4531521, %v4182_v62  ;;  %v8769_v25 = vpop.eup %8768  ;;  %v4437_v15 = vmul.f32 %v11258_v50, %v4405_v37  ;;  %v4476_v58 = vsub.f32 0.0, %v4028_v56  ;;  %v4549_v49 = vmul.f32 1.442695, %v4507_v10 }
 0x39a   : > { %8784 = vrcp.f32 %v4913_v1  ;;  %v8771_v24 = vpop.eup %8770  ;;  %v4916_v19 = vadd.f32 1.0, %v8769_v25  ;;  %v4631_v57 = vsub.f32 1.0, %v4599_v17  ;;  %v4312_v26 = vmul.f32 %v11278_v32, %v4280_v35  ;;  %v11304_v25 = vpop.f32.mrf.mxu0 }
 0x39b   : > { %v4246_v4 = vmul.f32 %v11290_v43, %v4214_v7  ;;  %v8773_v0 = vpop.eup %8772  ;;  %v4597_v2 = vmul.f32 %v8771_v24, %v4437_v15  ;;  %8786 = vrcp.f32 %v4092_v5  ;;  %v4505_v1 = vmul.f32 %v4473_v8, %v4025_v48  ;;  %13960 = vst [vmem:[#allocation80_spill] sm:$0xff] %v11304_v25 }
 0x39c   : > { %v4914_v12 = vadd.f32 1.0, %v8773_v0  ;;  %v4695_v3 = vsub.f32 0.0, %v4631_v57  ;;  %v4344_v62 = vadd.f32 -0.28449672, %v4312_v26  ;;  %8788 = vrcp.f32 %v4916_v19  ;;  %v8775_v48 = vpop.eup %8774 }
 0x39d   : > { %v4629_v50 = vsub.f32 1.0, %v4597_v2  ;;  %v4278_v40 = vadd.f32 1.4214138, %v4246_v4  ;;  %v11309_v35 = vmul.f32 0.5, %v11231_v21  ;;  %v4508_v8 = vmul.f32 %v4476_v58, %v4028_v56 }
 0x39e   : > { %8790 = vrcp.f32 %v4914_v12  ;;  %v4727_v17 = vsel %vm4663_vm12, %v4631_v57, %v4695_v3  ;;  %v4376_v24 = vmul.f32 %v11278_v32, %v4344_v62  ;;  %v4545_v5 = vmul.f32 1.442695, %v4505_v1 }
 0x39f   : > { %v4759_v7 = vadd.f32 1.0, %v4727_v17  ;;  %v4693_v37 = vsub.f32 0.0, %v4629_v50  ;;  %v4310_v20 = vmul.f32 %v11290_v43, %v4278_v40  ;;  %v11314_v10 = vmul.f32 0.70710677, %v11304_v25 }
 0x3a0   : > { %v4408_v15 = vadd.f32 0.2548296, %v4376_v24  ;;  %8792 = vpow2.f32 %v4549_v49  ;;  %v4551_v1 = vmul.f32 1.442695, %v4508_v8 }
 0x3a1   : > { %v4791_v39 = vmul.f32 %v4759_v7, %v11281_v31  ;;  %v4725_v57 = vsel %vm4661_vm13, %v4629_v50, %v4693_v37  ;;  %v4342_v26 = vadd.f32 -0.28449672, %v4310_v20  ;;  %v4026_v58 = vand.u32 2147483647, %v11314_v10 }
 0x3a2   : > { %v11316_v19 = vpop.eup %8776  ;;  %v4757_v0 = vadd.f32 1.0, %v4725_v57  ;;  %v4440_v56 = vmul.f32 %v11278_v32, %v4408_v15  ;;  %8794 = vpow2.f32 %v4545_v5  ;;  %vm4666_vm11 = vcmp.ge.f32.partialorder %v11314_v10, 0.0 }
 0x3a3   : > { %v11321_v4 = vpop.eup %8778  ;;  %v4187_v2 = vmul.f32 1.0614054, %v11316_v19  ;;  %v4823_v3 = vsub.f32 0.0, %v4791_v39  ;;  %v4374_v62 = vmul.f32 %v11290_v43, %v4342_v26  ;;  %v4058_v17 = vmul.f32 0.3275911, %v4026_v58 }
 0x3a4   : > { %v8781_v12 = vpop.eup %8780  ;;  %v4185_v31 = vmul.f32 1.0614054, %v11321_v4  ;;  %v4789_v50 = vmul.f32 %v4757_v0, %v11294_v29  ;;  %v4600_v40 = vmul.f32 %v8775_v48, %v4440_v56  ;;  %v4474_v29 = vsub.f32 0.0, %v4026_v58 }
 0x3a5   : > { %v8783_v52 = vpop.eup %8782  ;;  %v4219_v49 = vadd.f32 -1.4531521, %v4187_v2  ;;  %5204 = vperm.xlu1 %8658, %v8781_v12   ;;  %v4861_v24 = vmul.f32 1.442695, %v4823_v3  ;;  %v4406_v32 = vadd.f32 0.2548296, %v4374_v62 }
 0x3a6   : > { %v4217_v7 = vadd.f32 -1.4531521, %v4185_v31  ;;  %v4821_v20 = vsub.f32 0.0, %v4789_v50  ;;  %v4632_v15 = vsub.f32 1.0, %v4600_v40  ;;  %v4090_v57 = vadd.f32 1.0, %v4058_v17 }
 0x3a7   : > { %v8785_v37 = vpop.eup %8784  ;;  %v4251_v39 = vmul.f32 %v11316_v19, %v4219_v49  ;;  %8796 = vpow2.f32 %v4861_v24  ;;  %v4438_v8 = vmul.f32 %v11290_v43, %v4406_v32  ;;  %v4506_v50 = vmul.f32 %v4474_v29, %v4026_v58 }
 0x3a8   : > { %v4249_v26 = vmul.f32 %v11321_v4, %v4217_v7  ;;  %5194 = vperm.xlu0 %8659, %v8785_v37   ;;  %v11332_v48 = vpop.eup %8786  ;;  %v4857_v0 = vmul.f32 1.442695, %v4821_v20  ;;  %v4696_v56 = vsub.f32 0.0, %v4632_v15  ;;  %8798 = vrcp.f32 %v4090_v57 }
 0x3a9   : > { %v4283_v2 = vadd.f32 1.4214138, %v4251_v39  ;;  %v4598_v5 = vmul.f32 %v8783_v52, %v4438_v8  ;;  %v4188_v3 = vmul.f32 1.0614054, %v11332_v48  ;;  %v8789_v62 = vpop.eup %8788  ;;  %v11337_v40 = vpop.f32.mrf.mxu0  ;;  %v4547_v8 = vmul.f32 1.442695, %v4506_v50 }
 0x3aa   : > { %v4281_v12 = vadd.f32 1.4214138, %v4249_v26  ;;  %8800 = vpow2.f32 %v4857_v0  ;;  %v4728_v31 = vsel %vm4664_vm14, %v4632_v15, %v4696_v56  ;;  %13961 = vst [vmem:[#allocation81_spill] sm:$0xff] %v11337_v40  ;;  %v11346_v26 = vmul.f32 0.70710677, %v11337_v40 }
 0x3ab   : > { %v4315_v43 = vmul.f32 %v11316_v19, %v4283_v2  ;;  %v8791_v49 = vpop.eup %8790  ;;  %v4760_v17 = vadd.f32 1.0, %v4728_v31  ;;  %v4630_v24 = vsub.f32 1.0, %v4598_v5  ;;  %v4220_v7 = vadd.f32 -1.4531521, %v4188_v3  ;;  %v11348_v29 = vpop.f32.mrf.mxu0 }
 0x3ac   : > { %v4313_v32 = vmul.f32 %v11321_v4, %v4281_v12  ;;  %5209 = vperm.xlu0 %8659, %v8789_v62   ;;  %8802 = vpow2.f32 %v4551_v1  ;;  %5199 = vperm.xlu1 %8658, %v8791_v49   ;;  %13962 = vst [vmem:[#allocation82_spill] sm:$0xff] %v11348_v29  ;;  %v3963_v5 = vmul.f32 0.5, %v11262_v36  ;;  %v4031_v3 = vand.u32 2147483647, %v11346_v26 }
 0x3ad   : > { %v4347_v52 = vadd.f32 -0.28449672, %v4315_v43  ;;  %v4792_v37 = vmul.f32 %v4760_v17, %v11309_v35  ;;  %v4694_v20 = vsub.f32 0.0, %v4630_v24  ;;  %v4252_v58 = vmul.f32 %v11332_v48, %v4220_v7  ;;  %v8793_v39 = vpop.eup %8792 }
 0x3ae   : > { %v4345_v15 = vadd.f32 -0.28449672, %v4313_v32  ;;  %v11355_v43 = vmul.f32 0.70710677, %v11348_v29  ;;  %8804 = vpow2.f32 %v4547_v8  ;;  %v3962_v10 = vmul.f32 0.5, %v11304_v25 }
 0x3af   : > { %v4379_v57 = vmul.f32 %v11316_v19, %v4347_v52  ;;  %v4824_v0 = vsub.f32 0.0, %v4792_v37  ;;  %v4726_v1 = vsel %vm4662_vm15, %v4630_v24, %v4694_v20  ;;  %v4284_v35 = vadd.f32 1.4214138, %v4252_v58  ;;  %v8795_v50 = vpop.eup %8794 }
 0x3b0   : > { %v4377_v56 = vmul.f32 %v11321_v4, %v4345_v15  ;;  %v4758_v2 = vadd.f32 1.0, %v4726_v1  ;;  %v4063_v24 = vmul.f32 0.3275911, %v4031_v3  ;;  %v11360_v52 = vand.u32 2147483647, %v11355_v43 }
 0x3b1   : > { %v4411_v12 = vadd.f32 0.2548296, %v4379_v57  ;;  %v4863_v9 = vmul.f32 1.442695, %v4824_v0  ;;  %v4316_v31 = vmul.f32 %v11332_v48, %v4284_v35  ;;  %v4479_v57 = vsub.f32 0.0, %v4031_v3 }
 0x3b2   : > { %v4409_v62 = vadd.f32 0.2548296, %v4377_v56  ;;  %v4790_v49 = vmul.f32 %v4758_v2, %v3958_v16  ;;  %v4095_v58 = vadd.f32 1.0, %v4063_v24  ;;  %v4061_v8 = vmul.f32 0.3275911, %v11360_v52 }
 0x3b3   : > { %v4443_v17 = vmul.f32 %v11316_v19, %v4411_v12  ;;  %8806 = vpow2.f32 %v4863_v9  ;;  %v4348_v7 = vadd.f32 -0.28449672, %v4316_v31  ;;  %v4511_v24 = vmul.f32 %v4479_v57, %v4031_v3 }
 0x3b4   : > { %v4441_v32 = vmul.f32 %v11321_v4, %v4409_v62  ;;  %v8797_v37 = vpop.eup %8796  ;;  %v4822_v20 = vsub.f32 0.0, %v4790_v49  ;;  %8808 = vrcp.f32 %v4095_v58  ;;  %v11371_v58 = vpop.f32.mrf.mxu0  ;;  %vm4671_vm12 = vcmp.ge.f32.partialorder %v11346_v26, 0.0 }
 0x3b5   : > { %v4603_v15 = vmul.f32 %v8793_v39, %v4443_v17  ;;  %v11362_v0 = vpop.eup %8798  ;;  %v4919_v1 = vadd.f32 1.0, %v8797_v37  ;;  %v4380_v19 = vmul.f32 %v11332_v48, %v4348_v7  ;;  %13963 = vst [vmem:[#allocation83_spill] sm:$0xff] %v11371_v58  ;;  %v4557_v3 = vmul.f32 1.442695, %v4511_v24 }
 0x3b6   : > { %v4601_v16 = vmul.f32 %v8795_v50, %v4441_v32  ;;  %v4859_v56 = vmul.f32 1.442695, %v4822_v20  ;;  %v4186_v4 = vmul.f32 1.0614054, %v11362_v0  ;;  %v4093_v32 = vadd.f32 1.0, %v4061_v8 }
 0x3b7   : > { %v4635_v35 = vsub.f32 1.0, %v4603_v15  ;;  %v8801_v2 = vpop.eup %8800  ;;  %8810 = vrcp.f32 %v4919_v1  ;;  %v4412_v12 = vadd.f32 0.2548296, %v4380_v19  ;;  %v3961_v1 = vmul.f32 0.5, %v11267_v60 }
 0x3b8   : > { %v4633_v39 = vsub.f32 1.0, %v4601_v16  ;;  %v4917_v9 = vadd.f32 1.0, %v8801_v2  ;;  %8812 = vpow2.f32 %v4859_v56  ;;  %v4218_v31 = vadd.f32 -1.4531521, %v4186_v4 }
 0x3b9   : > { %v4699_v62 = vsub.f32 0.0, %v4635_v35  ;;  %v8803_v50 = vpop.eup %8802  ;;  %v4444_v17 = vmul.f32 %v11332_v48, %v4412_v12  ;;  %v11376_v54 = vmul.f32 0.70710677, %v11371_v58  ;;  %v3964_v2 = vmul.f32 0.5, %v11275_v45 }
 0x3ba   : > { %v4697_v49 = vsub.f32 0.0, %v4633_v39  ;;  %8814 = vrcp.f32 %v4917_v9  ;;  %v4250_v37 = vmul.f32 %v11362_v0, %v4218_v31  ;;  %v4477_v12 = vsub.f32 0.0, %v11360_v52 }
 0x3bb   : > { %v4731_v7 = vsel %vm4667_vm8, %v4635_v35, %v4699_v62  ;;  %v4604_v15 = vmul.f32 %v8803_v50, %v4444_v17  ;;  %8816 = vrcp.f32 %v4093_v32  ;;  %v8805_v35 = vpop.eup %8804  ;;  %v4032_v31 = vand.u32 2147483647, %v11376_v54  ;;  %v11382_v50 = vpop.f32.mrf.mxu0 }
 0x3bc   : > { %v4763_v20 = vadd.f32 1.0, %v4731_v7  ;;  %v4729_v6 = vsel %vm4665_vm9, %v4633_v39, %v4697_v49  ;;  %v4282_v19 = vadd.f32 1.4214138, %v4250_v37  ;;  %13964 = vst [vmem:[#allocation84_spill] sm:$0xff] %v11382_v50  ;;  %8818 = vpow2.f32 %v4557_v3 }
 0x3bd   : > { %v4761_v16 = vadd.f32 1.0, %v4729_v6  ;;  %v4636_v48 = vsub.f32 1.0, %v4604_v15  ;;  %v4509_v15 = vmul.f32 %v4477_v12, %v11360_v52  ;;  %v11389_v14 = vmul.f32 0.70710677, %v11382_v50 }
 0x3be   : > { %v4795_v56 = vmul.f32 %v4763_v20, %v3963_v5  ;;  %v4314_v8 = vmul.f32 %v11362_v0, %v4282_v19  ;;  %v4064_v20 = vmul.f32 0.3275911, %v4032_v31  ;;  %v11420_v45 = vmul.f32 0.5, %v11348_v29 }
 0x3bf   : > { %v4793_v57 = vmul.f32 %v4761_v16, %v3961_v1  ;;  %v4700_v39 = vsub.f32 0.0, %v4636_v48  ;;  %vm4669_vm13 = vcmp.ge.f32.partialorder %v11355_v43, 0.0  ;;  %vm4672_vm14 = vcmp.ge.f32.partialorder %v11376_v54, 0.0 }
 0x3c0   : > { %v4827_v4 = vsub.f32 0.0, %v4795_v56  ;;  %v8807_v9 = vpop.eup %8806  ;;  %v4346_v5 = vadd.f32 -0.28449672, %v4314_v8  ;;  %v4096_v3 = vadd.f32 1.0, %v4064_v20  ;;  %v4030_v8 = vand.u32 2147483647, %v11389_v14 }
 0x3c1   : > { %v4825_v62 = vsub.f32 0.0, %v4793_v57  ;;  %v4920_v49 = vadd.f32 1.0, %v8807_v9  ;;  %v4732_v24 = vsel %vm4668_vm10, %v4636_v48, %v4700_v39  ;;  %v11385_v6 = vpop.eup %8808  ;;  %v4480_v57 = vsub.f32 0.0, %v4032_v31  ;;  %v11394_v9 = vpop.f32.mrf.mxu0 }
 0x3c2   : > { %v4869_v17 = vmul.f32 1.442695, %v4827_v4  ;;  %v4764_v7 = vadd.f32 1.0, %v4732_v24  ;;  %v4378_v37 = vmul.f32 %v11362_v0, %v4346_v5  ;;  %v4191_v56 = vmul.f32 1.0614054, %v11385_v6  ;;  %13965 = vst [vmem:[#allocation85_spill] sm:$0xff] %v11394_v9 }
 0x3c3   : > { %v4865_v32 = vmul.f32 1.442695, %v4825_v62  ;;  %8820 = vrcp.f32 %v4920_v49  ;;  %vm4670_vm15 = vcmp.ge.f32.partialorder %v11389_v14, 0.0 }
 0x3c4   : > { %v8811_v1 = vpop.eup %8810  ;;  %8822 = vpow2.f32 %v4869_v17  ;;  %v4796_v16 = vmul.f32 %v4764_v7, %v3964_v2  ;;  %v4410_v19 = vadd.f32 0.2548296, %v4378_v37  ;;  %v4223_v12 = vadd.f32 -1.4531521, %v4191_v56 }
 0x3c5   : > { %v8813_v48 = vpop.eup %8812  ;;  %8824 = vpow2.f32 %v4865_v32  ;;  %5224 = vperm.xlu1 %8658, %v8811_v1   ;;  %v4062_v2 = vmul.f32 0.3275911, %v4030_v8  ;;  %v4553_v7 = vmul.f32 1.442695, %v4509_v15  ;;  %v4512_v37 = vmul.f32 %v4480_v57, %v4032_v31 }
 0x3c6   : > { %v4918_v4 = vadd.f32 1.0, %v8813_v48  ;;  %v4828_v39 = vsub.f32 0.0, %v4796_v16  ;;  %v4442_v52 = vmul.f32 %v11362_v0, %v4410_v19  ;;  %8826 = vrcp.f32 %v4096_v3  ;;  %v11400_v16 = vpop.f32.mrf.mxu0 }
 0x3c7   : > { %v8815_v62 = vpop.eup %8814  ;;  %v4255_v24 = vmul.f32 %v11385_v6, %v4223_v12  ;;  %v4094_v20 = vadd.f32 1.0, %v4062_v2  ;;  %13966 = vst [vmem:[#allocation86_spill] sm:$0xff] %v11400_v16  ;;  %v11405_v48 = vmul.f32 0.70710677, %v11394_v9  ;;  %v4559_v31 = vmul.f32 1.442695, %v4512_v37 }
 0x3c8   : > { %v11396_v5 = vpop.eup %8816  ;;  %8828 = vrcp.f32 %v4918_v4  ;;  %v4871_v49 = vmul.f32 1.442695, %v4828_v39  ;;  %v4602_v17 = vmul.f32 %v8805_v35, %v4442_v52  ;;  %v11409_v3 = vmul.f32 0.70710677, %v11400_v16 }
 0x3c9   : > { %v4189_v32 = vmul.f32 1.0614054, %v11396_v5  ;;  %5214 = vperm.xlu1 %8658, %v8815_v62   ;;  %v4287_v1 = vadd.f32 1.4214138, %v4255_v24  ;;  %v8819_v57 = vpop.eup %8818  ;;  %v4478_v52 = vsub.f32 0.0, %v4030_v8  ;;  %vm4675_vm8 = vcmp.ge.f32.partialorder %v11405_v48, 0.0 }
 0x3ca   : > { %8830 = vpow2.f32 %v4871_v49  ;;  %v4634_v0 = vsub.f32 1.0, %v4602_v17  ;;  %v4035_v12 = vand.u32 2147483647, %v11405_v48  ;;  %v4033_v49 = vand.u32 2147483647, %v11409_v3 }
 0x3cb   : > { %v4221_v19 = vadd.f32 -1.4531521, %v4189_v32  ;;  %8832 = vrcp.f32 %v4094_v20  ;;  %v4319_v35 = vmul.f32 %v11385_v6, %v4287_v1  ;;  %v11416_v20 = vmul.f32 0.5, %v11337_v40  ;;  %v11425_v40 = vpop.f32.mrf.mxu0 }
 0x3cc   : > { %v4698_v56 = vsub.f32 0.0, %v4634_v0  ;;  %8834 = vpow2.f32 %v4553_v7  ;;  %v4067_v32 = vmul.f32 0.3275911, %v4035_v12  ;;  %v4065_v1 = vmul.f32 0.3275911, %v4033_v49  ;;  %13967 = vst [vmem:[#allocation87_spill] sm:$0xff] %v11425_v40 }
 0x3cd   : > { %v4253_v15 = vmul.f32 %v11396_v5, %v4221_v19  ;;  %v4351_v39 = vadd.f32 -0.28449672, %v4319_v35  ;;  %8836 = vpow2.f32 %v4559_v31  ;;  %v4481_v31 = vsub.f32 0.0, %v4033_v49 }
 0x3ce   : > { %v4730_v4 = vsel %vm4666_vm11, %v4634_v0, %v4698_v56  ;;  %vm4673_vm9 = vcmp.ge.f32.partialorder %v11409_v3, 0.0 }
 0x3cf   : > { %v4762_v62 = vadd.f32 1.0, %v4730_v4  ;;  %v4285_v2 = vadd.f32 1.4214138, %v4253_v15  ;;  %v4383_v24 = vmul.f32 %v11385_v6, %v4351_v39  ;;  %v4510_v4 = vmul.f32 %v4478_v52, %v4030_v8 }
 0x3d0   : > { %v8821_v17 = vpop.eup %8820  ;;  %v4099_v15 = vadd.f32 1.0, %v4067_v32 }
 0x3d1   : > { %v8823_v7 = vpop.eup %8822  ;;  %v4794_v37 = vmul.f32 %v4762_v62, %v3962_v10  ;;  %v4317_v0 = vmul.f32 %v11396_v5, %v4285_v2  ;;  %5229 = vperm.xlu0 %8659, %v8821_v17   ;;  %v4415_v35 = vadd.f32 0.2548296, %v4383_v24  ;;  %v4483_v2 = vsub.f32 0.0, %v4035_v12 }
 0x3d2   : > { %v8825_v19 = vpop.eup %8824  ;;  %v4923_v56 = vadd.f32 1.0, %v8823_v7  ;;  %v4097_v24 = vadd.f32 1.0, %v4065_v1 }
 0x3d3   : > { %v4826_v25 = vsub.f32 0.0, %v4794_v37  ;;  %v4349_v39 = vadd.f32 -0.28449672, %v4317_v0  ;;  %v11422_v60 = vpop.eup %8826  ;;  %v4921_v10 = vadd.f32 1.0, %v8825_v19  ;;  %v4447_v62 = vmul.f32 %v11385_v6, %v4415_v35 }
 0x3d4   : > { %8838 = vrcp.f32 %v4923_v56  ;;  %v4192_v52 = vmul.f32 1.0614054, %v11422_v60  ;;  %v4555_v37 = vmul.f32 1.442695, %v4510_v4  ;;  %v11430_v6 = vmul.f32 0.70710677, %v11425_v40 }
 0x3d5   : > { %v8829_v17 = vpop.eup %8828  ;;  %v4867_v7 = vmul.f32 1.442695, %v4826_v25  ;;  %v4381_v8 = vmul.f32 %v11396_v5, %v4349_v39  ;;  %v4607_v32 = vmul.f32 %v8819_v57, %v4447_v62  ;;  %8840 = vrcp.f32 %v4099_v15 }
 0x3d6   : > { %5219 = vperm.xlu0 %8659, %v8829_v17   ;;  %v4224_v56 = vadd.f32 -1.4531521, %v4192_v52  ;;  %v4515_v29 = vmul.f32 %v4483_v2, %v4035_v12  ;;  %v4513_v17 = vmul.f32 %v4481_v31, %v4033_v49  ;;  %vm4676_vm10 = vcmp.ge.f32.partialorder %v11430_v6, 0.0 }
 0x3d7   : > { %v8831_v0 = vpop.eup %8830  ;;  %8842 = vpow2.f32 %v4867_v7  ;;  %v4413_v19 = vadd.f32 0.2548296, %v4381_v8  ;;  %v4639_v39 = vsub.f32 1.0, %v4607_v32  ;;  %v4036_v7 = vand.u32 2147483647, %v11430_v6  ;;  %v11439_v32 = vpop.f32.mrf.mxu0 }
 0x3d8   : > { %v11432_v35 = vpop.eup %8832  ;;  %8844 = vrcp.f32 %v4921_v10  ;;  %v4924_v25 = vadd.f32 1.0, %v8831_v0  ;;  %v4256_v57 = vmul.f32 %v11422_v60, %v4224_v56  ;;  %13968 = vst [vmem:[#allocation88_spill] sm:$0xff] %v11439_v32  ;;  %v4561_v49 = vmul.f32 1.442695, %v4513_v17 }
 0x3d9   : > { %v4445_v1 = vmul.f32 %v11396_v5, %v4413_v19  ;;  %v4190_v4 = vmul.f32 1.0614054, %v11432_v35  ;;  %8846 = vrcp.f32 %v4097_v24  ;;  %v8835_v15 = vpop.eup %8834  ;;  %v4703_v62 = vsub.f32 0.0, %v4639_v39 }
 0x3da   : > { %8848 = vrcp.f32 %v4924_v25  ;;  %v4288_v10 = vadd.f32 1.4214138, %v4256_v57  ;;  %v4565_v5 = vmul.f32 1.442695, %v4515_v29  ;;  %v4068_v2 = vmul.f32 0.3275911, %v4036_v7  ;;  %v8837_v29 = vpop.eup %8836 }
 0x3db   : > { %v4605_v8 = vmul.f32 %v8835_v15, %v4445_v1  ;;  %v4222_v52 = vadd.f32 -1.4531521, %v4190_v4  ;;  %v4735_v12 = vsel %vm4671_vm12, %v4639_v39, %v4703_v62  ;;  %8850 = vpow2.f32 %v4555_v37 }
 0x3dc   : > { %v4767_v0 = vadd.f32 1.0, %v4735_v12  ;;  %v4320_v24 = vmul.f32 %v11422_v60, %v4288_v10  ;;  %v4100_v31 = vadd.f32 1.0, %v4068_v2  ;;  %v11445_v26 = vmul.f32 0.70710677, %v11439_v32 }
 0x3dd   : > { %v4637_v19 = vsub.f32 1.0, %v4605_v8  ;;  %v4254_v56 = vmul.f32 %v11432_v35, %v4222_v52  ;;  %v11449_v57 = vmul.f32 0.5, %v11371_v58  ;;  %v4484_v4 = vsub.f32 0.0, %v4036_v7 }
 0x3de   : > { %v4799_v25 = vmul.f32 %v4767_v0, %v11416_v20  ;;  %v4352_v39 = vadd.f32 -0.28449672, %v4320_v24  ;;  %8852 = vrcp.f32 %v4100_v31  ;;  %v4034_v15 = vand.u32 2147483647, %v11445_v26  ;;  %v11459_v31 = vpop.f32.mrf.mxu0 }
 0x3df   : > { %v4701_v1 = vsub.f32 0.0, %v4637_v19  ;;  %v4286_v37 = vadd.f32 1.4214138, %v4254_v56  ;;  %v11455_v20 = vmul.f32 0.5, %v11382_v50  ;;  %8854 = vpow2.f32 %v4565_v5  ;;  %13969 = vst [vmem:[#allocation89_spill] sm:$0xff] %v11459_v31 }
 0x3e0   : > { %v4831_v43 = vsub.f32 0.0, %v4799_v25  ;;  %v4384_v8 = vmul.f32 %v11422_v60, %v4352_v39  ;;  %v4066_v12 = vmul.f32 0.3275911, %v4034_v15  ;;  %8856 = vpow2.f32 %v4561_v49 }
 0x3e1   : > { %v8839_v62 = vpop.eup %8838  ;;  %v4733_v17 = vsel %vm4669_vm13, %v4637_v19, %v4701_v1  ;;  %v4318_v10 = vmul.f32 %v11432_v35, %v4286_v37  ;;  %v4516_v39 = vmul.f32 %v4484_v4, %v4036_v7  ;;  %vm4674_vm11 = vcmp.ge.f32.partialorder %v11445_v26, 0.0 }
 0x3e2   : > { %v4765_v52 = vadd.f32 1.0, %v4733_v17  ;;  %5244 = vperm.xlu1 %8658, %v8839_v62   ;;  %v11457_v2 = vpop.eup %8840  ;;  %v4877_v0 = vmul.f32 1.442695, %v4831_v43  ;;  %v4416_v24 = vadd.f32 0.2548296, %v4384_v8  ;;  %v4098_v37 = vadd.f32 1.0, %v4066_v12 }
 0x3e3   : > { %v4350_v56 = vadd.f32 -0.28449672, %v4318_v10  ;;  %v4195_v1 = vmul.f32 1.0614054, %v11457_v2 }
 0x3e4   : > { %v8843_v19 = vpop.eup %8842  ;;  %v4797_v25 = vmul.f32 %v4765_v52, %v11420_v45  ;;  %8858 = vpow2.f32 %v4877_v0  ;;  %v4448_v5 = vmul.f32 %v11422_v60, %v4416_v24  ;;  %v11469_v52 = vpop.f32.mrf.mxu0  ;;  %v4567_v0 = vmul.f32 1.442695, %v4516_v39 }
 0x3e5   : > { %v8845_v17 = vpop.eup %8844  ;;  %v4922_v50 = vadd.f32 1.0, %v8843_v19  ;;  %v4382_v62 = vmul.f32 %v11432_v35, %v4350_v56  ;;  %v4227_v49 = vadd.f32 -1.4531521, %v4195_v1  ;;  %8860 = vrcp.f32 %v4098_v37  ;;  %13970 = vst [vmem:[#allocation90_spill] sm:$0xff] %v11469_v52 }
 0x3e6   : > { %v11465_v43 = vpop.eup %8846  ;;  %v4829_v8 = vsub.f32 0.0, %v4797_v25  ;;  %5234 = vperm.xlu1 %8658, %v8845_v17   ;;  %v4608_v10 = vmul.f32 %v8837_v29, %v4448_v5  ;;  %v4482_v24 = vsub.f32 0.0, %v4034_v15  ;;  %v11478_v29 = vmul.f32 0.5, %v11394_v9 }
 0x3e7   : > { %v8849_v45 = vpop.eup %8848  ;;  %8862 = vrcp.f32 %v4922_v50  ;;  %v4414_v7 = vadd.f32 0.2548296, %v4382_v62  ;;  %v4193_v4 = vmul.f32 1.0614054, %v11465_v43  ;;  %v4259_v60 = vmul.f32 %v11457_v2, %v4227_v49 }
 0x3e8   : > { %v4873_v12 = vmul.f32 1.442695, %v4829_v8  ;;  %5249 = vperm.xlu0 %8659, %v8849_v45   ;;  %v8851_v56 = vpop.eup %8850  ;;  %v4640_v19 = vsub.f32 1.0, %v4608_v10  ;;  %v11475_v50 = vmul.f32 0.70710677, %v11459_v31  ;;  %v4514_v49 = vmul.f32 %v4482_v24, %v4034_v15 }
 0x3e9   : > { %v4446_v25 = vmul.f32 %v11432_v35, %v4414_v7  ;;  %v4225_v1 = vadd.f32 -1.4531521, %v4193_v4  ;;  %v4291_v37 = vadd.f32 1.4214138, %v4259_v60  ;;  %v11481_v17 = vmul.f32 0.70710677, %v11469_v52 }
 0x3ea   : > { %8864 = vpow2.f32 %v4873_v12  ;;  %v4704_v5 = vsub.f32 0.0, %v4640_v19  ;;  %v4039_v8 = vand.u32 2147483647, %v11475_v50  ;;  %vm4679_vm12 = vcmp.ge.f32.partialorder %v11475_v50, 0.0 }
 0x3eb   : > { %v4606_v39 = vmul.f32 %v8851_v56, %v4446_v25  ;;  %v4257_v62 = vmul.f32 %v11465_v43, %v4225_v1  ;;  %v4323_v35 = vmul.f32 %v11457_v2, %v4291_v37  ;;  %8866 = vpow2.f32 %v4567_v0  ;;  %v11487_v10 = vpop.eup %8852 }
 0x3ec   : > { %v4037_v45 = vand.u32 2147483647, %v11481_v17  ;;  %v4736_v7 = vsel %vm4672_vm14, %v4640_v19, %v4704_v5  ;;  %v4071_v60 = vmul.f32 0.3275911, %v4039_v8  ;;  %v4196_v25 = vmul.f32 1.0614054, %v11487_v10  ;;  %v8855_v58 = vpop.eup %8854 }
 0x3ed   : > { %v4638_v4 = vsub.f32 1.0, %v4606_v39  ;;  %v4289_v12 = vadd.f32 1.4214138, %v4257_v62  ;;  %v4768_v9 = vadd.f32 1.0, %v4736_v7  ;;  %v4355_v56 = vadd.f32 -0.28449672, %v4323_v35  ;;  %v8857_v37 = vpop.eup %8856 }
 0x3ee   : > { %v4487_v1 = vsub.f32 0.0, %v4039_v8  ;;  %v4103_v15 = vadd.f32 1.0, %v4071_v60  ;;  %v4069_v24 = vmul.f32 0.3275911, %v4037_v45  ;;  %v4228_v19 = vadd.f32 -1.4531521, %v4196_v25 }
 0x3ef   : > { %v4702_v36 = vsub.f32 0.0, %v4638_v4  ;;  %v4321_v0 = vmul.f32 %v11465_v43, %v4289_v12  ;;  %v4800_v11 = vmul.f32 %v4768_v9, %v11449_v57  ;;  %v4387_v54 = vmul.f32 %v11457_v2, %v4355_v56 }
 0x3f0   : > { %v4563_v5 = vmul.f32 1.442695, %v4514_v49  ;;  %8868 = vrcp.f32 %v4103_v15  ;;  %v4101_v35 = vadd.f32 1.0, %v4069_v24  ;;  %v4260_v12 = vmul.f32 %v11487_v10, %v4228_v19 }
 0x3f1   : > { %v4734_v39 = vsel %vm4670_vm15, %v4638_v4, %v4702_v36  ;;  %v4353_v62 = vadd.f32 -0.28449672, %v4321_v0  ;;  %v8859_v7 = vpop.eup %8858  ;;  %v4832_v21 = vsub.f32 0.0, %v4800_v11  ;;  %v4419_v18 = vadd.f32 0.2548296, %v4387_v54 }
 0x3f2   : > { %v4766_v34 = vadd.f32 1.0, %v4734_v39  ;;  %v11498_v60 = vpop.eup %8860  ;;  %v4927_v63 = vadd.f32 1.0, %v8859_v7  ;;  %v4519_v57 = vmul.f32 %v4487_v1, %v4039_v8  ;;  %8870 = vrcp.f32 %v4101_v35  ;;  %v11507_v39 = vpop.f32.mrf.mxu0 }
 0x3f3   : > { %v4385_v9 = vmul.f32 %v11465_v43, %v4353_v62  ;;  %v4879_v56 = vmul.f32 1.442695, %v4832_v21  ;;  %v4451_v14 = vmul.f32 %v11457_v2, %v4419_v18  ;;  %v4292_v4 = vadd.f32 1.4214138, %v4260_v12  ;;  %13971 = vst [vmem:[#allocation91_spill] sm:$0xff] %v11507_v39 }
 0x3f4   : > { %v8863_v49 = vpop.eup %8862  ;;  %v4798_v36 = vmul.f32 %v4766_v34, %v11455_v20  ;;  %8872 = vrcp.f32 %v4927_v63  ;;  %v4194_v25 = vmul.f32 1.0614054, %v11498_v60  ;;  %v4485_v0 = vsub.f32 0.0, %v4037_v45 }
 0x3f5   : > { %v4417_v11 = vadd.f32 0.2548296, %v4385_v9  ;;  %5239 = vperm.xlu0 %8659, %v8863_v49   ;;  %8874 = vpow2.f32 %v4879_v56  ;;  %v4611_v24 = vmul.f32 %v8855_v58, %v4451_v14  ;;  %v4324_v54 = vmul.f32 %v11487_v10, %v4292_v4 }
 0x3f6   : > { %v4830_v15 = vsub.f32 0.0, %v4798_v36  ;;  %v3969_v1 = vmul.f32 0.5, %v11400_v16  ;;  %v4226_v34 = vadd.f32 -1.4531521, %v4194_v25  ;;  %v4517_v20 = vmul.f32 %v4485_v0, %v4037_v45 }
 0x3f7   : > { %v8865_v8 = vpop.eup %8864  ;;  %v4449_v21 = vmul.f32 %v11465_v43, %v4417_v11  ;;  %v4643_v63 = vsub.f32 1.0, %v4611_v24  ;;  %v4356_v19 = vadd.f32 -0.28449672, %v4324_v54  ;;  %8876 = vpow2.f32 %v4563_v5  ;;  %v11525_v54 = vpop.f32.mrf.mxu0 }
 0x3f8   : > { %v4925_v18 = vadd.f32 1.0, %v8865_v8  ;;  %v4875_v2 = vmul.f32 1.442695, %v4830_v15  ;;  %v8867_v62 = vpop.eup %8866  ;;  %v4258_v58 = vmul.f32 %v11498_v60, %v4226_v34  ;;  %v4573_v43 = vmul.f32 1.442695, %v4519_v57  ;;  %13972 = vst [vmem:[#allocation92_spill] sm:$0xff] %v11525_v54 }
 0x3f9   : > { %v4609_v35 = vmul.f32 %v8857_v37, %v4449_v21  ;;  %v4707_v7 = vsub.f32 0.0, %v4643_v63  ;;  %v4388_v12 = vmul.f32 %v11487_v10, %v4356_v19  ;;  %v11513_v49 = vmul.f32 0.70710677, %v11507_v39 }
 0x3fa   : > { %8878 = vrcp.f32 %v4925_v18  ;;  %v4290_v9 = vadd.f32 1.4214138, %v4258_v58  ;;  %v4569_v48 = vmul.f32 1.442695, %v4517_v20  ;;  %v3972_v57 = vmul.f32 0.5, %v11425_v40 }
 0x3fb   : > { %8880 = vpow2.f32 %v4875_v2  ;;  %v4641_v45 = vsub.f32 1.0, %v4609_v35  ;;  %v4739_v56 = vsel %vm4675_vm8, %v4643_v63, %v4707_v7  ;;  %v4420_v36 = vadd.f32 0.2548296, %v4388_v12 }
 0x3fc   : > { %v4771_v37 = vadd.f32 1.0, %v4739_v56  ;;  %v4322_v5 = vmul.f32 %v11498_v60, %v4290_v9  ;;  %v4040_v4 = vand.u32 2147483647, %v11513_v49  ;;  %8882 = vpow2.f32 %v4573_v43 }
 0x3fd   : > { %v4705_v14 = vsub.f32 0.0, %v4641_v45  ;;  %v11518_v11 = vpop.eup %8868  ;;  %v4452_v25 = vmul.f32 %v11487_v10, %v4420_v36  ;;  %8884 = vpow2.f32 %v4569_v48  ;;  %v11532_v7 = vmul.f32 0.70710677, %v11525_v54 }
 0x3fe   : > { %v4803_v0 = vmul.f32 %v4771_v37, %v11478_v29  ;;  %v4354_v15 = vadd.f32 -0.28449672, %v4322_v5  ;;  %v4199_v24 = vmul.f32 1.0614054, %v11518_v11  ;;  %v4072_v20 = vmul.f32 0.3275911, %v4040_v4 }
 0x3ff   : > { %v4737_v3 = vsel %vm4673_vm9, %v4641_v45, %v4705_v14  ;;  %v11527_v8 = vpop.eup %8870  ;;  %v4612_v34 = vmul.f32 %v8867_v62, %v4452_v25  ;;  %vm4677_vm13 = vcmp.ge.f32.partialorder %v11481_v17, 0.0  ;;  %vm4680_vm14 = vcmp.ge.f32.partialorder %v11513_v49, 0.0 }
 0x400   : > { %v4769_v21 = vadd.f32 1.0, %v4737_v3  ;;  %v4835_v18 = vsub.f32 0.0, %v4803_v0  ;;  %v4386_v10 = vmul.f32 %v11498_v60, %v4354_v15  ;;  %v4231_v2 = vadd.f32 -1.4531521, %v4199_v24 }
 0x401   : > { %v4197_v63 = vmul.f32 1.0614054, %v11527_v8  ;;  %v8873_v19 = vpop.eup %8872  ;;  %v4644_v35 = vsub.f32 1.0, %v4612_v34  ;;  %v4104_v58 = vadd.f32 1.0, %v4072_v20  ;;  %v4488_v3 = vsub.f32 0.0, %v4040_v4 }
 0x402   : > { %v4801_v29 = vmul.f32 %v4769_v21, %v3969_v1  ;;  %v8875_v12 = vpop.eup %8874  ;;  %v4885_v43 = vmul.f32 1.442695, %v4835_v18  ;;  %v4418_v45 = vadd.f32 0.2548296, %v4386_v10  ;;  %v4263_v62 = vmul.f32 %v11518_v11, %v4231_v2  ;;  %5264 = vperm.xlu1 %8658, %v8873_v19  }
 0x403   : > { %v4229_v9 = vadd.f32 -1.4531521, %v4197_v63  ;;  %v4928_v56 = vadd.f32 1.0, %v8875_v12  ;;  %v4708_v48 = vsub.f32 0.0, %v4644_v35  ;;  %8886 = vrcp.f32 %v4104_v58  ;;  %v11542_v58 = vpop.f32.mrf.mxu0 }
 0x404   : > { %v4833_v36 = vsub.f32 0.0, %v4801_v29  ;;  %8888 = vpow2.f32 %v4885_v43  ;;  %v4450_v37 = vmul.f32 %v11498_v60, %v4418_v45  ;;  %v4295_v1 = vadd.f32 1.4214138, %v4263_v62  ;;  %v8877_v5 = vpop.eup %8876  ;;  %13973 = vst [vmem:[#allocation93_spill] sm:$0xff] %v11542_v58 }
 0x405   : > { %v4261_v14 = vmul.f32 %v11527_v8, %v4229_v9  ;;  %8890 = vrcp.f32 %v4928_v56  ;;  %v4740_v0 = vsel %vm4676_vm10, %v4644_v35, %v4708_v48  ;;  %v4038_v60 = vand.u32 2147483647, %v11532_v7 }
 0x406   : > { %v4881_v25 = vmul.f32 1.442695, %v4833_v36  ;;  %v4772_v24 = vadd.f32 1.0, %v4740_v0  ;;  %v4610_v21 = vmul.f32 %v8877_v5, %v4450_v37  ;;  %v4327_v34 = vmul.f32 %v11518_v11, %v4295_v1 }
 0x407   : > { %v8879_v15 = vpop.eup %8878  ;;  %v4293_v20 = vadd.f32 1.4214138, %v4261_v14  ;;  %v4520_v6 = vmul.f32 %v4488_v3, %v4040_v4  ;;  %v4070_v35 = vmul.f32 0.3275911, %v4038_v60  ;;  %v11547_v1 = vmul.f32 0.70710677, %v11542_v58  ;;  %v11555_v3 = vpop.f32.mrf.mxu0 }
 0x408   : > { %v8881_v18 = vpop.eup %8880  ;;  %8892 = vpow2.f32 %v4881_v25  ;;  %5254 = vperm.xlu1 %8658, %v8879_v15   ;;  %v4804_v2 = vmul.f32 %v4772_v24, %v3972_v57  ;;  %v4642_v63 = vsub.f32 1.0, %v4610_v21  ;;  %v4359_v19 = vadd.f32 -0.28449672, %v4327_v34  ;;  %13974 = vst [vmem:[#allocation94_spill] sm:$0xff] %v11555_v3 }
 0x409   : > { %v4926_v10 = vadd.f32 1.0, %v8881_v18  ;;  %v4325_v29 = vmul.f32 %v11527_v8, %v4293_v20  ;;  %v8883_v12 = vpop.eup %8882  ;;  %v4102_v56 = vadd.f32 1.0, %v4070_v35  ;;  %v3970_v4 = vmul.f32 0.5, %v11439_v32 }
 0x40a   : > { %v4836_v43 = vsub.f32 0.0, %v4804_v2  ;;  %v4706_v45 = vsub.f32 0.0, %v4642_v63  ;;  %v4391_v62 = vmul.f32 %v11518_v11, %v4359_v19  ;;  %v8885_v36 = vpop.eup %8884  ;;  %v4575_v0 = vmul.f32 1.442695, %v4520_v6 }
 0x40b   : > { %8894 = vrcp.f32 %v4926_v10  ;;  %v4357_v9 = vadd.f32 -0.28449672, %v4325_v29  ;;  %v11553_v26 = vand.u32 2147483647, %v11547_v1  ;;  %v4486_v20 = vsub.f32 0.0, %v4038_v60 }
 0x40c   : > { %v4887_v57 = vmul.f32 1.442695, %v4836_v43  ;;  %v4738_v48 = vsel %vm4674_vm11, %v4642_v63, %v4706_v45  ;;  %v4423_v37 = vadd.f32 0.2548296, %v4391_v62  ;;  %8896 = vrcp.f32 %v4102_v56 }
 0x40d   : > { %v4770_v14 = vadd.f32 1.0, %v4738_v48  ;;  %v4389_v5 = vmul.f32 %v11527_v8, %v4357_v9  ;;  %v4075_v18 = vmul.f32 0.3275911, %v11553_v26  ;;  %v11563_v19 = vmul.f32 0.70710677, %v11555_v3 }
 0x40e   : > { %8898 = vpow2.f32 %v4887_v57  ;;  %v4455_v25 = vmul.f32 %v11518_v11, %v4423_v37  ;;  %v4518_v57 = vmul.f32 %v4486_v20, %v4038_v60  ;;  %vm4678_vm15 = vcmp.ge.f32.partialorder %v11532_v7, 0.0 }
 0x40f   : > { %v4802_v15 = vmul.f32 %v4770_v14, %v3970_v4  ;;  %v4421_v24 = vadd.f32 0.2548296, %v4389_v5  ;;  %8900 = vpow2.f32 %v4575_v0  ;;  %v4107_v43 = vadd.f32 1.0, %v4075_v18 }
 0x410   : > { %v11557_v21 = vpop.eup %8886  ;;  %v4615_v34 = vmul.f32 %v8883_v12, %v4455_v25  ;;  %v11566_v9 = vand.u32 2147483647, %v11563_v19  ;;  %v3975_v25 = vmul.f32 0.5, %v11459_v31  ;;  %v4571_v50 = vmul.f32 1.442695, %v4518_v57 }
 0x411   : > { %v8889_v10 = vpop.eup %8888  ;;  %v4834_v2 = vsub.f32 0.0, %v4802_v15  ;;  %v4453_v63 = vmul.f32 %v11527_v8, %v4421_v24  ;;  %v4200_v11 = vmul.f32 1.0614054, %v11557_v21  ;;  %vm4683_vm8 = vcmp.ge.f32.partialorder %v11547_v1, 0.0 }
 0x412   : > { %v8891_v29 = vpop.eup %8890  ;;  %v4931_v6 = vadd.f32 1.0, %v8889_v10  ;;  %v4647_v35 = vsub.f32 1.0, %v4615_v34  ;;  %v11572_v34 = vpop.f32.mrf.mxu0  ;;  %v3977_v1 = vmul.f32 0.5, %v11555_v3  ;;  %vm4681_vm9 = vcmp.ge.f32.partialorder %v11563_v19, 0.0 }
 0x413   : > { %v4883_v45 = vmul.f32 1.442695, %v4834_v2  ;;  %v4613_v62 = vmul.f32 %v8885_v36, %v4453_v63  ;;  %v4232_v12 = vadd.f32 -1.4531521, %v4200_v11  ;;  %5269 = vperm.xlu0 %8659, %v8891_v29   ;;  %v4073_v36 = vmul.f32 0.3275911, %v11566_v9 }
 0x414   : > { %8902 = vrcp.f32 %v4931_v6  ;;  %v4711_v8 = vsub.f32 0.0, %v4647_v35  ;;  %13975 = vst [vmem:[#allocation95_spill] sm:$0xff] %v11572_v34  ;;  %v4491_v2 = vsub.f32 0.0, %v11553_v26  ;;  %v3973_v11 = vmul.f32 0.5, %v11469_v52 }
 0x415   : > { %v8893_v56 = vpop.eup %8892  ;;  %8904 = vpow2.f32 %v4883_v45  ;;  %v4645_v37 = vsub.f32 1.0, %v4613_v62  ;;  %v4264_v4 = vmul.f32 %v11557_v21, %v4232_v12  ;;  %v4105_v60 = vadd.f32 1.0, %v4073_v36 }
 0x416   : > { %v4929_v48 = vadd.f32 1.0, %v8893_v56  ;;  %v4743_v14 = vsel %vm4679_vm12, %v4647_v35, %v4711_v8  ;;  %8906 = vrcp.f32 %v4107_v43  ;;  %v11581_v6 = vmul.f32 0.70710677, %v11572_v34 }
 0x417   : > { %v4775_v0 = vadd.f32 1.0, %v4743_v14  ;;  %v4709_v15 = vsub.f32 0.0, %v4645_v37  ;;  %v4296_v24 = vadd.f32 1.4214138, %v4264_v4  ;;  %v11587_v4 = vpop.f32.mrf.mxu0  ;;  %v4489_v36 = vsub.f32 0.0, %v11566_v9 }
 0x418   : > { %v8895_v5 = vpop.eup %8894  ;;  %8908 = vrcp.f32 %v4929_v48  ;;  %v4044_v56 = vand.u32 2147483647, %v11581_v6  ;;  %13976 = vst [vmem:[#allocation96_spill] sm:$0xff] %v11587_v4  ;;  %vm4684_vm10 = vcmp.ge.f32.partialorder %v11581_v6, 0.0  ;;  %vm9203_vm12 = vmmov 0  }
 0x419   : > { %5259 = vperm.xlu0 %8659, %v8895_v5   ;;  %v4807_v20 = vmul.f32 %v4775_v0, %v3975_v25  ;;  %v4741_v18 = vsel %vm4677_vm13, %v4645_v37, %v4709_v15  ;;  %v4328_v10 = vmul.f32 %v11557_v21, %v4296_v24  ;;  %v11577_v63 = vpop.eup %8896  ;;  %8910 = vrcp.f32 %v4105_v60 }
 0x41a   : > { %v4773_v29 = vadd.f32 1.0, %v4741_v18  ;;  %v4198_v45 = vmul.f32 1.0614054, %v11577_v63  ;;  %8912 = vpow2.f32 %v4571_v50  ;;  %v4523_v37 = vmul.f32 %v4491_v2, %v11553_v26 }
 0x41b   : > { %v8899_v35 = vpop.eup %8898  ;;  %v4839_v17 = vsub.f32 0.0, %v4807_v20  ;;  %v4360_v43 = vadd.f32 -0.28449672, %v4328_v10  ;;  %v4076_v5 = vmul.f32 0.3275911, %v4044_v56 }
 0x41c   : > { %v4932_v62 = vadd.f32 1.0, %v8899_v35  ;;  %v4805_v12 = vmul.f32 %v4773_v29, %v3973_v11  ;;  %v4230_v48 = vadd.f32 -1.4531521, %v4198_v45  ;;  %v8901_v25 = vpop.eup %8900  ;;  %v11592_v60 = vmul.f32 0.70710677, %v11587_v4 }
 0x41d   : > { %v4893_v8 = vmul.f32 1.442695, %v4839_v17  ;;  %v4392_v57 = vmul.f32 %v11557_v21, %v4360_v43  ;;  %v4108_v50 = vadd.f32 1.0, %v4076_v5  ;;  %v4581_v10 = vmul.f32 1.442695, %v4523_v37  ;;  %v11597_v17 = vpop.f32.mrf.mxu0 }
 0x41e   : > { %8914 = vrcp.f32 %v4932_v62  ;;  %v4837_v14 = vsub.f32 0.0, %v4805_v12  ;;  %v4262_v15 = vmul.f32 %v11577_v63, %v4230_v48  ;;  %v4521_v11 = vmul.f32 %v4489_v36, %v11566_v9  ;;  %13977 = vst [vmem:[#allocation97_spill] sm:$0xff] %v11597_v17 }
 0x41f   : > { %8916 = vpow2.f32 %v4893_v8  ;;  %v4424_v0 = vadd.f32 0.2548296, %v4392_v57  ;;  %v4492_v29 = vsub.f32 0.0, %v4044_v56  ;;  %v4042_v35 = vand.u32 2147483647, %v11592_v60 }
 0x420   : > { %v4889_v24 = vmul.f32 1.442695, %v4837_v14  ;;  %v4294_v18 = vadd.f32 1.4214138, %v4262_v15  ;;  %v11605_v36 = vmul.f32 0.70710677, %v11597_v17 }
 0x421   : > { %v8903_v20 = vpop.eup %8902  ;;  %v4456_v26 = vmul.f32 %v11557_v21, %v4424_v0  ;;  %v3976_v21 = vmul.f32 0.5, %v11507_v39  ;;  %v4074_v57 = vmul.f32 0.3275911, %v4042_v35  ;;  %v4490_v48 = vsub.f32 0.0, %v4042_v35 }
 0x422   : > { %v8905_v2 = vpop.eup %8904  ;;  %8918 = vpow2.f32 %v4889_v24  ;;  %5284 = vperm.xlu1 %8658, %v8903_v20   ;;  %v4326_v12 = vmul.f32 %v11577_v63, %v4294_v18  ;;  %v4577_v0 = vmul.f32 1.442695, %v4521_v11  ;;  %v4524_v20 = vmul.f32 %v4492_v29, %v4044_v56 }
 0x423   : > { %v11599_v43 = vpop.eup %8906  ;;  %v4930_v45 = vadd.f32 1.0, %v8905_v2  ;;  %v4616_v62 = vmul.f32 %v8901_v25, %v4456_v26  ;;  %8920 = vrcp.f32 %v4108_v50  ;;  %v4106_v25 = vadd.f32 1.0, %v4074_v57 }
 0x424   : > { %v4203_v8 = vmul.f32 1.0614054, %v11599_v43  ;;  %v4358_v14 = vadd.f32 -0.28449672, %v4326_v12  ;;  %v11611_v26 = vand.u32 2147483647, %v11605_v36 }
 0x425   : > { %v8909_v9 = vpop.eup %8908  ;;  %8922 = vrcp.f32 %v4930_v45  ;;  %v4648_v37 = vsub.f32 1.0, %v4616_v62  ;;  %v4522_v62 = vmul.f32 %v4490_v48, %v4042_v35  ;;  %v3974_v56 = vmul.f32 0.5, %v11525_v54 }
 0x426   : > { %v4235_v5 = vadd.f32 -1.4531521, %v4203_v8  ;;  %8924 = vpow2.f32 %v4581_v10  ;;  %5274 = vperm.xlu1 %8658, %v8909_v9   ;;  %v11607_v15 = vpop.eup %8910  ;;  %v4390_v50 = vmul.f32 %v11577_v63, %v4358_v14  ;;  %v4079_v12 = vmul.f32 0.3275911, %v11611_v26  ;;  %v11617_v8 = vpop.f32.mrf.mxu0 }
 0x427   : > { %v4712_v24 = vsub.f32 0.0, %v4648_v37  ;;  %v4201_v2 = vmul.f32 1.0614054, %v11607_v15  ;;  %8926 = vrcp.f32 %v4106_v25  ;;  %v8913_v10 = vpop.eup %8912  ;;  %13978 = vst [vmem:[#allocation98_spill] sm:$0xff] %v11617_v8  ;;  %vm4682_vm11 = vcmp.ge.f32.partialorder %v11592_v60, 0.0 }
 0x428   : > { %v4267_v18 = vmul.f32 %v11599_v43, %v4235_v5  ;;  %v4422_v45 = vadd.f32 0.2548296, %v4390_v50  ;;  %8928 = vpow2.f32 %v4577_v0  ;;  %v4583_v5 = vmul.f32 1.442695, %v4524_v20 }
 0x429   : > { %v4744_v11 = vsel %vm4680_vm14, %v4648_v37, %v4712_v24  ;;  %v4233_v9 = vadd.f32 -1.4531521, %v4201_v2  ;;  %v4111_v39 = vadd.f32 1.0, %v4079_v12  ;;  %v11626_v50 = vmul.f32 0.70710677, %v11617_v8 }
 0x42a   : > { %v4776_v57 = vadd.f32 1.0, %v4744_v11  ;;  %v4299_v29 = vadd.f32 1.4214138, %v4267_v18  ;;  %v4454_v49 = vmul.f32 %v11577_v63, %v4422_v45  ;;  %v4579_v11 = vmul.f32 1.442695, %v4522_v62 }
 0x42b   : > { %v8915_v14 = vpop.eup %8914  ;;  %v4265_v48 = vmul.f32 %v11607_v15, %v4233_v9  ;;  %8930 = vrcp.f32 %v4111_v39  ;;  %vm4687_vm13 = vcmp.ge.f32.partialorder %v11605_v36, 0.0  ;;  %vm4685_vm14 = vcmp.ge.f32.partialorder %v11626_v50, 0.0 }
 0x42c   : > { %v8917_v37 = vpop.eup %8916  ;;  %v4808_v24 = vmul.f32 %v4776_v57, %v3976_v21  ;;  %v4331_v35 = vmul.f32 %v11599_v43, %v4299_v29  ;;  %5289 = vperm.xlu0 %8659, %v8915_v14   ;;  %v4614_v2 = vmul.f32 %v8913_v10, %v4454_v49  ;;  %v4495_v57 = vsub.f32 0.0, %v11611_v26 }
 0x42d   : > { %v11621_v25 = vpop.f32.mrf.mxu1  ;;  %v4935_v18 = vadd.f32 1.0, %v8917_v37  ;;  %v4297_v45 = vadd.f32 1.4214138, %v4265_v48  ;;  %v4045_v29 = vand.u32 2147483647, %v11626_v50 }
 0x42e   : > { %v4840_v0 = vsub.f32 0.0, %v4808_v24  ;;  %v4363_v20 = vadd.f32 -0.28449672, %v4331_v35  ;;  %v4646_v12 = vsub.f32 1.0, %v4614_v2 }
 0x42f   : > { %v11628_v63 = vpop.f32.mrf.mxu1  ;;  %v8919_v21 = vpop.eup %8918  ;;  %8932 = vrcp.f32 %v4935_v18  ;;  %v4329_v49 = vmul.f32 %v11607_v15, %v4297_v45  ;;  %v4077_v35 = vmul.f32 0.3275911, %v4045_v29  ;;  %v4493_v52 = vsub.f32 0.0, %v4045_v29 }
 0x430   : > { %v11633_v14 = vpop.eup %8920  ;;  %v4933_v10 = vadd.f32 1.0, %v8919_v21  ;;  %v4895_v62 = vmul.f32 1.442695, %v4840_v0  ;;  %v4395_v39 = vmul.f32 %v11599_v43, %v4363_v20  ;;  %v4710_v37 = vsub.f32 0.0, %v4646_v12 }
 0x431   : > { %v8228_v9 = vpop.f32.mrf.mxu1  ;;  %v4204_v24 = vmul.f32 1.0614054, %v11633_v14  ;;  %8934 = vpow2.f32 %v4583_v5  ;;  %v4361_v54 = vadd.f32 -0.28449672, %v4329_v49  ;;  %v4109_v45 = vadd.f32 1.0, %v4077_v35 }
 0x432   : > { %v8923_v18 = vpop.eup %8922  ;;  %8936 = vrcp.f32 %v4933_v10  ;;  %v4427_v2 = vadd.f32 0.2548296, %v4395_v39  ;;  %v11638_v9 = vpop.f32.mrf.mxu0  ;;  %v4742_v0 = vsel %vm4678_vm15, %v4646_v12, %v4710_v37  ;;  %v4527_v10 = vmul.f32 %v4495_v57, %v11611_v26 }
 0x433   : > { %v8229_v48 = vpop.f32.mrf.mxu1  ;;  %13979 = vst [vmem:[#allocation99_spill] sm:$0xff] %v11638_v9  ;;  %v8925_v31 = vpop.eup %8924  ;;  %8938 = vpow2.f32 %v4895_v62  ;;  %v4236_v20 = vadd.f32 -1.4531521, %v4204_v24  ;;  %5279 = vperm.xlu0 %8659, %v8923_v18   ;;  %v4774_v21 = vadd.f32 1.0, %v4742_v0  ;;  %v4525_v32 = vmul.f32 %v4493_v52, %v4045_v29 }
 0x434   : > { %v4459_v5 = vmul.f32 %v11599_v43, %v4427_v2  ;;  %v4393_v48 = vmul.f32 %v11607_v15, %v4361_v54  ;;  %v11645_v39 = vpop.eup %8926  ;;  %8940 = vrcp.f32 %v4109_v45  ;;  %v11649_v62 = vmul.f32 0.70710677, %v11638_v9 }
 0x435   : > { %v4268_v49 = vmul.f32 %v11633_v14, %v4236_v20  ;;  %v4806_v7 = vmul.f32 %v4774_v21, %v3974_v56  ;;  %v4202_v24 = vmul.f32 1.0614054, %v11645_v39  ;;  %v3979_v43 = vmul.f32 0.5, %v11542_v58  ;;  %v8929_v26 = vpop.eup %8928 }
 0x436   : > { %v4619_v12 = vmul.f32 %v8925_v31, %v4459_v5  ;;  %v4425_v37 = vadd.f32 0.2548296, %v4393_v48  ;;  %8942 = vpow2.f32 %v4579_v11  ;;  %v11654_v54 = vand.u32 2147483647, %v11649_v62 }
 0x437   : > { %v4300_v35 = vadd.f32 1.4214138, %v4268_v49  ;;  %v4838_v57 = vsub.f32 0.0, %v4806_v7  ;;  %v4234_v29 = vadd.f32 -1.4531521, %v4202_v24  ;;  %vm4688_vm15 = vcmp.ge.f32.partialorder %v11649_v62, 0.0 }
 0x438   : > { %v4651_v18 = vsub.f32 1.0, %v4619_v12  ;;  %v4457_v52 = vmul.f32 %v11607_v15, %v4425_v37  ;;  %v4589_v56 = vmul.f32 1.442695, %v4527_v10  ;;  %v4585_v31 = vmul.f32 1.442695, %v4525_v32  ;;  %v11659_v20 = vpop.eup %8930 }
 0x439   : > { %v4332_v2 = vmul.f32 %v11633_v14, %v4300_v35  ;;  %v4080_v0 = vmul.f32 0.3275911, %v11654_v54  ;;  %v4891_v45 = vmul.f32 1.442695, %v4838_v57  ;;  %v4266_v5 = vmul.f32 %v11645_v39, %v4234_v29  ;;  %v11665_v57 = vpop.f32.mrf.mxu0 }
 0x43a   : > { %v4715_v21 = vsub.f32 0.0, %v4651_v18  ;;  %v4617_v11 = vmul.f32 %v8929_v26, %v4457_v52  ;;  %v4207_v49 = vmul.f32 1.0614054, %v11659_v20  ;;  %13980 = vst [vmem:[#allocation100_spill] sm:$0xff] %v11665_v57 }
 0x43b   : > { %v4364_v48 = vadd.f32 -0.28449672, %v4332_v2  ;;  %v4112_v15 = vadd.f32 1.0, %v4080_v0  ;;  %8944 = vpow2.f32 %v4891_v45  ;;  %v4298_v32 = vadd.f32 1.4214138, %v4266_v5 }
 0x43c   : > { %v8933_v7 = vpop.eup %8932  ;;  %v4747_v12 = vsel %vm4683_vm8, %v4651_v18, %v4715_v21  ;;  %v4649_v10 = vsub.f32 1.0, %v4617_v11  ;;  %v4239_v35 = vadd.f32 -1.4531521, %v4207_v49 }
 0x43d   : > { %v4779_v37 = vadd.f32 1.0, %v4747_v12  ;;  %v4396_v24 = vmul.f32 %v11633_v14, %v4364_v48  ;;  %8946 = vrcp.f32 %v4112_v15  ;;  %5304 = vperm.xlu1 %8658, %v8933_v7   ;;  %v4330_v29 = vmul.f32 %v11645_v39, %v4298_v32 }
 0x43e   : > { %v8935_v26 = vpop.eup %8934  ;;  %v4713_v52 = vsub.f32 0.0, %v4649_v10  ;;  %v4271_v45 = vmul.f32 %v11659_v20, %v4239_v35  ;;  %8948 = vpow2.f32 %v4589_v56  ;;  %v11672_v48 = vmul.f32 0.70710677, %v11665_v57 }
 0x43f   : > { %v8937_v2 = vpop.eup %8936  ;;  %v4811_v18 = vmul.f32 %v4779_v37, %v3979_v43  ;;  %v4428_v0 = vadd.f32 0.2548296, %v4396_v24  ;;  %v4362_v5 = vadd.f32 -0.28449672, %v4330_v29  ;;  %8950 = vpow2.f32 %v4585_v31 }
 0x440   : > { %v8939_v21 = vpop.eup %8938  ;;  %v4745_v11 = vsel %vm4681_vm9, %v4649_v10, %v4713_v52  ;;  %v4303_v32 = vadd.f32 1.4214138, %v4271_v45  ;;  %v4496_v56 = vsub.f32 0.0, %v11654_v54  ;;  %v11680_v10 = vand.u32 2147483647, %v11672_v48  ;;  %v8718_v45 = vld [vmem:[%s13646_s9 + $0x8] sm:$0xff]  }
 0x441   : > { %v4936_v49 = vadd.f32 1.0, %v8939_v21  ;;  %v4843_v15 = vsub.f32 0.0, %v4811_v18  ;;  %v4777_v7 = vadd.f32 1.0, %v4745_v11  ;;  %v4460_v19 = vmul.f32 %v11633_v14, %v4428_v0  ;;  %5294 = vperm.xlu1 %8658, %v8937_v2   ;;  %v11675_v12 = vpop.eup %8940 }
 0x442   : > { %v4394_v43 = vmul.f32 %v11645_v39, %v4362_v5  ;;  %v4335_v29 = vmul.f32 %v11659_v20, %v4303_v32  ;;  %v4205_v14 = vmul.f32 1.0614054, %v11675_v12  ;;  %v4078_v2 = vmul.f32 0.3275911, %v11680_v10 }
 0x443   : > { %8952 = vrcp.f32 %v4936_v49  ;;  %v4901_v31 = vmul.f32 1.442695, %v4843_v15  ;;  %v4809_v37 = vmul.f32 %v4777_v7, %v3977_v1  ;;  %v4620_v24 = vmul.f32 %v8935_v26, %v4460_v19  ;;  %v8943_v35 = vpop.eup %8942 }
 0x444   : > { %v4426_v52 = vadd.f32 0.2548296, %v4394_v43  ;;  %v4367_v26 = vadd.f32 -0.28449672, %v4335_v29  ;;  %v4237_v21 = vadd.f32 -1.4531521, %v4205_v14  ;;  %v4528_v15 = vmul.f32 %v4496_v56, %v11654_v54 }
 0x445   : > { %8954 = vpow2.f32 %v4901_v31  ;;  %v4841_v18 = vsub.f32 0.0, %v4809_v37  ;;  %v4652_v0 = vsub.f32 1.0, %v4620_v24  ;;  %v4110_v11 = vadd.f32 1.0, %v4078_v2  ;;  %v8719_v56 = vld [vmem:[%s13646_s9] sm:$0xff]  }
 0x446   : > { %v4458_v1 = vmul.f32 %v11645_v39, %v4426_v52  ;;  %v4399_v19 = vmul.f32 %v11659_v20, %v4367_v26  ;;  %v4269_v43 = vmul.f32 %v11675_v12, %v4237_v21  ;;  %v9202_v32 = vmov 0.0  }
 0x447   : > { %v4897_v5 = vmul.f32 1.442695, %v4841_v18  ;;  %v4716_v49 = vsub.f32 0.0, %v4652_v0  ;;  %8956 = vrcp.f32 %v4110_v11  ;;  %8514 = vmatprep.subr.bf16.mxu0 %v9202_v32  ;;  %8522 = vmatprep.subr.bf16.mxu1 %v9202_v32  ;;  %v3980_v39 = vmul.f32 0.5, %v11572_v34 }
 0x448   : > { %v4618_v7 = vmul.f32 %v8943_v35, %v4458_v1  ;;  %v8945_v31 = vpop.eup %8944  ;;  %8515 = vmatpush3.bf16.msra.mxu0 %v8718_v45  ;;  %v8227_v54 = vadd.f32 %v11628_v63, %v11621_v25  ;;  %v4431_v14 = vadd.f32 0.2548296, %v4399_v19  ;;  %v4301_v2 = vadd.f32 1.4214138, %v4269_v43  ;;  %8518 = vmatprep.mubr.msk.bf16.mxu0 %vm9203_vm12, %v9202_v32 }
 0x449   : > { %8958 = vpow2.f32 %v4897_v5  ;;  %v4748_v37 = vsel %vm4684_vm10, %v4652_v0, %v4716_v49  ;;  %v4934_v35 = vadd.f32 1.0, %v8945_v31  ;;  %8516 = vmatprep.subr.bf16.mxu0 %v9202_v32  ;;  %v4591_v6 = vmul.f32 1.442695, %v4528_v15  ;;  %8524 = vmatprep.mubr.msk.bf16.mxu1 %vm9203_vm12, %v9202_v32 }
 0x44a   : > { %v11701_v24 = vpop.eup %8946  ;;  %v4780_v52 = vadd.f32 1.0, %v4748_v37  ;;  %v4650_v29 = vsub.f32 1.0, %v4618_v7  ;;  %v5049_v0 = vpack.c.bf16 %v8227_v54, %v8227_v54  ;;  %v4463_v63 = vmul.f32 %v11659_v20, %v4431_v14 }
 0x44b   : > { %v4208_v18 = vmul.f32 1.0614054, %v11701_v24  ;;  %v8949_v45 = vpop.eup %8948  ;;  %8960 = vrcp.f32 %v4934_v35  ;;  %v4333_v21 = vmul.f32 %v11675_v12, %v4301_v2  ;;  %v4494_v19 = vsub.f32 0.0, %v11680_v10 }
 0x44c   : > { %v4812_v1 = vmul.f32 %v4780_v52, %v3980_v39  ;;  %v4714_v25 = vsub.f32 0.0, %v4650_v29  ;;  %v8951_v26 = vpop.eup %8950  ;;  %8517 = vmatpush3.bf16.msra.mxu0 %v8719_v56  ;;  %v4623_v7 = vmul.f32 %v8949_v45, %v4463_v63  ;;  %v3978_v15 = vmul.f32 0.5, %v11587_v4 }
 0x44d   : > { %v4240_v11 = vadd.f32 -1.4531521, %v4208_v18  ;;  %v4365_v31 = vadd.f32 -0.28449672, %v4333_v21  ;;  %8962 = vpow2.f32 %v4591_v6  ;;  %v3983_v6 = vmul.f32 0.5, %v11597_v17 }
 0x44e   : > { %v4844_v5 = vsub.f32 0.0, %v4812_v1  ;;  %v4746_v49 = vsel %vm4682_vm11, %v4650_v29, %v4714_v25  ;;  %v4655_v37 = vsub.f32 1.0, %v4623_v7  ;;  %v4526_v29 = vmul.f32 %v4494_v19, %v11680_v10 }
 0x44f   : > { %v4778_v43 = vadd.f32 1.0, %v4746_v49  ;;  %v4272_v20 = vmul.f32 %v11701_v24, %v4240_v11  ;;  %8519 = vmatmul.mubr.msk.bf16.vlgmr.msra.gmra.mxu0 %vm943_vm1, %v5049_v0  ;;  %v4397_v56 = vmul.f32 %v11675_v12, %v4365_v31  ;;  %vm4686_vm8 = vcmp.ge.f32.partialorder %v11672_v48, 0.0 }
 0x450   : > { %v8953_v39 = vpop.eup %8952  ;;  %v4903_v60 = vmul.f32 1.442695, %v4844_v5  ;;  %v4719_v32 = vsub.f32 0.0, %v4655_v37  ;;  %v4587_v49 = vmul.f32 1.442695, %v4526_v29  ;;  %vm5138_vm9 = vcmask 15360  }
 0x451   : > { %v4810_v54 = vmul.f32 %v4778_v43, %v3978_v15  ;;  %v4304_v35 = vadd.f32 1.4214138, %v4272_v20  ;;  %5309 = vperm.xlu0 %8659, %v8953_v39   ;;  %v4429_v18 = vadd.f32 0.2548296, %v4397_v56 }
 0x452   : > { %v8955_v52 = vpop.eup %8954  ;;  %8964 = vpow2.f32 %v4903_v60  ;;  %v4751_v0 = vsel %vm4687_vm13, %v4655_v37, %v4719_v32  ;;  %v3981_v32 = vmul.f32 0.5, %v11617_v8 }
 0x453   : > { %v4939_v14 = vadd.f32 1.0, %v8955_v52  ;;  %v4842_v2 = vsub.f32 0.0, %v4810_v54  ;;  %v4336_v45 = vmul.f32 %v11701_v24, %v4304_v35  ;;  %v4783_v63 = vadd.f32 1.0, %v4751_v0 }
 0x454   : > { %v8957_v1 = vpop.eup %8956  ;;  %v4461_v21 = vmul.f32 %v11675_v12, %v4429_v18 }
 0x455   : > { %8966 = vrcp.f32 %v4939_v14  ;;  %v4899_v25 = vmul.f32 1.442695, %v4842_v2  ;;  %v4368_v5 = vadd.f32 -0.28449672, %v4336_v45  ;;  %v4206_v36 = vmul.f32 1.0614054, %v8957_v1 }
 0x456   : > { %v8959_v11 = vpop.eup %8958  ;;  %v4815_v10 = vmul.f32 %v4783_v63, %v3983_v6  ;;  %v4621_v19 = vmul.f32 %v8951_v26, %v4461_v21 }
 0x457   : > { %v4937_v7 = vadd.f32 1.0, %v8959_v11  ;;  %8968 = vpow2.f32 %v4899_v25  ;;  %v4400_v15 = vmul.f32 %v11701_v24, %v4368_v5  ;;  %v4238_v43 = vadd.f32 -1.4531521, %v4206_v36 }
 0x458   : > { %v8961_v31 = vpop.eup %8960  ;;  %v4847_v20 = vsub.f32 0.0, %v4815_v10  ;;  %v4653_v39 = vsub.f32 1.0, %v4621_v19  ;;  %v3984_v10 = vmul.f32 0.5, %v11638_v9 }
 0x459   : > { %8970 = vrcp.f32 %v4937_v7  ;;  %v4432_v60 = vadd.f32 0.2548296, %v4400_v15  ;;  %v4270_v37 = vmul.f32 %v8957_v1, %v4238_v43  ;;  %5299 = vperm.xlu0 %8659, %v8961_v31  }
 0x45a   : > { %8972 = vpow2.f32 %v4587_v49  ;;  %v4909_v12 = vmul.f32 1.442695, %v4847_v20  ;;  %v4717_v54 = vsub.f32 0.0, %v4653_v39  ;;  %v8963_v52 = vpop.eup %8962 }
 0x45b   : > { %v4464_v56 = vmul.f32 %v11701_v24, %v4432_v60  ;;  %v4302_v35 = vadd.f32 1.4214138, %v4270_v37 }
 0x45c   : > { %8974 = vpow2.f32 %v4909_v12  ;;  %v4749_v26 = vsel %vm4685_vm14, %v4653_v39, %v4717_v54 }
 0x45d   : > { %v4781_v29 = vadd.f32 1.0, %v4749_v26  ;;  %v4624_v14 = vmul.f32 %v8963_v52, %v4464_v56  ;;  %v4334_v2 = vmul.f32 %v8957_v1, %v4302_v35  ;;  %v3982_v26 = vmul.f32 0.5, %v11665_v57 }
 0x45f   : > { %v8965_v18 = vpop.eup %8964  ;;  %v4813_v6 = vmul.f32 %v4781_v29, %v3981_v32  ;;  %v4656_v0 = vsub.f32 1.0, %v4624_v14  ;;  %v4366_v25 = vadd.f32 -0.28449672, %v4334_v2 }
 0x460   : > { %v4940_v45 = vadd.f32 1.0, %v8965_v18 }
 0x461   : > { %v4845_v21 = vsub.f32 0.0, %v4813_v6  ;;  %v4720_v50 = vsub.f32 0.0, %v4656_v0  ;;  %v4398_v11 = vmul.f32 %v8957_v1, %v4366_v25 }
 0x462   : > { %v8967_v63 = vpop.eup %8966  ;;  %8976 = vrcp.f32 %v4940_v45 }
 0x463   : > { %5324 = vperm.xlu0 %8659, %v8967_v63   ;;  %v4905_v5 = vmul.f32 1.442695, %v4845_v21  ;;  %v4752_v36 = vsel %vm4688_vm15, %v4656_v0, %v4720_v50  ;;  %v4430_v49 = vadd.f32 0.2548296, %v4398_v11 }
 0x464   : > { %v8969_v24 = vpop.eup %8968  ;;  %v4784_v19 = vadd.f32 1.0, %v4752_v36 }
 0x465   : > { %v4938_v7 = vadd.f32 1.0, %v8969_v24  ;;  %8978 = vpow2.f32 %v4905_v5  ;;  %v4462_v43 = vmul.f32 %v8957_v1, %v4430_v49  ;;  %v5137_v24 = vld [vmem:[%s13647_s10] sm:$0x1] }
 0x466   : > { %v8971_v15 = vpop.eup %8970  ;;  %v4816_v20 = vmul.f32 %v4784_v19, %v3984_v10  ;;  %v5144_v5 = vsel %vm1314_vm3, %v5137_v24, 0 }
 0x467   : > { %v8973_v31 = vpop.eup %8972  ;;  %8980 = vrcp.f32 %v4938_v7  ;;  %5314 = vperm.xlu0 %8659, %v8971_v15   ;;  %8523 = vmatpush3.bf16.msra.mxu1 %v5144_v5 }
 0x468   : > { %v4622_v39 = vmul.f32 %v8973_v31, %v4462_v43  ;;  %v4848_v60 = vsub.f32 0.0, %v4816_v20 }
 0x469   : > { %v8975_v37 = vpop.eup %8974 }
 0x46a   : > { %v4654_v62 = vsub.f32 1.0, %v4622_v39  ;;  %v4943_v12 = vadd.f32 1.0, %v8975_v37  ;;  %v4911_v54 = vmul.f32 1.442695, %v4848_v60 }
 0x46c   : > { %v4718_v56 = vsub.f32 0.0, %v4654_v62  ;;  %8982 = vrcp.f32 %v4943_v12 }
 0x46d   : > { %8984 = vpow2.f32 %v4911_v54 }
 0x46e   : > { %v4750_v35 = vsel %vm4686_vm8, %v4654_v62, %v4718_v56 }
 0x46f   : > { %v8977_v52 = vpop.eup %8976  ;;  %v4782_v1 = vadd.f32 1.0, %v4750_v35 }
 0x470   : > { %5329 = vperm.xlu1 %8658, %v8977_v52  }
 0x471   : > { %v4814_v32 = vmul.f32 %v4782_v1, %v3982_v26 }
 0x472   : > { %v8979_v29 = vpop.eup %8978 }
 0x473   : > { %v4846_v14 = vsub.f32 0.0, %v4814_v32  ;;  %v4941_v18 = vadd.f32 1.0, %v8979_v29 }
 0x474   : > { %v8981_v2 = vpop.eup %8980 }
 0x475   : > { %v4907_v45 = vmul.f32 1.442695, %v4846_v14  ;;  %5319 = vperm.xlu1 %8658, %v8981_v2   ;;  %8986 = vrcp.f32 %v4941_v18 }
 0x477   : > { %8988 = vpow2.f32 %v4907_v45 }
 0x479   : > { %v8983_v6 = vpop.eup %8982 }
 0x47a   : > { %v8985_v0 = vpop.eup %8984  ;;  %5344 = vperm.xlu0 %8659, %v8983_v6  }
 0x47b   : > { %v4944_v48 = vadd.f32 1.0, %v8985_v0 }
 0x47d   : > { %8990 = vrcp.f32 %v4944_v48 }
 0x482   : > { %v8987_v25 = vpop.eup %8986 }
 0x483   : > { %5334 = vperm.xlu0 %8659, %v8987_v25  }
 0x484   : > { %v8989_v63 = vpop.eup %8988 }
 0x485   : > { %v4942_v21 = vadd.f32 1.0, %v8989_v63  ;;  %v8720_v63 = vld [vmem:[%s13648_s11 + $0x88] sm:$0xff]  }
 0x486   : > { %8528 = vmatprep.subr.bf16.mxu1 %v8720_v63 }
 0x487   : > { %8992 = vrcp.f32 %v4942_v21  ;;  %v8721_v21 = vld [vmem:[%s13648_s11 + $0x80] sm:$0xff]  }
 0x48a   : > { %v8991_v50 = vpop.eup %8990 }
 0x48b   : > { %5349 = vperm.xlu1 %8658, %v8991_v50   ;;  %v5195_v50 = vpop.permute.xlu0 %5194 }
 0x48f   : > { %v5210_v5 = vpop.permute.xlu0 %5209 }
 0x494   : > { %v8993_v11 = vpop.eup %8992 }
 0x495   : > { %5339 = vperm.xlu1 %8658, %v8993_v11   ;;  %v5205_v11 = vpop.permute.xlu1 %5204 }
 0x499   : > { %v5200_v24 = vpop.permute.xlu1 %5199 }
 0x50f   : > { %v5103_v36 = vpop.f32.mrf.mxu0 }
 0x510   : > { %v5110_v49 = vmul.f32 0.70710677, %v5103_v36  ;;  %v5109_v6 = vmul.f32 0.5, %v5103_v36  ;;  %v5225_v36 = vpop.permute.xlu1 %5224 }
 0x511   : > { %v8520_v7 = vpop.f32.mrf.mxu0 }
 0x512   : > { %v5111_v10 = vand.u32 2147483647, %v5110_v49  ;;  %vm5131_vm3 = vcmp.ge.f32.partialorder %v5110_v49, 0.0  ;;  %v5230_v49 = vpop.permute.xlu0 %5229 }
 0x513   : > { %v5106_v19 = vpop.f32.mrf.mxu0 }
 0x514   : > { %v5112_v15 = vmul.f32 0.3275911, %v5111_v10  ;;  %v5125_v20 = vsub.f32 0.0, %v5111_v10  ;;  %v5215_v7 = vpop.permute.xlu1 %5214 }
 0x515   : > { %v8521_v43 = vpop.f32.mrf.mxu0 }
 0x516   : > { %v5113_v31 = vadd.f32 1.0, %v5112_v15  ;;  %v5126_v39 = vmul.f32 %v5125_v20, %v5111_v10  ;;  %v5220_v10 = vpop.permute.xlu0 %5219 }
 0x518   : > { %8994 = vrcp.f32 %v5113_v31  ;;  %v5127_v62 = vmul.f32 1.442695, %v5126_v39  ;;  %v5245_v19 = vpop.permute.xlu1 %5244 }
 0x51a   : > { %8996 = vpow2.f32 %v5127_v62  ;;  %v5250_v15 = vpop.permute.xlu0 %5249 }
 0x51c   : > { %v5235_v43 = vpop.permute.xlu1 %5234 }
 0x51e   : > { %v5240_v31 = vpop.permute.xlu0 %5239 }
 0x520   : > { %v5265_v39 = vpop.permute.xlu1 %5264 }
 0x525   : > { %v8995_v60 = vpop.eup %8994 }
 0x526   : > { %v5116_v37 = vmul.f32 1.0614054, %v8995_v60 }
 0x527   : > { %v8997_v29 = vpop.eup %8996 }
 0x528   : > { %v5117_v12 = vadd.f32 -1.4531521, %v5116_v37  ;;  %v5270_v37 = vpop.permute.xlu0 %5269 }
 0x52a   : > { %v5118_v54 = vmul.f32 %v8995_v60, %v5117_v12 }
 0x52c   : > { %v5119_v56 = vadd.f32 1.4214138, %v5118_v54 }
 0x52e   : > { %v5120_v35 = vmul.f32 %v8995_v60, %v5119_v56 }
 0x530   : > { %v5121_v52 = vadd.f32 -0.28449672, %v5120_v35  ;;  %v5255_v35 = vpop.permute.xlu1 %5254 }
 0x532   : > { %v5122_v26 = vmul.f32 %v8995_v60, %v5121_v52  ;;  %v5260_v52 = vpop.permute.xlu0 %5259 }
 0x534   : > { %v5123_v1 = vadd.f32 0.2548296, %v5122_v26  ;;  %v5285_v26 = vpop.permute.xlu1 %5284 }
 0x536   : > { %v5124_v32 = vmul.f32 %v8995_v60, %v5123_v1  ;;  %v5290_v1 = vpop.permute.xlu0 %5289 }
 0x538   : > { %v5129_v14 = vmul.f32 %v8997_v29, %v5124_v32  ;;  %v5275_v29 = vpop.permute.xlu1 %5274 }
 0x53a   : > { %v5130_v2 = vsub.f32 1.0, %v5129_v14  ;;  %v5280_v14 = vpop.permute.xlu0 %5279 }
 0x53c   : > { %v5132_v18 = vsub.f32 0.0, %v5130_v2 }
 0x53e   : > { %v5133_v45 = vsel %vm5131_vm3, %v5130_v2, %v5132_v18  ;;  %v5305_v18 = vpop.permute.xlu1 %5304 }
 0x53f   : > { %v5134_v0 = vadd.f32 1.0, %v5133_v45  ;;  %v5310_v45 = vpop.permute.xlu0 %5309 }
 0x541   : > { %v5135_v48 = vmul.f32 %v5134_v0, %v5109_v6 }
 0x542   : > { %v5295_v6 = vpop.permute.xlu1 %5294 }
 0x543   : > { %v5136_v25 = vpack.c.bf16 %v5135_v48, %v5135_v48  ;;  %v5300_v0 = vpop.permute.xlu0 %5299 }
 0x545   : > { %8525 = vmatmul.mubr.msk.bf16.vlgmr.msra.gmra.mxu1 %vm5138_vm9, %v5136_v25 }
 0x546   : > { %8529 = vmatpush3.bf16.msra.mxu1 %v8720_v63  ;;  %v5330_v25 = vpop.permute.xlu1 %5329  ;;  %v13981_v63 = vld [vmem:[#allocation21_spill] sm:$0xff] }
 0x547   : > { %8530 = vmatprep.subr.bf16.mxu1 %v8721_v21  ;;  %v5325_v48 = vpop.permute.xlu0 %5324 }
 0x54a   : > { %8531 = vmatpush3.bf16.msra.mxu1 %v8721_v21  ;;  %v5354_v21 = vsub.s32 0, %v13981_v63 }
 0x605   : > { %v5180_v20 = vpop.f32.mrf.mxu1 }
 0x606   : > { %v5186_v60 = vsub.f32 0.0, %v5180_v20 }
 0x607   : > { %v8526_v62 = vpop.f32.mrf.mxu1 }
 0x608   : > { %v5187_v12 = vmul.f32 1.442695, %v5186_v60  ;;  %v5315_v60 = vpop.permute.xlu0 %5314  ;;  %v5320_v62 = vpop.permute.xlu1 %5319 }
 0x609   : > { %v5183_v54 = vpop.f32.mrf.mxu1 }
 0x60a   : > { %8998 = vpow2.f32 %v5187_v12 }
 0x60b   : > { %v8527_v56 = vpop.f32.mrf.mxu1 }
 0x60c   : > { %v5345_v54 = vpop.permute.xlu0 %5344  ;;  %v5350_v56 = vpop.permute.xlu1 %5349 }
 0x617   : > { %v8999_v32 = vpop.eup %8998 }
 0x618   : > { %v5189_v2 = vadd.f32 1.0, %v8999_v32 }
 0x61a   : > { %9000 = vrcp.f32 %v5189_v2 }
 0x627   : > { %v9001_v20 = vpop.eup %9000 }
 0x628   : > { %v5355_v12 = vrot.slane %v9001_v20, %v5354_v21 }
 0x62a   : > { %v5356_v9 = vadd.f32 %v5355_v12, %v5195_v50  ;;  %v5357_v57 = vadd.f32 %v5355_v12, %v5200_v24  ;;  %v5358_v8 = vadd.f32 %v5355_v12, %v5205_v11  ;;  %v5359_v17 = vadd.f32 %v5355_v12, %v5210_v5 }
 0x62b   : > { %v5360_v32 = vadd.f32 %v5355_v12, %v5215_v7  ;;  %v5361_v4 = vadd.f32 %v5355_v12, %v5220_v10  ;;  %v5362_v34 = vadd.f32 %v5355_v12, %v5225_v36  ;;  %v5363_v2 = vadd.f32 %v5355_v12, %v5230_v49  ;;  %v5335_v7 = vpop.permute.xlu0 %5334  ;;  %v5340_v10 = vpop.permute.xlu1 %5339 }
 0x62c   : > { %v5364_v3 = vadd.f32 %v5355_v12, %v5235_v43  ;;  %v5365_v58 = vadd.f32 %v5355_v12, %v5240_v31  ;;  %v5366_v40 = vadd.f32 %v5355_v12, %v5245_v19  ;;  %v5367_v16 = vadd.f32 %v5355_v12, %v5250_v15 }
 0x62d   : > { %v5368_v46 = vadd.f32 %v5355_v12, %v5255_v35  ;;  %v5369_v63 = vadd.f32 %v5355_v12, %v5260_v52  ;;  %v5370_v42 = vadd.f32 %v5355_v12, %v5265_v39  ;;  %v5371_v23 = vadd.f32 %v5355_v12, %v5270_v37 }
 0x62e   : > { %v5372_v27 = vadd.f32 %v5355_v12, %v5275_v29  ;;  %v5373_v21 = vadd.f32 %v5355_v12, %v5280_v14  ;;  %v5374_v20 = vadd.f32 %v5355_v12, %v5285_v26  ;;  %v5375_v22 = vadd.f32 %v5355_v12, %v5290_v1 }
 0x62f   : > { %v5376_v50 = vadd.f32 %v5355_v12, %v5295_v6  ;;  %v5377_v24 = vadd.f32 %v5355_v12, %v5300_v0  ;;  %v5378_v11 = vadd.f32 %v5355_v12, %v5305_v18  ;;  %v5379_v5 = vadd.f32 %v5355_v12, %v5310_v45 }
 0x630   : > { %v5380_v36 = vadd.f32 %v5355_v12, %v5315_v60  ;;  %v5381_v49 = vadd.f32 %v5355_v12, %v5320_v62  ;;  %v5382_v43 = vadd.f32 %v5355_v12, %v5325_v48  ;;  %v5383_v31 = vadd.f32 %v5355_v12, %v5330_v25 }
 0x631   : > { %v5384_v19 = vadd.f32 %v5355_v12, %v5335_v7  ;;  %v5385_v15 = vadd.f32 %v5355_v12, %v5340_v10  ;;  %v5386_v35 = vadd.f32 %v5355_v12, %v5345_v54  ;;  %v5387_v52 = vadd.f32 %v5355_v12, %v5350_v56 }
 0x632   : > { %v13982_v39 = vmax.f32 %v10921_v44, 0.0  ;;  %v13983_v26 = vmax.f32 %v10927_v51, 0.0  ;;  %v13984_v29 = vmax.f32 %v10942_v33, 0.0  ;;  %v13985_v18 = vmax.f32 %v10945_v30, 0.0 }
 0x633   : > { %v13986_v6 = vmax.f32 %v10958_v41, 0.0  ;;  %v13987_v48 = vmax.f32 %v10961_v47, 0.0  ;;  %v13988_v60 = vmax.f32 %v10974_v13, 0.0  ;;  %v13989_v44 = vmax.f32 %v10977_v38, 0.0  ;;  %v13995_v13 = vld [vmem:[#allocation45_spill] sm:$0xff] }
 0x634   : > { %v5388_v37 = vmul.f32 %v5356_v9, %v13982_v39  ;;  %v5389_v1 = vmul.f32 %v5357_v57, %v13983_v26  ;;  %v5390_v14 = vmul.f32 %v5358_v8, %v13984_v29  ;;  %v5391_v45 = vmul.f32 %v5359_v17, %v13985_v18  ;;  %v13997_v38 = vld [vmem:[#allocation17_spill] sm:$0xff] }
 0x635   : > { %v5392_v0 = vmul.f32 %v5360_v32, %v13986_v6  ;;  %v5393_v25 = vmul.f32 %v5361_v4, %v13987_v48  ;;  %v5394_v62 = vmul.f32 %v5362_v34, %v13988_v60  ;;  %v5395_v9 = vmul.f32 %v5363_v2, %v13989_v44  ;;  %v14009_v29 = vld [vmem:[#allocation57_spill] sm:$0xff]  ;;  %v14011_v6 = vld [vmem:[#allocation58_spill] sm:$0xff]  ;;  %v14013_v60 = vld [vmem:[#allocation59_spill] sm:$0xff] }
 0x636   : > { %v13990_v51 = vmax.f32 %v10990_v55, 0.0  ;;  %v13991_v33 = vmax.f32 %v10993_v61, 0.0  ;;  %v13992_v30 = vmax.f32 %v11006_v59, 0.0  ;;  %v13993_v41 = vmax.f32 %v11009_v53, 0.0  ;;  %v13999_v55 = vld [vmem:[#allocation13_spill] sm:$0xff]  ;;  %v14001_v61 = vld [vmem:[#allocation56_spill] sm:$0xff] }
 0x637   : > { %v13994_v47 = vmax.f32 %v11022_v28, 0.0  ;;  %v13996_v34 = vmax.f32 %v13995_v13, 0.0  ;;  %v13998_v56 = vmax.f32 %v13997_v38, 0.0  ;;  %v14003_v59 = vld [vmem:[#allocation11_spill] sm:$0xff]  ;;  %v14005_v53 = vld [vmem:[#allocation28_spill] sm:$0xff] }
 0x638   : > { %v5396_v57 = vmul.f32 %v5364_v3, %v13990_v51  ;;  %v5397_v8 = vmul.f32 %v5365_v58, %v13991_v33  ;;  %v5398_v17 = vmul.f32 %v5366_v40, %v13992_v30  ;;  %v5399_v12 = vmul.f32 %v5367_v16, %v13993_v41  ;;  %v14007_v28 = vld [vmem:[#allocation23_spill] sm:$0xff]  ;;  %v14015_v51 = vld [vmem:[#allocation60_spill] sm:$0xff]  ;;  %v14017_v30 = vld [vmem:[#allocation61_spill] sm:$0xff] }
 0x639   : > { %v5400_v4 = vmul.f32 %v5368_v46, %v13994_v47  ;;  %v5401_v54 = vmul.f32 %v5369_v63, %v13996_v34  ;;  %v5402_v32 = vmul.f32 %v5370_v42, %v13998_v56  ;;  %v14000_v3 = vmax.f32 %v13999_v55, 0.0  ;;  %v14019_v47 = vld [vmem:[#allocation62_spill] sm:$0xff]  ;;  %v14021_v34 = vld [vmem:[#allocation63_spill] sm:$0xff]  ;;  %v14023_v56 = vld [vmem:[#allocation64_spill] sm:$0xff] }
 0x63a   : > { %v14002_v58 = vmax.f32 %v14001_v61, 0.0  ;;  %v14004_v40 = vmax.f32 %v14003_v59, 0.0  ;;  %v14006_v16 = vmax.f32 %v14005_v53, 0.0  ;;  %v14008_v46 = vmax.f32 %v14007_v28, 0.0 }
 0x63b   : > { %v5403_v2 = vmul.f32 %v5371_v23, %v14000_v3  ;;  %v14010_v63 = vmax.f32 %v14009_v29, 0.0  ;;  %v14012_v42 = vmax.f32 %v14011_v6, 0.0  ;;  %v14014_v23 = vmax.f32 %v14013_v60, 0.0  ;;  %v14025_v3 = vld [vmem:[#allocation65_spill] sm:$0xff] }
 0x63c   : > { %v5404_v7 = vmul.f32 %v5372_v27, %v14002_v58  ;;  %v5405_v10 = vmul.f32 %v5373_v21, %v14004_v40  ;;  %v5406_v39 = vmul.f32 %v5374_v20, %v14006_v16  ;;  %v5407_v26 = vmul.f32 %v5375_v22, %v14008_v46  ;;  %v14027_v58 = vld [vmem:[#allocation66_spill] sm:$0xff]  ;;  %v14029_v40 = vld [vmem:[#allocation67_spill] sm:$0xff] }
 0x63d   : > { %v5408_v18 = vmul.f32 %v5376_v50, %v14010_v63  ;;  %v5409_v48 = vmul.f32 %v5377_v24, %v14012_v42  ;;  %v5410_v44 = vmul.f32 %v5378_v11, %v14014_v23  ;;  %v14016_v27 = vmax.f32 %v14015_v51, 0.0 }
 0x63e   : > { %v14018_v21 = vmax.f32 %v14017_v30, 0.0  ;;  %v14020_v20 = vmax.f32 %v14019_v47, 0.0  ;;  %v14022_v22 = vmax.f32 %v14021_v34, 0.0  ;;  %v14024_v50 = vmax.f32 %v14023_v56, 0.0 }
 0x63f   : > { %v5411_v33 = vmul.f32 %v5379_v5, %v14016_v27  ;;  %v14026_v24 = vmax.f32 %v14025_v3, 0.0  ;;  %v14028_v11 = vmax.f32 %v14027_v58, 0.0  ;;  %v14030_v5 = vmax.f32 %v14029_v40, 0.0 }
 0x640   : > { %v5412_v41 = vmul.f32 %v5380_v36, %v14018_v21  ;;  %v5413_v13 = vmul.f32 %v5381_v49, %v14020_v20  ;;  %v5414_v38 = vmul.f32 %v5382_v43, %v14022_v22  ;;  %v5415_v55 = vmul.f32 %v5383_v31, %v14024_v50  ;;  %v14031_v36 = vld [vmem:[#allocation68_spill] sm:$0xff] }
 0x641   : > { %v5416_v61 = vmul.f32 %v5384_v19, %v14026_v24  ;;  %v5417_v59 = vmul.f32 %v5385_v15, %v14028_v11  ;;  %v5418_v53 = vmul.f32 %v5386_v35, %v14030_v5  ;;  %v5423_v16 = vpack.c.bf16 %v5395_v9, %v5394_v62 }
 0x642   : > { %v14032_v28 = vmax.f32 %v14031_v36, 0.0  ;;  %v5420_v49 = vpack.c.bf16 %v5389_v1, %v5388_v37  ;;  %v5421_v29 = vpack.c.bf16 %v5391_v45, %v5390_v14  ;;  %v5422_v63 = vpack.c.bf16 %v5393_v25, %v5392_v0 }
 0x643   : > { %v5424_v43 = vpack.c.bf16 %v5397_v8, %v5396_v57  ;;  %v5425_v6 = vpack.c.bf16 %v5399_v12, %v5398_v17  ;;  %v5426_v42 = vpack.c.bf16 %v5401_v54, %v5400_v4  ;;  %v5427_v31 = vpack.c.bf16 %v5403_v2, %v5402_v32 }
 0x644   : > { %v5419_v46 = vmul.f32 %v5387_v52, %v14032_v28  ;;  %v11800_v60 = vpack.c.bf16 %v5405_v10, %v5404_v7  ;;  %v11802_v19 = vpack.c.bf16 %v5407_v26, %v5406_v39  ;;  %v11804_v23 = vpack.c.bf16 %v5409_v48, %v5408_v18 }
 0x645   : > { %v11806_v15 = vpack.c.bf16 %v5411_v33, %v5410_v44  ;;  %v11808_v35 = vpack.c.bf16 %v5413_v13, %v5412_v41  ;;  %v11810_v62 = vpack.c.bf16 %v5415_v55, %v5414_v38  ;;  %v11812_v52 = vpack.c.bf16 %v5417_v59, %v5416_v61 }
 0x646   : > { %v5460_v37 = vshrl.u32 %v5423_v16, 16  ;;  %v11814_v1 = vpack.c.bf16 %v5419_v46, %v5418_v53  ;;  %v5437_v14 = vshrl.u32 %v5420_v49, 16  ;;  %v5440_v45 = vshll.u32 %v5420_v49, 16 }
 0x647   : > { %v5444_v0 = vshrl.u32 %v5421_v29, 16  ;;  %v5447_v25 = vshll.u32 %v5421_v29, 16  ;;  %v5452_v9 = vshrl.u32 %v5422_v63, 16  ;;  %v5455_v57 = vshll.u32 %v5422_v63, 16 }
 0x648   : > { %v5463_v8 = vshll.u32 %v5423_v16, 16  ;;  %v5468_v17 = vshrl.u32 %v5424_v43, 16  ;;  %v5471_v12 = vshll.u32 %v5424_v43, 16  ;;  %v5476_v4 = vshrl.u32 %v5425_v6, 16 }
 0x649   : > { %v5479_v54 = vshll.u32 %v5425_v6, 16  ;;  %v5484_v32 = vshrl.u32 %v5426_v42, 16  ;;  %v5487_v2 = vshll.u32 %v5426_v42, 16  ;;  %v5492_v7 = vshrl.u32 %v5427_v31, 16 }
 0x64a   : > { %v5462_v10 = vrot.slane %v5460_v37, 7  ;;  %v5495_v39 = vshll.u32 %v5427_v31, 16  ;;  %v5500_v26 = vshrl.u32 %v11800_v60, 16  ;;  %v5503_v18 = vshll.u32 %v11800_v60, 16  ;;  %v14034_v60 = vld [vmem:[#allocation41_spill] sm:$0xff]  ;;  %v14036_v37 = vld [vmem:[#allocation47_spill] sm:$0xff] }
 0x64b   : > { %v5508_v48 = vshrl.u32 %v11802_v19, 16  ;;  %v5511_v44 = vshll.u32 %v11802_v19, 16  ;;  %v5439_v51 = vrot.slane %v5437_v14, 7  ;;  %v5446_v27 = vrot.slane %v5444_v0, 7  ;;  %v14037_v14 = vld [vmem:[#allocation35_spill] sm:$0xff]  ;;  %v14038_v0 = vld [vmem:[#allocation38_spill] sm:$0xff] }
 0x64c   : > { %v5454_v33 = vrot.slane %v5452_v9, 7  ;;  %v5516_v30 = vshrl.u32 %v11804_v23, 16  ;;  %v5519_v21 = vshll.u32 %v11804_v23, 16  ;;  %v5524_v41 = vshrl.u32 %v11806_v15, 16  ;;  %v14035_v23 = vld [vmem:[#allocation48_spill] sm:$0xff] }
 0x64d   : > { %v5527_v47 = vshll.u32 %v11806_v15, 16  ;;  %v5532_v20 = vshrl.u32 %v11808_v35, 16  ;;  %v5535_v13 = vshll.u32 %v11808_v35, 16  ;;  %v5470_v34 = vrot.slane %v5468_v17, 7 }
 0x64e   : > { %v5465_v22 = vor.u32 %v5463_v8, %v5462_v10  ;;  %v5540_v38 = vshrl.u32 %v11810_v62, 16  ;;  %v5478_v56 = vrot.slane %v5476_v4, 7  ;;  %v5486_v50 = vrot.slane %v5484_v32, 7  ;;  %v14039_v32 = vld [vmem:[#allocation42_spill] sm:$0xff] }
 0x64f   : > { %v5494_v55 = vrot.slane %v5492_v7, 7  ;;  %v5543_v3 = vshll.u32 %v11810_v62, 16  ;;  %v5442_v24 = vor.u32 %v5440_v45, %v5439_v51  ;;  %v5449_v61 = vor.u32 %v5447_v25, %v5446_v27 }
 0x650   : > { %v5457_v58 = vor.u32 %v5455_v57, %v5454_v33  ;;  %v5548_v11 = vshrl.u32 %v11812_v52, 16  ;;  %v5556_v59 = vshrl.u32 %v11814_v1, 16  ;;  %v5559_v40 = vshll.u32 %v11814_v1, 16 }
 0x651   : > { %v5502_v5 = vrot.slane %v5500_v26, 7  ;;  %v11831_v53 = vrot.slane %v5508_v48, 7  ;;  %v11833_v16 = vrot.slane %v5516_v30, 7  ;;  %v5473_v36 = vor.u32 %v5471_v12, %v5470_v34 }
 0x652   : > { %v11836_v28 = vsel %vm1169_vm2, %v5454_v33, %v5465_v22  ;;  %v11838_v46 = vrot.slane %v5524_v41, 7  ;;  %v5481_v49 = vor.u32 %v5479_v54, %v5478_v56  ;;  %v5489_v29 = vor.u32 %v5487_v2, %v5486_v50  ;;  %v14040_v33 = vld [vmem:[#allocation40_spill] sm:$0xff] }
 0x653   : > { %v5497_v63 = vor.u32 %v5495_v39, %v5494_v55  ;;  %v11842_v6 = vsel %vm10002_vm6, 0, %v5442_v24  ;;  %v11845_v42 = vsel %vm1169_vm2, %v5439_v51, %v5449_v61  ;;  %v11848_v31 = vsel %vm1169_vm2, %v5446_v27, %v5457_v58  ;;  %v14041_v41 = vld [vmem:[#allocation44_spill] sm:$0xff]  ;;  %v14043_v58 = vld [vmem:[#allocation51_spill] sm:$0xff] }
 0x654   : > { %v5602_v19 = vmul.bf16 %v14034_v60, %v11836_v28  ;;  %v11854_v62 = vmul.bf16 %v14035_v23, %v11842_v6  ;;  %v11858_v1 = vmul.bf16 %v14036_v37, %v11845_v42  ;;  %v5600_v45 = vmul.bf16 %v14037_v14, %v11845_v42  ;;  %v14047_v23 = vld [vmem:[#allocation34_spill] sm:$0xff] }
 0x655   : > { %v5601_v25 = vmul.bf16 %v14038_v0, %v11848_v31  ;;  %v5505_v9 = vor.u32 %v5503_v18, %v5502_v5  ;;  %v5513_v57 = vor.u32 %v5511_v44, %v11831_v53  ;;  %v11866_v17 = vsel %vm1169_vm2, %v5462_v10, %v5473_v36 }
 0x656   : > { %v5795_v8 = vrot.slane %v5602_v19, 1  ;;  %v11869_v12 = vsel %vm1169_vm2, %v5470_v34, %v5481_v49  ;;  %5869 = vrot.lane.b32.xlu0 %v11854_v62, %s9197_s16  ;;  %5945 = vrot.lane.b32.xlu1 %v11858_v1, %s9198_s20  ;;  %v11875_v4 = vrot.slane %v5600_v45, 1  ;;  %v5603_v2 = vmul.bf16 %v14039_v32, %v11866_v17 }
 0x657   : > { %v5793_v54 = vrot.slane %v5601_v25, 1  ;;  %v5534_v7 = vrot.slane %v5532_v20, 7  ;;  %v11879_v39 = vrot.slane %v5540_v38, 7  ;;  %v5558_v10 = vrot.slane %v5556_v59, 7 }
 0x658   : > { %v11882_v26 = vsel %vm1169_vm2, %v5478_v56, %v5489_v29  ;;  %v11885_v18 = vsel %vm1169_vm2, %v5486_v50, %v5497_v63  ;;  %v5797_v51 = vrot.slane %v5603_v2, 1  ;;  %v11895_v27 = vsel %vm1169_vm2, %v5502_v5, %v5513_v57  ;;  %v14042_v50 = vld [vmem:[#allocation46_spill] sm:$0xff]  ;;  %v14044_v5 = vld [vmem:[#allocation55_spill] sm:$0xff] }
 0x659   : > { %v11889_v48 = vsel %vm2634_vm4, %v11875_v4, %v5793_v54  ;;  %v11892_v44 = vsel %vm2634_vm4, %v5793_v54, %v5795_v8  ;;  %v11901_v30 = vmul.bf16 %v14040_v33, %v11848_v31  ;;  %v5604_v20 = vmul.bf16 %v14041_v41, %v11869_v12  ;;  %v14048_v57 = vld [vmem:[#allocation43_spill] sm:$0xff]  ;;  %v14049_v54 = vld [vmem:[#allocation53_spill] sm:$0xff]  ;;  %v14052_v33 = vld [vmem:[#allocation16_spill] sm:$0xff] }
 0x65a   : > { %8532 = vmatprep.mubr.msk.bf16.mxu1 %vm943_vm1, %v11889_v48  ;;  %v11906_v34 = vsel %vm1169_vm2, %v5494_v55, %v5505_v9  ;;  %v5550_v22 = vrot.slane %v5548_v11, 7  ;;  %v5521_v38 = vor.u32 %v5519_v21, %v11833_v16  ;;  %5871 = vrot.lane.b32.xlu0 %v11858_v1, %s9197_s16  ;;  %v11914_v56 = vsel %vm2634_vm4, %v5795_v8, %v5797_v51 }
 0x65b   : > { %8533 = vmatmul.mubr.msk.bf16.vlgmr.msra.gmra.mxu1 %vm943_vm1, %v11892_v44  ;;  %v5605_v24 = vmul.bf16 %v14042_v50, %v11882_v26  ;;  %v5551_v61 = vshll.u32 %v11812_v52, 16  ;;  %v5529_v55 = vor.u32 %v5527_v47, %v11838_v46  ;;  %v5545_v21 = vor.u32 %v5543_v3, %v11879_v39  ;;  %5947 = vrot.lane.b32.xlu1 %v11901_v30, %s9198_s20  ;;  %v14045_v52 = vld [vmem:[#allocation15_spill] sm:$0xff]  ;;  %v14046_v3 = vld [vmem:[#allocation52_spill] sm:$0xff] }
 0x65c   : > { %8536 = vmatprep.mubr.msk.bf16.mxu1 %vm943_vm1, %v11914_v56  ;;  %v5606_v11 = vmul.bf16 %v14043_v58, %v11885_v18  ;;  %v5561_v59 = vor.u32 %v5559_v40, %v5558_v10  ;;  %v5607_v36 = vmul.bf16 %v14044_v5, %v11906_v34  ;;  %v5608_v49 = vmul.bf16 %v14045_v52, %v11895_v27  ;;  %v14054_v58 = vld [vmem:[#allocation39_spill] sm:$0xff] }
 0x65d   : > { %v5617_v15 = vshll.u32 %v11842_v6, 16  ;;  %v5537_v47 = vor.u32 %v5535_v13, %v5534_v7  ;;  %v11938_v29 = vmul.bf16 %v14046_v3, %v11836_v28  ;;  %v5799_v63 = vrot.slane %v5604_v20, 1 }
 0x65e   : > { %v11940_v60 = vor.u32 %v5551_v61, %v5550_v22  ;;  %v11944_v40 = vsel %vm10002_vm6, %v5558_v10, 0  ;;  %5873 = vrot.lane.b32.xlu0 %v11901_v30, %s9197_s16  ;;  %v5801_v19 = vrot.slane %v5605_v24, 1  ;;  %v5599_v37 = vmul.bf16 %v14047_v23, %v11842_v6  ;;  %v14051_v10 = vld [vmem:[#allocation54_spill] sm:$0xff] }
 0x65f   : > { %v11952_v35 = vsel %vm1169_vm2, %v11833_v16, %v5529_v55  ;;  %v11955_v13 = vsel %vm1169_vm2, %v5534_v7, %v5545_v21  ;;  %5949 = vrot.lane.b32.xlu1 %v11938_v29, %s9198_s20  ;;  %v5803_v43 = vrot.slane %v5606_v11, 1  ;;  %v11961_v14 = vsel %vm1169_vm2, %v11831_v53, %v5521_v38  ;;  %v14050_v53 = vld [vmem:[#allocation50_spill] sm:$0xff]  ;;  %v14053_v38 = vld [vmem:[#allocation25_spill] sm:$0xff] }
 0x660   : > { %v11964_v45 = vsel %vm1169_vm2, %v5550_v22, %v5561_v59  ;;  %v5805_v0 = vrot.slane %v5607_v36, 1  ;;  %v11966_v25 = vrot.slane %v5608_v49, 1  ;;  %v5619_v9 = vrot.slane %v5617_v15, 1  ;;  %v14055_v59 = vld [vmem:[#allocation10_spill] sm:$0xff] }
 0x661   : > { %v11969_v16 = vsel %vm2634_vm4, %v5797_v51, %v5799_v63  ;;  %v11973_v8 = vmul.bf16 %v14048_v57, %v11866_v17  ;;  %v11977_v32 = vmul.bf16 %v14049_v54, %v11869_v12  ;;  %v11981_v2 = vmul.bf16 %v14050_v53, %v11882_v26  ;;  %v14056_v23 = vld [vmem:[#allocation18_spill] sm:$0xff]  ;;  %v14057_v57 = vld [vmem:[#allocation37_spill] sm:$0xff] }
 0x662   : > { %5875 = vrot.lane.b32.xlu0 %v11938_v29, %s9197_s16  ;;  %v11988_v7 = vsel %vm2634_vm4, %v5799_v63, %v5801_v19  ;;  %v11992_v51 = vmul.bf16 %v14051_v10, %v11885_v18  ;;  %v5609_v41 = vmul.bf16 %v14052_v33, %v11961_v14  ;;  %v5789_v20 = vrot.slane %v5599_v37, 1 }
 0x663   : > { %8537 = vmatmul.mubr.msk.bf16.gmra.mxu1 %vm943_vm1, %v11969_v16  ;;  %5951 = vrot.lane.b32.xlu1 %v11973_v8, %s9198_s20  ;;  %v12001_v22 = vsel %vm2634_vm4, %v5801_v19, %v5803_v43  ;;  %v12005_v50 = vmul.bf16 %v14053_v38, %v11906_v34  ;;  %v5625_v24 = vshll.u32 %v11845_v42, 16  ;;  %v5633_v61 = vshll.u32 %v11848_v31, 16 }
 0x664   : > { %8540 = vmatprep.mubr.msk.bf16.mxu1 %vm943_vm1, %v11988_v7  ;;  %v12010_v55 = vsel %vm2634_vm4, %v5803_v43, %v5805_v0  ;;  %v12014_v21 = vsel %vm2634_vm4, %v5805_v0, %v11966_v25  ;;  %v12018_v11 = vsel %vm2452_vm5, %v14054_v58, %v5619_v9  ;;  %v5610_v5 = vmul.bf16 %v14055_v59, %v11952_v35 }
 0x665   : > { %v5627_v36 = vrot.slane %v5625_v24, 1  ;;  %v5629_v52 = vshrl.u32 %v11845_v42, 16  ;;  %v5635_v49 = vrot.slane %v5633_v61, 1  ;;  %v5621_v15 = vshrl.u32 %v11842_v6, 16 }
 0x666   : > { %5877 = vrot.lane.b32.xlu0 %v11973_v8, %s9197_s16  ;;  %v12026_v3 = vrot.slane %v5609_v41, 1  ;;  %v12030_v63 = vsel %vm2634_vm4, %v5789_v20, %v11875_v4  ;;  %v12034_v19 = vsel %vm1169_vm2, %v11838_v46, %v5537_v47  ;;  %v5612_v37 = vmul.bf16 %v14056_v23, %v11955_v13  ;;  %v8731_v23 = vld [vmem:[%s13648_s11 + $0x18] sm:$0xff]  }
 0x667   : > { %5953 = vrot.lane.b32.xlu1 %v11977_v32, %s9198_s20  ;;  %v5631_v6 = vor.u32 %v5629_v52, %v5627_v36  ;;  %v5623_v42 = vor.u32 %v5621_v15, %v5619_v9  ;;  %v5637_v43 = vshrl.u32 %v11848_v31, 16  ;;  %v5641_v0 = vshll.u32 %v11836_v28, 16 }
 0x668   : > { %v12044_v4 = vsel %vm2634_vm4, %v14057_v57, %v5789_v20  ;;  %v12046_v54 = vrot.slane %v5610_v5, 1  ;;  %v5645_v46 = vshrl.u32 %v11836_v28, 16  ;;  %v5649_v47 = vshll.u32 %v11866_v17, 16 }
 0x669   : > { %v12051_v53 = vsel %vm2452_vm5, %v5631_v6, %v5635_v49  ;;  %v12054_v10 = vsel %vm2452_vm5, %v5623_v42, %v5627_v36  ;;  %v5639_v9 = vor.u32 %v5637_v43, %v5635_v49  ;;  %v5643_v31 = vrot.slane %v5641_v0, 1  ;;  %v14058_v49 = vld [vmem:[#allocation31_spill] sm:$0xff] }
 0x66a   : > { %5879 = vrot.lane.b32.xlu0 %v11977_v32, %s9197_s16  ;;  %v5651_v33 = vrot.slane %v5649_v47, 1  ;;  %v5653_v41 = vshrl.u32 %v11866_v17, 16  ;;  %v5657_v28 = vshll.u32 %v11869_v12, 16  ;;  %v5665_v20 = vshll.u32 %v11882_v26, 16 }
 0x66b   : > { %8541 = vmatmul.mubr.msk.bf16.gmra.mxu1 %vm943_vm1, %v12001_v22  ;;  %5955 = vrot.lane.b32.xlu1 %v11981_v2, %s9198_s20  ;;  %v12068_v38 = vsel %vm2452_vm5, %v5639_v9, %v5643_v31  ;;  %v5647_v24 = vor.u32 %v5645_v46, %v5643_v31  ;;  %v5661_v61 = vshrl.u32 %v11869_v12, 16  ;;  %v5669_v59 = vshrl.u32 %v11882_v26, 16  ;;  %v8722_v31 = vld [vmem:[%s13648_s11 + $0x78] sm:$0xff]  }
 0x66c   : > { %8544 = vmatprep.mubr.msk.bf16.mxu1 %vm943_vm1, %v12010_v55  ;;  %v5655_v5 = vor.u32 %v5653_v41, %v5651_v33  ;;  %v5659_v17 = vrot.slane %v5657_v28, 1  ;;  %v5667_v36 = vrot.slane %v5665_v20, 1  ;;  %v5673_v52 = vshll.u32 %v11885_v18, 16  ;;  %8236 = vmatprep.subr.bf16.mxu0 %v8722_v31 }
 0x66d   : > { %v5611_v15 = vmul.bf16 %v14058_v49, %v12034_v19  ;;  %v12076_v6 = vsel %vm2452_vm5, %v5647_v24, %v5651_v33  ;;  %v5677_v42 = vshrl.u32 %v11885_v18, 16  ;;  %v5681_v43 = vshll.u32 %v11906_v34, 16 }
 0x66e   : > { %5881 = vrot.lane.b32.xlu0 %v11981_v2, %s9197_s16  ;;  %v12083_v12 = vsel %vm2452_vm5, %v5655_v5, %v5659_v17  ;;  %v5663_v26 = vor.u32 %v5661_v61, %v5659_v17  ;;  %v5671_v0 = vor.u32 %v5669_v59, %v5667_v36  ;;  %v5675_v57 = vrot.slane %v5673_v52, 1 }
 0x66f   : > { %5957 = vrot.lane.b32.xlu1 %v11992_v51, %s9198_s20  ;;  %v12090_v46 = vsel %vm2634_vm4, %v11966_v25, %v12026_v3  ;;  %v5683_v18 = vrot.slane %v5681_v43, 1  ;;  %v5685_v47 = vshrl.u32 %v11906_v34, 16  ;;  %v5689_v9 = vshll.u32 %v11895_v27, 16  ;;  %v8723_v25 = vld [vmem:[%s13648_s11 + $0x38] sm:$0xff]   ;;  %v8724_v43 = vld [vmem:[%s13648_s11 + $0x70] sm:$0xff]  }
 0x670   : > { %v12098_v33 = vsel %vm2452_vm5, %v5663_v26, %v5667_v36  ;;  %v12101_v41 = vsel %vm2452_vm5, %v5671_v0, %v5675_v57  ;;  %v5679_v28 = vor.u32 %v5677_v42, %v5675_v57  ;;  %v5697_v20 = vshll.u32 %v11961_v14, 16  ;;  %8237 = vmatpush3.bf16.msra.mxu0 %v8723_v25 }
 0x671   : > { %v12110_v34 = vsel %vm1169_vm2, %v11879_v39, %v11940_v60  ;;  %v5687_v24 = vor.u32 %v5685_v47, %v5683_v18  ;;  %v5691_v61 = vrot.slane %v5689_v9, 1  ;;  %v5693_v59 = vshrl.u32 %v11895_v27, 16  ;;  %8238 = vmatprep.subr.bf16.mxu0 %v8724_v43  ;;  %v8727_v43 = vld [vmem:[%s13648_s11 + $0x28] sm:$0xff]  }
 0x672   : > { %5883 = vrot.lane.b32.xlu0 %v11992_v51, %s9197_s16  ;;  %v12118_v5 = vsel %vm2452_vm5, %v5679_v28, %v5683_v18  ;;  %v5699_v17 = vrot.slane %v5697_v20, 1  ;;  %v5701_v36 = vshrl.u32 %v11961_v14, 16  ;;  %v5705_v39 = vshll.u32 %v11952_v35, 16 }
 0x673   : > { %8545 = vmatmul.mubr.msk.bf16.gmra.mxu1 %vm943_vm1, %v12014_v21  ;;  %5959 = vrot.lane.b32.xlu1 %v12005_v50, %s9198_s20  ;;  %v5813_v60 = vrot.slane %v5611_v15, 1  ;;  %v12127_v52 = vsel %vm2452_vm5, %v5687_v24, %v5691_v61  ;;  %v5695_v49 = vor.u32 %v5693_v59, %v5691_v61  ;;  %v5713_v42 = vshll.u32 %v12034_v19, 16  ;;  %v8725_v15 = vld [vmem:[%s13648_s11 + $0x30] sm:$0xff]  }
 0x674   : > { %8548 = vmatprep.mubr.msk.bf16.mxu1 %vm943_vm1, %v12090_v46  ;;  %v5703_v26 = vor.u32 %v5701_v36, %v5699_v17  ;;  %v5707_v0 = vrot.slane %v5705_v39, 1  ;;  %v5709_v57 = vshrl.u32 %v11952_v35, 16  ;;  %v5721_v18 = vshll.u32 %v11955_v13, 16  ;;  %8239 = vmatpush3.bf16.msra.mxu0 %v8725_v15 }
 0x675   : > { %v12139_v47 = vsel %vm2452_vm5, %v5695_v49, %v5699_v17  ;;  %v5715_v9 = vrot.slane %v5713_v42, 1  ;;  %v5717_v31 = vshrl.u32 %v12034_v19, 16  ;;  %v5729_v28 = vshll.u32 %v12110_v34, 16  ;;  %v8726_v17 = vld [vmem:[%s13648_s11 + $0x68] sm:$0xff]  }
 0x676   : > { %5741 = vrot.lane.b32.xlu0 %v12018_v11, %s9199_s25  ;;  %v12146_v20 = vsel %vm2452_vm5, %v5703_v26, %v5707_v0  ;;  %v5711_v25 = vor.u32 %v5709_v57, %v5707_v0  ;;  %v5723_v24 = vrot.slane %v5721_v18, 1  ;;  %v5725_v61 = vshrl.u32 %v11955_v13, 16  ;;  %8240 = vmatprep.subr.bf16.mxu0 %v8726_v17 }
 0x677   : > { %14059 = vst [vmem:[#allocation21_spill] sm:$0xff] %v12146_v20  ;;  %5912 = vrot.lane.b32.xlu1 %v12030_v63, %s9199_s25  ;;  %v5719_v59 = vor.u32 %v5717_v31, %v5715_v9  ;;  %v5731_v36 = vrot.slane %v5729_v28, 1  ;;  %v5733_v39 = vshrl.u32 %v12110_v34, 16  ;;  %v5737_v11 = vshll.u32 %v11964_v45, 16 }
 0x678   : > { %v12159_v49 = vsel %vm2634_vm4, %v12026_v3, %v12046_v54  ;;  %v12162_v42 = vsel %vm2452_vm5, %v5711_v25, %v5715_v9  ;;  %v5727_v26 = vor.u32 %v5725_v61, %v5723_v24  ;;  %v5905_v0 = vshll.u32 %v11944_v40, 16  ;;  %v14062_v9 = vld [vmem:[#allocation20_spill] sm:$0xff]  ;;  %8241 = vmatpush3.bf16.msra.mxu0 %v8727_v43  ;;  %v14063_v43 = vld [vmem:[#allocation19_spill] sm:$0xff] }
 0x679   : > { %14060 = vst [vmem:[#allocation45_spill] sm:$0xff] %v12162_v42  ;;  %v12169_v57 = vsel %vm2452_vm5, %v5719_v59, %v5723_v24  ;;  %v5735_v18 = vor.u32 %v5733_v39, %v5731_v36  ;;  %v5739_v31 = vrot.slane %v5737_v11, 1  ;;  %v5901_v3 = vshrl.u32 %v11964_v45, 16  ;;  %v8729_v59 = vld [vmem:[%s13648_s11 + $0x20] sm:$0xff]   ;;  %v8730_v11 = vld [vmem:[%s13648_s11 + $0x58] sm:$0xff]  }
 0x67a   : > { %14061 = vst [vmem:[#allocation17_spill] sm:$0xff] %v12169_v57  ;;  %5821 = vrot.lane.b32.xlu0 %v12044_v4, %s9198_s20  ;;  %v12178_v15 = vsel %vm2634_vm4, %v12046_v54, %v5813_v60  ;;  %v5613_v28 = vmul.bf16 %v14062_v9, %v12110_v34  ;;  %v12183_v25 = vsel %vm2452_vm5, %v5727_v26, %v5731_v36  ;;  %v8728_v4 = vld [vmem:[%s13648_s11 + $0x60] sm:$0xff]   ;;  %v12195_v61 = vrot.slane %v5905_v0, 1 }
 0x67b   : > { %8549 = vmatmul.mubr.msk.bf16.gmra.mxu1 %vm943_vm1, %v12159_v49  ;;  %5914 = vrot.lane.b32.xlu1 %v11889_v48, %s9199_s25  ;;  %v12193_v24 = vsel %vm2452_vm5, %v5735_v18, %v5739_v31  ;;  %v5903_v54 = vor.u32 %v5901_v3, %v5739_v31  ;;  %v5815_v17 = vrot.slane %v5612_v37, 1  ;;  %v5614_v26 = vmul.bf16 %v14063_v43, %v11964_v45  ;;  %v14064_v0 = vld [vmem:[#allocation22_spill] sm:$0xff]  ;;  %v8734_v3 = vld [vmem:[%s13648_s11 + $0x48] sm:$0xff]  }
 0x67c   : > { %8552 = vmatprep.mubr.msk.bf16.mxu1 %vm943_vm1, %v12178_v15  ;;  %8242 = vmatprep.subr.bf16.mxu0 %v8728_v4  ;;  %v5817_v39 = vrot.slane %v5613_v28, 1  ;;  %v5615_v18 = vmul.bf16 %v14064_v0, %v11944_v40  ;;  %v8735_v28 = vld [vmem:[%s13648_s11 + $0x8] sm:$0xff]  }
 0x67d   : > { %v12205_v36 = vsel %vm2452_vm5, %v5903_v54, %v12195_v61  ;;  %8243 = vmatpush3.bf16.msra.mxu0 %v8729_v59  ;;  %v12218_v37 = vsel %vm2634_vm4, %v5813_v60, %v5815_v17  ;;  %v8732_v60 = vld [vmem:[%s13648_s11 + $0x50] sm:$0xff]   ;;  %v5819_v31 = vrot.slane %v5614_v26, 1  ;;  %v8736_v54 = vld [vmem:[%s13648_s11 + $0x40] sm:$0xff]  }
 0x67e   : > { %5823 = vrot.lane.b32.xlu0 %v12030_v63, %s9198_s20  ;;  %8244 = vmatprep.subr.bf16.mxu0 %v8730_v11  ;;  %v12227_v63 = vsel %vm2634_vm4, %v5815_v17, %v5817_v39  ;;  %v5910_v9 = vrot.slane %v5615_v18, 1  ;;  %v14065_v59 = vld [vmem:[#allocation36_spill] sm:$0xff] }
 0x67f   : > { %5916 = vrot.lane.b32.xlu1 %v11892_v44, %s9199_s25  ;;  %v12252_v4 = vsel %vm2634_vm4, %v5817_v39, %v5819_v31  ;;  %v14066_v17 = vrot.slane %v14065_v59, 1 }
 0x681   : > { %8245 = vmatpush3.bf16.msra.mxu0 %v8731_v23  ;;  %v6013_v39 = vsel %vm2634_vm4, %v5910_v9, %v14066_v17  ;;  %v14073_v23 = vld [vmem:[#allocation33_spill] sm:$0xff] }
 0x682   : > { %5825 = vrot.lane.b32.xlu0 %v11889_v48, %s9198_s20  ;;  %v8733_v48 = vld [vmem:[%s13648_s11 + $0x10] sm:$0xff]   ;;  %8246 = vmatprep.subr.bf16.mxu0 %v8732_v60  ;;  %v12361_v43 = vmul.bf16 %v14073_v23, %v12034_v19 }
 0x683   : > { %8553 = vmatmul.mubr.msk.bf16.gmra.mxu1 %vm943_vm1, %v12218_v37  ;;  %5918 = vrot.lane.b32.xlu1 %v11914_v56, %s9199_s25 }
 0x684   : > { %8556 = vmatprep.mubr.msk.bf16.mxu1 %vm943_vm1, %v12227_v63  ;;  %14074 = vst [vmem:[#allocation28_spill] sm:$0xff] %v12361_v43 }
 0x685   : > { %8247 = vmatpush3.bf16.msra.mxu0 %v8733_v48 }
 0x686   : > { %5827 = vrot.lane.b32.xlu0 %v11892_v44, %s9198_s20  ;;  %8248 = vmatprep.subr.bf16.mxu0 %v8734_v3  ;;  %v12259_v44 = vsel %vm2634_vm4, %v5819_v31, %v5910_v9  ;;  %v14075_v3 = vld [vmem:[#allocation24_spill] sm:$0xff] }
 0x687   : > { %5920 = vrot.lane.b32.xlu1 %v11969_v16, %s9199_s25  ;;  %v12397_v9 = vmul.bf16 %v14075_v3, %v11955_v13 }
 0x689   : > { %8249 = vmatpush3.bf16.msra.mxu0 %v8735_v28  ;;  %14076 = vst [vmem:[#allocation23_spill] sm:$0xff] %v12397_v9 }
 0x68a   : > { %5829 = vrot.lane.b32.xlu0 %v11914_v56, %s9198_s20  ;;  %v8737_v56 = vld [vmem:[%s13648_s11] sm:$0xff]   ;;  %8250 = vmatprep.subr.bf16.mxu0 %v8736_v54 }
 0x68b   : > { %8557 = vmatmul.mubr.msk.bf16.gmra.mxu1 %vm943_vm1, %v12252_v4  ;;  %5922 = vrot.lane.b32.xlu1 %v11988_v7, %s9199_s25 }
 0x68c   : > { %8560 = vmatprep.mubr.msk.bf16.mxu1 %vm943_vm1, %v12259_v44 }
 0x68d   : > { %8251 = vmatpush3.bf16.msra.mxu0 %v8737_v56 }
 0x68e   : > { %5831 = vrot.lane.b32.xlu0 %v11969_v16, %s9198_s20  ;;  %v14067_v16 = vld [vmem:[#allocation26_spill] sm:$0xff] }
 0x68f   : > { %5924 = vrot.lane.b32.xlu1 %v12001_v22, %s9199_s25 }
 0x692   : > { %5833 = vrot.lane.b32.xlu0 %v11988_v7, %s9198_s20  ;;  %v12293_v7 = vmul.bf16 %v14067_v16, %v11895_v27  ;;  %v14069_v27 = vld [vmem:[#allocation29_spill] sm:$0xff]  ;;  %v14077_v16 = vld [vmem:[#allocation27_spill] sm:$0xff] }
 0x693   : > { %8561 = vmatmul.mubr.msk.bf16.gmra.mxu1 %vm943_vm1, %v6013_v39  ;;  %5926 = vrot.lane.b32.xlu1 %v12010_v55, %s9199_s25 }
 0x694   : > { %14068 = vst [vmem:[#allocation13_spill] sm:$0xff] %v12293_v7 }
 0x696   : > { %5835 = vrot.lane.b32.xlu0 %v12001_v22, %s9198_s20  ;;  %v12313_v22 = vmul.bf16 %v14069_v27, %v11961_v14  ;;  %v14071_v14 = vld [vmem:[#allocation32_spill] sm:$0xff]  ;;  %v12421_v27 = vmul.bf16 %v14077_v16, %v12110_v34 }
 0x697   : > { %5928 = vrot.lane.b32.xlu1 %v12014_v21, %s9199_s25 }
 0x698   : > { %14070 = vst [vmem:[#allocation56_spill] sm:$0xff] %v12313_v22  ;;  %14078 = vst [vmem:[#allocation57_spill] sm:$0xff] %v12421_v27 }
 0x69a   : > { %5837 = vrot.lane.b32.xlu0 %v12010_v55, %s9198_s20  ;;  %v12333_v55 = vmul.bf16 %v14071_v14, %v11952_v35 }
 0x69b   : > { %5981 = vrot.lane.b32.xlu1 %v12051_v53, %s9197_s16 }
 0x69c   : > { %14072 = vst [vmem:[#allocation11_spill] sm:$0xff] %v12333_v55 }
 0x69e   : > { %5743 = vrot.lane.b32.xlu0 %v12054_v10, %s9199_s25 }
 0x69f   : > { %5961 = vrot.lane.b32.xlu1 %v12293_v7, %s9198_s20 }
 0x6a2   : > { %5885 = vrot.lane.b32.xlu0 %v12005_v50, %s9197_s16 }
 0x6a3   : > { %5983 = vrot.lane.b32.xlu1 %v12068_v38, %s9197_s16 }
 0x6a6   : > { %5745 = vrot.lane.b32.xlu0 %v12051_v53, %s9199_s25 }
 0x6a7   : > { %5930 = vrot.lane.b32.xlu1 %v12090_v46, %s9199_s25 }
 0x6aa   : > { %5839 = vrot.lane.b32.xlu0 %v12014_v21, %s9198_s20 }
 0x6ab   : > { %5985 = vrot.lane.b32.xlu1 %v12076_v6, %s9197_s16 }
 0x6ae   : > { %5747 = vrot.lane.b32.xlu0 %v12068_v38, %s9199_s25 }
 0x6af   : > { %5963 = vrot.lane.b32.xlu1 %v12313_v22, %s9198_s20 }
 0x6b2   : > { %5887 = vrot.lane.b32.xlu0 %v12293_v7, %s9197_s16 }
 0x6b3   : > { %5987 = vrot.lane.b32.xlu1 %v12083_v12, %s9197_s16 }
 0x6b6   : > { %5749 = vrot.lane.b32.xlu0 %v12076_v6, %s9199_s25 }
 0x6b7   : > { %5932 = vrot.lane.b32.xlu1 %v12159_v49, %s9199_s25 }
 0x6ba   : > { %5841 = vrot.lane.b32.xlu0 %v12090_v46, %s9198_s20 }
 0x6bb   : > { %5989 = vrot.lane.b32.xlu1 %v12098_v33, %s9197_s16 }
 0x6be   : > { %5751 = vrot.lane.b32.xlu0 %v12083_v12, %s9199_s25 }
 0x6bf   : > { %5965 = vrot.lane.b32.xlu1 %v12333_v55, %s9198_s20 }
 0x6c2   : > { %5889 = vrot.lane.b32.xlu0 %v12313_v22, %s9197_s16 }
 0x6c3   : > { %5991 = vrot.lane.b32.xlu1 %v12101_v41, %s9197_s16 }
 0x6c6   : > { %5753 = vrot.lane.b32.xlu0 %v12098_v33, %s9199_s25 }
 0x6c7   : > { %5934 = vrot.lane.b32.xlu1 %v12178_v15, %s9199_s25 }
 0x6c8   : > { %v12347_v35 = vpop.permute.xlu1 %5945  ;;  %v12349_v21 = vpop.permute.xlu0 %5869 }
 0x6ca   : > { %5843 = vrot.lane.b32.xlu0 %v12159_v49, %s9198_s20 }
 0x6cb   : > { %5993 = vrot.lane.b32.xlu1 %v12118_v5, %s9197_s16 }
 0x6cc   : > { %v12355_v46 = vpop.permute.xlu0 %5871 }
 0x6cd   : > { %v12357_v11 = vpop.permute.xlu1 %5947 }
 0x6ce   : > { %5755 = vrot.lane.b32.xlu0 %v12101_v41, %s9199_s25 }
 0x6cf   : > { %5967 = vrot.lane.b32.xlu1 %v12361_v43, %s9198_s20 }
 0x6d0   : > { %v12367_v26 = vpop.permute.xlu0 %5873 }
 0x6d1   : > { %v12369_v49 = vpop.permute.xlu1 %5949 }
 0x6d2   : > { %5891 = vrot.lane.b32.xlu0 %v12333_v55, %s9197_s16  ;;  %v14079_v55 = vld [vmem:[#allocation14_spill] sm:$0xff] }
 0x6d3   : > { %5995 = vrot.lane.b32.xlu1 %v12127_v52, %s9197_s16 }
 0x6d4   : > { %v12375_v60 = vpop.permute.xlu0 %5875 }
 0x6d5   : > { %v12377_v19 = vpop.permute.xlu1 %5951 }
 0x6d6   : > { %5757 = vrot.lane.b32.xlu0 %v12118_v5, %s9199_s25 }
 0x6d7   : > { %5936 = vrot.lane.b32.xlu1 %v12218_v37, %s9199_s25 }
 0x6d8   : > { %v12383_v0 = vpop.permute.xlu0 %5877 }
 0x6d9   : > { %v12385_v18 = vpop.permute.xlu1 %5953 }
 0x6da   : > { %5845 = vrot.lane.b32.xlu0 %v12178_v15, %s9198_s20 }
 0x6db   : > { %5997 = vrot.lane.b32.xlu1 %v12139_v47, %s9197_s16 }
 0x6dc   : > { %v12391_v48 = vpop.permute.xlu0 %5879 }
 0x6dd   : > { %v12393_v31 = vpop.permute.xlu1 %5955 }
 0x6de   : > { %5759 = vrot.lane.b32.xlu0 %v12127_v52, %s9199_s25 }
 0x6df   : > { %5969 = vrot.lane.b32.xlu1 %v12397_v9, %s9198_s20 }
 0x6e0   : > { %v12403_v28 = vpop.permute.xlu0 %5881 }
 0x6e1   : > { %v5958_v15 = vpop.permute.xlu1 %5957 }
 0x6e2   : > { %5893 = vrot.lane.b32.xlu0 %v12361_v43, %s9197_s16 }
 0x6e3   : > { %5999 = vrot.lane.b32.xlu1 %v12146_v20, %s9197_s16 }
 0x6e4   : > { %v12409_v54 = vpop.permute.xlu0 %5883 }
 0x6e5   : > { %v5960_v56 = vpop.permute.xlu1 %5959 }
 0x6e6   : > { %5761 = vrot.lane.b32.xlu0 %v12139_v47, %s9199_s25 }
 0x6e7   : > { %5938 = vrot.lane.b32.xlu1 %v12227_v63, %s9199_s25 }
 0x6e8   : > { %v5742_v13 = vpop.permute.xlu0 %5741 }
 0x6e9   : > { %v5913_v59 = vpop.permute.xlu1 %5912 }
 0x6ea   : > { %5847 = vrot.lane.b32.xlu0 %v12218_v37, %s9198_s20 }
 0x6eb   : > { %6001 = vrot.lane.b32.xlu1 %v12162_v42, %s9197_s16 }
 0x6ec   : > { %v5822_v17 = vpop.permute.xlu0 %5821 }
 0x6ed   : > { %v5915_v39 = vpop.permute.xlu1 %5914 }
 0x6ee   : > { %5763 = vrot.lane.b32.xlu0 %v12146_v20, %s9199_s25 }
 0x6ef   : > { %5971 = vrot.lane.b32.xlu1 %v12421_v27, %s9198_s20 }
 0x6f0   : > { %v5824_v14 = vpop.permute.xlu0 %5823 }
 0x6f1   : > { %v12427_v23 = vpop.permute.xlu1 %5916 }
 0x6f2   : > { %5895 = vrot.lane.b32.xlu0 %v12397_v9, %s9197_s16 }
 0x6f3   : > { %6003 = vrot.lane.b32.xlu1 %v12169_v57, %s9197_s16 }
 0x6f4   : > { %v12433_v37 = vpop.permute.xlu0 %5825 }
 0x6f5   : > { %v12435_v3 = vpop.permute.xlu1 %5918 }
 0x6f6   : > { %5765 = vrot.lane.b32.xlu0 %v12162_v42, %s9199_s25  ;;  %v5597_v42 = vmul.bf16 %v14079_v55, %v11964_v45 }
 0x6f7   : > { %5940 = vrot.lane.b32.xlu1 %v12252_v4, %s9199_s25 }
 0x6f8   : > { %v12441_v34 = vpop.permute.xlu0 %5827 }
 0x6f9   : > { %v12443_v16 = vpop.permute.xlu1 %5920 }
 0x6fa   : > { %5849 = vrot.lane.b32.xlu0 %v12227_v63, %s9198_s20 }
 0x6fb   : > { %6005 = vrot.lane.b32.xlu1 %v12183_v25, %s9197_s16 }
 0x6fc   : > { %v12449_v9 = vpop.permute.xlu0 %5829 }
 0x6fd   : > { %v12451_v43 = vpop.permute.xlu1 %5922 }
 0x6fe   : > { %5767 = vrot.lane.b32.xlu0 %v12169_v57, %s9199_s25 }
 0x6ff   : > { %5973 = vrot.lane.b32.xlu1 %v5597_v42, %s9198_s20 }
 0x700   : > { %v12458_v22 = vpop.permute.xlu0 %5831 }
 0x701   : > { %v5925_v20 = vpop.permute.xlu1 %5924 }
 0x702   : > { %v6161_v63 = vsel %vm943_vm1, %v12101_v41, %v5925_v20  ;;  %5897 = vrot.lane.b32.xlu0 %v12421_v27, %s9197_s16 }
 0x703   : > { %6007 = vrot.lane.b32.xlu1 %v12193_v24, %s9197_s16  ;;  %v12467_v7 = vsel %vm605_vm0, %v6161_v63, %v5958_v15  ;;  %v6143_v15 = vsel %vm943_vm1, %v12054_v10, %v5913_v59  ;;  %v5977_v10 = vshrl.u32 %v11944_v40, 16 }
 0x704   : > { %v12469_v45 = vpop.permute.xlu0 %5833 }
 0x705   : > { %v5927_v55 = vpop.permute.xlu1 %5926 }
 0x706   : > { %v6164_v57 = vsel %vm943_vm1, %v12118_v5, %v5927_v55  ;;  %5769 = vrot.lane.b32.xlu0 %v12183_v25, %s9199_s25  ;;  %v14080_v5 = vld [vmem:[#allocation30_spill] sm:$0xff] }
 0x707   : > { %5942 = vrot.lane.b32.xlu1 %v12259_v44, %s9199_s25  ;;  %v12478_v41 = vsel %vm605_vm0, %v6164_v57, %v5960_v56  ;;  %v14081_v55 = vmul.bf16 0, %v14080_v5 }
 0x708   : > { %v12480_v20 = vpop.permute.xlu0 %5835 }
 0x709   : > { %v5929_v27 = vpop.permute.xlu1 %5928  ;;  %v6015_v44 = vsel %vm943_vm1, %v14081_v55, %v5742_v13  ;;  %v5979_v13 = vor.u32 %v5977_v10, %v12195_v61 }
 0x70a   : > { %v12486_v63 = vsel %vm943_vm1, %v12127_v52, %v5929_v27  ;;  %5851 = vrot.lane.b32.xlu0 %v12252_v4, %s9198_s20  ;;  %v6062_v57 = vsel %vm605_vm0, %v6015_v44, %v5822_v17  ;;  %v6190_v52 = vsel %vm605_vm0, %v6143_v15, %v12347_v35  ;;  %v14082_v27 = vld [vmem:[#allocation12_spill] sm:$0xff]  ;;  %v6146_v35 = vsel %vm943_vm1, %v12051_v53, %v5915_v39 }
 0x70b   : > { %6009 = vrot.lane.b32.xlu1 %v12205_v36, %s9197_s16  ;;  %v5598_v4 = vmul.bf16 %v14082_v27, %v11944_v40  ;;  %v6094_v17 = vsel %vm2943_vm7, %v6062_v57, %v12349_v21  ;;  %v5980_v61 = vsel %vm2452_vm5, %v5979_v13, %v14054_v58  ;;  %v6192_v10 = vsel %vm605_vm0, %v6146_v35, %v12357_v11 }
 0x70c   : > { %v12496_v56 = vpop.permute.xlu0 %5837 }
 0x70d   : > { %v5982_v59 = vpop.permute.xlu1 %5981 }
 0x70e   : > { %v6222_v5 = vsel %vm2943_vm7, %v6190_v52, %v5982_v59  ;;  %5771 = vrot.lane.b32.xlu0 %v12193_v24, %s9199_s25  ;;  %s13589_s25 = scalar_lea.hbm %s13650_s13, %s8022_s23 }
 0x70f   : > { %6500 = vmatprep.mubr.bf16.mxu0 %v6222_v5  ;;  %5975 = vrot.lane.b32.xlu1 %v5598_v4, %s9198_s20 }
 0x710   : > { %6501 = vmatmul.mubr.bf16.vlgmr.msra.gmra.mxu0 %v6094_v17  ;;  %v5744_v55 = vpop.permute.xlu0 %5743 }
 0x711   : > { %v12510_v44 = vpop.permute.xlu1 %5961  ;;  %v6018_v40 = vsel %vm943_vm1, %v11854_v62, %v5744_v55 }
 0x712   : > { %5899 = vrot.lane.b32.xlu0 %v5597_v42, %s9197_s16  ;;  %v6064_v21 = vsel %vm605_vm0, %v6018_v40, %v5824_v14  ;;  %v6149_v14 = vsel %vm943_vm1, %v12068_v38, %v12427_v23  ;;  %v6152_v23 = vsel %vm943_vm1, %v12076_v6, %v12435_v3  ;;  %v6155_v3 = vsel %vm943_vm1, %v12083_v12, %v12443_v16 }
 0x713   : > { %6011 = vrot.lane.b32.xlu1 %v5980_v61, %s9197_s16  ;;  %v6097_v53 = vsel %vm2943_vm7, %v6064_v21, %v12355_v46  ;;  %v6194_v46 = vsel %vm605_vm0, %v6149_v14, %v12369_v49 }
 0x714   : > { %v12520_v15 = vpop.permute.xlu0 %5885 }
 0x715   : > { %v5984_v57 = vpop.permute.xlu1 %5983 }
 0x716   : > { %v6225_v62 = vsel %vm2943_vm7, %v6192_v10, %v5984_v57 }
 0x717   : > { %6508 = vmatprep.mubr.bf16.mxu0 %v6225_v62 }
 0x718   : > { %6509 = vmatmul.mubr.bf16.gmra.mxu0 %v6097_v53  ;;  %v5746_v42 = vpop.permute.xlu0 %5745 }
 0x719   : > { %v12528_v39 = vpop.permute.xlu1 %5930  ;;  %v6021_v58 = vsel %vm943_vm1, %v11858_v1, %v5746_v42 }
 0x71a   : > { %v6066_v11 = vsel %vm605_vm0, %v6021_v58, %v12433_v37 }
 0x71b   : > { %v6100_v4 = vsel %vm2943_vm7, %v6066_v11, %v12367_v26  ;;  %v6196_v26 = vsel %vm605_vm0, %v6152_v23, %v12377_v19 }
 0x71c   : > { %v12535_v59 = vpop.permute.xlu0 %5839 }
 0x71d   : > { %v5986_v52 = vpop.permute.xlu1 %5985 }
 0x71e   : > { %v6228_v27 = vsel %vm2943_vm7, %v6194_v46, %v5986_v52 }
 0x71f   : > { %6516 = vmatprep.mubr.bf16.mxu0 %v6228_v27 }
 0x720   : > { %6517 = vmatmul.mubr.bf16.gmra.mxu0 %v6100_v4  ;;  %v5748_v1 = vpop.permute.xlu0 %5747 }
 0x721   : > { %v12544_v5 = vpop.permute.xlu1 %5963  ;;  %v6024_v38 = vsel %vm943_vm1, %v11901_v30, %v5748_v1 }
 0x722   : > { %v6068_v49 = vsel %vm605_vm0, %v6024_v38, %v12441_v34 }
 0x723   : > { %v6103_v55 = vsel %vm2943_vm7, %v6068_v49, %v12375_v60  ;;  %v6198_v60 = vsel %vm605_vm0, %v6155_v3, %v12385_v18 }
 0x724   : > { %v12551_v37 = vpop.permute.xlu0 %5887 }
 0x725   : > { %v5988_v13 = vpop.permute.xlu1 %5987 }
 0x726   : > { %v6231_v17 = vsel %vm2943_vm7, %v6196_v26, %v5988_v13 }
 0x727   : > { %6524 = vmatprep.mubr.bf16.mxu0 %v6231_v17 }
 0x728   : > { %6525 = vmatmul.mubr.bf16.gmra.mxu0 %v6103_v55  ;;  %v5750_v30 = vpop.permute.xlu0 %5749 }
 0x729   : > { %v12560_v40 = vpop.permute.xlu1 %5932  ;;  %v6027_v6 = vsel %vm943_vm1, %v11938_v29, %v5750_v30 }
 0x72a   : > { %v6070_v19 = vsel %vm605_vm0, %v6027_v6, %v12449_v9  ;;  %v6158_v9 = vsel %vm943_vm1, %v12098_v33, %v12451_v43  ;;  %v14083_v6 = vld [vmem:[#allocation13_spill] sm:$0xff] }
 0x72b   : > { %v6106_v21 = vsel %vm2943_vm7, %v6070_v19, %v12383_v0  ;;  %v6200_v62 = vsel %vm605_vm0, %v6158_v9, %v12393_v31  ;;  %v14086_v9 = vld [vmem:[#allocation45_spill] sm:$0xff] }
 0x72c   : > { %v12567_v34 = vpop.permute.xlu0 %5841 }
 0x72d   : > { %v5990_v35 = vpop.permute.xlu1 %5989 }
 0x72e   : > { %v6234_v61 = vsel %vm2943_vm7, %v6198_v60, %v5990_v35 }
 0x72f   : > { %6532 = vmatprep.mubr.bf16.mxu0 %v6234_v61 }
 0x730   : > { %6533 = vmatmul.mubr.bf16.gmra.mxu0 %v6106_v21  ;;  %v5752_v29 = vpop.permute.xlu0 %5751 }
 0x731   : > { %v5966_v57 = vpop.permute.xlu1 %5965  ;;  %v6030_v12 = vsel %vm943_vm1, %v11973_v8, %v5752_v29  ;;  %v14085_v29 = vld [vmem:[#allocation56_spill] sm:$0xff] }
 0x732   : > { %v6072_v18 = vsel %vm605_vm0, %v6030_v12, %v12458_v22 }
 0x733   : > { %v6109_v53 = vsel %vm2943_vm7, %v6072_v18, %v12391_v48 }
 0x734   : > { %v5890_v16 = vpop.permute.xlu0 %5889 }
 0x735   : > { %v5992_v10 = vpop.permute.xlu1 %5991 }
 0x736   : > { %v6237_v0 = vsel %vm2943_vm7, %v6200_v62, %v5992_v10 }
 0x737   : > { %6540 = vmatprep.mubr.bf16.mxu0 %v6237_v0 }
 0x738   : > { %6541 = vmatmul.mubr.bf16.gmra.mxu0 %v6109_v53  ;;  %v5754_v8 = vpop.permute.xlu0 %5753 }
 0x739   : > { %v5935_v42 = vpop.permute.xlu1 %5934  ;;  %v6033_v33 = vsel %vm943_vm1, %v11977_v32, %v5754_v8  ;;  %v14087_v8 = vld [vmem:[#allocation11_spill] sm:$0xff] }
 0x73a   : > { %v6074_v22 = vsel %vm605_vm0, %v6033_v33, %v12469_v45 }
 0x73b   : > { %v6112_v14 = vsel %vm2943_vm7, %v6074_v22, %v12403_v28  ;;  %v14088_v22 = vld [vmem:[#allocation17_spill] sm:$0xff] }
 0x73c   : > { %v5844_v43 = vpop.permute.xlu0 %5843 }
 0x73d   : > { %v5994_v58 = vpop.permute.xlu1 %5993 }
 0x73e   : > { %v6240_v31 = vsel %vm2943_vm7, %v12467_v7, %v5994_v58 }
 0x73f   : > { %6548 = vmatprep.mubr.bf16.mxu0 %v6240_v31 }
 0x740   : > { %6549 = vmatmul.mubr.bf16.gmra.mxu0 %v6112_v14  ;;  %v5756_v48 = vpop.permute.xlu0 %5755 }
 0x741   : > { %v5968_v11 = vpop.permute.xlu1 %5967  ;;  %v6036_v52 = vsel %vm943_vm1, %v11981_v2, %v5756_v48 }
 0x742   : > { %v6076_v32 = vsel %vm605_vm0, %v6036_v52, %v12480_v20  ;;  %v6206_v20 = vsel %vm605_vm0, %v12486_v63, %v12510_v44 }
 0x743   : > { %v6115_v7 = vsel %vm2943_vm7, %v6076_v32, %v12409_v54  ;;  %v14089_v32 = vld [vmem:[#allocation28_spill] sm:$0xff] }
 0x744   : > { %v5892_v46 = vpop.permute.xlu0 %5891 }
 0x745   : > { %v5996_v27 = vpop.permute.xlu1 %5995 }
 0x746   : > { %v6243_v45 = vsel %vm2943_vm7, %v12478_v41, %v5996_v27 }
 0x747   : > { %6556 = vmatprep.mubr.bf16.mxu0 %v6243_v45 }
 0x748   : > { %6557 = vmatmul.mubr.bf16.gmra.mxu0 %v6115_v7  ;;  %v5758_v28 = vpop.permute.xlu0 %5757 }
 0x749   : > { %v5937_v4 = vpop.permute.xlu1 %5936  ;;  %v6039_v1 = vsel %vm943_vm1, %v11992_v51, %v5758_v28 }
 0x74a   : > { %v6078_v2 = vsel %vm605_vm0, %v6039_v1, %v12496_v56  ;;  %v6170_v56 = vsel %vm943_vm1, %v12139_v47, %v12528_v39  ;;  %v14084_v39 = vld [vmem:[#allocation21_spill] sm:$0xff] }
 0x74b   : > { %v6118_v54 = vsel %vm2943_vm7, %v6078_v2, %v12520_v15  ;;  %v6208_v26 = vsel %vm605_vm0, %v6170_v56, %v12544_v5 }
 0x74c   : > { %v5846_v38 = vpop.permute.xlu0 %5845 }
 0x74d   : > { %v5998_v23 = vpop.permute.xlu1 %5997 }
 0x74e   : > { %v6246_v41 = vsel %vm2943_vm7, %v6206_v20, %v5998_v23 }
 0x74f   : > { %6564 = vmatprep.mubr.bf16.mxu0 %v6246_v41  ;;  %v14090_v41 = vld [vmem:[#allocation23_spill] sm:$0xff] }
 0x750   : > { %6565 = vmatmul.mubr.bf16.gmra.mxu0 %v6118_v54  ;;  %v5760_v49 = vpop.permute.xlu0 %5759 }
 0x751   : > { %v5970_v13 = vpop.permute.xlu1 %5969  ;;  %v6042_v51 = vsel %vm943_vm1, %v12005_v50, %v5760_v49 }
 0x752   : > { %v6080_v63 = vsel %vm605_vm0, %v6042_v51, %v12535_v59  ;;  %v6173_v59 = vsel %vm943_vm1, %v14084_v39, %v12560_v40  ;;  %v6176_v40 = vsel %vm943_vm1, %v14086_v9, %v5935_v42  ;;  %v6179_v42 = vsel %vm943_vm1, %v14088_v22, %v5937_v4  ;;  %v14092_v9 = vld [vmem:[#allocation70_spill] sm:$0xff] }
 0x753   : > { %v6121_v55 = vsel %vm2943_vm7, %v6080_v63, %v12551_v37  ;;  %v6210_v19 = vsel %vm605_vm0, %v6173_v59, %v5966_v57  ;;  %v6212_v57 = vsel %vm605_vm0, %v6176_v40, %v5968_v11  ;;  %v6214_v31 = vsel %vm605_vm0, %v6179_v42, %v5970_v13 }
 0x754   : > { %v5894_v44 = vpop.permute.xlu0 %5893 }
 0x755   : > { %v6000_v17 = vpop.permute.xlu1 %5999 }
 0x756   : > { %v6249_v15 = vsel %vm2943_vm7, %v6208_v26, %v6000_v17 }
 0x757   : > { %6572 = vmatprep.mubr.bf16.mxu0 %v6249_v15  ;;  %v14091_v15 = vld [vmem:[#allocation57_spill] sm:$0xff] }
 0x758   : > { %6573 = vmatmul.mubr.bf16.gmra.mxu0 %v6121_v55  ;;  %v5762_v50 = vpop.permute.xlu0 %5761 }
 0x759   : > { %v5939_v30 = vpop.permute.xlu1 %5938  ;;  %v6045_v47 = vsel %vm943_vm1, %v14083_v6, %v5762_v50 }
 0x75a   : > { %v6082_v5 = vsel %vm605_vm0, %v6045_v47, %v12567_v34  ;;  %v6182_v45 = vsel %vm943_vm1, %v12183_v25, %v5939_v30 }
 0x75b   : > { %v6124_v37 = vsel %vm2943_vm7, %v6082_v5, %v5890_v16  ;;  %v8534_v5 = vpop.f32.mrf.mxu1 }
 0x75c   : > { %v5848_v3 = vpop.permute.xlu0 %5847 }
 0x75d   : > { %v6002_v35 = vpop.permute.xlu1 %6001 }
 0x75e   : > { %v6252_v60 = vsel %vm2943_vm7, %v6210_v19, %v6002_v35  ;;  %v6663_v19 = vpop.f32.mrf.mxu1  ;;  %v12679_v35 = vld [vmem:[%s13649_s12] ss:$0 sm:$0xff] }
 0x75f   : > { %6580 = vmatprep.mubr.bf16.mxu0 %v6252_v60 }
 0x760   : > { %6581 = vmatmul.mubr.bf16.gmra.mxu0 %v6124_v37  ;;  %v5764_v61 = vpop.permute.xlu0 %5763 }
 0x761   : > { %v5972_v21 = vpop.permute.xlu1 %5971  ;;  %v6048_v12 = vsel %vm943_vm1, %v14085_v29, %v5764_v61  ;;  %v8535_v29 = vpop.f32.mrf.mxu1 }
 0x762   : > { %v6084_v34 = vsel %vm605_vm0, %v6048_v12, %v5844_v43  ;;  %v6216_v4 = vsel %vm605_vm0, %v6182_v45, %v5972_v21  ;;  %v12685_v21 = vld [vmem:[%s13645_s8] ss:$0 sm:$0xff] }
 0x763   : > { %v6127_v16 = vsel %vm2943_vm7, %v6084_v34, %v5892_v46  ;;  %v3921_v40 = vadd.f32 %v12685_v21, %v14092_v9 }
 0x764   : > { %v5896_v18 = vpop.permute.xlu0 %5895 }
 0x765   : > { %v6004_v10 = vpop.permute.xlu1 %6003 }
 0x766   : > { %v6255_v62 = vsel %vm2943_vm7, %v6212_v57, %v6004_v10 }
 0x767   : > { %6588 = vmatprep.mubr.bf16.mxu0 %v6255_v62 }
 0x768   : > { %6589 = vmatmul.mubr.bf16.gmra.mxu0 %v6127_v16  ;;  %v5766_v0 = vpop.permute.xlu0 %5765  ;;  %v6666_v16 = vpop.f32.mrf.mxu1 }
 0x769   : > { %v5941_v53 = vpop.permute.xlu1 %5940  ;;  %v6051_v33 = vsel %vm943_vm1, %v14087_v8, %v5766_v0 }
 0x76a   : > { %v6086_v43 = vsel %vm605_vm0, %v6051_v33, %v5846_v38  ;;  %v6185_v25 = vsel %vm943_vm1, %v12193_v24, %v5941_v53  ;;  %v14093_v53 = vld [vmem:[#allocation72_spill] sm:$0xff] }
 0x76b   : > { %v6130_v11 = vsel %vm2943_vm7, %v6086_v43, %v5894_v44  ;;  %v3922_v8 = vadd.f32 %v12685_v21, %v14093_v53 }
 0x76c   : > { %v5850_v58 = vpop.permute.xlu0 %5849 }
 0x76d   : > { %v6006_v14 = vpop.permute.xlu1 %6005 }
 0x76e   : > { %v6258_v48 = vsel %vm2943_vm7, %v6214_v31, %v6006_v14 }
 0x76f   : > { %6596 = vmatprep.mubr.bf16.mxu0 %v6258_v48  ;;  %v12701_v48 = vpop.f32.mrf.mxu1 }
 0x770   : > { %6597 = vmatmul.mubr.bf16.gmra.mxu0 %v6130_v11  ;;  %v5768_v52 = vpop.permute.xlu0 %5767 }
 0x771   : > { %v5974_v46 = vpop.permute.xlu1 %5973  ;;  %v6054_v27 = vsel %vm943_vm1, %v14089_v32, %v5768_v52  ;;  %v14094_v32 = vld [vmem:[#allocation69_spill] sm:$0xff] }
 0x772   : > { %v6088_v7 = vsel %vm605_vm0, %v6054_v27, %v5848_v3  ;;  %v6218_v51 = vsel %vm605_vm0, %v6185_v25, %v5974_v46  ;;  %v3923_v27 = vadd.f32 %v14094_v32, %v12685_v21 }
 0x773   : > { %v6133_v38 = vsel %vm2943_vm7, %v6088_v7, %v5896_v18 }
 0x774   : > { %v5898_v28 = vpop.permute.xlu0 %5897 }
 0x775   : > { %v6008_v1 = vpop.permute.xlu1 %6007 }
 0x776   : > { %v6261_v2 = vsel %vm2943_vm7, %v6216_v4, %v6008_v1 }
 0x777   : > { %6604 = vmatprep.mubr.bf16.mxu0 %v6261_v2  ;;  %v14095_v2 = vld [vmem:[#allocation71_spill] sm:$0xff] }
 0x778   : > { %6605 = vmatmul.mubr.bf16.gmra.mxu0 %v6133_v38  ;;  %v5770_v20 = vpop.permute.xlu0 %5769  ;;  %v3924_v38 = vadd.f32 %v14095_v2, %v12685_v21 }
 0x779   : > { %v5943_v23 = vpop.permute.xlu1 %5942  ;;  %v6057_v54 = vsel %vm943_vm1, %v14090_v41, %v5770_v20  ;;  %v14096_v20 = vld [vmem:[#allocation73_spill] sm:$0xff]  ;;  %v6679_v41 = vpop.f32.mrf.mxu1 }
 0x77a   : > { %v6090_v49 = vsel %vm605_vm0, %v6057_v54, %v5850_v58  ;;  %v6188_v24 = vsel %vm943_vm1, %v12205_v36, %v5943_v23  ;;  %v12713_v23 = vadd.f32 %v14096_v20, %v12685_v21 }
 0x77b   : > { %v6136_v44 = vsel %vm2943_vm7, %v6090_v49, %v5898_v28 }
 0x77c   : > { %v5852_v13 = vpop.permute.xlu0 %5851 }
 0x77d   : > { %v6010_v56 = vpop.permute.xlu1 %6009 }
 0x77e   : > { %v6264_v63 = vsel %vm2943_vm7, %v6218_v51, %v6010_v56  ;;  %v14098_v56 = vld [vmem:[#allocation75_spill] sm:$0xff] }
 0x77f   : > { %6612 = vmatprep.mubr.bf16.mxu0 %v6264_v63  ;;  %v12720_v63 = vadd.f32 %v14098_v56, %v12685_v21 }
 0x780   : > { %6613 = vmatmul.mubr.bf16.gmra.mxu0 %v6136_v44  ;;  %v5772_v26 = vpop.permute.xlu0 %5771 }
 0x781   : > { %v5976_v17 = vpop.permute.xlu1 %5975  ;;  %v6060_v55 = vsel %vm943_vm1, %v14091_v15, %v5772_v26  ;;  %v14099_v26 = vld [vmem:[#allocation76_spill] sm:$0xff] }
 0x782   : > { %v6092_v50 = vsel %vm605_vm0, %v6060_v55, %v5852_v13  ;;  %v6220_v6 = vsel %vm605_vm0, %v6188_v24, %v5976_v17  ;;  %v14097_v13 = vld [vmem:[#allocation74_spill] sm:$0xff]  ;;  %v3926_v17 = vadd.f32 %v12685_v21, %v14099_v26 }
 0x783   : > { %v3925_v51 = vadd.f32 %v12685_v21, %v14097_v13 }
 0x784   : > { %v5900_v30 = vpop.permute.xlu0 %5899 }
 0x785   : > { %v6012_v47 = vpop.permute.xlu1 %6011  ;;  %v6139_v39 = vsel %vm2943_vm7, %v6092_v50, %v5900_v30  ;;  %v14100_v30 = vld [vmem:[#allocation77_spill] sm:$0xff] }
 0x786   : > { %v6267_v59 = vsel %vm2943_vm7, %v6220_v6, %v6012_v47  ;;  %v12728_v6 = vadd.f32 %v14100_v30, %v12685_v21  ;;  %v14101_v47 = vld [vmem:[#allocation78_spill] sm:$0xff] }
 0x787   : > { %6620 = vmatprep.mubr.bf16.mxu0 %v6267_v59 }
 0x788   : > { %6621 = vmatmul.mubr.bf16.gmra.mxu0 %v6139_v39  ;;  %v12732_v39 = vadd.f32 %v12685_v21, %v14101_v47 }
 0x7d0   : > { %v8252_v3 = vpop.f32.mrf.mxu0 }
 0x7d2   : > { %v8253_v36 = vpop.f32.mrf.mxu0 }
 0x7d3   : > { %v8254_v60 = vadd.f32 %v8253_v36, %v8252_v3  ;;  %v14102_v3 = vld [vmem:[#allocation79_spill] sm:$0xff]  ;;  %v12738_v36 = vpop.f32.mrf.mxu1 }
 0x7d4   : > { %v8255_v37 = vpop.f32.mrf.mxu0 }
 0x7d5   : > { %v6503_v61 = vadd.f32 %v8254_v60, %v12679_v35 }
 0x7d6   : > { %v8256_v12 = vpop.f32.mrf.mxu0 }
 0x7d7   : > { %v6664_v34 = vadd.f32 %v6663_v19, %v6503_v61  ;;  %v8257_v18 = vadd.f32 %v8256_v12, %v8255_v37  ;;  %v12736_v19 = vadd.f32 %v14102_v3, %v12685_v21  ;;  %v14103_v12 = vld [vmem:[#allocation80_spill] sm:$0xff] }
 0x7d8   : > { %v8258_v57 = vpop.f32.mrf.mxu0  ;;  %v12744_v9 = vadd.f32 %v12685_v21, %v14103_v12 }
 0x7d9   : > { %v12689_v10 = vadd.f32 %v6664_v34, %v3921_v40  ;;  %v6506_v62 = vadd.f32 %v8257_v18, %v12679_v35  ;;  %v14104_v40 = vld [vmem:[#allocation81_spill] sm:$0xff] }
 0x7da   : > { %v8259_v0 = vpop.f32.mrf.mxu0  ;;  %v12748_v34 = vadd.f32 %v14104_v40, %v12685_v21 }
 0x7db   : > { %v12695_v33 = vmul.f32 0.70710677, %v12689_v10  ;;  %v6667_v22 = vadd.f32 %v6666_v16, %v6506_v62  ;;  %v8260_v42 = vadd.f32 %v8259_v0, %v8258_v57  ;;  %v14105_v57 = vld [vmem:[#allocation82_spill] sm:$0xff] }
 0x7dc   : > { %v8261_v43 = vpop.f32.mrf.mxu0  ;;  %v12752_v62 = vadd.f32 %v12685_v21, %v14105_v57 }
 0x7dd   : > { %v6886_v58 = vand.u32 2147483647, %v12695_v33  ;;  %v12698_v31 = vadd.f32 %v6667_v22, %v3922_v8  ;;  %v6511_v14 = vadd.f32 %v8260_v42, %v12679_v35  ;;  %v14106_v22 = vld [vmem:[#allocation83_spill] sm:$0xff]  ;;  %vm7526_vm0 = vcmp.ge.f32.partialorder %v12695_v33, 0.0 }
 0x7de   : > { %v8262_v11 = vpop.f32.mrf.mxu0  ;;  %v12758_v42 = vadd.f32 %v14106_v22, %v12685_v21 }
 0x7df   : > { %v6918_v52 = vmul.f32 0.3275911, %v6886_v58  ;;  %v12704_v46 = vmul.f32 0.70710677, %v12698_v31  ;;  %v6672_v45 = vadd.f32 %v8534_v5, %v6511_v14  ;;  %v8263_v7 = vadd.f32 %v8262_v11, %v8261_v43 }
 0x7e0   : > { %v8264_v28 = vpop.f32.mrf.mxu0  ;;  %v7334_v59 = vsub.f32 0.0, %v6886_v58 }
 0x7e1   : > { %v6950_v4 = vadd.f32 1.0, %v6918_v52  ;;  %v6887_v1 = vand.u32 2147483647, %v12704_v46  ;;  %v6792_v54 = vadd.f32 %v6672_v45, %v3923_v27  ;;  %v6514_v25 = vadd.f32 %v8263_v7, %v12679_v35  ;;  %v14107_v52 = vld [vmem:[#allocation84_spill] sm:$0xff]  ;;  %v14108_v27 = vld [vmem:[#allocation85_spill] sm:$0xff]  ;;  %v6682_v7 = vpop.f32.mrf.mxu1 }
 0x7e2   : > { %v8265_v49 = vpop.f32.mrf.mxu0  ;;  %v7366_v43 = vmul.f32 %v7334_v59, %v6886_v58  ;;  %v12763_v32 = vadd.f32 %v12685_v21, %v14107_v52  ;;  %v12767_v45 = vadd.f32 %v14108_v27, %v12685_v21  ;;  %v12791_v59 = vmul.f32 0.5, %v12689_v10 }
 0x7e3   : > { %9002 = vrcp.f32 %v6950_v4  ;;  %v6919_v44 = vmul.f32 0.3275911, %v6887_v1  ;;  %v12724_v15 = vmul.f32 0.70710677, %v6792_v54  ;;  %v6675_v55 = vadd.f32 %v8535_v29, %v6514_v25 }
 0x7e4   : > { %v8266_v24 = vadd.f32 %v8265_v49, %v8264_v28  ;;  %v8267_v50 = vpop.f32.mrf.mxu0  ;;  %v7335_v16 = vsub.f32 0.0, %v6887_v1  ;;  %14109 = vst [vmem:[#allocation58_spill] sm:$0xff] %v12767_v45  ;;  %v14111_v49 = vld [vmem:[#allocation87_spill] sm:$0xff]  ;;  %vm7527_vm2 = vcmp.ge.f32.partialorder %v12704_v46, 0.0 }
 0x7e5   : > { %v6951_v5 = vadd.f32 1.0, %v6919_v44  ;;  %v6888_v60 = vand.u32 2147483647, %v12724_v15  ;;  %v6793_v37 = vadd.f32 %v6675_v55, %v3924_v38  ;;  %v14110_v38 = vld [vmem:[#allocation86_spill] sm:$0xff]  ;;  %v12778_v13 = vadd.f32 %v14111_v49, %v12685_v21  ;;  %v12822_v49 = vpop.f32.mrf.mxu1 }
 0x7e6   : > { %v6519_v61 = vadd.f32 %v8266_v24, %v12679_v35  ;;  %v8268_v29 = vpop.f32.mrf.mxu0  ;;  %v12772_v20 = vadd.f32 %v12685_v21, %v14110_v38  ;;  %v7367_v56 = vmul.f32 %v7335_v16, %v6887_v1  ;;  %v7398_v55 = vmul.f32 1.442695, %v7366_v43 }
 0x7e7   : > { %9004 = vrcp.f32 %v6951_v5  ;;  %v8269_v18 = vadd.f32 %v8268_v29, %v8267_v50  ;;  %v6920_v0 = vmul.f32 0.3275911, %v6888_v60  ;;  %v12754_v53 = vmul.f32 0.70710677, %v6793_v37  ;;  %14112 = vst [vmem:[#allocation59_spill] sm:$0xff] %v12778_v13 }
 0x7e8   : > { %v8270_v8 = vpop.f32.mrf.mxu0  ;;  %v6680_v14 = vadd.f32 %v6679_v41, %v6519_v61  ;;  %v7336_v5 = vsub.f32 0.0, %v6888_v60  ;;  %v12794_v61 = vmul.f32 0.5, %v12698_v31  ;;  %v12796_v29 = vmul.f32 0.5, %v6792_v54 }
 0x7e9   : > { %v6522_v11 = vadd.f32 %v8269_v18, %v12679_v35  ;;  %v6952_v28 = vadd.f32 1.0, %v6920_v0  ;;  %v6889_v4 = vand.u32 2147483647, %v12754_v53  ;;  %v7400_v18 = vmul.f32 1.442695, %v7367_v56 }
 0x7ea   : > { %v8271_v2 = vpop.f32.mrf.mxu0  ;;  %v12774_v58 = vadd.f32 %v6680_v14, %v3925_v51  ;;  %v14113_v51 = vld [vmem:[#allocation88_spill] sm:$0xff]  ;;  %v12806_v31 = vmul.f32 0.5, %v6793_v37  ;;  %vm7528_vm4 = vcmp.ge.f32.partialorder %v12724_v15, 0.0  ;;  %vm7529_vm5 = vcmp.ge.f32.partialorder %v12754_v53, 0.0 }
 0x7eb   : > { %v6683_v41 = vadd.f32 %v6682_v7, %v6522_v11  ;;  %v8272_v25 = vadd.f32 %v8271_v2, %v8270_v8  ;;  %9006 = vrcp.f32 %v6952_v28  ;;  %v6921_v44 = vmul.f32 0.3275911, %v6889_v4 }
 0x7ec   : > { %v8273_v26 = vpop.f32.mrf.mxu0  ;;  %v12781_v24 = vmul.f32 0.70710677, %v12774_v58  ;;  %v12788_v47 = vadd.f32 %v12685_v21, %v14113_v51  ;;  %v7368_v8 = vmul.f32 %v7336_v5, %v6888_v60  ;;  %v7337_v22 = vsub.f32 0.0, %v6889_v4 }
 0x7ed   : > { %v12783_v50 = vadd.f32 %v6683_v41, %v3926_v17  ;;  %v6527_v30 = vadd.f32 %v8272_v25, %v12679_v35  ;;  %v6953_v1 = vadd.f32 1.0, %v6921_v44 }
 0x7ee   : > { %14114 = vst [vmem:[#allocation60_spill] sm:$0xff] %v12788_v47  ;;  %v8274_v3 = vpop.f32.mrf.mxu0  ;;  %v6890_v17 = vand.u32 2147483647, %v12781_v24  ;;  %v7402_v56 = vmul.f32 1.442695, %v7368_v8  ;;  %v7369_v44 = vmul.f32 %v7337_v22, %v6889_v4  ;;  %v6695_v22 = vpop.f32.mrf.mxu1  ;;  %vm7530_vm6 = vcmp.ge.f32.partialorder %v12781_v24, 0.0 }
 0x7ef   : > { %v12800_v12 = vmul.f32 0.70710677, %v12783_v50  ;;  %9008 = vrcp.f32 %v6953_v1  ;;  %v6688_v10 = vadd.f32 %v12701_v48, %v6527_v30  ;;  %v8275_v57 = vadd.f32 %v8274_v3, %v8273_v26 }
 0x7f0   : > { %v12802_v40 = vpop.eup %9002  ;;  %v8276_v16 = vpop.f32.mrf.mxu0  ;;  %9010 = vpow2.f32 %v7398_v55  ;;  %v6922_v54 = vmul.f32 0.3275911, %v6890_v17  ;;  %v7338_v7 = vsub.f32 0.0, %v6890_v17 }
 0x7f1   : > { %v7046_v0 = vmul.f32 1.0614054, %v12802_v40  ;;  %v6891_v43 = vand.u32 2147483647, %v12800_v12  ;;  %v12810_v14 = vadd.f32 %v6688_v10, %v12713_v23  ;;  %v6530_v48 = vadd.f32 %v8275_v57, %v12679_v35 }
 0x7f2   : > { %v8277_v11 = vpop.f32.mrf.mxu0  ;;  %v6954_v27 = vadd.f32 1.0, %v6922_v54  ;;  %9012 = vpow2.f32 %v7400_v18  ;;  %v7370_v1 = vmul.f32 %v7338_v7, %v6890_v17  ;;  %vm7531_vm7 = vcmp.ge.f32.partialorder %v12800_v12, 0.0 }
 0x7f3   : > { %v7078_v52 = vadd.f32 -1.4531521, %v7046_v0  ;;  %v6923_v2 = vmul.f32 0.3275911, %v6891_v43  ;;  %v7339_v37 = vsub.f32 0.0, %v6891_v43  ;;  %v8278_v25 = vadd.f32 %v8277_v11, %v8276_v16 }
 0x7f4   : > { %v12813_v28 = vpop.eup %9004  ;;  %v12816_v38 = vmul.f32 0.70710677, %v12810_v14  ;;  %v12818_v60 = vpop.f32.mrf.mxu0  ;;  %9014 = vrcp.f32 %v6954_v27  ;;  %v6691_v3 = vadd.f32 %v12738_v36, %v6530_v48  ;;  %v7404_v36 = vmul.f32 1.442695, %v7369_v44 }
 0x7f5   : > { %v7110_v41 = vmul.f32 %v12802_v40, %v7078_v52  ;;  %v7047_v23 = vmul.f32 1.0614054, %v12813_v28  ;;  %v6955_v26 = vadd.f32 1.0, %v6923_v2  ;;  %v7371_v18 = vmul.f32 %v7339_v37, %v6891_v43 }
 0x7f6   : > { %v6892_v55 = vand.u32 2147483647, %v12816_v38  ;;  %v8280_v30 = vpop.f32.mrf.mxu0  ;;  %v12831_v4 = vadd.f32 %v6691_v3, %v12720_v63  ;;  %v6535_v8 = vadd.f32 %v8278_v25, %v12679_v35  ;;  %v7406_v7 = vmul.f32 1.442695, %v7370_v1 }
 0x7f7   : > { %v7142_v51 = vadd.f32 1.4214138, %v7110_v41  ;;  %v7079_v5 = vadd.f32 -1.4531521, %v7047_v23  ;;  %9016 = vrcp.f32 %v6955_v26  ;;  %v7408_v37 = vmul.f32 1.442695, %v7371_v18 }
 0x7f8   : > { %v6924_v10 = vmul.f32 0.3275911, %v6892_v55  ;;  %v7340_v57 = vsub.f32 0.0, %v6892_v55  ;;  %v12826_v0 = vpop.eup %9006  ;;  %9018 = vpow2.f32 %v7402_v56  ;;  %v12835_v43 = vpop.f32.mrf.mxu0  ;;  %v6696_v48 = vadd.f32 %v6695_v22, %v6535_v8 }
 0x7f9   : > { %v7174_v16 = vmul.f32 %v12802_v40, %v7142_v51  ;;  %v7111_v54 = vmul.f32 %v12813_v28, %v7079_v5  ;;  %v7048_v17 = vmul.f32 1.0614054, %v12826_v0  ;;  %v12838_v63 = vmul.f32 0.70710677, %v12831_v4 }
 0x7fa   : > { %v6956_v11 = vadd.f32 1.0, %v6924_v10  ;;  %v7372_v56 = vmul.f32 %v7340_v57, %v6892_v55  ;;  %v12845_v44 = vadd.f32 %v6696_v48, %v12732_v39  ;;  %v12850_v3 = vpop.f32.mrf.mxu0  ;;  %vm7532_vm10 = vcmp.ge.f32.partialorder %v12816_v38, 0.0 }
 0x7fb   : > { %v7206_v52 = vadd.f32 -0.28449672, %v7174_v16  ;;  %v7143_v27 = vadd.f32 1.4214138, %v7111_v54  ;;  %v7080_v2 = vadd.f32 -1.4531521, %v7048_v17 }
 0x7fc   : > { %9020 = vrcp.f32 %v6956_v11  ;;  %v12840_v41 = vpop.eup %9008  ;;  %v6893_v1 = vand.u32 2147483647, %v12838_v63  ;;  %v12853_v16 = vmul.f32 0.5, %v12774_v58  ;;  %v7410_v17 = vmul.f32 1.442695, %v7372_v56  ;;  %v12866_v48 = vpop.f32.mrf.mxu0 }
 0x7fd   : > { %v7238_v23 = vmul.f32 %v12802_v40, %v7206_v52  ;;  %v7175_v25 = vmul.f32 %v12813_v28, %v7143_v27  ;;  %v9011_v26 = vpop.eup %9010  ;;  %v7112_v51 = vmul.f32 %v12826_v0, %v7080_v2  ;;  %v7049_v5 = vmul.f32 1.0614054, %v12840_v41 }
 0x7fe   : > { %9022 = vpow2.f32 %v7404_v36  ;;  %v6925_v57 = vmul.f32 0.3275911, %v6893_v1  ;;  %v12859_v36 = vmul.f32 0.70710677, %v12845_v44  ;;  %vm7533_vm11 = vcmp.ge.f32.partialorder %v12838_v63, 0.0 }
 0x7ff   : > { %v7270_v18 = vadd.f32 0.2548296, %v7238_v23  ;;  %v7207_v10 = vadd.f32 -0.28449672, %v7175_v25  ;;  %9024 = vpow2.f32 %v7406_v7  ;;  %v7144_v39 = vadd.f32 1.4214138, %v7112_v51  ;;  %v9013_v54 = vpop.eup %9012 }
 0x800   : > { %v7081_v55 = vadd.f32 -1.4531521, %v7049_v5  ;;  %9026 = vpow2.f32 %v7408_v37  ;;  %v6957_v27 = vadd.f32 1.0, %v6925_v57  ;;  %v8281_v7 = vadd.f32 %v8280_v30, %v12818_v60  ;;  %v12881_v57 = vpop.f32.mrf.mxu0 }
 0x801   : > { %v7302_v8 = vmul.f32 %v12802_v40, %v7270_v18  ;;  %v7239_v22 = vmul.f32 %v12813_v28, %v7207_v10  ;;  %v12861_v11 = vpop.eup %9014  ;;  %v7176_v58 = vmul.f32 %v12826_v0, %v7144_v39  ;;  %v7341_v23 = vsub.f32 0.0, %v6893_v1 }
 0x802   : > { %v7113_v52 = vmul.f32 %v12840_v41, %v7081_v55  ;;  %v7050_v37 = vmul.f32 1.0614054, %v12861_v11  ;;  %9028 = vrcp.f32 %v6957_v27  ;;  %v12872_v51 = vand.u32 2147483647, %v12859_v36 }
 0x803   : > { %v7462_v2 = vmul.f32 %v9011_v26, %v7302_v8  ;;  %v7271_v40 = vadd.f32 0.2548296, %v7239_v22  ;;  %v7208_v25 = vadd.f32 -0.28449672, %v7176_v58  ;;  %9030 = vpow2.f32 %v7410_v17 }
 0x804   : > { %v7145_v56 = vadd.f32 1.4214138, %v7113_v52  ;;  %v12874_v5 = vpop.eup %9016  ;;  %v7082_v18 = vadd.f32 -1.4531521, %v7050_v37  ;;  %v6926_v55 = vmul.f32 0.3275911, %v12872_v51  ;;  %v6538_v17 = vadd.f32 %v8281_v7, %v12679_v35  ;;  %v12889_v52 = vpop.f32.mrf.mxu1 }
 0x805   : > { %v7494_v60 = vsub.f32 1.0, %v7462_v2  ;;  %v7303_v30 = vmul.f32 %v12813_v28, %v7271_v40  ;;  %v7240_v26 = vmul.f32 %v12826_v0, %v7208_v25  ;;  %v7051_v39 = vmul.f32 1.0614054, %v12874_v5  ;;  %v9019_v8 = vpop.eup %9018 }
 0x806   : > { %v7177_v10 = vmul.f32 %v12840_v41, %v7145_v56  ;;  %v7114_v28 = vmul.f32 %v12861_v11, %v7082_v18  ;;  %v7373_v37 = vmul.f32 %v7341_v23, %v6893_v1  ;;  %vm7534_vm12 = vcmp.ge.f32.partialorder %v12859_v36, 0.0 }
 0x807   : > { %v7558_v22 = vsub.f32 0.0, %v7494_v60  ;;  %v7463_v58 = vmul.f32 %v9013_v54, %v7303_v30  ;;  %v7272_v27 = vadd.f32 0.2548296, %v7240_v26  ;;  %v7083_v40 = vadd.f32 -1.4531521, %v7051_v39 }
 0x808   : > { %v7209_v2 = vadd.f32 -0.28449672, %v7177_v10  ;;  %v7146_v45 = vadd.f32 1.4214138, %v7114_v28  ;;  %v6958_v54 = vadd.f32 1.0, %v6926_v55  ;;  %v12899_v10 = vpop.f32.mrf.mxu0 }
 0x809   : > { %v12891_v25 = vpop.eup %9020  ;;  %v7590_v56 = vsel %vm7526_vm0, %v7494_v60, %v7558_v22  ;;  %v7495_v13 = vsub.f32 1.0, %v7463_v58  ;;  %v7304_v18 = vmul.f32 %v12826_v0, %v7272_v27  ;;  %v7115_v26 = vmul.f32 %v12874_v5, %v7083_v40  ;;  %v6698_v22 = vpop.f32.mrf.mxu1 }
 0x80a   : > { %v7622_v30 = vadd.f32 1.0, %v7590_v56  ;;  %v7241_v7 = vmul.f32 %v12840_v41, %v7209_v2  ;;  %v7178_v33 = vmul.f32 %v12861_v11, %v7146_v45  ;;  %v7052_v60 = vmul.f32 1.0614054, %v12891_v25 }
 0x80b   : > { %v9023_v1 = vpop.eup %9022  ;;  %v7559_v23 = vsub.f32 0.0, %v7495_v13  ;;  %9032 = vrcp.f32 %v6958_v54  ;;  %v7464_v58 = vmul.f32 %v9019_v8, %v7304_v18  ;;  %v7147_v28 = vadd.f32 1.4214138, %v7115_v26 }
 0x80c   : > { %v9025_v39 = vpop.eup %9024  ;;  %v7654_v55 = vmul.f32 %v7622_v30, %v12791_v59  ;;  %v7273_v0 = vadd.f32 0.2548296, %v7241_v7  ;;  %v7210_v40 = vadd.f32 -0.28449672, %v7178_v33  ;;  %v7084_v56 = vadd.f32 -1.4531521, %v7052_v60  ;;  %v12914_v30 = vpop.f32.mrf.mxu0 }
 0x80d   : > { %v9027_v27 = vpop.eup %9026  ;;  %v7591_v2 = vsel %vm7527_vm2, %v7495_v13, %v7559_v23  ;;  %v6699_v47 = vadd.f32 %v6698_v22, %v6538_v17  ;;  %v7496_v54 = vsub.f32 1.0, %v7464_v58  ;;  %v7179_v8 = vmul.f32 %v12874_v5, %v7147_v28 }
 0x80e   : > { %7686 = vst.msk [vmem:[%s12908_s14] sm:$0xff] %vm943_vm1, %v7654_v55  ;;  %v7623_v45 = vadd.f32 1.0, %v7591_v2  ;;  %v7305_v59 = vmul.f32 %v12840_v41, %v7273_v0  ;;  %v7242_v46 = vmul.f32 %v12861_v11, %v7210_v40  ;;  %v7116_v13 = vmul.f32 %v12891_v25, %v7084_v56  ;;  %v12933_v2 = vpop.f32.mrf.mxu0 }
 0x80f   : > { %v7412_v18 = vmul.f32 1.442695, %v7373_v37  ;;  %v7342_v17 = vsub.f32 0.0, %v12872_v51  ;;  %v7560_v26 = vsub.f32 0.0, %v7496_v54  ;;  %v7211_v33 = vadd.f32 -0.28449672, %v7179_v8  ;;  %v12920_v60 = vpop.eup %9028 }
 0x810   : > { %v7655_v7 = vmul.f32 %v7623_v45, %v12794_v61  ;;  %v7465_v23 = vmul.f32 %v9023_v1, %v7305_v59  ;;  %v7274_v41 = vadd.f32 0.2548296, %v7242_v46  ;;  %v7148_v22 = vadd.f32 1.4214138, %v7116_v13  ;;  %v9031_v0 = vpop.eup %9030 }
 0x811   : > { %v12923_v55 = vadd.f32 %v6699_v47, %v12744_v9  ;;  %v8284_v58 = vadd.f32 %v12850_v3, %v12835_v43  ;;  %v7592_v37 = vsel %vm7528_vm4, %v7496_v54, %v7560_v26  ;;  %v7243_v1 = vmul.f32 %v12874_v5, %v7211_v33 }
 0x812   : > { %7687 = vst.msk [vmem:[%s12908_s14 + $0x8] sm:$0xff] %vm943_vm1, %v7655_v7  ;;  %v7497_v61 = vsub.f32 1.0, %v7465_v23  ;;  %v7053_v28 = vmul.f32 1.0614054, %v12920_v60  ;;  %v7624_v40 = vadd.f32 1.0, %v7592_v37  ;;  %v7306_v9 = vmul.f32 %v12861_v11, %v7274_v41  ;;  %v12947_v7 = vpop.f32.mrf.mxu0 }
 0x813   : > { %v7180_v47 = vmul.f32 %v12891_v25, %v7148_v22  ;;  %9034 = vpow2.f32 %v7412_v18  ;;  %v7275_v3 = vadd.f32 0.2548296, %v7243_v1  ;;  %v7374_v15 = vmul.f32 %v7342_v17, %v12872_v51 }
 0x814   : > { %v7561_v43 = vsub.f32 0.0, %v7497_v61  ;;  %v7085_v56 = vadd.f32 -1.4531521, %v7053_v28  ;;  %v7656_v45 = vmul.f32 %v7624_v40, %v12796_v29  ;;  %v7466_v54 = vmul.f32 %v9025_v39, %v7306_v9 }
 0x815   : > { %v7212_v59 = vadd.f32 -0.28449672, %v7180_v47  ;;  %v12940_v8 = vmul.f32 0.70710677, %v12923_v55  ;;  %v7307_v11 = vmul.f32 %v12874_v5, %v7275_v3  ;;  %v6543_v18 = vadd.f32 %v8284_v58, %v12679_v35 }
 0x816   : > { %v7593_v46 = vsel %vm7529_vm5, %v7497_v61, %v7561_v43  ;;  %v7117_v13 = vmul.f32 %v12920_v60, %v7085_v56  ;;  %7688 = vst.msk [vmem:[%s12908_s14 + $0x10] sm:$0xff] %vm943_vm1, %v7656_v45  ;;  %v7498_v29 = vsub.f32 1.0, %v7466_v54  ;;  %v7414_v23 = vmul.f32 1.442695, %v7374_v15  ;;  %v12960_v61 = vpop.f32.mrf.mxu1 }
 0x817   : > { %v7625_v51 = vadd.f32 1.0, %v7593_v46  ;;  %v7244_v39 = vmul.f32 %v12891_v25, %v7212_v59  ;;  %v12953_v17 = vand.u32 2147483647, %v12940_v8  ;;  %v7467_v26 = vmul.f32 %v9027_v27, %v7307_v11  ;;  %v12965_v27 = vpop.f32.mrf.mxu0 }
 0x818   : > { %v12955_v53 = vpop.eup %9032  ;;  %v7149_v5 = vadd.f32 1.4214138, %v7117_v13  ;;  %v6704_v33 = vadd.f32 %v12822_v49, %v6543_v18  ;;  %v7562_v22 = vsub.f32 0.0, %v7498_v29  ;;  %9036 = vpow2.f32 %v7414_v23  ;;  %v6711_v54 = vpop.f32.mrf.mxu1 }
 0x819   : > { %v7657_v41 = vmul.f32 %v7625_v51, %v12806_v31  ;;  %v7276_v58 = vadd.f32 0.2548296, %v7244_v39  ;;  %v7054_v37 = vmul.f32 1.0614054, %v12955_v53  ;;  %v7499_v1 = vsub.f32 1.0, %v7467_v26 }
 0x81a   : > { %v7181_v28 = vmul.f32 %v12920_v60, %v7149_v5  ;;  %v6927_v40 = vmul.f32 0.3275911, %v12953_v17  ;;  %v7594_v49 = vsel %vm7530_vm6, %v7498_v29, %v7562_v22  ;;  %v12971_v47 = vadd.f32 %v6704_v33, %v12728_v6  ;;  %v8295_v6 = vpop.f32.mrf.mxu0  ;;  %v12989_v33 = vpop.f32.mrf.mxu1 }
 0x81b   : > { %7689 = vst.msk [vmem:[%s12908_s14 + $0x18] sm:$0xff] %vm943_vm1, %v7657_v41  ;;  %v7308_v31 = vmul.f32 %v12891_v25, %v7276_v58  ;;  %v7086_v9 = vadd.f32 -1.4531521, %v7054_v37  ;;  %v7626_v43 = vadd.f32 1.0, %v7594_v49  ;;  %v7563_v3 = vsub.f32 0.0, %v7499_v1 }
 0x81c   : > { %v7213_v56 = vadd.f32 -0.28449672, %v7181_v28  ;;  %v6959_v24 = vadd.f32 1.0, %v6927_v40  ;;  %v6827_v11 = vmul.f32 0.5, %v12783_v50  ;;  %v8290_v39 = vadd.f32 %v12914_v30, %v12899_v10 }
 0x81d   : > { %v7468_v15 = vmul.f32 %v9031_v0, %v7308_v31  ;;  %v7118_v45 = vmul.f32 %v12955_v53, %v7086_v9  ;;  %v7658_v59 = vmul.f32 %v7626_v43, %v12853_v16  ;;  %v7595_v46 = vsel %vm7531_vm7, %v7499_v1, %v7563_v3  ;;  %v14115_v9 = vld [vmem:[#allocation89_spill] sm:$0xff]  ;;  %v6714_v3 = vpop.f32.mrf.mxu1 }
 0x81e   : > { %v7245_v25 = vmul.f32 %v12920_v60, %v7213_v56  ;;  %9038 = vrcp.f32 %v6959_v24  ;;  %v7627_v13 = vadd.f32 1.0, %v7595_v46  ;;  %v12981_v0 = vmul.f32 0.70710677, %v12971_v47 }
 0x81f   : > { %v7500_v18 = vsub.f32 1.0, %v7468_v15  ;;  %v7150_v51 = vadd.f32 1.4214138, %v7118_v45  ;;  %7690 = vst.msk [vmem:[%s12908_s14 + $0x20] sm:$0xff] %vm943_vm1, %v7658_v59  ;;  %v8287_v16 = vadd.f32 %v12881_v57, %v12866_v48  ;;  %v6828_v50 = vmul.f32 0.5, %v12810_v14  ;;  %v12995_v48 = vpop.f32.mrf.mxu0 }
 0x820   : > { %v9035_v29 = vpop.eup %9034  ;;  %v7277_v12 = vadd.f32 0.2548296, %v7245_v25  ;;  %v7659_v26 = vmul.f32 %v7627_v13, %v6827_v11  ;;  %v6896_v22 = vand.u32 2147483647, %v12981_v0  ;;  %v6551_v14 = vadd.f32 %v8290_v39, %v12679_v35 }
 0x821   : > { %v7564_v5 = vsub.f32 0.0, %v7500_v18  ;;  %v7182_v23 = vmul.f32 %v12955_v53, %v7150_v51  ;;  %v6546_v58 = vadd.f32 %v8287_v16, %v12679_v35  ;;  %v8293_v30 = vadd.f32 %v12947_v7, %v12933_v2  ;;  %v13010_v24 = vpop.f32.mrf.mxu0 }
 0x822   : > { %v7309_v41 = vmul.f32 %v12920_v60, %v7277_v12  ;;  %7691 = vst.msk [vmem:[%s12908_s14 + $0x28] sm:$0xff] %vm943_vm1, %v7659_v26  ;;  %v7343_v38 = vsub.f32 0.0, %v12953_v17  ;;  %v6928_v60 = vmul.f32 0.3275911, %v6896_v22  ;;  %v6712_v49 = vadd.f32 %v6711_v54, %v6551_v14  ;;  %v14116_v54 = vld [vmem:[#allocation90_spill] sm:$0xff] }
 0x823   : > { %v7596_v57 = vsel %vm7532_vm10, %v7500_v18, %v7564_v5  ;;  %v7214_v10 = vadd.f32 -0.28449672, %v7182_v23  ;;  %v6707_v40 = vadd.f32 %v12889_v52, %v6546_v58  ;;  %v6554_v31 = vadd.f32 %v8293_v30, %v12679_v35  ;;  %v8300_v39 = vpop.f32.mrf.mxu0  ;;  %v14117_v5 = vld [vmem:[#allocation91_spill] sm:$0xff] }
 0x824   : > { %v7628_v37 = vadd.f32 1.0, %v7596_v57  ;;  %v7469_v1 = vmul.f32 %v9035_v29, %v7309_v41  ;;  %v13008_v43 = vadd.f32 %v14115_v9, %v12685_v21  ;;  %v6960_v7 = vadd.f32 1.0, %v6928_v60 }
 0x825   : > { %v7246_v28 = vmul.f32 %v12955_v53, %v7214_v10  ;;  %v13013_v45 = vadd.f32 %v6707_v40, %v12736_v19  ;;  %v13016_v59 = vadd.f32 %v6712_v49, %v12752_v62  ;;  %v6715_v52 = vadd.f32 %v6714_v3, %v6554_v31  ;;  %v9037_v62 = vpop.eup %9036 }
 0x826   : > { %v7660_v56 = vmul.f32 %v7628_v37, %v6828_v50  ;;  %v7501_v2 = vsub.f32 1.0, %v7469_v1  ;;  %v13020_v46 = vadd.f32 %v12685_v21, %v14116_v54  ;;  %v7375_v11 = vmul.f32 %v7343_v38, %v12953_v17  ;;  %v8301_v1 = vpop.f32.mrf.mxu0 }
 0x827   : > { %v7278_v15 = vadd.f32 0.2548296, %v7246_v28  ;;  %9040 = vrcp.f32 %v6960_v7  ;;  %v7344_v19 = vsub.f32 0.0, %v6896_v22  ;;  %v13028_v18 = vmul.f32 0.70710677, %v13013_v45  ;;  %v14118_v7 = vld [vmem:[#allocation92_spill] sm:$0xff] }
 0x828   : > { %7692 = vst.msk [vmem:[%s12908_s14 + $0x30] sm:$0xff] %vm943_vm1, %v7660_v56  ;;  %v7565_v25 = vsub.f32 0.0, %v7501_v2  ;;  %v6829_v51 = vmul.f32 0.5, %v12831_v4  ;;  %v13032_v12 = vmul.f32 0.70710677, %v13016_v59  ;;  %v8296_v16 = vadd.f32 %v8295_v6, %v12965_v27  ;;  %v8303_v36 = vpop.f32.mrf.mxu0 }
 0x829   : > { %v7310_v13 = vmul.f32 %v12955_v53, %v7278_v15  ;;  %v6897_v53 = vand.u32 2147483647, %v13028_v18  ;;  %v13039_v50 = vadd.f32 %v6715_v52, %v12763_v32  ;;  %v13043_v4 = vadd.f32 %v14117_v5, %v12685_v21  ;;  %v14119_v52 = vld [vmem:[#allocation93_spill] sm:$0xff] }
 0x82a   : > { %v7597_v29 = vsel %vm7533_vm11, %v7501_v2, %v7565_v25  ;;  %v7416_v41 = vmul.f32 1.442695, %v7375_v11  ;;  %v6898_v27 = vand.u32 2147483647, %v13032_v12  ;;  %v7376_v57 = vmul.f32 %v7344_v19, %v6896_v22 }
 0x82b   : > { %v13035_v17 = vpop.eup %9038  ;;  %v7629_v26 = vadd.f32 1.0, %v7597_v29  ;;  %v7470_v63 = vmul.f32 %v9037_v62, %v7310_v13  ;;  %v6929_v10 = vmul.f32 0.3275911, %v6897_v53  ;;  %v6830_v14 = vmul.f32 0.5, %v12845_v44  ;;  %v13070_v13 = vpop.f32.mrf.mxu1 }
 0x82c   : > { %v7055_v23 = vmul.f32 1.0614054, %v13035_v17  ;;  %v6930_v37 = vmul.f32 0.3275911, %v6898_v27  ;;  %v6559_v32 = vadd.f32 %v8296_v16, %v12679_v35  ;;  %v13053_v28 = vmul.f32 0.70710677, %v13039_v50 }
 0x82d   : > { %v7661_v6 = vmul.f32 %v7629_v26, %v6829_v51  ;;  %v7502_v58 = vsub.f32 1.0, %v7470_v63  ;;  %v6961_v60 = vadd.f32 1.0, %v6929_v10  ;;  %9042 = vpow2.f32 %v7416_v41  ;;  %v6727_v10 = vpop.f32.mrf.mxu1 }
 0x82e   : > { %v7087_v30 = vadd.f32 -1.4531521, %v7055_v23  ;;  %v6962_v22 = vadd.f32 1.0, %v6930_v37  ;;  %v6720_v44 = vadd.f32 %v12960_v61, %v6559_v32  ;;  %v7418_v31 = vmul.f32 1.442695, %v7376_v57  ;;  %v14120_v61 = vld [vmem:[#allocation94_spill] sm:$0xff] }
 0x82f   : > { %7693 = vst.msk [vmem:[%s12908_s14 + $0x38] sm:$0xff] %vm943_vm1, %v7661_v6  ;;  %v7566_v38 = vsub.f32 0.0, %v7502_v58  ;;  %9044 = vrcp.f32 %v6961_v60  ;;  %v6899_v9 = vand.u32 2147483647, %v13053_v28  ;;  %v7345_v2 = vsub.f32 0.0, %v6897_v53 }
 0x830   : > { %v7119_v40 = vmul.f32 %v13035_v17, %v7087_v30  ;;  %9046 = vrcp.f32 %v6962_v22  ;;  %v13060_v15 = vadd.f32 %v12685_v21, %v14118_v7  ;;  %v13064_v54 = vadd.f32 %v14119_v52, %v12685_v21 }
 0x831   : > { %v7598_v49 = vsel %vm7534_vm12, %v7502_v58, %v7566_v38  ;;  %v13068_v25 = vadd.f32 %v12685_v21, %v14120_v61  ;;  %v6931_v11 = vmul.f32 0.3275911, %v6899_v9  ;;  %v7346_v51 = vsub.f32 0.0, %v6898_v27  ;;  %v8304_v58 = vpop.f32.mrf.mxu0 }
 0x832   : > { %v7630_v3 = vadd.f32 1.0, %v7598_v49  ;;  %v7151_v56 = vadd.f32 1.4214138, %v7119_v40  ;;  %v13074_v29 = vadd.f32 %v6720_v44, %v12748_v34  ;;  %v13079_v26 = vmul.f32 0.5, %v12923_v55 }
 0x833   : > { %v6963_v63 = vadd.f32 1.0, %v6931_v11  ;;  %v8299_v21 = vadd.f32 %v13010_v24, %v12995_v48  ;;  %v8302_v5 = vadd.f32 %v8301_v1, %v8300_v39  ;;  %9048 = vpow2.f32 %v7418_v31  ;;  %v13108_v49 = vpop.f32.mrf.mxu0 }
 0x834   : > { %v7662_v19 = vmul.f32 %v7630_v3, %v6830_v14  ;;  %v7183_v62 = vmul.f32 %v13035_v17, %v7151_v56  ;;  %v13076_v16 = vpop.eup %9040  ;;  %v7377_v6 = vmul.f32 %v7345_v2, %v6897_v53  ;;  %v13087_v34 = vmul.f32 0.5, %v12971_v47 }
 0x835   : > { %v7056_v41 = vmul.f32 1.0614054, %v13076_v16  ;;  %9050 = vrcp.f32 %v6963_v63  ;;  %v13090_v55 = vmul.f32 0.70710677, %v13074_v29  ;;  %v6562_v57 = vadd.f32 %v8299_v21, %v12679_v35 }
 0x836   : > { %7694 = vst.msk [vmem:[%s12908_s14 + $0x40] sm:$0xff] %vm943_vm1, %v7662_v19  ;;  %v7215_v23 = vadd.f32 -0.28449672, %v7183_v62  ;;  %v7378_v39 = vmul.f32 %v7346_v51, %v6898_v27  ;;  %v6567_v14 = vadd.f32 %v8302_v5, %v12679_v35  ;;  %v7347_v30 = vsub.f32 0.0, %v6899_v9  ;;  %v8307_v51 = vpop.f32.mrf.mxu0 }
 0x837   : > { %v7088_v24 = vadd.f32 -1.4531521, %v7056_v41  ;;  %v6900_v53 = vand.u32 2147483647, %v13090_v55  ;;  %v6723_v37 = vadd.f32 %v12989_v33, %v6562_v57  ;;  %v8305_v47 = vadd.f32 %v8304_v58, %v8303_v36  ;;  %v13110_v33 = vpop.f32.mrf.mxu1 }
 0x838   : > { %v7247_v48 = vmul.f32 %v13035_v17, %v7215_v23  ;;  %v7420_v38 = vmul.f32 1.442695, %v7377_v6  ;;  %v6728_v60 = vadd.f32 %v6727_v10, %v6567_v14  ;;  %vm7535_vm13 = vcmp.ge.f32.partialorder %v12940_v8, 0.0 }
 0x839   : > { %v7120_v1 = vmul.f32 %v13076_v16, %v7088_v24  ;;  %v13100_v40 = vmul.f32 0.5, %v13013_v45  ;;  %v13103_v27 = vmul.f32 0.5, %v13016_v59  ;;  %v6932_v22 = vmul.f32 0.3275911, %v6900_v53  ;;  %v6730_v63 = vpop.f32.mrf.mxu1 }
 0x83a   : > { %v7279_v32 = vadd.f32 0.2548296, %v7247_v48  ;;  %v13106_v44 = vadd.f32 %v6723_v37, %v12758_v42  ;;  %v7422_v56 = vmul.f32 1.442695, %v7378_v39  ;;  %v13114_v2 = vadd.f32 %v6728_v60, %v12772_v20  ;;  %v9043_v45 = vpop.eup %9042 }
 0x83b   : > { %v7152_v3 = vadd.f32 1.4214138, %v7120_v1  ;;  %v7379_v36 = vmul.f32 %v7347_v30, %v6899_v9  ;;  %v6964_v7 = vadd.f32 1.0, %v6932_v22  ;;  %v6570_v42 = vadd.f32 %v8305_v47, %v12679_v35 }
 0x83c   : > { %v7311_v31 = vmul.f32 %v13035_v17, %v7279_v32  ;;  %v13117_v59 = vmul.f32 0.70710677, %v13106_v44  ;;  %v13120_v52 = vpop.eup %9044  ;;  %9052 = vpow2.f32 %v7420_v38  ;;  %v13124_v17 = vmul.f32 0.70710677, %v13114_v2  ;;  %v8309_v32 = vpop.f32.mrf.mxu0 }
 0x83d   : > { %v7184_v11 = vmul.f32 %v13076_v16, %v7152_v3  ;;  %v13126_v19 = vpop.eup %9046  ;;  %v7057_v20 = vmul.f32 1.0614054, %v13120_v52  ;;  %9054 = vrcp.f32 %v6964_v7  ;;  %v7348_v9 = vsub.f32 0.0, %v6900_v53 }
 0x83e   : > { %v7471_v61 = vmul.f32 %v9043_v45, %v7311_v31  ;;  %v6901_v62 = vand.u32 2147483647, %v13117_v59  ;;  %v7058_v5 = vmul.f32 1.0614054, %v13126_v19  ;;  %9056 = vpow2.f32 %v7422_v56 }
 0x83f   : > { %v7216_v21 = vadd.f32 -0.28449672, %v7184_v11  ;;  %v7089_v23 = vadd.f32 -1.4531521, %v7057_v20  ;;  %v7424_v41 = vmul.f32 1.442695, %v7379_v36  ;;  %v6731_v58 = vadd.f32 %v6730_v63, %v6570_v42  ;;  %v8310_v63 = vpop.f32.mrf.mxu0 }
 0x840   : > { %v7503_v35 = vsub.f32 1.0, %v7471_v61  ;;  %v6933_v6 = vmul.f32 0.3275911, %v6901_v62  ;;  %v7090_v48 = vadd.f32 -1.4531521, %v7058_v5  ;;  %v9049_v39 = vpop.eup %9048  ;;  %v7380_v30 = vmul.f32 %v7348_v9, %v6900_v53  ;;  %v14121_v42 = vld [vmem:[#allocation60_spill] sm:$0xff] }
 0x841   : > { %v7248_v10 = vmul.f32 %v13076_v16, %v7216_v21  ;;  %v13133_v24 = vand.u32 2147483647, %v13124_v17  ;;  %v7121_v14 = vmul.f32 %v13120_v52, %v7089_v23  ;;  %v7349_v47 = vsub.f32 0.0, %v6901_v62 }
 0x842   : > { %v7567_v57 = vsub.f32 0.0, %v7503_v35  ;;  %v6965_v37 = vadd.f32 1.0, %v6933_v6  ;;  %v13136_v1 = vpop.eup %9050  ;;  %v7122_v22 = vmul.f32 %v13126_v19, %v7090_v48  ;;  %vm7536_vm14 = vcmp.ge.f32.partialorder %v12981_v0, 0.0 }
 0x843   : > { %v7280_v60 = vadd.f32 0.2548296, %v7248_v10  ;;  %v6934_v31 = vmul.f32 0.3275911, %v13133_v24  ;;  %v7153_v56 = vadd.f32 1.4214138, %v7121_v14  ;;  %v13146_v8 = vadd.f32 %v6731_v58, %v14121_v42 }
 0x844   : > { %v7599_v38 = vsel %vm7535_vm13, %v7503_v35, %v7567_v57  ;;  %v7059_v53 = vmul.f32 1.0614054, %v13136_v1  ;;  %9058 = vrcp.f32 %v6965_v37  ;;  %v7154_v36 = vadd.f32 1.4214138, %v7122_v22  ;;  %v13172_v37 = vld [vmem:[%s13649_s12] ss:$0 sm:$0xff] }
 0x845   : > { %v7631_v3 = vadd.f32 1.0, %v7599_v38  ;;  %v7312_v45 = vmul.f32 %v13076_v16, %v7280_v60  ;;  %v6966_v7 = vadd.f32 1.0, %v6934_v31  ;;  %v7185_v11 = vmul.f32 %v13120_v52, %v7153_v56 }
 0x846   : > { %v7091_v20 = vadd.f32 -1.4531521, %v7059_v53  ;;  %v7426_v9 = vmul.f32 1.442695, %v7380_v30  ;;  %v7186_v21 = vmul.f32 %v13126_v19, %v7154_v36  ;;  %9060 = vpow2.f32 %v7424_v41 }
 0x847   : > { %v7663_v61 = vmul.f32 %v7631_v3, %v13079_v26  ;;  %v7472_v35 = vmul.f32 %v9049_v39, %v7312_v45  ;;  %v8308_v5 = vadd.f32 %v8307_v51, %v13108_v49  ;;  %v7217_v16 = vadd.f32 -0.28449672, %v7185_v11  ;;  %v13163_v51 = vpop.f32.mrf.mxu0 }
 0x848   : > { %v7123_v23 = vmul.f32 %v13136_v1, %v7091_v20  ;;  %v7381_v6 = vmul.f32 %v7349_v47, %v6901_v62  ;;  %9062 = vrcp.f32 %v6966_v7  ;;  %v7218_v26 = vadd.f32 -0.28449672, %v7186_v21 }
 0x849   : > { %7695 = vst.msk [vmem:[%s12908_s14 + $0x48] sm:$0xff] %vm943_vm1, %v7663_v61  ;;  %v7504_v58 = vsub.f32 1.0, %v7472_v35  ;;  %v13156_v57 = vmul.f32 0.5, %v13039_v50  ;;  %v13159_v10 = vmul.f32 0.70710677, %v13146_v8  ;;  %v9053_v48 = vpop.eup %9052  ;;  %v7249_v41 = vmul.f32 %v13120_v52, %v7217_v16  ;;  %v13182_v20 = vpop.f32.mrf.mxu0 }
 0x84a   : > { %v7155_v39 = vadd.f32 1.4214138, %v7123_v23  ;;  %9064 = vpow2.f32 %v7426_v9  ;;  %v7350_v49 = vsub.f32 0.0, %v13133_v24  ;;  %v13165_v14 = vpop.eup %9054  ;;  %v7250_v30 = vmul.f32 %v13126_v19, %v7218_v26 }
 0x84b   : > { %v7568_v62 = vsub.f32 0.0, %v7504_v58  ;;  %v6903_v50 = vand.u32 2147483647, %v13159_v10  ;;  %v6575_v47 = vadd.f32 %v13172_v37, %v8308_v5  ;;  %v9057_v38 = vpop.eup %9056  ;;  %v7281_v60 = vadd.f32 0.2548296, %v7249_v41 }
 0x84c   : > { %v7187_v22 = vmul.f32 %v13136_v1, %v7155_v39  ;;  %v7060_v31 = vmul.f32 1.0614054, %v13165_v14  ;;  %v7428_v3 = vmul.f32 1.442695, %v7381_v6  ;;  %vm7537_vm15 = vcmp.ge.f32.partialorder %v13028_v18, 0.0 }
 0x84d   : > { %v7600_v56 = vsel %vm7536_vm14, %v7504_v58, %v7568_v62  ;;  %v7282_v53 = vadd.f32 0.2548296, %v7250_v30  ;;  %v6935_v45 = vmul.f32 0.3275911, %v6903_v50  ;;  %v8311_v36 = vadd.f32 %v8310_v63, %v8309_v32  ;;  %v14122_v58 = vld [vmem:[#allocation58_spill] sm:$0xff] }
 0x84e   : > { %v7632_v7 = vadd.f32 1.0, %v7600_v56  ;;  %v7313_v42 = vmul.f32 %v13120_v52, %v7281_v60  ;;  %vm7538_vm8 = vcmp.ge.f32.partialorder %v13032_v12, 0.0  ;;  %v7219_v61 = vadd.f32 -0.28449672, %v7187_v22 }
 0x84f   : > { %v7092_v11 = vadd.f32 -1.4531521, %v7060_v31  ;;  %v7314_v9 = vmul.f32 %v13126_v19, %v7282_v53  ;;  %v7382_v0 = vmul.f32 %v7350_v49, %v13133_v24  ;;  %v6967_v35 = vadd.f32 1.0, %v6935_v45 }
 0x850   : > { %v6736_v21 = vadd.f32 %v13070_v13, %v6575_v47  ;;  %v7664_v5 = vmul.f32 %v7632_v7, %v13087_v34  ;;  %v7473_v32 = vmul.f32 %v9053_v48, %v7313_v42  ;;  %v7251_v63 = vmul.f32 %v13136_v1, %v7219_v61  ;;  %v13198_v48 = vpop.f32.mrf.mxu0 }
 0x851   : > { %v7124_v52 = vmul.f32 %v13165_v14, %v7092_v11  ;;  %v13190_v16 = vpop.eup %9058  ;;  %v7474_v23 = vmul.f32 %v9057_v38, %v7314_v9  ;;  %9066 = vrcp.f32 %v6967_v35  ;;  %v7351_v6 = vsub.f32 0.0, %v6903_v50 }
 0x852   : > { %v13193_v26 = vadd.f32 %v6736_v21, %v14122_v58  ;;  %7696 = vst.msk [vmem:[%s12908_s14 + $0x50] sm:$0xff] %vm943_vm1, %v7664_v5  ;;  %v7505_v19 = vsub.f32 1.0, %v7473_v32  ;;  %v7283_v24 = vadd.f32 0.2548296, %v7251_v63  ;;  %v6578_v34 = vadd.f32 %v13172_v37, %v8311_v36  ;;  %v13218_v5 = vpop.f32.mrf.mxu1 }
 0x853   : > { %v7156_v13 = vadd.f32 1.4214138, %v7124_v52  ;;  %v7506_v41 = vsub.f32 1.0, %v7474_v23  ;;  %vm7539_vm3 = vcmp.ge.f32.partialorder %v13053_v28, 0.0  ;;  %v7061_v39 = vmul.f32 1.0614054, %v13190_v16  ;;  %v9061_v62 = vpop.eup %9060 }
 0x854   : > { %9068 = vpow2.f32 %v7428_v3  ;;  %v7430_v49 = vmul.f32 1.442695, %v7382_v0  ;;  %v7569_v30 = vsub.f32 0.0, %v7505_v19  ;;  %v7315_v47 = vmul.f32 %v13136_v1, %v7283_v24  ;;  %v8316_v1 = vpop.f32.mrf.mxu0 }
 0x855   : > { %v7188_v38 = vmul.f32 %v13165_v14, %v7156_v13  ;;  %v13205_v60 = vmul.f32 0.70710677, %v13193_v26  ;;  %v13207_v22 = vpop.eup %9062  ;;  %v7570_v31 = vsub.f32 0.0, %v7506_v41  ;;  %v7093_v56 = vadd.f32 -1.4531521, %v7061_v39 }
 0x856   : > { %v7383_v53 = vmul.f32 %v7351_v6, %v6903_v50  ;;  %v6739_v45 = vadd.f32 %v13110_v33, %v6578_v34  ;;  %v7601_v3 = vsel %vm7537_vm15, %v7505_v19, %v7569_v30  ;;  %v7475_v36 = vmul.f32 %v9061_v62, %v7315_v47  ;;  %v13223_v19 = vpop.f32.mrf.mxu0  ;;  %v6743_v30 = vpop.f32.mrf.mxu1 }
 0x857   : > { %v7220_v7 = vadd.f32 -0.28449672, %v7188_v38  ;;  %v7062_v42 = vmul.f32 1.0614054, %v13207_v22  ;;  %v9065_v61 = vpop.eup %9064  ;;  %v7633_v11 = vadd.f32 1.0, %v7601_v3  ;;  %v7602_v9 = vsel %vm7538_vm8, %v7506_v41, %v7570_v31 }
 0x858   : > { %v7125_v0 = vmul.f32 %v13190_v16, %v7093_v56  ;;  %v6904_v50 = vand.u32 2147483647, %v13205_v60  ;;  %v7634_v35 = vadd.f32 1.0, %v7602_v9  ;;  %v7507_v33 = vsub.f32 1.0, %v7475_v36  ;;  %v8319_v3 = vpop.f32.mrf.mxu0 }
 0x859   : > { %v7252_v18 = vmul.f32 %v13165_v14, %v7220_v7  ;;  %v7094_v21 = vadd.f32 -1.4531521, %v7062_v42  ;;  %v7665_v32 = vmul.f32 %v7633_v11, %v13100_v40  ;;  %9070 = vpow2.f32 %v7430_v49  ;;  %v14123_v49 = vld [vmem:[#allocation59_spill] sm:$0xff]  ;;  %v13250_v11 = vpop.f32.mrf.mxu1 }
 0x85a   : > { %v7157_v63 = vadd.f32 1.4214138, %v7125_v0  ;;  %v6936_v52 = vmul.f32 0.3275911, %v6904_v50  ;;  %v7666_v12 = vmul.f32 %v7634_v35, %v13103_v27  ;;  %v7571_v23 = vsub.f32 0.0, %v7507_v33 }
 0x85b   : > { %v7284_v6 = vadd.f32 0.2548296, %v7252_v18  ;;  %v7126_v58 = vmul.f32 %v13207_v22, %v7094_v21  ;;  %7697 = vst.msk [vmem:[%s12908_s14 + $0x58] sm:$0xff] %vm943_vm1, %v7665_v32  ;;  %v6836_v24 = vmul.f32 0.5, %v13074_v29  ;;  %v7432_v34 = vmul.f32 1.442695, %v7383_v53 }
 0x85c   : > { %v7189_v13 = vmul.f32 %v13190_v16, %v7157_v63  ;;  %v6968_v41 = vadd.f32 1.0, %v6936_v52  ;;  %7698 = vst.msk [vmem:[%s12908_s14 + $0x60] sm:$0xff] %vm943_vm1, %v7666_v12  ;;  %v7603_v40 = vsel %vm7539_vm3, %v7507_v33, %v7571_v23  ;;  %v13235_v62 = vadd.f32 %v6739_v45, %v14123_v49  ;;  %v8321_v63 = vpop.f32.mrf.mxu0 }
 0x85d   : > { %v7316_v27 = vmul.f32 %v13165_v14, %v7284_v6  ;;  %v7158_v39 = vadd.f32 1.4214138, %v7126_v58  ;;  %v7635_v47 = vadd.f32 1.0, %v7603_v40  ;;  %v8314_v29 = vadd.f32 %v13182_v20, %v13163_v51 }
 0x85e   : > { %v7221_v38 = vadd.f32 -0.28449672, %v7189_v13  ;;  %9072 = vrcp.f32 %v6968_v41  ;;  %v13239_v31 = vpop.eup %9066  ;;  %v7352_v53 = vsub.f32 0.0, %v6904_v50  ;;  %v13243_v14 = vmul.f32 0.70710677, %v13235_v62 }
 0x85f   : > { %v7476_v56 = vmul.f32 %v9065_v61, %v7316_v27  ;;  %v7190_v28 = vmul.f32 %v13207_v22, %v7158_v39  ;;  %v7667_v45 = vmul.f32 %v7635_v47, %v13156_v57  ;;  %vm7540_vm9 = vcmp.ge.f32.partialorder %v13090_v55, 0.0  ;;  %v8322_v55 = vpop.f32.mrf.mxu0 }
 0x860   : > { %v7253_v36 = vmul.f32 %v13190_v16, %v7221_v38  ;;  %v7063_v7 = vmul.f32 1.0614054, %v13239_v31  ;;  %9074 = vpow2.f32 %v7432_v34  ;;  %v6905_v61 = vand.u32 2147483647, %v13243_v14 }
 0x861   : > { %v9069_v51 = vpop.eup %9068  ;;  %v7508_v20 = vsub.f32 1.0, %v7476_v56  ;;  %v7222_v42 = vadd.f32 -0.28449672, %v7190_v28  ;;  %7699 = vst.msk [vmem:[%s12908_s14 + $0x68] sm:$0xff] %vm943_vm1, %v7667_v45  ;;  %v6583_v57 = vadd.f32 %v13172_v37, %v8314_v29  ;;  %v8317_v35 = vadd.f32 %v8316_v1, %v13198_v48  ;;  %v6746_v1 = vpop.f32.mrf.mxu1 }
 0x862   : > { %v7285_v9 = vadd.f32 0.2548296, %v7253_v36  ;;  %v7095_v0 = vadd.f32 -1.4531521, %v7063_v7  ;;  %v7384_v21 = vmul.f32 %v7352_v53, %v6904_v50  ;;  %v6937_v32 = vmul.f32 0.3275911, %v6905_v61 }
 0x863   : > { %v7572_v33 = vsub.f32 0.0, %v7508_v20  ;;  %v7254_v18 = vmul.f32 %v13207_v22, %v7222_v42  ;;  %v6744_v23 = vadd.f32 %v6743_v30, %v6583_v57  ;;  %v6586_v6 = vadd.f32 %v13172_v37, %v8317_v35 }
 0x864   : > { %v7317_v52 = vmul.f32 %v13190_v16, %v7285_v9  ;;  %v7127_v12 = vmul.f32 %v13239_v31, %v7095_v0  ;;  %v6837_v13 = vmul.f32 0.5, %v13106_v44  ;;  %v6969_v48 = vadd.f32 1.0, %v6937_v32 }
 0x865   : > { %v7604_v58 = vsel %vm7540_vm9, %v7508_v20, %v7572_v33  ;;  %v7286_v34 = vadd.f32 0.2548296, %v7254_v18  ;;  %v13264_v27 = vadd.f32 %v6744_v23, %v13020_v46  ;;  %v7434_v49 = vmul.f32 1.442695, %v7384_v21 }
 0x866   : > { %v7636_v41 = vadd.f32 1.0, %v7604_v58  ;;  %v7477_v40 = vmul.f32 %v9069_v51, %v7317_v52  ;;  %v7159_v50 = vadd.f32 1.4214138, %v7127_v12  ;;  %v9071_v16 = vpop.eup %9070  ;;  %9076 = vrcp.f32 %v6969_v48  ;;  %v8324_v51 = vpop.f32.mrf.mxu0 }
 0x867   : > { %v7318_v39 = vmul.f32 %v13207_v22, %v7286_v34  ;;  %v6747_v30 = vadd.f32 %v6746_v1, %v6586_v6  ;;  %v6838_v44 = vmul.f32 0.5, %v13114_v2  ;;  %v7353_v28 = vsub.f32 0.0, %v6905_v61  ;;  %v13303_v1 = vld [vmem:[%s13645_s8] ss:$0 sm:$0xff] }
 0x868   : > { %v7668_v47 = vmul.f32 %v7636_v41, %v6836_v24  ;;  %v7509_v38 = vsub.f32 1.0, %v7477_v40  ;;  %v7191_v29 = vmul.f32 %v13239_v31, %v7159_v50  ;;  %v13270_v53 = vmul.f32 0.70710677, %v13264_v27  ;;  %v8325_v6 = vpop.f32.mrf.mxu0  ;;  %v14126_v40 = vld [vmem:[#allocation97_spill] sm:$0xff] }
 0x869   : > { %v7478_v56 = vmul.f32 %v9071_v16, %v7318_v39  ;;  %v13273_v46 = vadd.f32 %v6747_v30, %v13060_v15  ;;  %vm7541_vm0 = vcmp.ge.f32.partialorder %v13117_v59, 0.0  ;;  %vm7542_vm2 = vcmp.ge.f32.partialorder %v13124_v17, 0.0  ;;  %v14127_v30 = vld [vmem:[#allocation98_spill] sm:$0xff] }
 0x86a   : > { %7700 = vst.msk [vmem:[%s12908_s14 + $0x70] sm:$0xff] %vm943_vm1, %v7668_v47  ;;  %v7573_v22 = vsub.f32 0.0, %v7509_v38  ;;  %v7223_v24 = vadd.f32 -0.28449672, %v7191_v29  ;;  %9078 = vpow2.f32 %v7434_v49  ;;  %v13282_v36 = vand.u32 2147483647, %v13270_v53  ;;  %v13323_v47 = vpop.f32.mrf.mxu1 }
 0x86b   : > { %v13279_v45 = vpop.eup %9072  ;;  %v7510_v2 = vsub.f32 1.0, %v7478_v56  ;;  %v8320_v7 = vadd.f32 %v8319_v3, %v13223_v19  ;;  %v13288_v59 = vmul.f32 0.70710677, %v13273_v46  ;;  %v7385_v57 = vmul.f32 %v7353_v28, %v6905_v61  ;;  %v8327_v28 = vpop.f32.mrf.mxu0 }
 0x86c   : > { %v7605_v15 = vsel %vm7541_vm0, %v7509_v38, %v7573_v22  ;;  %v7255_v20 = vmul.f32 %v13239_v31, %v7223_v24  ;;  %v7064_v42 = vmul.f32 1.0614054, %v13279_v45  ;;  %v6938_v35 = vmul.f32 0.3275911, %v13282_v36 }
 0x86d   : > { %v7637_v9 = vadd.f32 1.0, %v7605_v15  ;;  %v7574_v0 = vsub.f32 0.0, %v7510_v2  ;;  %v9075_v33 = vpop.eup %9074  ;;  %v13292_v19 = vand.u32 2147483647, %v13288_v59  ;;  %v8323_v3 = vadd.f32 %v8322_v55, %v8321_v63  ;;  %v14124_v63 = vld [vmem:[#allocation95_spill] sm:$0xff] }
 0x86e   : > { %v7287_v18 = vadd.f32 0.2548296, %v7255_v20  ;;  %v7096_v21 = vadd.f32 -1.4531521, %v7064_v42  ;;  %v6970_v12 = vadd.f32 1.0, %v6938_v35  ;;  %v6591_v23 = vadd.f32 %v13172_v37, %v8320_v7  ;;  %v6759_v35 = vpop.f32.mrf.mxu1 }
 0x86f   : > { %v7669_v32 = vmul.f32 %v7637_v9, %v6837_v13  ;;  %v7606_v52 = vsel %vm7542_vm2, %v7510_v2, %v7574_v0  ;;  %v6939_v48 = vmul.f32 0.3275911, %v13292_v19  ;;  %v13307_v17 = vadd.f32 %v13303_v1, %v14124_v63  ;;  %v14125_v13 = vld [vmem:[#allocation96_spill] sm:$0xff] }
 0x870   : > { %v7638_v58 = vadd.f32 1.0, %v7606_v52  ;;  %v7319_v61 = vmul.f32 %v13239_v31, %v7287_v18  ;;  %v7128_v34 = vmul.f32 %v13279_v45, %v7096_v21  ;;  %v13311_v41 = vadd.f32 %v13303_v1, %v14125_v13  ;;  %v8328_v18 = vpop.f32.mrf.mxu0 }
 0x871   : > { %v13315_v31 = vadd.f32 %v13303_v1, %v14126_v40  ;;  %7701 = vst.msk [vmem:[%s12908_s14 + $0x78] sm:$0xff] %vm943_vm1, %v7669_v32  ;;  %9080 = vrcp.f32 %v6970_v12  ;;  %v6971_v49 = vadd.f32 1.0, %v6939_v48  ;;  %v13321_v55 = vadd.f32 %v13303_v1, %v14127_v30 }
 0x872   : > { %v7670_v50 = vmul.f32 %v7638_v58, %v6838_v44  ;;  %v7479_v16 = vmul.f32 %v9075_v33, %v7319_v61  ;;  %v7160_v39 = vadd.f32 1.4214138, %v7128_v34  ;;  %v7436_v38 = vmul.f32 1.442695, %v7385_v57  ;;  %v8330_v40 = vpop.f32.mrf.mxu0 }
 0x873   : > { %v6752_v29 = vadd.f32 %v13218_v5, %v6591_v23  ;;  %v6594_v56 = vadd.f32 %v13172_v37, %v8323_v3  ;;  %v13327_v22 = vpop.eup %9076  ;;  %9082 = vrcp.f32 %v6971_v49  ;;  %v8326_v2 = vadd.f32 %v8325_v6, %v8324_v51 }
 0x874   : > { %7702 = vst.msk [vmem:[%s12908_s14 + $0x80] sm:$0xff] %vm943_vm1, %v7670_v50  ;;  %v7511_v44 = vsub.f32 1.0, %v7479_v16  ;;  %v7192_v24 = vmul.f32 %v13279_v45, %v7160_v39  ;;  %v7065_v7 = vmul.f32 1.0614054, %v13327_v22  ;;  %v7354_v15 = vsub.f32 0.0, %v13282_v36 }
 0x875   : > { %v13335_v20 = vadd.f32 %v6752_v29, %v13008_v43  ;;  %v6755_v5 = vadd.f32 %v13250_v11, %v6594_v56  ;;  %v6839_v42 = vmul.f32 0.5, %v13146_v8  ;;  %v6599_v57 = vadd.f32 %v13172_v37, %v8326_v2 }
 0x876   : > { %v7575_v9 = vsub.f32 0.0, %v7511_v44  ;;  %v7224_v0 = vadd.f32 -0.28449672, %v7192_v24  ;;  %vm7543_vm4 = vcmp.ge.f32.partialorder %v13159_v10, 0.0  ;;  %v7097_v33 = vadd.f32 -1.4531521, %v7065_v7  ;;  %v8331_v7 = vpop.f32.mrf.mxu0 }
 0x877   : > { %9084 = vpow2.f32 %v7436_v38  ;;  %v13342_v51 = vmul.f32 0.70710677, %v13335_v20  ;;  %v9079_v21 = vpop.eup %9078  ;;  %v13346_v11 = vadd.f32 %v6755_v5, %v13043_v4  ;;  %v6760_v8 = vadd.f32 %v6759_v35, %v6599_v57  ;;  %v14128_v4 = vld [vmem:[#allocation100_spill] sm:$0xff] }
 0x878   : > { %v7607_v43 = vsel %vm7543_vm4, %v7511_v44, %v7575_v9  ;;  %v7256_v3 = vmul.f32 %v13279_v45, %v7224_v0  ;;  %v7129_v52 = vmul.f32 %v13327_v22, %v7097_v33  ;;  %v7386_v10 = vmul.f32 %v7354_v15, %v13282_v36  ;;  %v13375_v44 = vpop.f32.mrf.mxu1 }
 0x879   : > { %v7639_v32 = vadd.f32 1.0, %v7607_v43  ;;  %v6908_v12 = vand.u32 2147483647, %v13342_v51  ;;  %v7355_v6 = vsub.f32 0.0, %v13292_v19  ;;  %v13353_v58 = vmul.f32 0.70710677, %v13346_v11 }
 0x87a   : > { %v7288_v23 = vadd.f32 0.2548296, %v7256_v3  ;;  %v13356_v61 = vadd.f32 %v6760_v8, %v13068_v25  ;;  %v13360_v34 = vadd.f32 %v13303_v1, %v14128_v4  ;;  %v7161_v63 = vadd.f32 1.4214138, %v7129_v52  ;;  %v6762_v43 = vpop.f32.mrf.mxu1 }
 0x87b   : > { %v7671_v48 = vmul.f32 %v7639_v32, %v6839_v42  ;;  %v6940_v13 = vmul.f32 0.3275911, %v6908_v12  ;;  %v6840_v36 = vmul.f32 0.5, %v13193_v26  ;;  %v6909_v16 = vand.u32 2147483647, %v13353_v58 }
 0x87c   : > { %v7320_v50 = vmul.f32 %v13279_v45, %v7288_v23  ;;  %v8329_v39 = vadd.f32 %v8328_v18, %v8327_v28  ;;  %v7193_v25 = vmul.f32 %v13327_v22, %v7161_v63  ;;  %v7438_v49 = vmul.f32 1.442695, %v7386_v10  ;;  %v8333_v10 = vpop.f32.mrf.mxu0 }
 0x87d   : > { %7703 = vst.msk [vmem:[%s12908_s14 + $0x88] sm:$0xff] %vm943_vm1, %v7671_v48  ;;  %v6972_v30 = vadd.f32 1.0, %v6940_v13  ;;  %v13369_v38 = vmul.f32 0.70710677, %v13356_v61  ;;  %vm7544_vm5 = vcmp.ge.f32.partialorder %v13205_v60, 0.0  ;;  %v7387_v26 = vmul.f32 %v7355_v6, %v13292_v19 }
 0x87e   : > { %v13371_v29 = vpop.eup %9080  ;;  %v7480_v56 = vmul.f32 %v9079_v21, %v7320_v50  ;;  %v6941_v45 = vmul.f32 0.3275911, %v6909_v16  ;;  %v7225_v28 = vadd.f32 -0.28449672, %v7193_v25  ;;  %v7356_v2 = vsub.f32 0.0, %v6908_v12 }
 0x87f   : > { %v7066_v24 = vmul.f32 1.0614054, %v13371_v29  ;;  %9086 = vrcp.f32 %v6972_v30  ;;  %v13379_v42 = vand.u32 2147483647, %v13369_v38  ;;  %v6602_v9 = vadd.f32 %v13172_v37, %v8329_v39 }
 0x880   : > { %v7512_v15 = vsub.f32 1.0, %v7480_v56  ;;  %v6973_v5 = vadd.f32 1.0, %v6941_v45  ;;  %v13382_v0 = vpop.eup %9082  ;;  %v13385_v19 = vmul.f32 0.5, %v13235_v62  ;;  %v7257_v57 = vmul.f32 %v13327_v22, %v7225_v28 }
 0x881   : > { %v7098_v35 = vadd.f32 -1.4531521, %v7066_v24  ;;  %9088 = vpow2.f32 %v7438_v49  ;;  %v7067_v18 = vmul.f32 1.0614054, %v13382_v0  ;;  %v7440_v21 = vmul.f32 1.442695, %v7387_v26  ;;  %v8334_v26 = vpop.f32.mrf.mxu0 }
 0x882   : > { %v7576_v33 = vsub.f32 0.0, %v7512_v15  ;;  %9090 = vrcp.f32 %v6973_v5  ;;  %v7289_v3 = vadd.f32 0.2548296, %v7257_v57  ;;  %v7388_v32 = vmul.f32 %v7356_v2, %v6908_v12 }
 0x883   : > { %v7130_v8 = vmul.f32 %v13371_v29, %v7098_v35  ;;  %v6942_v52 = vmul.f32 0.3275911, %v13379_v42  ;;  %v7099_v6 = vadd.f32 -1.4531521, %v7067_v18  ;;  %v7357_v4 = vsub.f32 0.0, %v6909_v16 }
 0x884   : > { %v9085_v23 = vpop.eup %9084  ;;  %v7608_v62 = vsel %vm7544_vm5, %v7512_v15, %v7576_v33  ;;  %v6763_v48 = vadd.f32 %v6762_v43, %v6602_v9  ;;  %v7321_v13 = vmul.f32 %v13327_v22, %v7289_v3  ;;  %9092 = vpow2.f32 %v7440_v21  ;;  %v8336_v3 = vpop.f32.mrf.mxu0 }
 0x885   : > { %v7640_v63 = vadd.f32 1.0, %v7608_v62  ;;  %v7162_v50 = vadd.f32 1.4214138, %v7130_v8  ;;  %v6974_v39 = vadd.f32 1.0, %v6942_v52  ;;  %v7131_v25 = vmul.f32 %v13382_v0, %v7099_v6 }
 0x886   : > { %v13396_v12 = vadd.f32 %v6763_v48, %v13311_v41  ;;  %v8332_v49 = vadd.f32 %v8331_v7, %v8330_v40  ;;  %v7481_v56 = vmul.f32 %v9085_v23, %v7321_v13  ;;  %v7442_v28 = vmul.f32 1.442695, %v7388_v32 }
 0x887   : > { %v7672_v30 = vmul.f32 %v7640_v63, %v6840_v36  ;;  %v7194_v60 = vmul.f32 %v13371_v29, %v7162_v50  ;;  %9094 = vrcp.f32 %v6974_v39  ;;  %v7163_v45 = vadd.f32 1.4214138, %v7131_v25 }
 0x888   : > { %v7389_v24 = vmul.f32 %v7357_v4, %v6909_v16  ;;  %v6607_v22 = vadd.f32 %v13172_v37, %v8332_v49  ;;  %v7513_v2 = vsub.f32 1.0, %v7481_v56  ;;  %vm7545_vm6 = vcmp.ge.f32.partialorder %v13243_v14, 0.0  ;;  %v8337_v49 = vpop.f32.mrf.mxu0 }
 0x889   : > { %7704 = vst.msk [vmem:[%s12908_s14 + $0x90] sm:$0xff] %vm943_vm1, %v7672_v30  ;;  %v7226_v15 = vadd.f32 -0.28449672, %v7194_v60  ;;  %v13404_v41 = vmul.f32 0.70710677, %v13396_v12  ;;  %v7195_v40 = vmul.f32 %v13382_v0, %v7163_v45  ;;  %v7358_v36 = vsub.f32 0.0, %v13379_v42 }
 0x88a   : > { %v6768_v7 = vadd.f32 %v13323_v47, %v6607_v22  ;;  %v8335_v5 = vadd.f32 %v8334_v26, %v8333_v10  ;;  %v7577_v9 = vsub.f32 0.0, %v7513_v2  ;;  %v13410_v16 = vmul.f32 0.5, %v13264_v27 }
 0x88b   : > { %v7258_v57 = vmul.f32 %v13371_v29, %v7226_v15  ;;  %v6911_v35 = vand.u32 2147483647, %v13404_v41  ;;  %v7227_v18 = vadd.f32 -0.28449672, %v7195_v40  ;;  %9096 = vpow2.f32 %v7442_v28 }
 0x88c   : > { %v13414_v33 = vpop.eup %9086  ;;  %v7444_v21 = vmul.f32 1.442695, %v7389_v24  ;;  %v13417_v43 = vadd.f32 %v6768_v7, %v13064_v54  ;;  %v7609_v47 = vsel %vm7545_vm6, %v7513_v2, %v7577_v9  ;;  %vm7546_vm7 = vcmp.ge.f32.partialorder %v13270_v53, 0.0 }
 0x88d   : > { %v7290_v8 = vadd.f32 0.2548296, %v7258_v57  ;;  %v7068_v27 = vmul.f32 1.0614054, %v13414_v33  ;;  %v6943_v32 = vmul.f32 0.3275911, %v6911_v35  ;;  %v7259_v23 = vmul.f32 %v13382_v0, %v7227_v18 }
 0x88e   : > { %v9089_v52 = vpop.eup %9088  ;;  %v7641_v10 = vadd.f32 1.0, %v7609_v47  ;;  %v7390_v62 = vmul.f32 %v7358_v36, %v13379_v42  ;;  %v6610_v6 = vadd.f32 %v13172_v37, %v8335_v5  ;;  %v13430_v63 = vmul.f32 0.70710677, %v13417_v43  ;;  %v13444_v5 = vpop.f32.mrf.mxu1 }
 0x88f   : > { %v13426_v54 = vpop.eup %9090  ;;  %v7322_v14 = vmul.f32 %v13371_v29, %v7290_v8  ;;  %v7100_v4 = vadd.f32 -1.4531521, %v7068_v27  ;;  %v6975_v48 = vadd.f32 1.0, %v6943_v32  ;;  %v7291_v50 = vadd.f32 0.2548296, %v7259_v23 }
 0x890   : > { %v7673_v13 = vmul.f32 %v7641_v10, %v13385_v19  ;;  %v7069_v39 = vmul.f32 1.0614054, %v13426_v54  ;;  %v7359_v25 = vsub.f32 0.0, %v6911_v35  ;;  %vm7547_vm10 = vcmp.ge.f32.partialorder %v13288_v59, 0.0 }
 0x891   : > { %v7482_v42 = vmul.f32 %v9089_v52, %v7322_v14  ;;  %v7132_v30 = vmul.f32 %v13414_v33, %v7100_v4  ;;  %9098 = vrcp.f32 %v6975_v48  ;;  %v6912_v29 = vand.u32 2147483647, %v13430_v63  ;;  %v9093_v26 = vpop.eup %9092 }
 0x892   : > { %7705 = vst.msk [vmem:[%s12908_s14 + $0x98] sm:$0xff] %vm943_vm1, %v7673_v13  ;;  %v7323_v56 = vmul.f32 %v13382_v0, %v7291_v50  ;;  %v7101_v60 = vadd.f32 -1.4531521, %v7069_v39  ;;  %9100 = vpow2.f32 %v7444_v21  ;;  %v7446_v19 = vmul.f32 1.442695, %v7390_v62  ;;  %v8339_v21 = vpop.f32.mrf.mxu0 }
 0x893   : > { %v7514_v45 = vsub.f32 1.0, %v7482_v42  ;;  %v7164_v28 = vadd.f32 1.4214138, %v7132_v30  ;;  %v6944_v24 = vmul.f32 0.3275911, %v6912_v29  ;;  %v8338_v22 = vadd.f32 %v8337_v49, %v8336_v3 }
 0x894   : > { %v13440_v2 = vpop.eup %9094  ;;  %v7483_v15 = vmul.f32 %v9093_v26, %v7323_v56  ;;  %v7133_v40 = vmul.f32 %v13426_v54, %v7101_v60  ;;  %v7391_v36 = vmul.f32 %v7359_v25, %v6911_v35  ;;  %v6771_v7 = vadd.f32 %v13375_v44, %v6610_v6  ;;  %v6775_v6 = vpop.f32.mrf.mxu1 }
 0x895   : > { %v7578_v9 = vsub.f32 0.0, %v7514_v45  ;;  %v7196_v0 = vmul.f32 %v13414_v33, %v7164_v28  ;;  %v7070_v57 = vmul.f32 1.0614054, %v13440_v2  ;;  %v6976_v18 = vadd.f32 1.0, %v6944_v24  ;;  %v8340_v48 = vpop.f32.mrf.mxu0 }
 0x896   : > { %v7515_v47 = vsub.f32 1.0, %v7483_v15  ;;  %v7165_v8 = vadd.f32 1.4214138, %v7133_v40  ;;  %9102 = vpow2.f32 %v7446_v19  ;;  %v13449_v3 = vadd.f32 %v6771_v7, %v13307_v17 }
 0x897   : > { %v7610_v35 = vsel %vm7546_vm7, %v7514_v45, %v7578_v9  ;;  %v7228_v27 = vadd.f32 -0.28449672, %v7196_v0  ;;  %v7102_v44 = vadd.f32 -1.4531521, %v7070_v57  ;;  %9104 = vrcp.f32 %v6976_v18  ;;  %v13470_v45 = vpop.f32.mrf.mxu1 }
 0x898   : > { %v7642_v32 = vadd.f32 1.0, %v7610_v35  ;;  %v7579_v52 = vsub.f32 0.0, %v7515_v47  ;;  %v7197_v10 = vmul.f32 %v13426_v54, %v7165_v8  ;;  %v6615_v23 = vadd.f32 %v13172_v37, %v8338_v22  ;;  %v9097_v62 = vpop.eup %9096  ;;  %v8342_v22 = vpop.f32.mrf.mxu0 }
 0x899   : > { %v7260_v14 = vmul.f32 %v13414_v33, %v7228_v27  ;;  %v7134_v17 = vmul.f32 %v13440_v2, %v7102_v44  ;;  %v7448_v4 = vmul.f32 1.442695, %v7391_v36  ;;  %v13458_v53 = vmul.f32 0.70710677, %v13449_v3 }
 0x89a   : > { %v7674_v13 = vmul.f32 %v7642_v32, %v13410_v16  ;;  %v7611_v50 = vsel %vm7547_vm10, %v7515_v47, %v7579_v52  ;;  %v7229_v39 = vadd.f32 -0.28449672, %v7197_v10  ;;  %v7360_v25 = vsub.f32 0.0, %v6912_v29  ;;  %v6778_v47 = vpop.f32.mrf.mxu1  ;;  %v8343_v44 = vpop.f32.mrf.mxu0 }
 0x89b   : > { %v6843_v49 = vmul.f32 0.5, %v13273_v46  ;;  %v7643_v42 = vadd.f32 1.0, %v7611_v50  ;;  %v7292_v30 = vadd.f32 0.2548296, %v7260_v14  ;;  %v7166_v56 = vadd.f32 1.4214138, %v7134_v17 }
 0x89c   : > { %7706 = vst.msk [vmem:[%s12908_s14 + $0xa0] sm:$0xff] %vm943_vm1, %v7674_v13  ;;  %v7261_v60 = vmul.f32 %v13426_v54, %v7229_v39  ;;  %v13468_v19 = vand.u32 2147483647, %v13458_v53  ;;  %v6776_v26 = vadd.f32 %v6775_v6, %v6615_v23  ;;  %v8341_v16 = vadd.f32 %v8340_v48, %v8339_v21 }
 0x89d   : > { %v7675_v59 = vmul.f32 %v7643_v42, %v6843_v49  ;;  %v6844_v28 = vmul.f32 0.5, %v13335_v20  ;;  %v7324_v46 = vmul.f32 %v13414_v33, %v7292_v30  ;;  %v7198_v24 = vmul.f32 %v13440_v2, %v7166_v56 }
 0x89e   : > { %v13475_v15 = vpop.eup %9098  ;;  %v7293_v40 = vadd.f32 0.2548296, %v7261_v60  ;;  %v7392_v36 = vmul.f32 %v7360_v25, %v6912_v29  ;;  %v6945_v7 = vmul.f32 0.3275911, %v13468_v19  ;;  %v13479_v9 = vadd.f32 %v6776_v26, %v13321_v55 }
 0x89f   : > { %v9101_v0 = vpop.eup %9100  ;;  %7707 = vst.msk [vmem:[%s12908_s14 + $0xa8] sm:$0xff] %vm943_vm1, %v7675_v59  ;;  %v7484_v57 = vmul.f32 %v9097_v62, %v7324_v46  ;;  %v7230_v18 = vadd.f32 -0.28449672, %v7198_v24  ;;  %v7071_v20 = vmul.f32 1.0614054, %v13475_v15  ;;  %v6618_v33 = vadd.f32 %v13172_v37, %v8341_v16 }
 0x8a0   : > { %vm7548_vm11 = vcmp.ge.f32.partialorder %v13342_v51, 0.0  ;;  %v7325_v21 = vmul.f32 %v13426_v54, %v7293_v40  ;;  %9106 = vpow2.f32 %v7448_v4  ;;  %v6977_v29 = vadd.f32 1.0, %v6945_v7 }
 0x8a1   : > { %v7516_v8 = vsub.f32 1.0, %v7484_v57  ;;  %v7262_v55 = vmul.f32 %v13440_v2, %v7230_v18  ;;  %v7103_v35 = vadd.f32 -1.4531521, %v7071_v20  ;;  %v13489_v27 = vmul.f32 0.70710677, %v13479_v9 }
 0x8a2   : > { %v7485_v32 = vmul.f32 %v9101_v0, %v7325_v21  ;;  %v7450_v52 = vmul.f32 1.442695, %v7392_v36  ;;  %9108 = vrcp.f32 %v6977_v29  ;;  %v6779_v10 = vadd.f32 %v6778_v47, %v6618_v33 }
 0x8a3   : > { %v9103_v23 = vpop.eup %9102  ;;  %v7580_v62 = vsub.f32 0.0, %v7516_v8  ;;  %v7294_v6 = vadd.f32 0.2548296, %v7262_v55  ;;  %v7135_v54 = vmul.f32 %v13475_v15, %v7103_v35  ;;  %v13493_v14 = vand.u32 2147483647, %v13489_v27 }
 0x8a4   : > { %v13495_v17 = vpop.eup %9104  ;;  %v6845_v4 = vmul.f32 0.5, %v13346_v11  ;;  %v7517_v48 = vsub.f32 1.0, %v7485_v32  ;;  %vm7549_vm12 = vcmp.ge.f32.partialorder %v13353_v58, 0.0  ;;  %v8344_v13 = vadd.f32 %v8343_v44, %v8342_v22  ;;  %v8345_v11 = vpop.f32.mrf.mxu0 }
 0x8a5   : > { %v7612_v50 = vsel %vm7548_vm11, %v7516_v8, %v7580_v62  ;;  %v7326_v39 = vmul.f32 %v13440_v2, %v7294_v6  ;;  %v7167_v25 = vadd.f32 1.4214138, %v7135_v54  ;;  %v7072_v49 = vmul.f32 1.0614054, %v13495_v17 }
 0x8a6   : > { %v7644_v42 = vadd.f32 1.0, %v7612_v50  ;;  %v7581_v30 = vsub.f32 0.0, %v7517_v48  ;;  %v6946_v56 = vmul.f32 0.3275911, %v13493_v14  ;;  %v13505_v60 = vadd.f32 %v6779_v10, %v13360_v34 }
 0x8a7   : > { %v7486_v26 = vmul.f32 %v9103_v23, %v7326_v39  ;;  %v7199_v16 = vmul.f32 %v13475_v15, %v7167_v25  ;;  %v7104_v59 = vadd.f32 -1.4531521, %v7072_v49  ;;  %9110 = vpow2.f32 %v7450_v52 }
 0x8a8   : > { %v7676_v51 = vmul.f32 %v7644_v42, %v6844_v28  ;;  %v7613_v2 = vsel %vm7549_vm12, %v7517_v48, %v7581_v30  ;;  %v7361_v46 = vsub.f32 0.0, %v13468_v19  ;;  %v6978_v24 = vadd.f32 1.0, %v6946_v56  ;;  %v8346_v28 = vpop.f32.mrf.mxu0 }
 0x8a9   : > { %v7645_v22 = vadd.f32 1.0, %v7613_v2  ;;  %v7518_v40 = vsub.f32 1.0, %v7486_v26  ;;  %v7231_v36 = vadd.f32 -0.28449672, %v7199_v16  ;;  %v7136_v7 = vmul.f32 %v13495_v17, %v7104_v59 }
 0x8aa   : > { %7708 = vst.msk [vmem:[%s12908_s14 + $0xb0] sm:$0xff] %vm943_vm1, %v7676_v51  ;;  %v6846_v34 = vmul.f32 0.5, %v13356_v61  ;;  %9112 = vrcp.f32 %v6978_v24  ;;  %v13516_v0 = vmul.f32 0.70710677, %v13505_v60  ;;  %v6623_v58 = vadd.f32 %v13172_v37, %v8344_v13  ;;  %v14129_v13 = vld [vmem:[#allocation99_spill] sm:$0xff] }
 0x8ab   : > { %v7677_v57 = vmul.f32 %v7645_v22, %v6845_v4  ;;  %v7582_v18 = vsub.f32 0.0, %v7518_v40  ;;  %v7263_v20 = vmul.f32 %v13475_v15, %v7231_v36  ;;  %v7168_v33 = vadd.f32 1.4214138, %v7136_v7 }
 0x8ac   : > { %vm7550_vm13 = vcmp.ge.f32.partialorder %v13369_v38, 0.0  ;;  %v7393_v21 = vmul.f32 %v7361_v46, %v13468_v19  ;;  %v6915_v29 = vand.u32 2147483647, %v13516_v0  ;;  %v6784_v61 = vadd.f32 %v13444_v5, %v6623_v58 }
 0x8ad   : > { %v9107_v47 = vpop.eup %9106  ;;  %7709 = vst.msk [vmem:[%s12908_s14 + $0xb8] sm:$0xff] %vm943_vm1, %v7677_v57  ;;  %v7614_v8 = vsel %vm7550_vm13, %v7518_v40, %v7582_v18  ;;  %v7295_v55 = vadd.f32 0.2548296, %v7263_v20  ;;  %v7200_v35 = vmul.f32 %v13495_v17, %v7168_v33  ;;  %v8347_v44 = vadd.f32 %v8346_v28, %v8345_v11 }
 0x8ae   : > { %v7646_v32 = vadd.f32 1.0, %v7614_v8  ;;  %v7362_v52 = vsub.f32 0.0, %v13493_v14  ;;  %v6947_v10 = vmul.f32 0.3275911, %v6915_v29  ;;  %v13529_v38 = vadd.f32 %v6784_v61, %v13315_v31 }
 0x8af   : > { %v13531_v19 = vpop.eup %9108  ;;  %v7327_v5 = vmul.f32 %v13475_v15, %v7295_v55  ;;  %v7232_v23 = vadd.f32 -0.28449672, %v7200_v35  ;;  %v6626_v62 = vadd.f32 %v13172_v37, %v8347_v44  ;;  %v7452_v4 = vmul.f32 1.442695, %v7393_v21 }
 0x8b0   : > { %v7678_v6 = vmul.f32 %v7646_v32, %v6846_v34  ;;  %v7073_v54 = vmul.f32 1.0614054, %v13531_v19  ;;  %v6979_v48 = vadd.f32 1.0, %v6947_v10  ;;  %v3952_v50 = vadd.f32 %v13303_v1, %v14129_v13 }
 0x8b1   : > { %v7487_v39 = vmul.f32 %v9107_v47, %v7327_v5  ;;  %v7264_v25 = vmul.f32 %v13495_v17, %v7232_v23  ;;  %v13540_v31 = vmul.f32 0.70710677, %v13529_v38  ;;  %v7394_v49 = vmul.f32 %v7362_v52, %v13493_v14 }
 0x8b2   : > { %7710 = vst.msk [vmem:[%s12908_s14 + $0xc0] sm:$0xff] %vm943_vm1, %v7678_v6  ;;  %v7105_v15 = vadd.f32 -1.4531521, %v7073_v54  ;;  %9114 = vrcp.f32 %v6979_v48  ;;  %v6787_v37 = vadd.f32 %v13470_v45, %v6626_v62  ;;  %v6847_v1 = vmul.f32 0.5, %v13396_v12 }
 0x8b3   : > { %v7519_v42 = vsub.f32 1.0, %v7487_v39  ;;  %v7296_v30 = vadd.f32 0.2548296, %v7264_v25  ;;  %v6916_v56 = vand.u32 2147483647, %v13540_v31  ;;  %9116 = vpow2.f32 %v7452_v4 }
 0x8b4   : > { %v9111_v11 = vpop.eup %9110  ;;  %v7137_v26 = vmul.f32 %v13531_v19, %v7105_v15  ;;  %v13549_v16 = vadd.f32 %v6787_v37, %v3952_v50  ;;  %vm7551_vm14 = vcmp.ge.f32.partialorder %v13404_v41, 0.0  ;;  %v7454_v45 = vmul.f32 1.442695, %v7394_v49 }
 0x8b5   : > { %v7583_v59 = vsub.f32 0.0, %v7519_v42  ;;  %v7328_v14 = vmul.f32 %v13495_v17, %v7296_v30  ;;  %v6948_v51 = vmul.f32 0.3275911, %v6916_v56  ;;  %v7363_v12 = vsub.f32 0.0, %v6915_v29 }
 0x8b6   : > { %v7169_v2 = vadd.f32 1.4214138, %v7137_v26  ;;  %v13554_v46 = vmul.f32 0.70710677, %v13549_v16  ;;  %vm7552_vm15 = vcmp.ge.f32.partialorder %v13430_v63, 0.0  ;;  %v6848_v55 = vmul.f32 0.5, %v13417_v43 }
 0x8b7   : > { %v9113_v24 = vpop.eup %9112  ;;  %v7615_v22 = vsel %vm7551_vm14, %v7519_v42, %v7583_v59  ;;  %v7488_v40 = vmul.f32 %v9111_v11, %v7328_v14  ;;  %v6980_v36 = vadd.f32 1.0, %v6948_v51  ;;  %v7395_v21 = vmul.f32 %v7363_v12, %v6915_v29 }
 0x8b8   : > { %v7647_v7 = vadd.f32 1.0, %v7615_v22  ;;  %v7201_v34 = vmul.f32 %v13531_v19, %v7169_v2  ;;  %v7074_v58 = vmul.f32 1.0614054, %v9113_v24  ;;  %v6917_v41 = vand.u32 2147483647, %v13554_v46 }
 0x8b9   : > { %v7520_v28 = vsub.f32 1.0, %v7488_v40  ;;  %9118 = vrcp.f32 %v6980_v36  ;;  %v7456_v5 = vmul.f32 1.442695, %v7395_v21  ;;  %v7364_v63 = vsub.f32 0.0, %v6916_v56 }
 0x8ba   : > { %v7679_v17 = vmul.f32 %v7647_v7, %v6847_v1  ;;  %v7233_v57 = vadd.f32 -0.28449672, %v7201_v34  ;;  %v7106_v18 = vadd.f32 -1.4531521, %v7074_v58  ;;  %v6949_v20 = vmul.f32 0.3275911, %v6917_v41 }
 0x8bb   : > { %v7584_v33 = vsub.f32 0.0, %v7520_v28  ;;  %9120 = vpow2.f32 %v7454_v45  ;;  %v7396_v43 = vmul.f32 %v7364_v63, %v6916_v56  ;;  %v7365_v15 = vsub.f32 0.0, %v6917_v41 }
 0x8bc   : > { %7711 = vst.msk [vmem:[%s12908_s14 + $0xc8] sm:$0xff] %vm943_vm1, %v7679_v17  ;;  %v7265_v61 = vmul.f32 %v13531_v19, %v7233_v57  ;;  %v7138_v47 = vmul.f32 %v9113_v24, %v7106_v18  ;;  %v6981_v8 = vadd.f32 1.0, %v6949_v20  ;;  %vm7553_vm8 = vcmp.ge.f32.partialorder %v13458_v53, 0.0 }
 0x8bd   : > { %v7616_v35 = vsel %vm7552_vm15, %v7520_v28, %v7584_v33  ;;  %v7458_v11 = vmul.f32 1.442695, %v7396_v43  ;;  %v7397_v14 = vmul.f32 %v7365_v15, %v6917_v41  ;;  %v6849_v56 = vmul.f32 0.5, %v13449_v3 }
 0x8be   : > { %v7648_v44 = vadd.f32 1.0, %v7616_v35  ;;  %v7297_v32 = vadd.f32 0.2548296, %v7265_v61  ;;  %v7170_v52 = vadd.f32 1.4214138, %v7138_v47  ;;  %9122 = vrcp.f32 %v6981_v8 }
 0x8bf   : > { %v9115_v10 = vpop.eup %9114  ;;  %9124 = vpow2.f32 %v7456_v5  ;;  %v7460_v28 = vmul.f32 1.442695, %v7397_v14  ;;  %vm7554_vm3 = vcmp.ge.f32.partialorder %v13489_v27, 0.0  ;;  %v6850_v61 = vmul.f32 0.5, %v13479_v9 }
 0x8c0   : > { %v7680_v23 = vmul.f32 %v7648_v44, %v6848_v55  ;;  %v7329_v29 = vmul.f32 %v13531_v19, %v7297_v32  ;;  %v7202_v62 = vmul.f32 %v9113_v24, %v7170_v52  ;;  %v7075_v6 = vmul.f32 1.0614054, %v9115_v10  ;;  %v9117_v54 = vpop.eup %9116 }
 0x8c1   : > { %9126 = vpow2.f32 %v7458_v11  ;;  %vm7555_vm9 = vcmp.ge.f32.partialorder %v13516_v0, 0.0  ;;  %vm7556_vm0 = vcmp.ge.f32.partialorder %v13540_v31, 0.0  ;;  %vm7557_vm2 = vcmp.ge.f32.partialorder %v13554_v46, 0.0 }
 0x8c2   : > { %7712 = vst.msk [vmem:[%s12908_s14 + $0xd0] sm:$0xff] %vm943_vm1, %v7680_v23  ;;  %v7489_v4 = vmul.f32 %v9117_v54, %v7329_v29  ;;  %v7234_v48 = vadd.f32 -0.28449672, %v7202_v62  ;;  %v7107_v13 = vadd.f32 -1.4531521, %v7075_v6  ;;  %9128 = vpow2.f32 %v7460_v28 }
 0x8c3   : > { %v6851_v6 = vmul.f32 0.5, %v13505_v60  ;;  %v6852_v60 = vmul.f32 0.5, %v13529_v38  ;;  %v6853_v31 = vmul.f32 0.5, %v13549_v16 }
 0x8c4   : > { %v7521_v50 = vsub.f32 1.0, %v7489_v4  ;;  %v7266_v39 = vmul.f32 %v9113_v24, %v7234_v48  ;;  %v7139_v25 = vmul.f32 %v9115_v10, %v7107_v13 }
 0x8c6   : > { %v9119_v49 = vpop.eup %9118  ;;  %v7585_v37 = vsub.f32 0.0, %v7521_v50  ;;  %v7298_v42 = vadd.f32 0.2548296, %v7266_v39  ;;  %v7171_v30 = vadd.f32 1.4214138, %v7139_v25 }
 0x8c7   : > { %v7076_v19 = vmul.f32 1.0614054, %v9119_v49 }
 0x8c8   : > { %v7617_v1 = vsel %vm7553_vm8, %v7521_v50, %v7585_v37  ;;  %v7330_v26 = vmul.f32 %v9113_v24, %v7298_v42  ;;  %v7203_v59 = vmul.f32 %v9115_v10, %v7171_v30  ;;  %v9121_v51 = vpop.eup %9120 }
 0x8c9   : > { %v7649_v2 = vadd.f32 1.0, %v7617_v1  ;;  %v7108_v45 = vadd.f32 -1.4531521, %v7076_v19 }
 0x8ca   : > { %v7490_v22 = vmul.f32 %v9121_v51, %v7330_v26  ;;  %v7235_v40 = vadd.f32 -0.28449672, %v7203_v59 }
 0x8cb   : > { %v9123_v12 = vpop.eup %9122  ;;  %v7681_v36 = vmul.f32 %v7649_v2, %v6849_v56  ;;  %v7140_v7 = vmul.f32 %v9119_v49, %v7108_v45 }
 0x8cc   : > { %v7522_v34 = vsub.f32 1.0, %v7490_v22  ;;  %v7267_v53 = vmul.f32 %v9115_v10, %v7235_v40  ;;  %v7077_v58 = vmul.f32 1.0614054, %v9123_v12  ;;  %v9125_v18 = vpop.eup %9124 }
 0x8cd   : > { %7713 = vst.msk [vmem:[%s12908_s14 + $0xd8] sm:$0xff] %vm943_vm1, %v7681_v36  ;;  %v7172_v24 = vadd.f32 1.4214138, %v7140_v7 }
 0x8ce   : > { %v7586_v17 = vsub.f32 0.0, %v7522_v34  ;;  %v7299_v41 = vadd.f32 0.2548296, %v7267_v53  ;;  %v7109_v57 = vadd.f32 -1.4531521, %v7077_v58  ;;  %v9127_v29 = vpop.eup %9126 }
 0x8cf   : > { %v7204_v3 = vmul.f32 %v9119_v49, %v7172_v24  ;;  %v9129_v39 = vpop.eup %9128 }
 0x8d0   : > { %v7618_v20 = vsel %vm7554_vm3, %v7522_v34, %v7586_v17  ;;  %v7331_v33 = vmul.f32 %v9115_v10, %v7299_v41  ;;  %v7141_v21 = vmul.f32 %v9123_v12, %v7109_v57 }
 0x8d1   : > { %v7650_v47 = vadd.f32 1.0, %v7618_v20  ;;  %v7236_v8 = vadd.f32 -0.28449672, %v7204_v3 }
 0x8d2   : > { %v7491_v55 = vmul.f32 %v9125_v18, %v7331_v33  ;;  %v7173_v35 = vadd.f32 1.4214138, %v7141_v21 }
 0x8d3   : > { %v7682_v44 = vmul.f32 %v7650_v47, %v6850_v61  ;;  %v7268_v32 = vmul.f32 %v9119_v49, %v7236_v8 }
 0x8d4   : > { %v7523_v52 = vsub.f32 1.0, %v7491_v55  ;;  %v7205_v5 = vmul.f32 %v9123_v12, %v7173_v35 }
 0x8d5   : > { %7714 = vst.msk [vmem:[%s12908_s14 + $0xe0] sm:$0xff] %vm943_vm1, %v7682_v44  ;;  %v7300_v27 = vadd.f32 0.2548296, %v7268_v32 }
 0x8d6   : > { %v7587_v63 = vsub.f32 0.0, %v7523_v52  ;;  %v7237_v23 = vadd.f32 -0.28449672, %v7205_v5 }
 0x8d7   : > { %v7332_v10 = vmul.f32 %v9119_v49, %v7300_v27 }
 0x8d8   : > { %v7619_v62 = vsel %vm7555_vm9, %v7523_v52, %v7587_v63  ;;  %v7269_v9 = vmul.f32 %v9123_v12, %v7237_v23 }
 0x8d9   : > { %v7651_v54 = vadd.f32 1.0, %v7619_v62  ;;  %v7492_v4 = vmul.f32 %v9127_v29, %v7332_v10 }
 0x8da   : > { %v7301_v48 = vadd.f32 0.2548296, %v7269_v9 }
 0x8db   : > { %v7683_v13 = vmul.f32 %v7651_v54, %v6851_v6  ;;  %v7524_v43 = vsub.f32 1.0, %v7492_v4 }
 0x8dc   : > { %v7333_v50 = vmul.f32 %v9123_v12, %v7301_v48 }
 0x8dd   : > { %7715 = vst.msk [vmem:[%s12908_s14 + $0xe8] sm:$0xff] %vm943_vm1, %v7683_v13  ;;  %v7588_v25 = vsub.f32 0.0, %v7524_v43 }
 0x8de   : > { %v7493_v0 = vmul.f32 %v9129_v39, %v7333_v50 }
 0x8df   : > { %v7620_v15 = vsel %vm7556_vm0, %v7524_v43, %v7588_v25 }
 0x8e0   : > { %v7652_v49 = vadd.f32 1.0, %v7620_v15  ;;  %v7525_v37 = vsub.f32 1.0, %v7493_v0 }
 0x8e2   : > { %v7684_v42 = vmul.f32 %v7652_v49, %v6852_v60  ;;  %v7589_v30 = vsub.f32 0.0, %v7525_v37 }
 0x8e4   : > { %7716 = vst.msk [vmem:[%s12908_s14 + $0xf0] sm:$0xff] %vm943_vm1, %v7684_v42  ;;  %v7621_v19 = vsel %vm7557_vm2, %v7525_v37, %v7589_v30 }
 0x8e5   : > { %v7653_v11 = vadd.f32 1.0, %v7621_v19 }
 0x8e7   : > { %v7685_v38 = vmul.f32 %v7653_v11, %v6853_v31 }
 0x8e9   : > { %7717 = vst.msk [vmem:[%s12908_s14 + $0xf8] sm:$0xff] %vm943_vm1, %v7685_v38 }
 0x8ea   : > { %9145 = shalt.err (!%p9142_p3)
}
 0x8eb   : > { %s9146_s27 = scalar_lea.hbm %s13589_s25, 4096  ;;  %s9150_s24 = scalar_lea.hbm %s13650_s13, 8192 }
 0x8ec   : > { %p9147_p4 = scmp.ne.s32.totalorder %s13589_s25, %s9146_s27  ;;  %p9151_p9 = scmp.lt.s32.totalorder %s13589_s25, %s13650_s13 }
 0x8ed   : > { %p9152_p10 = scmp.lt.s32.totalorder %s9150_s24, %s9146_s27 }
 0x8ee   : > { %p9148_p7 = pnand %p9147_p4, %p9315_p5 }
 0x8ef   : > { %p9153_p11 = por %p9152_p10, %p9151_p9 }
 0x8f0   : > { %p9149_p8 = pneg %p9148_p7 }
 0x8f2   : > { %p9154_p12 = pnand %p9153_p11, %p9149_p8 }
 0x8f4   : > { %9157 = shalt.err (!%p9154_p12)
}
 0x8f5   : > { %s9205_s20 = smov 128   ;;  %s9206_s30 = smov 8  }
 0x8f6   : > { %8572 = dma.vmem_to_hbm [thread:$0]  (%p9315_p5), %s13591_s15, 4096, %s13589_s25, %s13597_s29, %s9205_s20, %s9205_s20, %s9206_s30  }
 0x8f7 PF: > { %s14130_s19 = sld [smem:[#allocation5_spill]]  ;;  %p8578_p13 = scmp.ge.s32.totalorder %s9192_s28, 2 }
 0x8f9   : > { %p8575_p0 = pnand %p8578_p13, %p9319_p6 }
 0x8fb   : > { %p8576_p1 = pneg %p8575_p0 }
 0x8fd   : > { %s7747_s21 = sand.u32 1, %s14130_s19  }
 0x8fe   : > { %s7748_s27 = scalar_lea.sflag [#allocation3], %s7747_s21 }
 0x8ff   : > { %9175 = dma.done.wait (%p8576_p1), %s7748_s27, 4096  }
 0x900   : > { %9177 = vsyncadd (%p8576_p1), %s7748_s27, 4294963200  ;;  %s14132_s28 = sld [smem:[#allocation7_spill]]  ;;  %s14135_s25 = smov %s9184_s26 }
 0x901   : > { %s14133_s14 = sld [smem:[#allocation6_spill]] }
 0x902   : > { %s14134_s27 = sld [smem:[#allocation8_spill]] }
 0x906   : > { %p23_p2 = scmp.ge.s32.totalorder %s14132_s28, 4  }
 0x907   : > { %s14136_s26 = smov %s14133_s14 }
 0x908   :  { %25 = sbr.rel (!%p23_p2) target bundleno = 3 (0x3), region = 110 }
 0x90d   :  { %7753 = vsyncpa [#allocation3], 1 }
 0x90e   :  { %7755 = vsyncpa [#allocation3 + $0x1], 1 }

</bundles_post_ra>
